<compile_context>
chip_gen: v7x
topology: tpu7x:2x2x1
jax: 0.10.0
libtpu: 0.0.40
codegen_flags: <defaults>
</compile_context>

<pallas_src>
import math
import functools
import numpy as np

import jax
import jax.numpy as jnp
from jax.experimental import pallas as pl
from jax.experimental.pallas import tpu as pltpu

F32 = jnp.float32


# ----------------------------------------------------------------------------
# in-kernel math helpers (traced inside the Pallas kernel)
# ----------------------------------------------------------------------------
def _erf(x):
    # Abramowitz & Stegun 7.1.26 rational approximation, max abs err ~1.5e-7.
    a1, a2, a3, a4, a5 = 0.254829592, -0.284496736, 1.421413741, -1.453152027, 1.061405429
    p = 0.3275911
    sgn = jnp.where(x >= 0.0, 1.0, -1.0)
    ax = jnp.abs(x)
    t = pl.reciprocal(1.0 + p * ax, approx=True)       # EUP, off the VPU chain
    poly = ((((a5 * t + a4) * t + a3) * t + a2) * t + a1) * t
    return sgn * (1.0 - poly * jnp.exp(-ax * ax))


def _gelu_exact(x):
    return 0.5 * x * (1.0 + _erf(x * (1.0 / math.sqrt(2.0))))


def _layernorm(x, gamma, beta, eps):
    mu = jnp.mean(x, axis=-1, keepdims=True)
    var = jnp.mean((x - mu) ** 2, axis=-1, keepdims=True)
    return (x - mu) * jax.lax.rsqrt(var + eps) * gamma + beta


# ----------------------------------------------------------------------------
# Fused kernel: one batch block per grid step, whole forward in one body.
# ----------------------------------------------------------------------------
def fused_kernel(x_ref, emb_w_ref, peb_ref,
                 w_in_ref, b_in_ref, w_out_ref, ln_b_ref,
                 w1_ref, b1_ref, w2_ref,
                 gfbf_ref, dw1_ref, db1_ref, dw2_ref, db2_ref,
                 out_ref, *attw_refs,
                 num_heads, num_layers, batch_block, attn_width):
    H, L, BB, SP = num_heads, num_layers, batch_block, attn_width
    x_in = x_ref[...]                                   # (BB, S, K)
    _, S, K = x_in.shape
    D = peb_ref.shape[-1]
    hd = D // H
    R = BB * S

    # ---- embedding + positional encoding (emb bias folded into peb) ----
    x2 = x_in.reshape(R, K)
    if K == 1:
        # outer product as a VPU broadcast multiply, no degenerate-K MXU matmul
        src = x2 * emb_w_ref[...] + peb_ref[...]
    else:
        src = jnp.dot(x2, emb_w_ref[...], preferred_element_type=F32) + peb_ref[...]

    # ---- encoder layers (statically unrolled) ----
    for l in range(L):
        w_out_l = w_out_ref[l]      # (H, hd, D)
        ln_b = ln_b_ref[l]          # (6, D): [b_out, g1, be1, b2, g2, be2]

        # fused, lane-dense QKV projection: one (R, D) x (D, 3D) matmul
        # (1/sqrt(hd) already folded into the Q columns / bias)
        qkv = jnp.dot(src, w_in_ref[l], preferred_element_type=F32) + b_in_ref[l]

        # per-head scores + per-head V*W_out-slice (tiny hd=8 contractions are
        # inherent; the big projections above stay lane-dense)
        s_heads = []
        vproj_heads = []
        for h in range(H):
            q_h = qkv[:, h * hd:(h + 1) * hd].reshape(BB, S, hd)
            k_h = qkv[:, D + h * hd:D + (h + 1) * hd].reshape(BB, S, hd)
            s_heads.append(jnp.einsum('bqd,bkd->bqk', q_h, k_h,
                                      preferred_element_type=F32))   # (BB,S,S)
            vproj_heads.append(
                jnp.dot(qkv[:, 2 * D + h * hd:2 * D + (h + 1) * hd], w_out_l[h],
                        preferred_element_type=F32).reshape(BB, S, D))

        # one softmax pass over all (batch, head) pairs
        s = jnp.stack(s_heads, axis=1)                                # (BB,H,S,S)
        s = s - jnp.max(s, axis=-1, keepdims=True)
        e = jnp.exp(s)
        p = e * pl.reciprocal(jnp.sum(e, axis=-1, keepdims=True), approx=True)

        # concat-of-heads absorbed into ONE batched (S, H*S) x (H*S, D) matmul
        p_flat = jnp.concatenate([p[:, h] for h in range(H)], axis=-1)  # (BB,S,H*S)
        vproj = jnp.concatenate(vproj_heads, axis=1)                    # (BB,H*S,D)
        attn = jnp.einsum('bqx,bxm->bqm', p_flat, vproj,
                          preferred_element_type=F32).reshape(R, D)
        attn = attn + ln_b[0:1, :]                                      # + b_out

        # post-norm residual blocks (layer_norm_eps = 1e-6 as in the module)
        src = _layernorm(src + attn, ln_b[1:2, :], ln_b[2:3, :], 1e-6)
        h1 = _gelu_exact(jnp.dot(src, w1_ref[l], preferred_element_type=F32)
                         + b1_ref[l])
        ff = jnp.dot(h1, w2_ref[l], preferred_element_type=F32) + ln_b[3:4, :]
        src = _layernorm(src + ff, ln_b[4:5, :], ln_b[5:6, :], 1e-6)

        if attw_refs:   # gated: only when the caller asked for attention maps
            pa = jnp.mean(p, axis=1)                                    # (BB,S,S)
            if SP != S:   # pad key dim -> lane-dense (unmasked) store
                pa = jnp.concatenate(
                    [pa, jnp.zeros((BB, S, SP - S), dtype=F32)], axis=-1)
            attw_refs[0][0, l] = pa

    # ---- final LayerNorm (eps=1e-5) + mean/max pool + decoder MLP ----
    gfbf = gfbf_ref[...]
    y = _layernorm(src, gfbf[0:1, :], gfbf[1:2, :], 1e-5).reshape(BB, S, D)
    pooled = jnp.concatenate([jnp.mean(y, axis=1), jnp.max(y, axis=1)],
                             axis=-1)                                   # (BB, 2D)
    hdec = jnp.dot(pooled, dw1_ref[...], preferred_element_type=F32) + db1_ref[...]
    hsw = hdec * jnp.clip(hdec + 3.0, 0.0, 6.0) * (1.0 / 6.0)           # Hardswish
    out_ref[0] = (jnp.dot(hsw, dw2_ref[...], preferred_element_type=F32)
                  + db2_ref[...])                                       # (BB, CP)


# ----------------------------------------------------------------------------
# Wrapper: one fused pallas_call for the whole forward
# ----------------------------------------------------------------------------
def transformer_pallas(x, kp, num_heads, return_attn=False, batch_block=None,
                       single_buffer_weights=True):
    """x: (B, S, input_size) f32.  kp: kernel-ready params (prep_kernel_params)."""
    B, S, K = x.shape
    D = kp["peb"].shape[-1]
    H = num_heads
    hd = D // H
    L = kp["w_in"].shape[0]
    dff = kp["w1"].shape[-1]
    CP = kp["dw2"].shape[-1]
    C = kp["num_classes"]
    SP = ((S + 127) // 128) * 128           # lane-dense attention-map width

    # Batch blocking: default = whole batch in one step (best on single-TC
    # v5e/v6e at small B).  On v7x pass batch_block=ceil(B/2) (keeping
    # batch_block*S >= ~64 rows) so the two TensorCores each take a fat block.
    if batch_block is None:
        batch_block = B
    BB = max(1, min(batch_block, B))
    nsteps = -(-B // BB)
    Bp = nsteps * BB
    if Bp != B:
        x = jnp.concatenate([x, jnp.zeros((Bp - B, S, K), x.dtype)], axis=0)
    R = BB * S
    peb_tiled = jnp.tile(kp["peb"], (BB, 1))            # (BB*S, D), host-side

    def _build(buffered):
        def _w(shape):
            nd = len(shape)
            idx = lambda i, _n=nd: (0,) * _n
            if buffered:
                # constant block across the grid -> single-buffer it
                return pl.BlockSpec(shape, idx, pipeline_mode=pl.Buffered(1))
            return pl.BlockSpec(shape, idx)

        in_specs = [
            pl.BlockSpec((BB, S, K), lambda i: (i, 0, 0)),   # x
            _w((K, D)),                                      # emb_w
            _w((R, D)),                                      # peb (tiled)
            _w((L, D, 3 * D)), _w((L, 1, 3 * D)),            # w_in, b_in
            _w((L, H, hd, D)),                               # w_out (head-split)
            _w((L, 6, D)),                                   # b_out/g1/be1/b2/g2/be2
            _w((L, D, dff)), _w((L, 1, dff)), _w((L, dff, D)),  # w1, b1, w2
            _w((2, D)),                                      # gf, bf
            _w((2 * D, dff)), _w((1, dff)),                  # dw1, db1
            _w((dff, CP)), _w((1, CP)),                      # dw2, db2 (lane-padded)
        ]
        out_shapes = [jax.ShapeDtypeStruct((nsteps, BB, CP), F32)]
        out_specs = [pl.BlockSpec((1, BB, CP), lambda i: (i, 0, 0))]
        if return_attn:
            out_shapes.append(jax.ShapeDtypeStruct((nsteps, L, BB, S, SP), F32))
            out_specs.append(
                pl.BlockSpec((1, L, BB, S, SP), lambda i: (i, 0, 0, 0, 0)))

        return pl.pallas_call(
            functools.partial(fused_kernel, num_heads=H, num_layers=L,
                              batch_block=BB, attn_width=SP),
            out_shape=tuple(out_shapes),
            grid=(nsteps,),
            in_specs=in_specs,
            out_specs=tuple(out_specs),
            compiler_params=pltpu.CompilerParams(
                dimension_semantics=("parallel",)),
        )

    args = (x, kp["emb_w"], peb_tiled,
            kp["w_in"], kp["b_in"], kp["w_out"], kp["ln_b"],
            kp["w1"], kp["b1"], kp["w2"],
            kp["gfbf"], kp["dw1"], kp["db1"], kp["dw2"], kp["db2"])

    try:
        outs = _build(single_buffer_weights)(*args)
    except Exception:
        if not single_buffer_weights:
            raise
        # fallback if this JAX build rejects pipeline_mode=pl.Buffered(1)
        outs = _build(False)(*args)

    logits = outs[0].reshape(Bp, CP)[:B, :C]
    if return_attn:
        aw = outs[1]                                       # (nsteps, L, BB, S, SP)
        aw = jnp.transpose(aw, (1, 0, 2, 3, 4)).reshape(L, Bp, S, SP)[:, :B, :, :S]
        return logits, [aw[l] for l in range(L)]
    return logits


# ----------------------------------------------------------------------------
# One-time host-side weight preparation (lane-dense slabs)
# ----------------------------------------------------------------------------
def prep_kernel_params(params, num_heads, seq_len):
    D = params["emb_w"].shape[1]
    H = num_heads
    hd = D // H
    scale = 1.0 / math.sqrt(hd)
    layers = params["layers"]
    C = params["dw2"].shape[1]
    CP = ((C + 127) // 128) * 128

    w_in, b_in = [], []
    for lp in layers:
        w, b = lp["w_in"], lp["b_in"]
        w_in.append(jnp.concatenate([w[:, :D] * scale, w[:, D:]], axis=1))
        b_in.append(jnp.concatenate([b[:, :D] * scale, b[:, D:]], axis=1))

    return {
        "emb_w": params["emb_w"],                                  # (K, D)
        "peb": params["pe"][:seq_len] + params["emb_b"],           # (S, D)
        "w_in": jnp.stack(w_in),                                   # (L, D, 3D)
        "b_in": jnp.stack(b_in),                                   # (L, 1, 3D)
        "w_out": jnp.stack([lp["w_out"].reshape(H, hd, D) for lp in layers]),
        "ln_b": jnp.stack([jnp.concatenate(
            [lp["b_out"], lp["g1"], lp["be1"], lp["b2"], lp["g2"], lp["be2"]],
            axis=0) for lp in layers]),                            # (L, 6, D)
        "w1": jnp.stack([lp["w1"] for lp in layers]),              # (L, D, dff)
        "b1": jnp.stack([lp["b1"] for lp in layers]),              # (L, 1, dff)
        "w2": jnp.stack([lp["w2"] for lp in layers]),              # (L, dff, D)
        "gfbf": jnp.concatenate([params["gf"], params["bf"]], axis=0),  # (2, D)
        "dw1": params["dw1"],                                      # (2D, dff)
        "db1": params["db1"],                                      # (1, dff)
        "dw2": jnp.pad(params["dw2"], ((0, 0), (0, CP - C))),      # (dff, CP)
        "db2": jnp.pad(params["db2"], ((0, 0), (0, CP - C))),      # (1, CP)
        "num_classes": C,
    }


# ----------------------------------------------------------------------------
# Parameter construction (deterministic) + positional-encoding table
# ----------------------------------------------------------------------------
def make_positional_encoding(max_len, d_model):
    pos = np.arange(max_len, dtype=np.float32)[:, None]
    div = np.exp(np.arange(0, d_model, 2, dtype=np.float32) * (-np.log(10000.0) / d_model))
    pe = np.zeros((max_len, d_model), dtype=np.float32)
    pe[:, 0::2] = np.sin(pos * div)
    pe[:, 1::2] = np.cos(pos * div)
    return jnp.asarray(pe)


def init_params(key, input_size, model_size, num_classes, num_heads, num_layers, d_ff):
    D = model_size

    def nrm(k, shape, scale=0.05):
        return scale * jax.random.normal(k, shape, dtype=F32)

    keys = jax.random.split(key, 4 + num_layers)
    params = {
        "emb_w": nrm(keys[0], (input_size, D)),
        "emb_b": nrm(keys[1], (1, D)),
        "pe": make_positional_encoding(5000, D),
        "gf": jnp.ones((1, D), F32), "bf": jnp.zeros((1, D), F32),
        "layers": [],
    }
    for li in range(num_layers):
        lk = jax.random.split(keys[4 + li], 8)
        params["layers"].append({
            "w_in": nrm(lk[0], (D, 3 * D)), "b_in": nrm(lk[1], (1, 3 * D)),
            "w_out": nrm(lk[2], (D, D)), "b_out": nrm(lk[3], (1, D)),
            "g1": jnp.ones((1, D), F32), "be1": jnp.zeros((1, D), F32),
            "w1": nrm(lk[4], (D, d_ff)), "b1": nrm(lk[5], (1, d_ff)),
            "w2": nrm(lk[6], (d_ff, D)), "b2": nrm(lk[7], (1, D)),
            "g2": jnp.ones((1, D), F32), "be2": jnp.zeros((1, D), F32),
        })
    dk = jax.random.split(keys[2], 4)
    params["dw1"] = nrm(dk[0], (2 * D, d_ff))
    params["db1"] = nrm(dk[1], (1, d_ff))
    params["dw2"] = nrm(dk[2], (d_ff, num_classes))
    params["db2"] = nrm(dk[3], (1, num_classes))
    return params


# ----------------------------------------------------------------------------
# Pure-JAX reference mirroring the PyTorch semantics (batch-first layout)
# ----------------------------------------------------------------------------
def transformer_ref(x, params, num_heads):
    B, S, K = x.shape
    D = params["emb_w"].shape[1]
    hd = D // num_heads

    def ln(v, g, b, eps):
        mu = v.mean(-1, keepdims=True)
        var = ((v - mu) ** 2).mean(-1, keepdims=True)
        return (v - mu) / jnp.sqrt(var + eps) * g + b

    h = x @ params["emb_w"] + params["emb_b"]
    h = h + params["pe"][:S][None, :, :]
    attn_list = []
    for lp in params["layers"]:
        qkv = h @ lp["w_in"] + lp["b_in"]
        q, k, v = qkv[..., :D], qkv[..., D:2 * D], qkv[..., 2 * D:]
        q = q.reshape(B, S, num_heads, hd).transpose(0, 2, 1, 3)
        k = k.reshape(B, S, num_heads, hd).transpose(0, 2, 1, 3)
        v = v.reshape(B, S, num_heads, hd).transpose(0, 2, 1, 3)
        s = jnp.einsum("bhqd,bhkd->bhqk", q, k) / math.sqrt(hd)
        p = jax.nn.softmax(s, axis=-1)
        attn_list.append(p.mean(axis=1))
        o = jnp.einsum("bhqk,bhkd->bhqd", p, v).transpose(0, 2, 1, 3).reshape(B, S, D)
        o = o @ lp["w_out"] + lp["b_out"]
        h = ln(h + o, lp["g1"], lp["be1"], 1e-6)
        ffh = h @ lp["w1"] + lp["b1"]
        ffh = 0.5 * ffh * (1.0 + jax.scipy.special.erf(ffh / math.sqrt(2.0)))
        ff = ffh @ lp["w2"] + lp["b2"]
        h = ln(h + ff, lp["g2"], lp["be2"], 1e-6)
    h = ln(h, params["gf"], params["bf"], 1e-5)
    pooled = jnp.concatenate([h.mean(axis=1), h.max(axis=1)], axis=-1)
    d = pooled @ params["dw1"] + params["db1"]
    d = d * jnp.clip(d + 3.0, 0.0, 6.0) / 6.0
    return d @ params["dw2"] + params["db2"], attn_list


# ----------------------------------------------------------------------------
if __name__ == "__main__":
    # small shapes consistent with the module defaults:
    #   input_size=1, model_size=64, num_heads=8, d_ff=256, num_classes=2
    B, S = 2, 8
    input_size, model_size, num_heads, num_layers, d_ff, num_classes = 1, 64, 8, 2, 256, 2

    key = jax.random.PRNGKey(0)
    pkey, xkey = jax.random.split(key)
    params = init_params(pkey, input_size, model_size, num_classes,
                         num_heads, num_layers, d_ff)
    x = jax.random.normal(xkey, (B, S, input_size), dtype=F32)

    kp = prep_kernel_params(params, num_heads, S)    # one-time weight transform

    # default forward (get_weights=False): logits only, no attention stores
    out = jax.block_until_ready(transformer_pallas(x, kp, num_heads))

    # gated path: also returns per-layer head-averaged attention maps
    out_w, attw = transformer_pallas(x, kp, num_heads, return_attn=True)
    out_w = jax.block_until_ready(out_w)

    ref_out, ref_attw = transformer_ref(x, params, num_heads)
    ref_out = jax.block_until_ready(ref_out)

    # tolerance covers the A&S erf approximation and EUP approx reciprocals
    np.testing.assert_allclose(np.asarray(out), np.asarray(ref_out),
                               rtol=5e-3, atol=2e-3)
    np.testing.assert_allclose(np.asarray(out_w), np.asarray(ref_out),
                               rtol=5e-3, atol=2e-3)
    for li in range(num_layers):
        np.testing.assert_allclose(np.asarray(attw[li]), np.asarray(ref_attw[li]),
                                   rtol=5e-3, atol=2e-3)
    assert out.shape == (B, num_classes)
    assert all(w.shape == (B, S, S) for w in attw)

    print("KERNEL_OK")
</pallas_src>

<mosaic_0001>
module attributes {stable_mosaic.version = 11 : i64} {
  func.func @fused_kernel(%arg0: i32, %arg1: memref<2x8x1xf32, #tpu.memory_space<vmem>>, %arg2: memref<1x64xf32, #tpu.memory_space<vmem>>, %arg3: memref<16x64xf32, #tpu.memory_space<vmem>>, %arg4: memref<2x64x192xf32, #tpu.memory_space<vmem>>, %arg5: memref<2x1x192xf32, #tpu.memory_space<vmem>>, %arg6: memref<2x8x8x64xf32, #tpu.memory_space<vmem>>, %arg7: memref<2x6x64xf32, #tpu.memory_space<vmem>>, %arg8: memref<2x64x256xf32, #tpu.memory_space<vmem>>, %arg9: memref<2x1x256xf32, #tpu.memory_space<vmem>>, %arg10: memref<2x256x64xf32, #tpu.memory_space<vmem>>, %arg11: memref<2x64xf32, #tpu.memory_space<vmem>>, %arg12: memref<128x256xf32, #tpu.memory_space<vmem>>, %arg13: memref<1x256xf32, #tpu.memory_space<vmem>>, %arg14: memref<256x128xf32, #tpu.memory_space<vmem>>, %arg15: memref<1x128xf32, #tpu.memory_space<vmem>>, %arg16: memref<1x2x128xf32, #tpu.memory_space<vmem>>) attributes {dimension_semantics = [#tpu.dimension_semantics<parallel>], iteration_bounds = array<i64: 1>, scalar_prefetch = 0 : i64, scratch_operands = 0 : i64, tpu.core_type = #tpu.core_type<tc>, window_params = [{transform_indices = @transform_0, window_bounds = array<i64: 2, 8, 1>}, {pipeline_mode = #tpu.pipeline_mode<synchronous>, transform_indices = @transform_1, window_bounds = array<i64: 1, 64>}, {pipeline_mode = #tpu.pipeline_mode<synchronous>, transform_indices = @transform_2, window_bounds = array<i64: 16, 64>}, {pipeline_mode = #tpu.pipeline_mode<synchronous>, transform_indices = @transform_3, window_bounds = array<i64: 2, 64, 192>}, {pipeline_mode = #tpu.pipeline_mode<synchronous>, transform_indices = @transform_4, window_bounds = array<i64: 2, 1, 192>}, {pipeline_mode = #tpu.pipeline_mode<synchronous>, transform_indices = @transform_5, window_bounds = array<i64: 2, 8, 8, 64>}, {pipeline_mode = #tpu.pipeline_mode<synchronous>, transform_indices = @transform_6, window_bounds = array<i64: 2, 6, 64>}, {pipeline_mode = #tpu.pipeline_mode<synchronous>, transform_indices = @transform_7, window_bounds = array<i64: 2, 64, 256>}, {pipeline_mode = #tpu.pipeline_mode<synchronous>, transform_indices = @transform_8, window_bounds = array<i64: 2, 1, 256>}, {pipeline_mode = #tpu.pipeline_mode<synchronous>, transform_indices = @transform_9, window_bounds = array<i64: 2, 256, 64>}, {pipeline_mode = #tpu.pipeline_mode<synchronous>, transform_indices = @transform_10, window_bounds = array<i64: 2, 64>}, {pipeline_mode = #tpu.pipeline_mode<synchronous>, transform_indices = @transform_11, window_bounds = array<i64: 128, 256>}, {pipeline_mode = #tpu.pipeline_mode<synchronous>, transform_indices = @transform_12, window_bounds = array<i64: 1, 256>}, {pipeline_mode = #tpu.pipeline_mode<synchronous>, transform_indices = @transform_13, window_bounds = array<i64: 256, 128>}, {pipeline_mode = #tpu.pipeline_mode<synchronous>, transform_indices = @transform_14, window_bounds = array<i64: 1, 128>}, {transform_indices = @transform_15, window_bounds = array<i64: 1, 2, 128>}]} {
    %c0 = arith.constant 0 : index
    %c0_0 = arith.constant 0 : index
    %c0_1 = arith.constant 0 : index
    %0 = vector.load %arg1[%c0, %c0_0, %c0_1] : memref<2x8x1xf32, #tpu.memory_space<vmem>>, vector<2x8x1xf32>
    %1 = vector.shape_cast %0 : vector<2x8x1xf32> to vector<16x1xf32>
    %c0_2 = arith.constant 0 : index
    %c0_3 = arith.constant 0 : index
    %2 = vector.load %arg2[%c0_2, %c0_3] : memref<1x64xf32, #tpu.memory_space<vmem>>, vector<1x64xf32>
    %3 = vector.broadcast %1 : vector<16x1xf32> to vector<16x64xf32>
    %4 = vector.broadcast %2 : vector<1x64xf32> to vector<16x64xf32>
    %5 = arith.mulf %3, %4 : vector<16x64xf32>
    %c0_4 = arith.constant 0 : index
    %c0_5 = arith.constant 0 : index
    %6 = vector.load %arg3[%c0_4, %c0_5] : memref<16x64xf32, #tpu.memory_space<vmem>>, vector<16x64xf32>
    %7 = arith.addf %5, %6 : vector<16x64xf32>
    %c0_6 = arith.constant 0 : index
    %c0_7 = arith.constant 0 : index
    %c0_8 = arith.constant 0 : index
    %c0_9 = arith.constant 0 : index
    %8 = vector.load %arg6[%c0_6, %c0_7, %c0_8, %c0_9] : memref<2x8x8x64xf32, #tpu.memory_space<vmem>>, vector<1x8x8x64xf32>
    %9 = vector.shape_cast %8 : vector<1x8x8x64xf32> to vector<8x8x64xf32>
    %c0_10 = arith.constant 0 : index
    %c0_11 = arith.constant 0 : index
    %c0_12 = arith.constant 0 : index
    %10 = vector.load %arg7[%c0_10, %c0_11, %c0_12] : memref<2x6x64xf32, #tpu.memory_space<vmem>>, vector<1x6x64xf32>
    %11 = vector.shape_cast %10 : vector<1x6x64xf32> to vector<6x64xf32>
    %c0_13 = arith.constant 0 : index
    %c0_14 = arith.constant 0 : index
    %c0_15 = arith.constant 0 : index
    %12 = vector.load %arg4[%c0_13, %c0_14, %c0_15] : memref<2x64x192xf32, #tpu.memory_space<vmem>>, vector<1x64x192xf32>
    %13 = vector.shape_cast %12 : vector<1x64x192xf32> to vector<64x192xf32>
    %cst = arith.constant dense<0.000000e+00> : vector<16x192xf32>
    %14 = tpu.matmul %7, %13, %cst {dimension_numbers = #tpu.dot_dimension_numbers<[1], [0], [0], [1], [0, 0, 1, 1], [], []>} : vector<16x64xf32>, vector<64x192xf32>, vector<16x192xf32> -> vector<16x192xf32>
    %c0_16 = arith.constant 0 : index
    %c0_17 = arith.constant 0 : index
    %c0_18 = arith.constant 0 : index
    %15 = vector.load %arg5[%c0_16, %c0_17, %c0_18] : memref<2x1x192xf32, #tpu.memory_space<vmem>>, vector<1x1x192xf32>
    %16 = vector.shape_cast %15 : vector<1x1x192xf32> to vector<1x192xf32>
    %17 = vector.broadcast %16 : vector<1x192xf32> to vector<16x192xf32>
    %18 = arith.addf %14, %17 : vector<16x192xf32>
    %19 = vector.extract_strided_slice %18 {offsets = [0, 0], sizes = [16, 8], strides = [1, 1]} : vector<16x192xf32> to vector<16x8xf32>
    %20 = vector.shape_cast %19 : vector<16x8xf32> to vector<2x8x8xf32>
    %21 = vector.extract_strided_slice %18 {offsets = [0, 64], sizes = [16, 8], strides = [1, 1]} : vector<16x192xf32> to vector<16x8xf32>
    %22 = vector.shape_cast %21 : vector<16x8xf32> to vector<2x8x8xf32>
    "tpu.trace_start"() <{level = 10 : i32, message = "bqd,bkd->bqk"}> : () -> ()
    %cst_19 = arith.constant dense<0.000000e+00> : vector<2x8x8xf32>
    %23 = tpu.matmul %20, %22, %cst_19 {dimension_numbers = #tpu.dot_dimension_numbers<[2], [2], [1], [1], [0, 0, 0, 1, 1, 1], [0], [0]>} : vector<2x8x8xf32>, vector<2x8x8xf32>, vector<2x8x8xf32> -> vector<2x8x8xf32>
    "tpu.trace_stop"() : () -> ()
    %24 = vector.extract_strided_slice %18 {offsets = [0, 128], sizes = [16, 8], strides = [1, 1]} : vector<16x192xf32> to vector<16x8xf32>
    %25 = vector.extract_strided_slice %9 {offsets = [0, 0, 0], sizes = [1, 8, 64], strides = [1, 1, 1]} : vector<8x8x64xf32> to vector<1x8x64xf32>
    %26 = vector.shape_cast %25 : vector<1x8x64xf32> to vector<8x64xf32>
    %cst_20 = arith.constant dense<0.000000e+00> : vector<16x64xf32>
    %27 = tpu.matmul %24, %26, %cst_20 {dimension_numbers = #tpu.dot_dimension_numbers<[1], [0], [0], [1], [0, 0, 1, 1], [], []>} : vector<16x8xf32>, vector<8x64xf32>, vector<16x64xf32> -> vector<16x64xf32>
    %28 = vector.shape_cast %27 : vector<16x64xf32> to vector<2x8x64xf32>
    %29 = vector.extract_strided_slice %18 {offsets = [0, 8], sizes = [16, 8], strides = [1, 1]} : vector<16x192xf32> to vector<16x8xf32>
    %30 = vector.shape_cast %29 : vector<16x8xf32> to vector<2x8x8xf32>
    %31 = vector.extract_strided_slice %18 {offsets = [0, 72], sizes = [16, 8], strides = [1, 1]} : vector<16x192xf32> to vector<16x8xf32>
    %32 = vector.shape_cast %31 : vector<16x8xf32> to vector<2x8x8xf32>
    "tpu.trace_start"() <{level = 10 : i32, message = "bqd,bkd->bqk"}> : () -> ()
    %cst_21 = arith.constant dense<0.000000e+00> : vector<2x8x8xf32>
    %33 = tpu.matmul %30, %32, %cst_21 {dimension_numbers = #tpu.dot_dimension_numbers<[2], [2], [1], [1], [0, 0, 0, 1, 1, 1], [0], [0]>} : vector<2x8x8xf32>, vector<2x8x8xf32>, vector<2x8x8xf32> -> vector<2x8x8xf32>
    "tpu.trace_stop"() : () -> ()
    %34 = vector.extract_strided_slice %18 {offsets = [0, 136], sizes = [16, 8], strides = [1, 1]} : vector<16x192xf32> to vector<16x8xf32>
    %35 = vector.extract_strided_slice %9 {offsets = [1, 0, 0], sizes = [1, 8, 64], strides = [1, 1, 1]} : vector<8x8x64xf32> to vector<1x8x64xf32>
    %36 = vector.shape_cast %35 : vector<1x8x64xf32> to vector<8x64xf32>
    %cst_22 = arith.constant dense<0.000000e+00> : vector<16x64xf32>
    %37 = tpu.matmul %34, %36, %cst_22 {dimension_numbers = #tpu.dot_dimension_numbers<[1], [0], [0], [1], [0, 0, 1, 1], [], []>} : vector<16x8xf32>, vector<8x64xf32>, vector<16x64xf32> -> vector<16x64xf32>
    %38 = vector.shape_cast %37 : vector<16x64xf32> to vector<2x8x64xf32>
    %39 = vector.extract_strided_slice %18 {offsets = [0, 16], sizes = [16, 8], strides = [1, 1]} : vector<16x192xf32> to vector<16x8xf32>
    %40 = vector.shape_cast %39 : vector<16x8xf32> to vector<2x8x8xf32>
    %41 = vector.extract_strided_slice %18 {offsets = [0, 80], sizes = [16, 8], strides = [1, 1]} : vector<16x192xf32> to vector<16x8xf32>
    %42 = vector.shape_cast %41 : vector<16x8xf32> to vector<2x8x8xf32>
    "tpu.trace_start"() <{level = 10 : i32, message = "bqd,bkd->bqk"}> : () -> ()
    %cst_23 = arith.constant dense<0.000000e+00> : vector<2x8x8xf32>
    %43 = tpu.matmul %40, %42, %cst_23 {dimension_numbers = #tpu.dot_dimension_numbers<[2], [2], [1], [1], [0, 0, 0, 1, 1, 1], [0], [0]>} : vector<2x8x8xf32>, vector<2x8x8xf32>, vector<2x8x8xf32> -> vector<2x8x8xf32>
    "tpu.trace_stop"() : () -> ()
    %44 = vector.extract_strided_slice %18 {offsets = [0, 144], sizes = [16, 8], strides = [1, 1]} : vector<16x192xf32> to vector<16x8xf32>
    %45 = vector.extract_strided_slice %9 {offsets = [2, 0, 0], sizes = [1, 8, 64], strides = [1, 1, 1]} : vector<8x8x64xf32> to vector<1x8x64xf32>
    %46 = vector.shape_cast %45 : vector<1x8x64xf32> to vector<8x64xf32>
    %cst_24 = arith.constant dense<0.000000e+00> : vector<16x64xf32>
    %47 = tpu.matmul %44, %46, %cst_24 {dimension_numbers = #tpu.dot_dimension_numbers<[1], [0], [0], [1], [0, 0, 1, 1], [], []>} : vector<16x8xf32>, vector<8x64xf32>, vector<16x64xf32> -> vector<16x64xf32>
    %48 = vector.shape_cast %47 : vector<16x64xf32> to vector<2x8x64xf32>
    %49 = vector.extract_strided_slice %18 {offsets = [0, 24], sizes = [16, 8], strides = [1, 1]} : vector<16x192xf32> to vector<16x8xf32>
    %50 = vector.shape_cast %49 : vector<16x8xf32> to vector<2x8x8xf32>
    %51 = vector.extract_strided_slice %18 {offsets = [0, 88], sizes = [16, 8], strides = [1, 1]} : vector<16x192xf32> to vector<16x8xf32>
    %52 = vector.shape_cast %51 : vector<16x8xf32> to vector<2x8x8xf32>
    "tpu.trace_start"() <{level = 10 : i32, message = "bqd,bkd->bqk"}> : () -> ()
    %cst_25 = arith.constant dense<0.000000e+00> : vector<2x8x8xf32>
    %53 = tpu.matmul %50, %52, %cst_25 {dimension_numbers = #tpu.dot_dimension_numbers<[2], [2], [1], [1], [0, 0, 0, 1, 1, 1], [0], [0]>} : vector<2x8x8xf32>, vector<2x8x8xf32>, vector<2x8x8xf32> -> vector<2x8x8xf32>
    "tpu.trace_stop"() : () -> ()
    %54 = vector.extract_strided_slice %18 {offsets = [0, 152], sizes = [16, 8], strides = [1, 1]} : vector<16x192xf32> to vector<16x8xf32>
    %55 = vector.extract_strided_slice %9 {offsets = [3, 0, 0], sizes = [1, 8, 64], strides = [1, 1, 1]} : vector<8x8x64xf32> to vector<1x8x64xf32>
    %56 = vector.shape_cast %55 : vector<1x8x64xf32> to vector<8x64xf32>
    %cst_26 = arith.constant dense<0.000000e+00> : vector<16x64xf32>
    %57 = tpu.matmul %54, %56, %cst_26 {dimension_numbers = #tpu.dot_dimension_numbers<[1], [0], [0], [1], [0, 0, 1, 1], [], []>} : vector<16x8xf32>, vector<8x64xf32>, vector<16x64xf32> -> vector<16x64xf32>
    %58 = vector.shape_cast %57 : vector<16x64xf32> to vector<2x8x64xf32>
    %59 = vector.extract_strided_slice %18 {offsets = [0, 32], sizes = [16, 8], strides = [1, 1]} : vector<16x192xf32> to vector<16x8xf32>
    %60 = vector.shape_cast %59 : vector<16x8xf32> to vector<2x8x8xf32>
    %61 = vector.extract_strided_slice %18 {offsets = [0, 96], sizes = [16, 8], strides = [1, 1]} : vector<16x192xf32> to vector<16x8xf32>
    %62 = vector.shape_cast %61 : vector<16x8xf32> to vector<2x8x8xf32>
    "tpu.trace_start"() <{level = 10 : i32, message = "bqd,bkd->bqk"}> : () -> ()
    %cst_27 = arith.constant dense<0.000000e+00> : vector<2x8x8xf32>
    %63 = tpu.matmul %60, %62, %cst_27 {dimension_numbers = #tpu.dot_dimension_numbers<[2], [2], [1], [1], [0, 0, 0, 1, 1, 1], [0], [0]>} : vector<2x8x8xf32>, vector<2x8x8xf32>, vector<2x8x8xf32> -> vector<2x8x8xf32>
    "tpu.trace_stop"() : () -> ()
    %64 = vector.extract_strided_slice %18 {offsets = [0, 160], sizes = [16, 8], strides = [1, 1]} : vector<16x192xf32> to vector<16x8xf32>
    %65 = vector.extract_strided_slice %9 {offsets = [4, 0, 0], sizes = [1, 8, 64], strides = [1, 1, 1]} : vector<8x8x64xf32> to vector<1x8x64xf32>
    %66 = vector.shape_cast %65 : vector<1x8x64xf32> to vector<8x64xf32>
    %cst_28 = arith.constant dense<0.000000e+00> : vector<16x64xf32>
    %67 = tpu.matmul %64, %66, %cst_28 {dimension_numbers = #tpu.dot_dimension_numbers<[1], [0], [0], [1], [0, 0, 1, 1], [], []>} : vector<16x8xf32>, vector<8x64xf32>, vector<16x64xf32> -> vector<16x64xf32>
    %68 = vector.shape_cast %67 : vector<16x64xf32> to vector<2x8x64xf32>
    %69 = vector.extract_strided_slice %18 {offsets = [0, 40], sizes = [16, 8], strides = [1, 1]} : vector<16x192xf32> to vector<16x8xf32>
    %70 = vector.shape_cast %69 : vector<16x8xf32> to vector<2x8x8xf32>
    %71 = vector.extract_strided_slice %18 {offsets = [0, 104], sizes = [16, 8], strides = [1, 1]} : vector<16x192xf32> to vector<16x8xf32>
    %72 = vector.shape_cast %71 : vector<16x8xf32> to vector<2x8x8xf32>
    "tpu.trace_start"() <{level = 10 : i32, message = "bqd,bkd->bqk"}> : () -> ()
    %cst_29 = arith.constant dense<0.000000e+00> : vector<2x8x8xf32>
    %73 = tpu.matmul %70, %72, %cst_29 {dimension_numbers = #tpu.dot_dimension_numbers<[2], [2], [1], [1], [0, 0, 0, 1, 1, 1], [0], [0]>} : vector<2x8x8xf32>, vector<2x8x8xf32>, vector<2x8x8xf32> -> vector<2x8x8xf32>
    "tpu.trace_stop"() : () -> ()
    %74 = vector.extract_strided_slice %18 {offsets = [0, 168], sizes = [16, 8], strides = [1, 1]} : vector<16x192xf32> to vector<16x8xf32>
    %75 = vector.extract_strided_slice %9 {offsets = [5, 0, 0], sizes = [1, 8, 64], strides = [1, 1, 1]} : vector<8x8x64xf32> to vector<1x8x64xf32>
    %76 = vector.shape_cast %75 : vector<1x8x64xf32> to vector<8x64xf32>
    %cst_30 = arith.constant dense<0.000000e+00> : vector<16x64xf32>
    %77 = tpu.matmul %74, %76, %cst_30 {dimension_numbers = #tpu.dot_dimension_numbers<[1], [0], [0], [1], [0, 0, 1, 1], [], []>} : vector<16x8xf32>, vector<8x64xf32>, vector<16x64xf32> -> vector<16x64xf32>
    %78 = vector.shape_cast %77 : vector<16x64xf32> to vector<2x8x64xf32>
    %79 = vector.extract_strided_slice %18 {offsets = [0, 48], sizes = [16, 8], strides = [1, 1]} : vector<16x192xf32> to vector<16x8xf32>
    %80 = vector.shape_cast %79 : vector<16x8xf32> to vector<2x8x8xf32>
    %81 = vector.extract_strided_slice %18 {offsets = [0, 112], sizes = [16, 8], strides = [1, 1]} : vector<16x192xf32> to vector<16x8xf32>
    %82 = vector.shape_cast %81 : vector<16x8xf32> to vector<2x8x8xf32>
    "tpu.trace_start"() <{level = 10 : i32, message = "bqd,bkd->bqk"}> : () -> ()
    %cst_31 = arith.constant dense<0.000000e+00> : vector<2x8x8xf32>
    %83 = tpu.matmul %80, %82, %cst_31 {dimension_numbers = #tpu.dot_dimension_numbers<[2], [2], [1], [1], [0, 0, 0, 1, 1, 1], [0], [0]>} : vector<2x8x8xf32>, vector<2x8x8xf32>, vector<2x8x8xf32> -> vector<2x8x8xf32>
    "tpu.trace_stop"() : () -> ()
    %84 = vector.extract_strided_slice %18 {offsets = [0, 176], sizes = [16, 8], strides = [1, 1]} : vector<16x192xf32> to vector<16x8xf32>
    %85 = vector.extract_strided_slice %9 {offsets = [6, 0, 0], sizes = [1, 8, 64], strides = [1, 1, 1]} : vector<8x8x64xf32> to vector<1x8x64xf32>
    %86 = vector.shape_cast %85 : vector<1x8x64xf32> to vector<8x64xf32>
    %cst_32 = arith.constant dense<0.000000e+00> : vector<16x64xf32>
    %87 = tpu.matmul %84, %86, %cst_32 {dimension_numbers = #tpu.dot_dimension_numbers<[1], [0], [0], [1], [0, 0, 1, 1], [], []>} : vector<16x8xf32>, vector<8x64xf32>, vector<16x64xf32> -> vector<16x64xf32>
    %88 = vector.shape_cast %87 : vector<16x64xf32> to vector<2x8x64xf32>
    %89 = vector.extract_strided_slice %18 {offsets = [0, 56], sizes = [16, 8], strides = [1, 1]} : vector<16x192xf32> to vector<16x8xf32>
    %90 = vector.shape_cast %89 : vector<16x8xf32> to vector<2x8x8xf32>
    %91 = vector.extract_strided_slice %18 {offsets = [0, 120], sizes = [16, 8], strides = [1, 1]} : vector<16x192xf32> to vector<16x8xf32>
    %92 = vector.shape_cast %91 : vector<16x8xf32> to vector<2x8x8xf32>
    "tpu.trace_start"() <{level = 10 : i32, message = "bqd,bkd->bqk"}> : () -> ()
    %cst_33 = arith.constant dense<0.000000e+00> : vector<2x8x8xf32>
    %93 = tpu.matmul %90, %92, %cst_33 {dimension_numbers = #tpu.dot_dimension_numbers<[2], [2], [1], [1], [0, 0, 0, 1, 1, 1], [0], [0]>} : vector<2x8x8xf32>, vector<2x8x8xf32>, vector<2x8x8xf32> -> vector<2x8x8xf32>
    "tpu.trace_stop"() : () -> ()
    %94 = vector.extract_strided_slice %18 {offsets = [0, 184], sizes = [16, 8], strides = [1, 1]} : vector<16x192xf32> to vector<16x8xf32>
    %95 = vector.extract_strided_slice %9 {offsets = [7, 0, 0], sizes = [1, 8, 64], strides = [1, 1, 1]} : vector<8x8x64xf32> to vector<1x8x64xf32>
    %96 = vector.shape_cast %95 : vector<1x8x64xf32> to vector<8x64xf32>
    %cst_34 = arith.constant dense<0.000000e+00> : vector<16x64xf32>
    %97 = tpu.matmul %94, %96, %cst_34 {dimension_numbers = #tpu.dot_dimension_numbers<[1], [0], [0], [1], [0, 0, 1, 1], [], []>} : vector<16x8xf32>, vector<8x64xf32>, vector<16x64xf32> -> vector<16x64xf32>
    %98 = vector.shape_cast %97 : vector<16x64xf32> to vector<2x8x64xf32>
    %99 = vector.shape_cast %23 : vector<2x8x8xf32> to vector<2x1x8x8xf32>
    %100 = vector.shape_cast %33 : vector<2x8x8xf32> to vector<2x1x8x8xf32>
    %101 = vector.shape_cast %43 : vector<2x8x8xf32> to vector<2x1x8x8xf32>
    %102 = vector.shape_cast %53 : vector<2x8x8xf32> to vector<2x1x8x8xf32>
    %103 = vector.shape_cast %63 : vector<2x8x8xf32> to vector<2x1x8x8xf32>
    %104 = vector.shape_cast %73 : vector<2x8x8xf32> to vector<2x1x8x8xf32>
    %105 = vector.shape_cast %83 : vector<2x8x8xf32> to vector<2x1x8x8xf32>
    %106 = vector.shape_cast %93 : vector<2x8x8xf32> to vector<2x1x8x8xf32>
    %107 = tpu.concatenate %99, %100, %101, %102, %103, %104, %105, %106 in 1 : vector<2x1x8x8xf32>, vector<2x1x8x8xf32>, vector<2x1x8x8xf32>, vector<2x1x8x8xf32>, vector<2x1x8x8xf32>, vector<2x1x8x8xf32>, vector<2x1x8x8xf32>, vector<2x1x8x8xf32> -> vector<2x8x8x8xf32>
    %cst_35 = arith.constant dense<0xFF800000> : vector<2x8x8xf32>
    %108 = vector.multi_reduction <maximumf>, %107, %cst_35 [3] : vector<2x8x8x8xf32> to vector<2x8x8xf32>
    %109 = vector.shape_cast %108 : vector<2x8x8xf32> to vector<2x8x8x1xf32>
    %110 = vector.broadcast %109 : vector<2x8x8x1xf32> to vector<2x8x8x8xf32>
    %111 = arith.subf %107, %110 : vector<2x8x8x8xf32>
    %112 = math.exp %111 : vector<2x8x8x8xf32>
    %cst_36 = arith.constant dense<0.000000e+00> : vector<2x8x8xf32>
    %113 = vector.multi_reduction <add>, %112, %cst_36 [3] : vector<2x8x8x8xf32> to vector<2x8x8xf32>
    %114 = vector.shape_cast %113 : vector<2x8x8xf32> to vector<2x8x8x1xf32>
    %115 = tpu.reciprocal %114 {approx = true} : vector<2x8x8x1xf32> -> vector<2x8x8x1xf32>
    %116 = vector.broadcast %115 : vector<2x8x8x1xf32> to vector<2x8x8x8xf32>
    %117 = arith.mulf %112, %116 : vector<2x8x8x8xf32>
    %118 = vector.extract_strided_slice %117 {offsets = [0, 0, 0, 0], sizes = [2, 1, 8, 8], strides = [1, 1, 1, 1]} : vector<2x8x8x8xf32> to vector<2x1x8x8xf32>
    %119 = vector.shape_cast %118 : vector<2x1x8x8xf32> to vector<2x8x8xf32>
    %120 = vector.extract_strided_slice %117 {offsets = [0, 1, 0, 0], sizes = [2, 1, 8, 8], strides = [1, 1, 1, 1]} : vector<2x8x8x8xf32> to vector<2x1x8x8xf32>
    %121 = vector.shape_cast %120 : vector<2x1x8x8xf32> to vector<2x8x8xf32>
    %122 = vector.extract_strided_slice %117 {offsets = [0, 2, 0, 0], sizes = [2, 1, 8, 8], strides = [1, 1, 1, 1]} : vector<2x8x8x8xf32> to vector<2x1x8x8xf32>
    %123 = vector.shape_cast %122 : vector<2x1x8x8xf32> to vector<2x8x8xf32>
    %124 = vector.extract_strided_slice %117 {offsets = [0, 3, 0, 0], sizes = [2, 1, 8, 8], strides = [1, 1, 1, 1]} : vector<2x8x8x8xf32> to vector<2x1x8x8xf32>
    %125 = vector.shape_cast %124 : vector<2x1x8x8xf32> to vector<2x8x8xf32>
    %126 = vector.extract_strided_slice %117 {offsets = [0, 4, 0, 0], sizes = [2, 1, 8, 8], strides = [1, 1, 1, 1]} : vector<2x8x8x8xf32> to vector<2x1x8x8xf32>
    %127 = vector.shape_cast %126 : vector<2x1x8x8xf32> to vector<2x8x8xf32>
    %128 = vector.extract_strided_slice %117 {offsets = [0, 5, 0, 0], sizes = [2, 1, 8, 8], strides = [1, 1, 1, 1]} : vector<2x8x8x8xf32> to vector<2x1x8x8xf32>
    %129 = vector.shape_cast %128 : vector<2x1x8x8xf32> to vector<2x8x8xf32>
    %130 = vector.extract_strided_slice %117 {offsets = [0, 6, 0, 0], sizes = [2, 1, 8, 8], strides = [1, 1, 1, 1]} : vector<2x8x8x8xf32> to vector<2x1x8x8xf32>
    %131 = vector.shape_cast %130 : vector<2x1x8x8xf32> to vector<2x8x8xf32>
    %132 = vector.extract_strided_slice %117 {offsets = [0, 7, 0, 0], sizes = [2, 1, 8, 8], strides = [1, 1, 1, 1]} : vector<2x8x8x8xf32> to vector<2x1x8x8xf32>
    %133 = vector.shape_cast %132 : vector<2x1x8x8xf32> to vector<2x8x8xf32>
    %134 = tpu.concatenate %119, %121, %123, %125, %127, %129, %131, %133 in 2 : vector<2x8x8xf32>, vector<2x8x8xf32>, vector<2x8x8xf32>, vector<2x8x8xf32>, vector<2x8x8xf32>, vector<2x8x8xf32>, vector<2x8x8xf32>, vector<2x8x8xf32> -> vector<2x8x64xf32>
    %135 = tpu.concatenate %28, %38, %48, %58, %68, %78, %88, %98 in 1 : vector<2x8x64xf32>, vector<2x8x64xf32>, vector<2x8x64xf32>, vector<2x8x64xf32>, vector<2x8x64xf32>, vector<2x8x64xf32>, vector<2x8x64xf32>, vector<2x8x64xf32> -> vector<2x64x64xf32>
    "tpu.trace_start"() <{level = 10 : i32, message = "bqx,bxm->bqm"}> : () -> ()
    %cst_37 = arith.constant dense<0.000000e+00> : vector<2x8x64xf32>
    %136 = tpu.matmul %134, %135, %cst_37 {dimension_numbers = #tpu.dot_dimension_numbers<[2], [1], [1], [2], [0, 0, 0, 1, 1, 2], [0], [0]>} : vector<2x8x64xf32>, vector<2x64x64xf32>, vector<2x8x64xf32> -> vector<2x8x64xf32>
    "tpu.trace_stop"() : () -> ()
    %137 = vector.shape_cast %136 : vector<2x8x64xf32> to vector<16x64xf32>
    %138 = vector.extract_strided_slice %11 {offsets = [0, 0], sizes = [1, 64], strides = [1, 1]} : vector<6x64xf32> to vector<1x64xf32>
    %139 = vector.broadcast %138 : vector<1x64xf32> to vector<16x64xf32>
    %140 = arith.addf %137, %139 : vector<16x64xf32>
    %141 = arith.addf %7, %140 : vector<16x64xf32>
    %142 = vector.extract_strided_slice %11 {offsets = [1, 0], sizes = [1, 64], strides = [1, 1]} : vector<6x64xf32> to vector<1x64xf32>
    %143 = vector.extract_strided_slice %11 {offsets = [2, 0], sizes = [1, 64], strides = [1, 1]} : vector<6x64xf32> to vector<1x64xf32>
    %cst_38 = arith.constant dense<0.000000e+00> : vector<16xf32>
    %144 = vector.multi_reduction <add>, %141, %cst_38 [1] : vector<16x64xf32> to vector<16xf32>
    %145 = vector.shape_cast %144 : vector<16xf32> to vector<16x1xf32>
    %cst_39 = arith.constant 6.400000e+01 : f32
    %146 = vector.broadcast %cst_39 : f32 to vector<16x1xf32>
    %147 = arith.divf %145, %146 : vector<16x1xf32>
    %148 = vector.broadcast %147 : vector<16x1xf32> to vector<16x64xf32>
    %149 = arith.subf %141, %148 : vector<16x64xf32>
    %150 = arith.mulf %149, %149 : vector<16x64xf32>
    %cst_40 = arith.constant dense<0.000000e+00> : vector<16xf32>
    %151 = vector.multi_reduction <add>, %150, %cst_40 [1] : vector<16x64xf32> to vector<16xf32>
    %152 = vector.shape_cast %151 : vector<16xf32> to vector<16x1xf32>
    %cst_41 = arith.constant 6.400000e+01 : f32
    %153 = vector.broadcast %cst_41 : f32 to vector<16x1xf32>
    %154 = arith.divf %152, %153 : vector<16x1xf32>
    %155 = vector.broadcast %147 : vector<16x1xf32> to vector<16x64xf32>
    %156 = arith.subf %141, %155 : vector<16x64xf32>
    %cst_42 = arith.constant 9.99999997E-7 : f32
    %157 = vector.broadcast %cst_42 : f32 to vector<16x1xf32>
    %158 = arith.addf %154, %157 : vector<16x1xf32>
    %159 = math.rsqrt %158 : vector<16x1xf32>
    %160 = vector.broadcast %159 : vector<16x1xf32> to vector<16x64xf32>
    %161 = arith.mulf %156, %160 : vector<16x64xf32>
    %162 = vector.broadcast %142 : vector<1x64xf32> to vector<16x64xf32>
    %163 = arith.mulf %161, %162 : vector<16x64xf32>
    %164 = vector.broadcast %143 : vector<1x64xf32> to vector<16x64xf32>
    %165 = arith.addf %163, %164 : vector<16x64xf32>
    %c0_43 = arith.constant 0 : index
    %c0_44 = arith.constant 0 : index
    %c0_45 = arith.constant 0 : index
    %166 = vector.load %arg8[%c0_43, %c0_44, %c0_45] : memref<2x64x256xf32, #tpu.memory_space<vmem>>, vector<1x64x256xf32>
    %167 = vector.shape_cast %166 : vector<1x64x256xf32> to vector<64x256xf32>
    %cst_46 = arith.constant dense<0.000000e+00> : vector<16x256xf32>
    %168 = tpu.matmul %165, %167, %cst_46 {dimension_numbers = #tpu.dot_dimension_numbers<[1], [0], [0], [1], [0, 0, 1, 1], [], []>} : vector<16x64xf32>, vector<64x256xf32>, vector<16x256xf32> -> vector<16x256xf32>
    %c0_47 = arith.constant 0 : index
    %c0_48 = arith.constant 0 : index
    %c0_49 = arith.constant 0 : index
    %169 = vector.load %arg9[%c0_47, %c0_48, %c0_49] : memref<2x1x256xf32, #tpu.memory_space<vmem>>, vector<1x1x256xf32>
    %170 = vector.shape_cast %169 : vector<1x1x256xf32> to vector<1x256xf32>
    %171 = vector.broadcast %170 : vector<1x256xf32> to vector<16x256xf32>
    %172 = arith.addf %168, %171 : vector<16x256xf32>
    %cst_50 = arith.constant 5.000000e-01 : f32
    %173 = vector.broadcast %cst_50 : f32 to vector<16x256xf32>
    %174 = arith.mulf %173, %172 : vector<16x256xf32>
    %cst_51 = arith.constant 0.707106769 : f32
    %175 = vector.broadcast %cst_51 : f32 to vector<16x256xf32>
    %176 = arith.mulf %172, %175 : vector<16x256xf32>
    %cst_52 = arith.constant 0.000000e+00 : f32
    %177 = vector.broadcast %cst_52 : f32 to vector<16x256xf32>
    %178 = arith.cmpf oge, %176, %177 : vector<16x256xf32>
    %cst_53 = arith.constant 1.000000e+00 : f32
    %cst_54 = arith.constant -1.000000e+00 : f32
    %179 = vector.broadcast %cst_53 : f32 to vector<16x256xf32>
    %180 = vector.broadcast %cst_54 : f32 to vector<16x256xf32>
    %181 = arith.select %178, %179, %180 : vector<16x256xi1>, vector<16x256xf32>
    %182 = math.absf %176 : vector<16x256xf32>
    %cst_55 = arith.constant 0.327591091 : f32
    %183 = vector.broadcast %cst_55 : f32 to vector<16x256xf32>
    %184 = arith.mulf %183, %182 : vector<16x256xf32>
    %cst_56 = arith.constant 1.000000e+00 : f32
    %185 = vector.broadcast %cst_56 : f32 to vector<16x256xf32>
    %186 = arith.addf %185, %184 : vector<16x256xf32>
    %187 = tpu.reciprocal %186 {approx = true} : vector<16x256xf32> -> vector<16x256xf32>
    %cst_57 = arith.constant 1.06140542 : f32
    %188 = vector.broadcast %cst_57 : f32 to vector<16x256xf32>
    %189 = arith.mulf %188, %187 : vector<16x256xf32>
    %cst_58 = arith.constant -1.45315206 : f32
    %190 = vector.broadcast %cst_58 : f32 to vector<16x256xf32>
    %191 = arith.addf %189, %190 : vector<16x256xf32>
    %192 = arith.mulf %191, %187 : vector<16x256xf32>
    %cst_59 = arith.constant 1.42141378 : f32
    %193 = vector.broadcast %cst_59 : f32 to vector<16x256xf32>
    %194 = arith.addf %192, %193 : vector<16x256xf32>
    %195 = arith.mulf %194, %187 : vector<16x256xf32>
    %cst_60 = arith.constant -0.284496725 : f32
    %196 = vector.broadcast %cst_60 : f32 to vector<16x256xf32>
    %197 = arith.addf %195, %196 : vector<16x256xf32>
    %198 = arith.mulf %197, %187 : vector<16x256xf32>
    %cst_61 = arith.constant 0.254829586 : f32
    %199 = vector.broadcast %cst_61 : f32 to vector<16x256xf32>
    %200 = arith.addf %198, %199 : vector<16x256xf32>
    %201 = arith.mulf %200, %187 : vector<16x256xf32>
    %cst_62 = arith.constant 0.000000e+00 : f32
    %202 = vector.broadcast %cst_62 : f32 to vector<16x256xf32>
    %203 = arith.subf %202, %182 : vector<16x256xf32>
    %204 = arith.mulf %203, %182 : vector<16x256xf32>
    %205 = math.exp %204 : vector<16x256xf32>
    %206 = arith.mulf %201, %205 : vector<16x256xf32>
    %cst_63 = arith.constant 1.000000e+00 : f32
    %207 = vector.broadcast %cst_63 : f32 to vector<16x256xf32>
    %208 = arith.subf %207, %206 : vector<16x256xf32>
    %209 = arith.mulf %181, %208 : vector<16x256xf32>
    %cst_64 = arith.constant 1.000000e+00 : f32
    %210 = vector.broadcast %cst_64 : f32 to vector<16x256xf32>
    %211 = arith.addf %210, %209 : vector<16x256xf32>
    %212 = arith.mulf %174, %211 : vector<16x256xf32>
    %c0_65 = arith.constant 0 : index
    %c0_66 = arith.constant 0 : index
    %c0_67 = arith.constant 0 : index
    %213 = vector.load %arg10[%c0_65, %c0_66, %c0_67] : memref<2x256x64xf32, #tpu.memory_space<vmem>>, vector<1x256x64xf32>
    %214 = vector.shape_cast %213 : vector<1x256x64xf32> to vector<256x64xf32>
    %cst_68 = arith.constant dense<0.000000e+00> : vector<16x64xf32>
    %215 = tpu.matmul %212, %214, %cst_68 {dimension_numbers = #tpu.dot_dimension_numbers<[1], [0], [0], [1], [0, 0, 1, 1], [], []>} : vector<16x256xf32>, vector<256x64xf32>, vector<16x64xf32> -> vector<16x64xf32>
    %216 = vector.extract_strided_slice %11 {offsets = [3, 0], sizes = [1, 64], strides = [1, 1]} : vector<6x64xf32> to vector<1x64xf32>
    %217 = vector.broadcast %216 : vector<1x64xf32> to vector<16x64xf32>
    %218 = arith.addf %215, %217 : vector<16x64xf32>
    %219 = arith.addf %165, %218 : vector<16x64xf32>
    %220 = vector.extract_strided_slice %11 {offsets = [4, 0], sizes = [1, 64], strides = [1, 1]} : vector<6x64xf32> to vector<1x64xf32>
    %221 = vector.extract_strided_slice %11 {offsets = [5, 0], sizes = [1, 64], strides = [1, 1]} : vector<6x64xf32> to vector<1x64xf32>
    %cst_69 = arith.constant dense<0.000000e+00> : vector<16xf32>
    %222 = vector.multi_reduction <add>, %219, %cst_69 [1] : vector<16x64xf32> to vector<16xf32>
    %223 = vector.shape_cast %222 : vector<16xf32> to vector<16x1xf32>
    %cst_70 = arith.constant 6.400000e+01 : f32
    %224 = vector.broadcast %cst_70 : f32 to vector<16x1xf32>
    %225 = arith.divf %223, %224 : vector<16x1xf32>
    %226 = vector.broadcast %225 : vector<16x1xf32> to vector<16x64xf32>
    %227 = arith.subf %219, %226 : vector<16x64xf32>
    %228 = arith.mulf %227, %227 : vector<16x64xf32>
    %cst_71 = arith.constant dense<0.000000e+00> : vector<16xf32>
    %229 = vector.multi_reduction <add>, %228, %cst_71 [1] : vector<16x64xf32> to vector<16xf32>
    %230 = vector.shape_cast %229 : vector<16xf32> to vector<16x1xf32>
    %cst_72 = arith.constant 6.400000e+01 : f32
    %231 = vector.broadcast %cst_72 : f32 to vector<16x1xf32>
    %232 = arith.divf %230, %231 : vector<16x1xf32>
    %233 = vector.broadcast %225 : vector<16x1xf32> to vector<16x64xf32>
    %234 = arith.subf %219, %233 : vector<16x64xf32>
    %cst_73 = arith.constant 9.99999997E-7 : f32
    %235 = vector.broadcast %cst_73 : f32 to vector<16x1xf32>
    %236 = arith.addf %232, %235 : vector<16x1xf32>
    %237 = math.rsqrt %236 : vector<16x1xf32>
    %238 = vector.broadcast %237 : vector<16x1xf32> to vector<16x64xf32>
    %239 = arith.mulf %234, %238 : vector<16x64xf32>
    %240 = vector.broadcast %220 : vector<1x64xf32> to vector<16x64xf32>
    %241 = arith.mulf %239, %240 : vector<16x64xf32>
    %242 = vector.broadcast %221 : vector<1x64xf32> to vector<16x64xf32>
    %243 = arith.addf %241, %242 : vector<16x64xf32>
    %c1 = arith.constant 1 : index
    %c0_74 = arith.constant 0 : index
    %c0_75 = arith.constant 0 : index
    %c0_76 = arith.constant 0 : index
    %244 = vector.load %arg6[%c1, %c0_74, %c0_75, %c0_76] : memref<2x8x8x64xf32, #tpu.memory_space<vmem>>, vector<1x8x8x64xf32>
    %245 = vector.shape_cast %244 : vector<1x8x8x64xf32> to vector<8x8x64xf32>
    %c1_77 = arith.constant 1 : index
    %c0_78 = arith.constant 0 : index
    %c0_79 = arith.constant 0 : index
    %246 = vector.load %arg7[%c1_77, %c0_78, %c0_79] : memref<2x6x64xf32, #tpu.memory_space<vmem>>, vector<1x6x64xf32>
    %247 = vector.shape_cast %246 : vector<1x6x64xf32> to vector<6x64xf32>
    %c1_80 = arith.constant 1 : index
    %c0_81 = arith.constant 0 : index
    %c0_82 = arith.constant 0 : index
    %248 = vector.load %arg4[%c1_80, %c0_81, %c0_82] : memref<2x64x192xf32, #tpu.memory_space<vmem>>, vector<1x64x192xf32>
    %249 = vector.shape_cast %248 : vector<1x64x192xf32> to vector<64x192xf32>
    %cst_83 = arith.constant dense<0.000000e+00> : vector<16x192xf32>
    %250 = tpu.matmul %243, %249, %cst_83 {dimension_numbers = #tpu.dot_dimension_numbers<[1], [0], [0], [1], [0, 0, 1, 1], [], []>} : vector<16x64xf32>, vector<64x192xf32>, vector<16x192xf32> -> vector<16x192xf32>
    %c1_84 = arith.constant 1 : index
    %c0_85 = arith.constant 0 : index
    %c0_86 = arith.constant 0 : index
    %251 = vector.load %arg5[%c1_84, %c0_85, %c0_86] : memref<2x1x192xf32, #tpu.memory_space<vmem>>, vector<1x1x192xf32>
    %252 = vector.shape_cast %251 : vector<1x1x192xf32> to vector<1x192xf32>
    %253 = vector.broadcast %252 : vector<1x192xf32> to vector<16x192xf32>
    %254 = arith.addf %250, %253 : vector<16x192xf32>
    %255 = vector.extract_strided_slice %254 {offsets = [0, 0], sizes = [16, 8], strides = [1, 1]} : vector<16x192xf32> to vector<16x8xf32>
    %256 = vector.shape_cast %255 : vector<16x8xf32> to vector<2x8x8xf32>
    %257 = vector.extract_strided_slice %254 {offsets = [0, 64], sizes = [16, 8], strides = [1, 1]} : vector<16x192xf32> to vector<16x8xf32>
    %258 = vector.shape_cast %257 : vector<16x8xf32> to vector<2x8x8xf32>
    "tpu.trace_start"() <{level = 10 : i32, message = "bqd,bkd->bqk"}> : () -> ()
    %cst_87 = arith.constant dense<0.000000e+00> : vector<2x8x8xf32>
    %259 = tpu.matmul %256, %258, %cst_87 {dimension_numbers = #tpu.dot_dimension_numbers<[2], [2], [1], [1], [0, 0, 0, 1, 1, 1], [0], [0]>} : vector<2x8x8xf32>, vector<2x8x8xf32>, vector<2x8x8xf32> -> vector<2x8x8xf32>
    "tpu.trace_stop"() : () -> ()
    %260 = vector.extract_strided_slice %254 {offsets = [0, 128], sizes = [16, 8], strides = [1, 1]} : vector<16x192xf32> to vector<16x8xf32>
    %261 = vector.extract_strided_slice %245 {offsets = [0, 0, 0], sizes = [1, 8, 64], strides = [1, 1, 1]} : vector<8x8x64xf32> to vector<1x8x64xf32>
    %262 = vector.shape_cast %261 : vector<1x8x64xf32> to vector<8x64xf32>
    %cst_88 = arith.constant dense<0.000000e+00> : vector<16x64xf32>
    %263 = tpu.matmul %260, %262, %cst_88 {dimension_numbers = #tpu.dot_dimension_numbers<[1], [0], [0], [1], [0, 0, 1, 1], [], []>} : vector<16x8xf32>, vector<8x64xf32>, vector<16x64xf32> -> vector<16x64xf32>
    %264 = vector.shape_cast %263 : vector<16x64xf32> to vector<2x8x64xf32>
    %265 = vector.extract_strided_slice %254 {offsets = [0, 8], sizes = [16, 8], strides = [1, 1]} : vector<16x192xf32> to vector<16x8xf32>
    %266 = vector.shape_cast %265 : vector<16x8xf32> to vector<2x8x8xf32>
    %267 = vector.extract_strided_slice %254 {offsets = [0, 72], sizes = [16, 8], strides = [1, 1]} : vector<16x192xf32> to vector<16x8xf32>
    %268 = vector.shape_cast %267 : vector<16x8xf32> to vector<2x8x8xf32>
    "tpu.trace_start"() <{level = 10 : i32, message = "bqd,bkd->bqk"}> : () -> ()
    %cst_89 = arith.constant dense<0.000000e+00> : vector<2x8x8xf32>
    %269 = tpu.matmul %266, %268, %cst_89 {dimension_numbers = #tpu.dot_dimension_numbers<[2], [2], [1], [1], [0, 0, 0, 1, 1, 1], [0], [0]>} : vector<2x8x8xf32>, vector<2x8x8xf32>, vector<2x8x8xf32> -> vector<2x8x8xf32>
    "tpu.trace_stop"() : () -> ()
    %270 = vector.extract_strided_slice %254 {offsets = [0, 136], sizes = [16, 8], strides = [1, 1]} : vector<16x192xf32> to vector<16x8xf32>
    %271 = vector.extract_strided_slice %245 {offsets = [1, 0, 0], sizes = [1, 8, 64], strides = [1, 1, 1]} : vector<8x8x64xf32> to vector<1x8x64xf32>
    %272 = vector.shape_cast %271 : vector<1x8x64xf32> to vector<8x64xf32>
    %cst_90 = arith.constant dense<0.000000e+00> : vector<16x64xf32>
    %273 = tpu.matmul %270, %272, %cst_90 {dimension_numbers = #tpu.dot_dimension_numbers<[1], [0], [0], [1], [0, 0, 1, 1], [], []>} : vector<16x8xf32>, vector<8x64xf32>, vector<16x64xf32> -> vector<16x64xf32>
    %274 = vector.shape_cast %273 : vector<16x64xf32> to vector<2x8x64xf32>
    %275 = vector.extract_strided_slice %254 {offsets = [0, 16], sizes = [16, 8], strides = [1, 1]} : vector<16x192xf32> to vector<16x8xf32>
    %276 = vector.shape_cast %275 : vector<16x8xf32> to vector<2x8x8xf32>
    %277 = vector.extract_strided_slice %254 {offsets = [0, 80], sizes = [16, 8], strides = [1, 1]} : vector<16x192xf32> to vector<16x8xf32>
    %278 = vector.shape_cast %277 : vector<16x8xf32> to vector<2x8x8xf32>
    "tpu.trace_start"() <{level = 10 : i32, message = "bqd,bkd->bqk"}> : () -> ()
    %cst_91 = arith.constant dense<0.000000e+00> : vector<2x8x8xf32>
    %279 = tpu.matmul %276, %278, %cst_91 {dimension_numbers = #tpu.dot_dimension_numbers<[2], [2], [1], [1], [0, 0, 0, 1, 1, 1], [0], [0]>} : vector<2x8x8xf32>, vector<2x8x8xf32>, vector<2x8x8xf32> -> vector<2x8x8xf32>
    "tpu.trace_stop"() : () -> ()
    %280 = vector.extract_strided_slice %254 {offsets = [0, 144], sizes = [16, 8], strides = [1, 1]} : vector<16x192xf32> to vector<16x8xf32>
    %281 = vector.extract_strided_slice %245 {offsets = [2, 0, 0], sizes = [1, 8, 64], strides = [1, 1, 1]} : vector<8x8x64xf32> to vector<1x8x64xf32>
    %282 = vector.shape_cast %281 : vector<1x8x64xf32> to vector<8x64xf32>
    %cst_92 = arith.constant dense<0.000000e+00> : vector<16x64xf32>
    %283 = tpu.matmul %280, %282, %cst_92 {dimension_numbers = #tpu.dot_dimension_numbers<[1], [0], [0], [1], [0, 0, 1, 1], [], []>} : vector<16x8xf32>, vector<8x64xf32>, vector<16x64xf32> -> vector<16x64xf32>
    %284 = vector.shape_cast %283 : vector<16x64xf32> to vector<2x8x64xf32>
    %285 = vector.extract_strided_slice %254 {offsets = [0, 24], sizes = [16, 8], strides = [1, 1]} : vector<16x192xf32> to vector<16x8xf32>
    %286 = vector.shape_cast %285 : vector<16x8xf32> to vector<2x8x8xf32>
    %287 = vector.extract_strided_slice %254 {offsets = [0, 88], sizes = [16, 8], strides = [1, 1]} : vector<16x192xf32> to vector<16x8xf32>
    %288 = vector.shape_cast %287 : vector<16x8xf32> to vector<2x8x8xf32>
    "tpu.trace_start"() <{level = 10 : i32, message = "bqd,bkd->bqk"}> : () -> ()
    %cst_93 = arith.constant dense<0.000000e+00> : vector<2x8x8xf32>
    %289 = tpu.matmul %286, %288, %cst_93 {dimension_numbers = #tpu.dot_dimension_numbers<[2], [2], [1], [1], [0, 0, 0, 1, 1, 1], [0], [0]>} : vector<2x8x8xf32>, vector<2x8x8xf32>, vector<2x8x8xf32> -> vector<2x8x8xf32>
    "tpu.trace_stop"() : () -> ()
    %290 = vector.extract_strided_slice %254 {offsets = [0, 152], sizes = [16, 8], strides = [1, 1]} : vector<16x192xf32> to vector<16x8xf32>
    %291 = vector.extract_strided_slice %245 {offsets = [3, 0, 0], sizes = [1, 8, 64], strides = [1, 1, 1]} : vector<8x8x64xf32> to vector<1x8x64xf32>
    %292 = vector.shape_cast %291 : vector<1x8x64xf32> to vector<8x64xf32>
    %cst_94 = arith.constant dense<0.000000e+00> : vector<16x64xf32>
    %293 = tpu.matmul %290, %292, %cst_94 {dimension_numbers = #tpu.dot_dimension_numbers<[1], [0], [0], [1], [0, 0, 1, 1], [], []>} : vector<16x8xf32>, vector<8x64xf32>, vector<16x64xf32> -> vector<16x64xf32>
    %294 = vector.shape_cast %293 : vector<16x64xf32> to vector<2x8x64xf32>
    %295 = vector.extract_strided_slice %254 {offsets = [0, 32], sizes = [16, 8], strides = [1, 1]} : vector<16x192xf32> to vector<16x8xf32>
    %296 = vector.shape_cast %295 : vector<16x8xf32> to vector<2x8x8xf32>
    %297 = vector.extract_strided_slice %254 {offsets = [0, 96], sizes = [16, 8], strides = [1, 1]} : vector<16x192xf32> to vector<16x8xf32>
    %298 = vector.shape_cast %297 : vector<16x8xf32> to vector<2x8x8xf32>
    "tpu.trace_start"() <{level = 10 : i32, message = "bqd,bkd->bqk"}> : () -> ()
    %cst_95 = arith.constant dense<0.000000e+00> : vector<2x8x8xf32>
    %299 = tpu.matmul %296, %298, %cst_95 {dimension_numbers = #tpu.dot_dimension_numbers<[2], [2], [1], [1], [0, 0, 0, 1, 1, 1], [0], [0]>} : vector<2x8x8xf32>, vector<2x8x8xf32>, vector<2x8x8xf32> -> vector<2x8x8xf32>
    "tpu.trace_stop"() : () -> ()
    %300 = vector.extract_strided_slice %254 {offsets = [0, 160], sizes = [16, 8], strides = [1, 1]} : vector<16x192xf32> to vector<16x8xf32>
    %301 = vector.extract_strided_slice %245 {offsets = [4, 0, 0], sizes = [1, 8, 64], strides = [1, 1, 1]} : vector<8x8x64xf32> to vector<1x8x64xf32>
    %302 = vector.shape_cast %301 : vector<1x8x64xf32> to vector<8x64xf32>
    %cst_96 = arith.constant dense<0.000000e+00> : vector<16x64xf32>
    %303 = tpu.matmul %300, %302, %cst_96 {dimension_numbers = #tpu.dot_dimension_numbers<[1], [0], [0], [1], [0, 0, 1, 1], [], []>} : vector<16x8xf32>, vector<8x64xf32>, vector<16x64xf32> -> vector<16x64xf32>
    %304 = vector.shape_cast %303 : vector<16x64xf32> to vector<2x8x64xf32>
    %305 = vector.extract_strided_slice %254 {offsets = [0, 40], sizes = [16, 8], strides = [1, 1]} : vector<16x192xf32> to vector<16x8xf32>
    %306 = vector.shape_cast %305 : vector<16x8xf32> to vector<2x8x8xf32>
    %307 = vector.extract_strided_slice %254 {offsets = [0, 104], sizes = [16, 8], strides = [1, 1]} : vector<16x192xf32> to vector<16x8xf32>
    %308 = vector.shape_cast %307 : vector<16x8xf32> to vector<2x8x8xf32>
    "tpu.trace_start"() <{level = 10 : i32, message = "bqd,bkd->bqk"}> : () -> ()
    %cst_97 = arith.constant dense<0.000000e+00> : vector<2x8x8xf32>
    %309 = tpu.matmul %306, %308, %cst_97 {dimension_numbers = #tpu.dot_dimension_numbers<[2], [2], [1], [1], [0, 0, 0, 1, 1, 1], [0], [0]>} : vector<2x8x8xf32>, vector<2x8x8xf32>, vector<2x8x8xf32> -> vector<2x8x8xf32>
    "tpu.trace_stop"() : () -> ()
    %310 = vector.extract_strided_slice %254 {offsets = [0, 168], sizes = [16, 8], strides = [1, 1]} : vector<16x192xf32> to vector<16x8xf32>
    %311 = vector.extract_strided_slice %245 {offsets = [5, 0, 0], sizes = [1, 8, 64], strides = [1, 1, 1]} : vector<8x8x64xf32> to vector<1x8x64xf32>
    %312 = vector.shape_cast %311 : vector<1x8x64xf32> to vector<8x64xf32>
    %cst_98 = arith.constant dense<0.000000e+00> : vector<16x64xf32>
    %313 = tpu.matmul %310, %312, %cst_98 {dimension_numbers = #tpu.dot_dimension_numbers<[1], [0], [0], [1], [0, 0, 1, 1], [], []>} : vector<16x8xf32>, vector<8x64xf32>, vector<16x64xf32> -> vector<16x64xf32>
    %314 = vector.shape_cast %313 : vector<16x64xf32> to vector<2x8x64xf32>
    %315 = vector.extract_strided_slice %254 {offsets = [0, 48], sizes = [16, 8], strides = [1, 1]} : vector<16x192xf32> to vector<16x8xf32>
    %316 = vector.shape_cast %315 : vector<16x8xf32> to vector<2x8x8xf32>
    %317 = vector.extract_strided_slice %254 {offsets = [0, 112], sizes = [16, 8], strides = [1, 1]} : vector<16x192xf32> to vector<16x8xf32>
    %318 = vector.shape_cast %317 : vector<16x8xf32> to vector<2x8x8xf32>
    "tpu.trace_start"() <{level = 10 : i32, message = "bqd,bkd->bqk"}> : () -> ()
    %cst_99 = arith.constant dense<0.000000e+00> : vector<2x8x8xf32>
    %319 = tpu.matmul %316, %318, %cst_99 {dimension_numbers = #tpu.dot_dimension_numbers<[2], [2], [1], [1], [0, 0, 0, 1, 1, 1], [0], [0]>} : vector<2x8x8xf32>, vector<2x8x8xf32>, vector<2x8x8xf32> -> vector<2x8x8xf32>
    "tpu.trace_stop"() : () -> ()
    %320 = vector.extract_strided_slice %254 {offsets = [0, 176], sizes = [16, 8], strides = [1, 1]} : vector<16x192xf32> to vector<16x8xf32>
    %321 = vector.extract_strided_slice %245 {offsets = [6, 0, 0], sizes = [1, 8, 64], strides = [1, 1, 1]} : vector<8x8x64xf32> to vector<1x8x64xf32>
    %322 = vector.shape_cast %321 : vector<1x8x64xf32> to vector<8x64xf32>
    %cst_100 = arith.constant dense<0.000000e+00> : vector<16x64xf32>
    %323 = tpu.matmul %320, %322, %cst_100 {dimension_numbers = #tpu.dot_dimension_numbers<[1], [0], [0], [1], [0, 0, 1, 1], [], []>} : vector<16x8xf32>, vector<8x64xf32>, vector<16x64xf32> -> vector<16x64xf32>
    %324 = vector.shape_cast %323 : vector<16x64xf32> to vector<2x8x64xf32>
    %325 = vector.extract_strided_slice %254 {offsets = [0, 56], sizes = [16, 8], strides = [1, 1]} : vector<16x192xf32> to vector<16x8xf32>
    %326 = vector.shape_cast %325 : vector<16x8xf32> to vector<2x8x8xf32>
    %327 = vector.extract_strided_slice %254 {offsets = [0, 120], sizes = [16, 8], strides = [1, 1]} : vector<16x192xf32> to vector<16x8xf32>
    %328 = vector.shape_cast %327 : vector<16x8xf32> to vector<2x8x8xf32>
    "tpu.trace_start"() <{level = 10 : i32, message = "bqd,bkd->bqk"}> : () -> ()
    %cst_101 = arith.constant dense<0.000000e+00> : vector<2x8x8xf32>
    %329 = tpu.matmul %326, %328, %cst_101 {dimension_numbers = #tpu.dot_dimension_numbers<[2], [2], [1], [1], [0, 0, 0, 1, 1, 1], [0], [0]>} : vector<2x8x8xf32>, vector<2x8x8xf32>, vector<2x8x8xf32> -> vector<2x8x8xf32>
    "tpu.trace_stop"() : () -> ()
    %330 = vector.extract_strided_slice %254 {offsets = [0, 184], sizes = [16, 8], strides = [1, 1]} : vector<16x192xf32> to vector<16x8xf32>
    %331 = vector.extract_strided_slice %245 {offsets = [7, 0, 0], sizes = [1, 8, 64], strides = [1, 1, 1]} : vector<8x8x64xf32> to vector<1x8x64xf32>
    %332 = vector.shape_cast %331 : vector<1x8x64xf32> to vector<8x64xf32>
    %cst_102 = arith.constant dense<0.000000e+00> : vector<16x64xf32>
    %333 = tpu.matmul %330, %332, %cst_102 {dimension_numbers = #tpu.dot_dimension_numbers<[1], [0], [0], [1], [0, 0, 1, 1], [], []>} : vector<16x8xf32>, vector<8x64xf32>, vector<16x64xf32> -> vector<16x64xf32>
    %334 = vector.shape_cast %333 : vector<16x64xf32> to vector<2x8x64xf32>
    %335 = vector.shape_cast %259 : vector<2x8x8xf32> to vector<2x1x8x8xf32>
    %336 = vector.shape_cast %269 : vector<2x8x8xf32> to vector<2x1x8x8xf32>
    %337 = vector.shape_cast %279 : vector<2x8x8xf32> to vector<2x1x8x8xf32>
    %338 = vector.shape_cast %289 : vector<2x8x8xf32> to vector<2x1x8x8xf32>
    %339 = vector.shape_cast %299 : vector<2x8x8xf32> to vector<2x1x8x8xf32>
    %340 = vector.shape_cast %309 : vector<2x8x8xf32> to vector<2x1x8x8xf32>
    %341 = vector.shape_cast %319 : vector<2x8x8xf32> to vector<2x1x8x8xf32>
    %342 = vector.shape_cast %329 : vector<2x8x8xf32> to vector<2x1x8x8xf32>
    %343 = tpu.concatenate %335, %336, %337, %338, %339, %340, %341, %342 in 1 : vector<2x1x8x8xf32>, vector<2x1x8x8xf32>, vector<2x1x8x8xf32>, vector<2x1x8x8xf32>, vector<2x1x8x8xf32>, vector<2x1x8x8xf32>, vector<2x1x8x8xf32>, vector<2x1x8x8xf32> -> vector<2x8x8x8xf32>
    %cst_103 = arith.constant dense<0xFF800000> : vector<2x8x8xf32>
    %344 = vector.multi_reduction <maximumf>, %343, %cst_103 [3] : vector<2x8x8x8xf32> to vector<2x8x8xf32>
    %345 = vector.shape_cast %344 : vector<2x8x8xf32> to vector<2x8x8x1xf32>
    %346 = vector.broadcast %345 : vector<2x8x8x1xf32> to vector<2x8x8x8xf32>
    %347 = arith.subf %343, %346 : vector<2x8x8x8xf32>
    %348 = math.exp %347 : vector<2x8x8x8xf32>
    %cst_104 = arith.constant dense<0.000000e+00> : vector<2x8x8xf32>
    %349 = vector.multi_reduction <add>, %348, %cst_104 [3] : vector<2x8x8x8xf32> to vector<2x8x8xf32>
    %350 = vector.shape_cast %349 : vector<2x8x8xf32> to vector<2x8x8x1xf32>
    %351 = tpu.reciprocal %350 {approx = true} : vector<2x8x8x1xf32> -> vector<2x8x8x1xf32>
    %352 = vector.broadcast %351 : vector<2x8x8x1xf32> to vector<2x8x8x8xf32>
    %353 = arith.mulf %348, %352 : vector<2x8x8x8xf32>
    %354 = vector.extract_strided_slice %353 {offsets = [0, 0, 0, 0], sizes = [2, 1, 8, 8], strides = [1, 1, 1, 1]} : vector<2x8x8x8xf32> to vector<2x1x8x8xf32>
    %355 = vector.shape_cast %354 : vector<2x1x8x8xf32> to vector<2x8x8xf32>
    %356 = vector.extract_strided_slice %353 {offsets = [0, 1, 0, 0], sizes = [2, 1, 8, 8], strides = [1, 1, 1, 1]} : vector<2x8x8x8xf32> to vector<2x1x8x8xf32>
    %357 = vector.shape_cast %356 : vector<2x1x8x8xf32> to vector<2x8x8xf32>
    %358 = vector.extract_strided_slice %353 {offsets = [0, 2, 0, 0], sizes = [2, 1, 8, 8], strides = [1, 1, 1, 1]} : vector<2x8x8x8xf32> to vector<2x1x8x8xf32>
    %359 = vector.shape_cast %358 : vector<2x1x8x8xf32> to vector<2x8x8xf32>
    %360 = vector.extract_strided_slice %353 {offsets = [0, 3, 0, 0], sizes = [2, 1, 8, 8], strides = [1, 1, 1, 1]} : vector<2x8x8x8xf32> to vector<2x1x8x8xf32>
    %361 = vector.shape_cast %360 : vector<2x1x8x8xf32> to vector<2x8x8xf32>
    %362 = vector.extract_strided_slice %353 {offsets = [0, 4, 0, 0], sizes = [2, 1, 8, 8], strides = [1, 1, 1, 1]} : vector<2x8x8x8xf32> to vector<2x1x8x8xf32>
    %363 = vector.shape_cast %362 : vector<2x1x8x8xf32> to vector<2x8x8xf32>
    %364 = vector.extract_strided_slice %353 {offsets = [0, 5, 0, 0], sizes = [2, 1, 8, 8], strides = [1, 1, 1, 1]} : vector<2x8x8x8xf32> to vector<2x1x8x8xf32>
    %365 = vector.shape_cast %364 : vector<2x1x8x8xf32> to vector<2x8x8xf32>
    %366 = vector.extract_strided_slice %353 {offsets = [0, 6, 0, 0], sizes = [2, 1, 8, 8], strides = [1, 1, 1, 1]} : vector<2x8x8x8xf32> to vector<2x1x8x8xf32>
    %367 = vector.shape_cast %366 : vector<2x1x8x8xf32> to vector<2x8x8xf32>
    %368 = vector.extract_strided_slice %353 {offsets = [0, 7, 0, 0], sizes = [2, 1, 8, 8], strides = [1, 1, 1, 1]} : vector<2x8x8x8xf32> to vector<2x1x8x8xf32>
    %369 = vector.shape_cast %368 : vector<2x1x8x8xf32> to vector<2x8x8xf32>
    %370 = tpu.concatenate %355, %357, %359, %361, %363, %365, %367, %369 in 2 : vector<2x8x8xf32>, vector<2x8x8xf32>, vector<2x8x8xf32>, vector<2x8x8xf32>, vector<2x8x8xf32>, vector<2x8x8xf32>, vector<2x8x8xf32>, vector<2x8x8xf32> -> vector<2x8x64xf32>
    %371 = tpu.concatenate %264, %274, %284, %294, %304, %314, %324, %334 in 1 : vector<2x8x64xf32>, vector<2x8x64xf32>, vector<2x8x64xf32>, vector<2x8x64xf32>, vector<2x8x64xf32>, vector<2x8x64xf32>, vector<2x8x64xf32>, vector<2x8x64xf32> -> vector<2x64x64xf32>
    "tpu.trace_start"() <{level = 10 : i32, message = "bqx,bxm->bqm"}> : () -> ()
    %cst_105 = arith.constant dense<0.000000e+00> : vector<2x8x64xf32>
    %372 = tpu.matmul %370, %371, %cst_105 {dimension_numbers = #tpu.dot_dimension_numbers<[2], [1], [1], [2], [0, 0, 0, 1, 1, 2], [0], [0]>} : vector<2x8x64xf32>, vector<2x64x64xf32>, vector<2x8x64xf32> -> vector<2x8x64xf32>
    "tpu.trace_stop"() : () -> ()
    %373 = vector.shape_cast %372 : vector<2x8x64xf32> to vector<16x64xf32>
    %374 = vector.extract_strided_slice %247 {offsets = [0, 0], sizes = [1, 64], strides = [1, 1]} : vector<6x64xf32> to vector<1x64xf32>
    %375 = vector.broadcast %374 : vector<1x64xf32> to vector<16x64xf32>
    %376 = arith.addf %373, %375 : vector<16x64xf32>
    %377 = arith.addf %243, %376 : vector<16x64xf32>
    %378 = vector.extract_strided_slice %247 {offsets = [1, 0], sizes = [1, 64], strides = [1, 1]} : vector<6x64xf32> to vector<1x64xf32>
    %379 = vector.extract_strided_slice %247 {offsets = [2, 0], sizes = [1, 64], strides = [1, 1]} : vector<6x64xf32> to vector<1x64xf32>
    %cst_106 = arith.constant dense<0.000000e+00> : vector<16xf32>
    %380 = vector.multi_reduction <add>, %377, %cst_106 [1] : vector<16x64xf32> to vector<16xf32>
    %381 = vector.shape_cast %380 : vector<16xf32> to vector<16x1xf32>
    %cst_107 = arith.constant 6.400000e+01 : f32
    %382 = vector.broadcast %cst_107 : f32 to vector<16x1xf32>
    %383 = arith.divf %381, %382 : vector<16x1xf32>
    %384 = vector.broadcast %383 : vector<16x1xf32> to vector<16x64xf32>
    %385 = arith.subf %377, %384 : vector<16x64xf32>
    %386 = arith.mulf %385, %385 : vector<16x64xf32>
    %cst_108 = arith.constant dense<0.000000e+00> : vector<16xf32>
    %387 = vector.multi_reduction <add>, %386, %cst_108 [1] : vector<16x64xf32> to vector<16xf32>
    %388 = vector.shape_cast %387 : vector<16xf32> to vector<16x1xf32>
    %cst_109 = arith.constant 6.400000e+01 : f32
    %389 = vector.broadcast %cst_109 : f32 to vector<16x1xf32>
    %390 = arith.divf %388, %389 : vector<16x1xf32>
    %391 = vector.broadcast %383 : vector<16x1xf32> to vector<16x64xf32>
    %392 = arith.subf %377, %391 : vector<16x64xf32>
    %cst_110 = arith.constant 9.99999997E-7 : f32
    %393 = vector.broadcast %cst_110 : f32 to vector<16x1xf32>
    %394 = arith.addf %390, %393 : vector<16x1xf32>
    %395 = math.rsqrt %394 : vector<16x1xf32>
    %396 = vector.broadcast %395 : vector<16x1xf32> to vector<16x64xf32>
    %397 = arith.mulf %392, %396 : vector<16x64xf32>
    %398 = vector.broadcast %378 : vector<1x64xf32> to vector<16x64xf32>
    %399 = arith.mulf %397, %398 : vector<16x64xf32>
    %400 = vector.broadcast %379 : vector<1x64xf32> to vector<16x64xf32>
    %401 = arith.addf %399, %400 : vector<16x64xf32>
    %c1_111 = arith.constant 1 : index
    %c0_112 = arith.constant 0 : index
    %c0_113 = arith.constant 0 : index
    %402 = vector.load %arg8[%c1_111, %c0_112, %c0_113] : memref<2x64x256xf32, #tpu.memory_space<vmem>>, vector<1x64x256xf32>
    %403 = vector.shape_cast %402 : vector<1x64x256xf32> to vector<64x256xf32>
    %cst_114 = arith.constant dense<0.000000e+00> : vector<16x256xf32>
    %404 = tpu.matmul %401, %403, %cst_114 {dimension_numbers = #tpu.dot_dimension_numbers<[1], [0], [0], [1], [0, 0, 1, 1], [], []>} : vector<16x64xf32>, vector<64x256xf32>, vector<16x256xf32> -> vector<16x256xf32>
    %c1_115 = arith.constant 1 : index
    %c0_116 = arith.constant 0 : index
    %c0_117 = arith.constant 0 : index
    %405 = vector.load %arg9[%c1_115, %c0_116, %c0_117] : memref<2x1x256xf32, #tpu.memory_space<vmem>>, vector<1x1x256xf32>
    %406 = vector.shape_cast %405 : vector<1x1x256xf32> to vector<1x256xf32>
    %407 = vector.broadcast %406 : vector<1x256xf32> to vector<16x256xf32>
    %408 = arith.addf %404, %407 : vector<16x256xf32>
    %cst_118 = arith.constant 5.000000e-01 : f32
    %409 = vector.broadcast %cst_118 : f32 to vector<16x256xf32>
    %410 = arith.mulf %409, %408 : vector<16x256xf32>
    %cst_119 = arith.constant 0.707106769 : f32
    %411 = vector.broadcast %cst_119 : f32 to vector<16x256xf32>
    %412 = arith.mulf %408, %411 : vector<16x256xf32>
    %cst_120 = arith.constant 0.000000e+00 : f32
    %413 = vector.broadcast %cst_120 : f32 to vector<16x256xf32>
    %414 = arith.cmpf oge, %412, %413 : vector<16x256xf32>
    %cst_121 = arith.constant 1.000000e+00 : f32
    %cst_122 = arith.constant -1.000000e+00 : f32
    %415 = vector.broadcast %cst_121 : f32 to vector<16x256xf32>
    %416 = vector.broadcast %cst_122 : f32 to vector<16x256xf32>
    %417 = arith.select %414, %415, %416 : vector<16x256xi1>, vector<16x256xf32>
    %418 = math.absf %412 : vector<16x256xf32>
    %cst_123 = arith.constant 0.327591091 : f32
    %419 = vector.broadcast %cst_123 : f32 to vector<16x256xf32>
    %420 = arith.mulf %419, %418 : vector<16x256xf32>
    %cst_124 = arith.constant 1.000000e+00 : f32
    %421 = vector.broadcast %cst_124 : f32 to vector<16x256xf32>
    %422 = arith.addf %421, %420 : vector<16x256xf32>
    %423 = tpu.reciprocal %422 {approx = true} : vector<16x256xf32> -> vector<16x256xf32>
    %cst_125 = arith.constant 1.06140542 : f32
    %424 = vector.broadcast %cst_125 : f32 to vector<16x256xf32>
    %425 = arith.mulf %424, %423 : vector<16x256xf32>
    %cst_126 = arith.constant -1.45315206 : f32
    %426 = vector.broadcast %cst_126 : f32 to vector<16x256xf32>
    %427 = arith.addf %425, %426 : vector<16x256xf32>
    %428 = arith.mulf %427, %423 : vector<16x256xf32>
    %cst_127 = arith.constant 1.42141378 : f32
    %429 = vector.broadcast %cst_127 : f32 to vector<16x256xf32>
    %430 = arith.addf %428, %429 : vector<16x256xf32>
    %431 = arith.mulf %430, %423 : vector<16x256xf32>
    %cst_128 = arith.constant -0.284496725 : f32
    %432 = vector.broadcast %cst_128 : f32 to vector<16x256xf32>
    %433 = arith.addf %431, %432 : vector<16x256xf32>
    %434 = arith.mulf %433, %423 : vector<16x256xf32>
    %cst_129 = arith.constant 0.254829586 : f32
    %435 = vector.broadcast %cst_129 : f32 to vector<16x256xf32>
    %436 = arith.addf %434, %435 : vector<16x256xf32>
    %437 = arith.mulf %436, %423 : vector<16x256xf32>
    %cst_130 = arith.constant 0.000000e+00 : f32
    %438 = vector.broadcast %cst_130 : f32 to vector<16x256xf32>
    %439 = arith.subf %438, %418 : vector<16x256xf32>
    %440 = arith.mulf %439, %418 : vector<16x256xf32>
    %441 = math.exp %440 : vector<16x256xf32>
    %442 = arith.mulf %437, %441 : vector<16x256xf32>
    %cst_131 = arith.constant 1.000000e+00 : f32
    %443 = vector.broadcast %cst_131 : f32 to vector<16x256xf32>
    %444 = arith.subf %443, %442 : vector<16x256xf32>
    %445 = arith.mulf %417, %444 : vector<16x256xf32>
    %cst_132 = arith.constant 1.000000e+00 : f32
    %446 = vector.broadcast %cst_132 : f32 to vector<16x256xf32>
    %447 = arith.addf %446, %445 : vector<16x256xf32>
    %448 = arith.mulf %410, %447 : vector<16x256xf32>
    %c1_133 = arith.constant 1 : index
    %c0_134 = arith.constant 0 : index
    %c0_135 = arith.constant 0 : index
    %449 = vector.load %arg10[%c1_133, %c0_134, %c0_135] : memref<2x256x64xf32, #tpu.memory_space<vmem>>, vector<1x256x64xf32>
    %450 = vector.shape_cast %449 : vector<1x256x64xf32> to vector<256x64xf32>
    %cst_136 = arith.constant dense<0.000000e+00> : vector<16x64xf32>
    %451 = tpu.matmul %448, %450, %cst_136 {dimension_numbers = #tpu.dot_dimension_numbers<[1], [0], [0], [1], [0, 0, 1, 1], [], []>} : vector<16x256xf32>, vector<256x64xf32>, vector<16x64xf32> -> vector<16x64xf32>
    %452 = vector.extract_strided_slice %247 {offsets = [3, 0], sizes = [1, 64], strides = [1, 1]} : vector<6x64xf32> to vector<1x64xf32>
    %453 = vector.broadcast %452 : vector<1x64xf32> to vector<16x64xf32>
    %454 = arith.addf %451, %453 : vector<16x64xf32>
    %455 = arith.addf %401, %454 : vector<16x64xf32>
    %456 = vector.extract_strided_slice %247 {offsets = [4, 0], sizes = [1, 64], strides = [1, 1]} : vector<6x64xf32> to vector<1x64xf32>
    %457 = vector.extract_strided_slice %247 {offsets = [5, 0], sizes = [1, 64], strides = [1, 1]} : vector<6x64xf32> to vector<1x64xf32>
    %cst_137 = arith.constant dense<0.000000e+00> : vector<16xf32>
    %458 = vector.multi_reduction <add>, %455, %cst_137 [1] : vector<16x64xf32> to vector<16xf32>
    %459 = vector.shape_cast %458 : vector<16xf32> to vector<16x1xf32>
    %cst_138 = arith.constant 6.400000e+01 : f32
    %460 = vector.broadcast %cst_138 : f32 to vector<16x1xf32>
    %461 = arith.divf %459, %460 : vector<16x1xf32>
    %462 = vector.broadcast %461 : vector<16x1xf32> to vector<16x64xf32>
    %463 = arith.subf %455, %462 : vector<16x64xf32>
    %464 = arith.mulf %463, %463 : vector<16x64xf32>
    %cst_139 = arith.constant dense<0.000000e+00> : vector<16xf32>
    %465 = vector.multi_reduction <add>, %464, %cst_139 [1] : vector<16x64xf32> to vector<16xf32>
    %466 = vector.shape_cast %465 : vector<16xf32> to vector<16x1xf32>
    %cst_140 = arith.constant 6.400000e+01 : f32
    %467 = vector.broadcast %cst_140 : f32 to vector<16x1xf32>
    %468 = arith.divf %466, %467 : vector<16x1xf32>
    %469 = vector.broadcast %461 : vector<16x1xf32> to vector<16x64xf32>
    %470 = arith.subf %455, %469 : vector<16x64xf32>
    %cst_141 = arith.constant 9.99999997E-7 : f32
    %471 = vector.broadcast %cst_141 : f32 to vector<16x1xf32>
    %472 = arith.addf %468, %471 : vector<16x1xf32>
    %473 = math.rsqrt %472 : vector<16x1xf32>
    %474 = vector.broadcast %473 : vector<16x1xf32> to vector<16x64xf32>
    %475 = arith.mulf %470, %474 : vector<16x64xf32>
    %476 = vector.broadcast %456 : vector<1x64xf32> to vector<16x64xf32>
    %477 = arith.mulf %475, %476 : vector<16x64xf32>
    %478 = vector.broadcast %457 : vector<1x64xf32> to vector<16x64xf32>
    %479 = arith.addf %477, %478 : vector<16x64xf32>
    %c0_142 = arith.constant 0 : index
    %c0_143 = arith.constant 0 : index
    %480 = vector.load %arg11[%c0_142, %c0_143] : memref<2x64xf32, #tpu.memory_space<vmem>>, vector<2x64xf32>
    %481 = vector.extract_strided_slice %480 {offsets = [0, 0], sizes = [1, 64], strides = [1, 1]} : vector<2x64xf32> to vector<1x64xf32>
    %482 = vector.extract_strided_slice %480 {offsets = [1, 0], sizes = [1, 64], strides = [1, 1]} : vector<2x64xf32> to vector<1x64xf32>
    %cst_144 = arith.constant dense<0.000000e+00> : vector<16xf32>
    %483 = vector.multi_reduction <add>, %479, %cst_144 [1] : vector<16x64xf32> to vector<16xf32>
    %484 = vector.shape_cast %483 : vector<16xf32> to vector<16x1xf32>
    %cst_145 = arith.constant 6.400000e+01 : f32
    %485 = vector.broadcast %cst_145 : f32 to vector<16x1xf32>
    %486 = arith.divf %484, %485 : vector<16x1xf32>
    %487 = vector.broadcast %486 : vector<16x1xf32> to vector<16x64xf32>
    %488 = arith.subf %479, %487 : vector<16x64xf32>
    %489 = arith.mulf %488, %488 : vector<16x64xf32>
    %cst_146 = arith.constant dense<0.000000e+00> : vector<16xf32>
    %490 = vector.multi_reduction <add>, %489, %cst_146 [1] : vector<16x64xf32> to vector<16xf32>
    %491 = vector.shape_cast %490 : vector<16xf32> to vector<16x1xf32>
    %cst_147 = arith.constant 6.400000e+01 : f32
    %492 = vector.broadcast %cst_147 : f32 to vector<16x1xf32>
    %493 = arith.divf %491, %492 : vector<16x1xf32>
    %494 = vector.broadcast %486 : vector<16x1xf32> to vector<16x64xf32>
    %495 = arith.subf %479, %494 : vector<16x64xf32>
    %cst_148 = arith.constant 9.99999974E-6 : f32
    %496 = vector.broadcast %cst_148 : f32 to vector<16x1xf32>
    %497 = arith.addf %493, %496 : vector<16x1xf32>
    %498 = math.rsqrt %497 : vector<16x1xf32>
    %499 = vector.broadcast %498 : vector<16x1xf32> to vector<16x64xf32>
    %500 = arith.mulf %495, %499 : vector<16x64xf32>
    %501 = vector.broadcast %481 : vector<1x64xf32> to vector<16x64xf32>
    %502 = arith.mulf %500, %501 : vector<16x64xf32>
    %503 = vector.broadcast %482 : vector<1x64xf32> to vector<16x64xf32>
    %504 = arith.addf %502, %503 : vector<16x64xf32>
    %505 = vector.shape_cast %504 : vector<16x64xf32> to vector<2x8x64xf32>
    %cst_149 = arith.constant dense<0.000000e+00> : vector<2x64xf32>
    %506 = vector.multi_reduction <add>, %505, %cst_149 [1] : vector<2x8x64xf32> to vector<2x64xf32>
    %cst_150 = arith.constant 8.000000e+00 : f32
    %507 = vector.broadcast %cst_150 : f32 to vector<2x64xf32>
    %508 = arith.divf %506, %507 : vector<2x64xf32>
    %cst_151 = arith.constant dense<0xFF800000> : vector<2x64xf32>
    %509 = vector.multi_reduction <maximumf>, %505, %cst_151 [1] : vector<2x8x64xf32> to vector<2x64xf32>
    %510 = tpu.concatenate %508, %509 in 1 : vector<2x64xf32>, vector<2x64xf32> -> vector<2x128xf32>
    %c0_152 = arith.constant 0 : index
    %c0_153 = arith.constant 0 : index
    %511 = vector.load %arg12[%c0_152, %c0_153] : memref<128x256xf32, #tpu.memory_space<vmem>>, vector<128x256xf32>
    %cst_154 = arith.constant dense<0.000000e+00> : vector<2x256xf32>
    %512 = tpu.matmul %510, %511, %cst_154 {dimension_numbers = #tpu.dot_dimension_numbers<[1], [0], [0], [1], [0, 0, 1, 1], [], []>} : vector<2x128xf32>, vector<128x256xf32>, vector<2x256xf32> -> vector<2x256xf32>
    %c0_155 = arith.constant 0 : index
    %c0_156 = arith.constant 0 : index
    %513 = vector.load %arg13[%c0_155, %c0_156] : memref<1x256xf32, #tpu.memory_space<vmem>>, vector<1x256xf32>
    %514 = vector.broadcast %513 : vector<1x256xf32> to vector<2x256xf32>
    %515 = arith.addf %512, %514 : vector<2x256xf32>
    %cst_157 = arith.constant 3.000000e+00 : f32
    %516 = vector.broadcast %cst_157 : f32 to vector<2x256xf32>
    %517 = arith.addf %515, %516 : vector<2x256xf32>
    %cst_158 = arith.constant 0.000000e+00 : f32
    %cst_159 = arith.constant 6.000000e+00 : f32
    %518 = vector.broadcast %cst_158 : f32 to vector<2x256xf32>
    %519 = arith.maximumf %518, %517 : vector<2x256xf32>
    %520 = vector.broadcast %cst_159 : f32 to vector<2x256xf32>
    %521 = arith.minimumf %520, %519 : vector<2x256xf32>
    %522 = arith.mulf %515, %521 : vector<2x256xf32>
    %cst_160 = arith.constant 0.166666672 : f32
    %523 = vector.broadcast %cst_160 : f32 to vector<2x256xf32>
    %524 = arith.mulf %522, %523 : vector<2x256xf32>
    %c0_161 = arith.constant 0 : index
    %c0_162 = arith.constant 0 : index
    %525 = vector.load %arg14[%c0_161, %c0_162] : memref<256x128xf32, #tpu.memory_space<vmem>>, vector<256x128xf32>
    %cst_163 = arith.constant dense<0.000000e+00> : vector<2x128xf32>
    %526 = tpu.matmul %524, %525, %cst_163 {dimension_numbers = #tpu.dot_dimension_numbers<[1], [0], [0], [1], [0, 0, 1, 1], [], []>} : vector<2x256xf32>, vector<256x128xf32>, vector<2x128xf32> -> vector<2x128xf32>
    %c0_164 = arith.constant 0 : index
    %c0_165 = arith.constant 0 : index
    %527 = vector.load %arg15[%c0_164, %c0_165] : memref<1x128xf32, #tpu.memory_space<vmem>>, vector<1x128xf32>
    %528 = vector.broadcast %527 : vector<1x128xf32> to vector<2x128xf32>
    %529 = arith.addf %526, %528 : vector<2x128xf32>
    %c0_166 = arith.constant 0 : index
    %c0_167 = arith.constant 0 : index
    %c0_168 = arith.constant 0 : index
    %530 = vector.load %arg16[%c0_166, %c0_167, %c0_168] : memref<1x2x128xf32, #tpu.memory_space<vmem>>, vector<1x2x128xf32>
    %531 = vector.shape_cast %530 : vector<1x2x128xf32> to vector<2x128xf32>
    %532 = vector.shape_cast %529 : vector<2x128xf32> to vector<1x2x128xf32>
    tpu.vector_store %arg16[%c0_166, %c0_167, %c0_168], %532 {strides = array<i32>} : memref<1x2x128xf32, #tpu.memory_space<vmem>>, vector<1x2x128xf32>,
    return
  }
  func.func @transform_0(%arg0: i32) -> (i32, i32, i32) {
    %c0_i32 = arith.constant 0 : i32
    %c0_i32_0 = arith.constant 0 : i32
    %c0_i32_1 = arith.constant 0 : i32
    return %arg0, %c0_i32, %c0_i32_0 : i32, i32, i32
  }
  func.func @transform_1(%arg0: i32) -> (i32, i32) {
    %c0_i32 = arith.constant 0 : i32
    %c0_i32_0 = arith.constant 0 : i32
    %c0_i32_1 = arith.constant 0 : i32
    return %c0_i32, %c0_i32_0 : i32, i32
  }
  func.func @transform_2(%arg0: i32) -> (i32, i32) {
    %c0_i32 = arith.constant 0 : i32
    %c0_i32_0 = arith.constant 0 : i32
    %c0_i32_1 = arith.constant 0 : i32
    return %c0_i32, %c0_i32_0 : i32, i32
  }
  func.func @transform_3(%arg0: i32) -> (i32, i32, i32) {
    %c0_i32 = arith.constant 0 : i32
    %c0_i32_0 = arith.constant 0 : i32
    %c0_i32_1 = arith.constant 0 : i32
    %c0_i32_2 = arith.constant 0 : i32
    return %c0_i32, %c0_i32_0, %c0_i32_1 : i32, i32, i32
  }
  func.func @transform_4(%arg0: i32) -> (i32, i32, i32) {
    %c0_i32 = arith.constant 0 : i32
    %c0_i32_0 = arith.constant 0 : i32
    %c0_i32_1 = arith.constant 0 : i32
    %c0_i32_2 = arith.constant 0 : i32
    return %c0_i32, %c0_i32_0, %c0_i32_1 : i32, i32, i32
  }
  func.func @transform_5(%arg0: i32) -> (i32, i32, i32, i32) {
    %c0_i32 = arith.constant 0 : i32
    %c0_i32_0 = arith.constant 0 : i32
    %c0_i32_1 = arith.constant 0 : i32
    %c0_i32_2 = arith.constant 0 : i32
    %c0_i32_3 = arith.constant 0 : i32
    return %c0_i32, %c0_i32_0, %c0_i32_1, %c0_i32_2 : i32, i32, i32, i32
  }
  func.func @transform_6(%arg0: i32) -> (i32, i32, i32) {
    %c0_i32 = arith.constant 0 : i32
    %c0_i32_0 = arith.constant 0 : i32
    %c0_i32_1 = arith.constant 0 : i32
    %c0_i32_2 = arith.constant 0 : i32
    return %c0_i32, %c0_i32_0, %c0_i32_1 : i32, i32, i32
  }
  func.func @transform_7(%arg0: i32) -> (i32, i32, i32) {
    %c0_i32 = arith.constant 0 : i32
    %c0_i32_0 = arith.constant 0 : i32
    %c0_i32_1 = arith.constant 0 : i32
    %c0_i32_2 = arith.constant 0 : i32
    return %c0_i32, %c0_i32_0, %c0_i32_1 : i32, i32, i32
  }
  func.func @transform_8(%arg0: i32) -> (i32, i32, i32) {
    %c0_i32 = arith.constant 0 : i32
    %c0_i32_0 = arith.constant 0 : i32
    %c0_i32_1 = arith.constant 0 : i32
    %c0_i32_2 = arith.constant 0 : i32
    return %c0_i32, %c0_i32_0, %c0_i32_1 : i32, i32, i32
  }
  func.func @transform_9(%arg0: i32) -> (i32, i32, i32) {
    %c0_i32 = arith.constant 0 : i32
    %c0_i32_0 = arith.constant 0 : i32
    %c0_i32_1 = arith.constant 0 : i32
    %c0_i32_2 = arith.constant 0 : i32
    return %c0_i32, %c0_i32_0, %c0_i32_1 : i32, i32, i32
  }
  func.func @transform_10(%arg0: i32) -> (i32, i32) {
    %c0_i32 = arith.constant 0 : i32
    %c0_i32_0 = arith.constant 0 : i32
    %c0_i32_1 = arith.constant 0 : i32
    return %c0_i32, %c0_i32_0 : i32, i32
  }
  func.func @transform_11(%arg0: i32) -> (i32, i32) {
    %c0_i32 = arith.constant 0 : i32
    %c0_i32_0 = arith.constant 0 : i32
    %c0_i32_1 = arith.constant 0 : i32
    return %c0_i32, %c0_i32_0 : i32, i32
  }
  func.func @transform_12(%arg0: i32) -> (i32, i32) {
    %c0_i32 = arith.constant 0 : i32
    %c0_i32_0 = arith.constant 0 : i32
    %c0_i32_1 = arith.constant 0 : i32
    return %c0_i32, %c0_i32_0 : i32, i32
  }
  func.func @transform_13(%arg0: i32) -> (i32, i32) {
    %c0_i32 = arith.constant 0 : i32
    %c0_i32_0 = arith.constant 0 : i32
    %c0_i32_1 = arith.constant 0 : i32
    return %c0_i32, %c0_i32_0 : i32, i32
  }
  func.func @transform_14(%arg0: i32) -> (i32, i32) {
    %c0_i32 = arith.constant 0 : i32
    %c0_i32_0 = arith.constant 0 : i32
    %c0_i32_1 = arith.constant 0 : i32
    return %c0_i32, %c0_i32_0 : i32, i32
  }
  func.func @transform_15(%arg0: i32) -> (i32, i32, i32) {
    %c0_i32 = arith.constant 0 : i32
    %c0_i32_0 = arith.constant 0 : i32
    %c0_i32_1 = arith.constant 0 : i32
    return %arg0, %c0_i32, %c0_i32_0 : i32, i32, i32
  }
}

module attributes {stable_mosaic.version = 11 : i64} {
  func.func @fused_kernel(%arg0: i32, %arg1: memref<2x8x1xf32, #tpu.memory_space<vmem>>, %arg2: memref<1x64xf32, #tpu.memory_space<vmem>>, %arg3: memref<16x64xf32, #tpu.memory_space<vmem>>, %arg4: memref<2x64x192xf32, #tpu.memory_space<vmem>>, %arg5: memref<2x1x192xf32, #tpu.memory_space<vmem>>, %arg6: memref<2x8x8x64xf32, #tpu.memory_space<vmem>>, %arg7: memref<2x6x64xf32, #tpu.memory_space<vmem>>, %arg8: memref<2x64x256xf32, #tpu.memory_space<vmem>>, %arg9: memref<2x1x256xf32, #tpu.memory_space<vmem>>, %arg10: memref<2x256x64xf32, #tpu.memory_space<vmem>>, %arg11: memref<2x64xf32, #tpu.memory_space<vmem>>, %arg12: memref<128x256xf32, #tpu.memory_space<vmem>>, %arg13: memref<1x256xf32, #tpu.memory_space<vmem>>, %arg14: memref<256x128xf32, #tpu.memory_space<vmem>>, %arg15: memref<1x128xf32, #tpu.memory_space<vmem>>, %arg16: memref<1x2x128xf32, #tpu.memory_space<vmem>>) attributes {dimension_semantics = [#tpu.dimension_semantics<parallel>], iteration_bounds = array<i64: 1>, scalar_prefetch = 0 : i64, scratch_operands = 0 : i64, tpu.core_type = #tpu.core_type<tc>, window_params = [{transform_indices = @transform_0, window_bounds = array<i64: 2, 8, 1>}, {pipeline_mode = #tpu.pipeline_mode<synchronous>, transform_indices = @transform_1, window_bounds = array<i64: 1, 64>}, {pipeline_mode = #tpu.pipeline_mode<synchronous>, transform_indices = @transform_2, window_bounds = array<i64: 16, 64>}, {pipeline_mode = #tpu.pipeline_mode<synchronous>, transform_indices = @transform_3, window_bounds = array<i64: 2, 64, 192>}, {pipeline_mode = #tpu.pipeline_mode<synchronous>, transform_indices = @transform_4, window_bounds = array<i64: 2, 1, 192>}, {pipeline_mode = #tpu.pipeline_mode<synchronous>, transform_indices = @transform_5, window_bounds = array<i64: 2, 8, 8, 64>}, {pipeline_mode = #tpu.pipeline_mode<synchronous>, transform_indices = @transform_6, window_bounds = array<i64: 2, 6, 64>}, {pipeline_mode = #tpu.pipeline_mode<synchronous>, transform_indices = @transform_7, window_bounds = array<i64: 2, 64, 256>}, {pipeline_mode = #tpu.pipeline_mode<synchronous>, transform_indices = @transform_8, window_bounds = array<i64: 2, 1, 256>}, {pipeline_mode = #tpu.pipeline_mode<synchronous>, transform_indices = @transform_9, window_bounds = array<i64: 2, 256, 64>}, {pipeline_mode = #tpu.pipeline_mode<synchronous>, transform_indices = @transform_10, window_bounds = array<i64: 2, 64>}, {pipeline_mode = #tpu.pipeline_mode<synchronous>, transform_indices = @transform_11, window_bounds = array<i64: 128, 256>}, {pipeline_mode = #tpu.pipeline_mode<synchronous>, transform_indices = @transform_12, window_bounds = array<i64: 1, 256>}, {pipeline_mode = #tpu.pipeline_mode<synchronous>, transform_indices = @transform_13, window_bounds = array<i64: 256, 128>}, {pipeline_mode = #tpu.pipeline_mode<synchronous>, transform_indices = @transform_14, window_bounds = array<i64: 1, 128>}, {transform_indices = @transform_15, window_bounds = array<i64: 1, 2, 128>}]} {
    %c0 = arith.constant 0 : index
    %c0_0 = arith.constant 0 : index
    %c0_1 = arith.constant 0 : index
    %0 = vector.load %arg1[%c0, %c0_0, %c0_1] : memref<2x8x1xf32, #tpu.memory_space<vmem>>, vector<2x8x1xf32>
    %1 = vector.shape_cast %0 : vector<2x8x1xf32> to vector<16x1xf32>
    %c0_2 = arith.constant 0 : index
    %c0_3 = arith.constant 0 : index
    %2 = vector.load %arg2[%c0_2, %c0_3] : memref<1x64xf32, #tpu.memory_space<vmem>>, vector<1x64xf32>
    %3 = vector.broadcast %1 : vector<16x1xf32> to vector<16x64xf32>
    %4 = vector.broadcast %2 : vector<1x64xf32> to vector<16x64xf32>
    %5 = arith.mulf %3, %4 : vector<16x64xf32>
    %c0_4 = arith.constant 0 : index
    %c0_5 = arith.constant 0 : index
    %6 = vector.load %arg3[%c0_4, %c0_5] : memref<16x64xf32, #tpu.memory_space<vmem>>, vector<16x64xf32>
    %7 = arith.addf %5, %6 : vector<16x64xf32>
    %c0_6 = arith.constant 0 : index
    %c0_7 = arith.constant 0 : index
    %c0_8 = arith.constant 0 : index
    %c0_9 = arith.constant 0 : index
    %8 = vector.load %arg6[%c0_6, %c0_7, %c0_8, %c0_9] : memref<2x8x8x64xf32, #tpu.memory_space<vmem>>, vector<1x8x8x64xf32>
    %9 = vector.shape_cast %8 : vector<1x8x8x64xf32> to vector<8x8x64xf32>
    %c0_10 = arith.constant 0 : index
    %c0_11 = arith.constant 0 : index
    %c0_12 = arith.constant 0 : index
    %10 = vector.load %arg7[%c0_10, %c0_11, %c0_12] : memref<2x6x64xf32, #tpu.memory_space<vmem>>, vector<1x6x64xf32>
    %11 = vector.shape_cast %10 : vector<1x6x64xf32> to vector<6x64xf32>
    %c0_13 = arith.constant 0 : index
    %c0_14 = arith.constant 0 : index
    %c0_15 = arith.constant 0 : index
    %12 = vector.load %arg4[%c0_13, %c0_14, %c0_15] : memref<2x64x192xf32, #tpu.memory_space<vmem>>, vector<1x64x192xf32>
    %13 = vector.shape_cast %12 : vector<1x64x192xf32> to vector<64x192xf32>
    %cst = arith.constant dense<0.000000e+00> : vector<16x192xf32>
    %14 = tpu.matmul %7, %13, %cst {dimension_numbers = #tpu.dot_dimension_numbers<[1], [0], [0], [1], [0, 0, 1, 1], [], []>} : vector<16x64xf32>, vector<64x192xf32>, vector<16x192xf32> -> vector<16x192xf32>
    %c0_16 = arith.constant 0 : index
    %c0_17 = arith.constant 0 : index
    %c0_18 = arith.constant 0 : index
    %15 = vector.load %arg5[%c0_16, %c0_17, %c0_18] : memref<2x1x192xf32, #tpu.memory_space<vmem>>, vector<1x1x192xf32>
    %16 = vector.shape_cast %15 : vector<1x1x192xf32> to vector<1x192xf32>
    %17 = vector.broadcast %16 : vector<1x192xf32> to vector<16x192xf32>
    %18 = arith.addf %14, %17 : vector<16x192xf32>
    %19 = vector.extract_strided_slice %18 {offsets = [0, 0], sizes = [16, 8], strides = [1, 1]} : vector<16x192xf32> to vector<16x8xf32>
    %20 = vector.shape_cast %19 : vector<16x8xf32> to vector<2x8x8xf32>
    %21 = vector.extract_strided_slice %18 {offsets = [0, 64], sizes = [16, 8], strides = [1, 1]} : vector<16x192xf32> to vector<16x8xf32>
    %22 = vector.shape_cast %21 : vector<16x8xf32> to vector<2x8x8xf32>
    "tpu.trace_start"() <{level = 10 : i32, message = "bqd,bkd->bqk"}> : () -> ()
    %cst_19 = arith.constant dense<0.000000e+00> : vector<2x8x8xf32>
    %23 = tpu.matmul %20, %22, %cst_19 {dimension_numbers = #tpu.dot_dimension_numbers<[2], [2], [1], [1], [0, 0, 0, 1, 1, 1], [0], [0]>} : vector<2x8x8xf32>, vector<2x8x8xf32>, vector<2x8x8xf32> -> vector<2x8x8xf32>
    "tpu.trace_stop"() : () -> ()
    %24 = vector.extract_strided_slice %18 {offsets = [0, 128], sizes = [16, 8], strides = [1, 1]} : vector<16x192xf32> to vector<16x8xf32>
    %25 = vector.extract_strided_slice %9 {offsets = [0, 0, 0], sizes = [1, 8, 64], strides = [1, 1, 1]} : vector<8x8x64xf32> to vector<1x8x64xf32>
    %26 = vector.shape_cast %25 : vector<1x8x64xf32> to vector<8x64xf32>
    %cst_20 = arith.constant dense<0.000000e+00> : vector<16x64xf32>
    %27 = tpu.matmul %24, %26, %cst_20 {dimension_numbers = #tpu.dot_dimension_numbers<[1], [0], [0], [1], [0, 0, 1, 1], [], []>} : vector<16x8xf32>, vector<8x64xf32>, vector<16x64xf32> -> vector<16x64xf32>
    %28 = vector.shape_cast %27 : vector<16x64xf32> to vector<2x8x64xf32>
    %29 = vector.extract_strided_slice %18 {offsets = [0, 8], sizes = [16, 8], strides = [1, 1]} : vector<16x192xf32> to vector<16x8xf32>
    %30 = vector.shape_cast %29 : vector<16x8xf32> to vector<2x8x8xf32>
    %31 = vector.extract_strided_slice %18 {offsets = [0, 72], sizes = [16, 8], strides = [1, 1]} : vector<16x192xf32> to vector<16x8xf32>
    %32 = vector.shape_cast %31 : vector<16x8xf32> to vector<2x8x8xf32>
    "tpu.trace_start"() <{level = 10 : i32, message = "bqd,bkd->bqk"}> : () -> ()
    %cst_21 = arith.constant dense<0.000000e+00> : vector<2x8x8xf32>
    %33 = tpu.matmul %30, %32, %cst_21 {dimension_numbers = #tpu.dot_dimension_numbers<[2], [2], [1], [1], [0, 0, 0, 1, 1, 1], [0], [0]>} : vector<2x8x8xf32>, vector<2x8x8xf32>, vector<2x8x8xf32> -> vector<2x8x8xf32>
    "tpu.trace_stop"() : () -> ()
    %34 = vector.extract_strided_slice %18 {offsets = [0, 136], sizes = [16, 8], strides = [1, 1]} : vector<16x192xf32> to vector<16x8xf32>
    %35 = vector.extract_strided_slice %9 {offsets = [1, 0, 0], sizes = [1, 8, 64], strides = [1, 1, 1]} : vector<8x8x64xf32> to vector<1x8x64xf32>
    %36 = vector.shape_cast %35 : vector<1x8x64xf32> to vector<8x64xf32>
    %cst_22 = arith.constant dense<0.000000e+00> : vector<16x64xf32>
    %37 = tpu.matmul %34, %36, %cst_22 {dimension_numbers = #tpu.dot_dimension_numbers<[1], [0], [0], [1], [0, 0, 1, 1], [], []>} : vector<16x8xf32>, vector<8x64xf32>, vector<16x64xf32> -> vector<16x64xf32>
    %38 = vector.shape_cast %37 : vector<16x64xf32> to vector<2x8x64xf32>
    %39 = vector.extract_strided_slice %18 {offsets = [0, 16], sizes = [16, 8], strides = [1, 1]} : vector<16x192xf32> to vector<16x8xf32>
    %40 = vector.shape_cast %39 : vector<16x8xf32> to vector<2x8x8xf32>
    %41 = vector.extract_strided_slice %18 {offsets = [0, 80], sizes = [16, 8], strides = [1, 1]} : vector<16x192xf32> to vector<16x8xf32>
    %42 = vector.shape_cast %41 : vector<16x8xf32> to vector<2x8x8xf32>
    "tpu.trace_start"() <{level = 10 : i32, message = "bqd,bkd->bqk"}> : () -> ()
    %cst_23 = arith.constant dense<0.000000e+00> : vector<2x8x8xf32>
    %43 = tpu.matmul %40, %42, %cst_23 {dimension_numbers = #tpu.dot_dimension_numbers<[2], [2], [1], [1], [0, 0, 0, 1, 1, 1], [0], [0]>} : vector<2x8x8xf32>, vector<2x8x8xf32>, vector<2x8x8xf32> -> vector<2x8x8xf32>
    "tpu.trace_stop"() : () -> ()
    %44 = vector.extract_strided_slice %18 {offsets = [0, 144], sizes = [16, 8], strides = [1, 1]} : vector<16x192xf32> to vector<16x8xf32>
    %45 = vector.extract_strided_slice %9 {offsets = [2, 0, 0], sizes = [1, 8, 64], strides = [1, 1, 1]} : vector<8x8x64xf32> to vector<1x8x64xf32>
    %46 = vector.shape_cast %45 : vector<1x8x64xf32> to vector<8x64xf32>
    %cst_24 = arith.constant dense<0.000000e+00> : vector<16x64xf32>
    %47 = tpu.matmul %44, %46, %cst_24 {dimension_numbers = #tpu.dot_dimension_numbers<[1], [0], [0], [1], [0, 0, 1, 1], [], []>} : vector<16x8xf32>, vector<8x64xf32>, vector<16x64xf32> -> vector<16x64xf32>
    %48 = vector.shape_cast %47 : vector<16x64xf32> to vector<2x8x64xf32>
    %49 = vector.extract_strided_slice %18 {offsets = [0, 24], sizes = [16, 8], strides = [1, 1]} : vector<16x192xf32> to vector<16x8xf32>
    %50 = vector.shape_cast %49 : vector<16x8xf32> to vector<2x8x8xf32>
    %51 = vector.extract_strided_slice %18 {offsets = [0, 88], sizes = [16, 8], strides = [1, 1]} : vector<16x192xf32> to vector<16x8xf32>
    %52 = vector.shape_cast %51 : vector<16x8xf32> to vector<2x8x8xf32>
    "tpu.trace_start"() <{level = 10 : i32, message = "bqd,bkd->bqk"}> : () -> ()
    %cst_25 = arith.constant dense<0.000000e+00> : vector<2x8x8xf32>
    %53 = tpu.matmul %50, %52, %cst_25 {dimension_numbers = #tpu.dot_dimension_numbers<[2], [2], [1], [1], [0, 0, 0, 1, 1, 1], [0], [0]>} : vector<2x8x8xf32>, vector<2x8x8xf32>, vector<2x8x8xf32> -> vector<2x8x8xf32>
    "tpu.trace_stop"() : () -> ()
    %54 = vector.extract_strided_slice %18 {offsets = [0, 152], sizes = [16, 8], strides = [1, 1]} : vector<16x192xf32> to vector<16x8xf32>
    %55 = vector.extract_strided_slice %9 {offsets = [3, 0, 0], sizes = [1, 8, 64], strides = [1, 1, 1]} : vector<8x8x64xf32> to vector<1x8x64xf32>
    %56 = vector.shape_cast %55 : vector<1x8x64xf32> to vector<8x64xf32>
    %cst_26 = arith.constant dense<0.000000e+00> : vector<16x64xf32>
    %57 = tpu.matmul %54, %56, %cst_26 {dimension_numbers = #tpu.dot_dimension_numbers<[1], [0], [0], [1], [0, 0, 1, 1], [], []>} : vector<16x8xf32>, vector<8x64xf32>, vector<16x64xf32> -> vector<16x64xf32>
    %58 = vector.shape_cast %57 : vector<16x64xf32> to vector<2x8x64xf32>
    %59 = vector.extract_strided_slice %18 {offsets = [0, 32], sizes = [16, 8], strides = [1, 1]} : vector<16x192xf32> to vector<16x8xf32>
    %60 = vector.shape_cast %59 : vector<16x8xf32> to vector<2x8x8xf32>
    %61 = vector.extract_strided_slice %18 {offsets = [0, 96], sizes = [16, 8], strides = [1, 1]} : vector<16x192xf32> to vector<16x8xf32>
    %62 = vector.shape_cast %61 : vector<16x8xf32> to vector<2x8x8xf32>
    "tpu.trace_start"() <{level = 10 : i32, message = "bqd,bkd->bqk"}> : () -> ()
    %cst_27 = arith.constant dense<0.000000e+00> : vector<2x8x8xf32>
    %63 = tpu.matmul %60, %62, %cst_27 {dimension_numbers = #tpu.dot_dimension_numbers<[2], [2], [1], [1], [0, 0, 0, 1, 1, 1], [0], [0]>} : vector<2x8x8xf32>, vector<2x8x8xf32>, vector<2x8x8xf32> -> vector<2x8x8xf32>
    "tpu.trace_stop"() : () -> ()
    %64 = vector.extract_strided_slice %18 {offsets = [0, 160], sizes = [16, 8], strides = [1, 1]} : vector<16x192xf32> to vector<16x8xf32>
    %65 = vector.extract_strided_slice %9 {offsets = [4, 0, 0], sizes = [1, 8, 64], strides = [1, 1, 1]} : vector<8x8x64xf32> to vector<1x8x64xf32>
    %66 = vector.shape_cast %65 : vector<1x8x64xf32> to vector<8x64xf32>
    %cst_28 = arith.constant dense<0.000000e+00> : vector<16x64xf32>
    %67 = tpu.matmul %64, %66, %cst_28 {dimension_numbers = #tpu.dot_dimension_numbers<[1], [0], [0], [1], [0, 0, 1, 1], [], []>} : vector<16x8xf32>, vector<8x64xf32>, vector<16x64xf32> -> vector<16x64xf32>
    %68 = vector.shape_cast %67 : vector<16x64xf32> to vector<2x8x64xf32>
    %69 = vector.extract_strided_slice %18 {offsets = [0, 40], sizes = [16, 8], strides = [1, 1]} : vector<16x192xf32> to vector<16x8xf32>
    %70 = vector.shape_cast %69 : vector<16x8xf32> to vector<2x8x8xf32>
    %71 = vector.extract_strided_slice %18 {offsets = [0, 104], sizes = [16, 8], strides = [1, 1]} : vector<16x192xf32> to vector<16x8xf32>
    %72 = vector.shape_cast %71 : vector<16x8xf32> to vector<2x8x8xf32>
    "tpu.trace_start"() <{level = 10 : i32, message = "bqd,bkd->bqk"}> : () -> ()
    %cst_29 = arith.constant dense<0.000000e+00> : vector<2x8x8xf32>
    %73 = tpu.matmul %70, %72, %cst_29 {dimension_numbers = #tpu.dot_dimension_numbers<[2], [2], [1], [1], [0, 0, 0, 1, 1, 1], [0], [0]>} : vector<2x8x8xf32>, vector<2x8x8xf32>, vector<2x8x8xf32> -> vector<2x8x8xf32>
    "tpu.trace_stop"() : () -> ()
    %74 = vector.extract_strided_slice %18 {offsets = [0, 168], sizes = [16, 8], strides = [1, 1]} : vector<16x192xf32> to vector<16x8xf32>
    %75 = vector.extract_strided_slice %9 {offsets = [5, 0, 0], sizes = [1, 8, 64], strides = [1, 1, 1]} : vector<8x8x64xf32> to vector<1x8x64xf32>
    %76 = vector.shape_cast %75 : vector<1x8x64xf32> to vector<8x64xf32>
    %cst_30 = arith.constant dense<0.000000e+00> : vector<16x64xf32>
    %77 = tpu.matmul %74, %76, %cst_30 {dimension_numbers = #tpu.dot_dimension_numbers<[1], [0], [0], [1], [0, 0, 1, 1], [], []>} : vector<16x8xf32>, vector<8x64xf32>, vector<16x64xf32> -> vector<16x64xf32>
    %78 = vector.shape_cast %77 : vector<16x64xf32> to vector<2x8x64xf32>
    %79 = vector.extract_strided_slice %18 {offsets = [0, 48], sizes = [16, 8], strides = [1, 1]} : vector<16x192xf32> to vector<16x8xf32>
    %80 = vector.shape_cast %79 : vector<16x8xf32> to vector<2x8x8xf32>
    %81 = vector.extract_strided_slice %18 {offsets = [0, 112], sizes = [16, 8], strides = [1, 1]} : vector<16x192xf32> to vector<16x8xf32>
    %82 = vector.shape_cast %81 : vector<16x8xf32> to vector<2x8x8xf32>
    "tpu.trace_start"() <{level = 10 : i32, message = "bqd,bkd->bqk"}> : () -> ()
    %cst_31 = arith.constant dense<0.000000e+00> : vector<2x8x8xf32>
    %83 = tpu.matmul %80, %82, %cst_31 {dimension_numbers = #tpu.dot_dimension_numbers<[2], [2], [1], [1], [0, 0, 0, 1, 1, 1], [0], [0]>} : vector<2x8x8xf32>, vector<2x8x8xf32>, vector<2x8x8xf32> -> vector<2x8x8xf32>
    "tpu.trace_stop"() : () -> ()
    %84 = vector.extract_strided_slice %18 {offsets = [0, 176], sizes = [16, 8], strides = [1, 1]} : vector<16x192xf32> to vector<16x8xf32>
    %85 = vector.extract_strided_slice %9 {offsets = [6, 0, 0], sizes = [1, 8, 64], strides = [1, 1, 1]} : vector<8x8x64xf32> to vector<1x8x64xf32>
    %86 = vector.shape_cast %85 : vector<1x8x64xf32> to vector<8x64xf32>
    %cst_32 = arith.constant dense<0.000000e+00> : vector<16x64xf32>
    %87 = tpu.matmul %84, %86, %cst_32 {dimension_numbers = #tpu.dot_dimension_numbers<[1], [0], [0], [1], [0, 0, 1, 1], [], []>} : vector<16x8xf32>, vector<8x64xf32>, vector<16x64xf32> -> vector<16x64xf32>
    %88 = vector.shape_cast %87 : vector<16x64xf32> to vector<2x8x64xf32>
    %89 = vector.extract_strided_slice %18 {offsets = [0, 56], sizes = [16, 8], strides = [1, 1]} : vector<16x192xf32> to vector<16x8xf32>
    %90 = vector.shape_cast %89 : vector<16x8xf32> to vector<2x8x8xf32>
    %91 = vector.extract_strided_slice %18 {offsets = [0, 120], sizes = [16, 8], strides = [1, 1]} : vector<16x192xf32> to vector<16x8xf32>
    %92 = vector.shape_cast %91 : vector<16x8xf32> to vector<2x8x8xf32>
    "tpu.trace_start"() <{level = 10 : i32, message = "bqd,bkd->bqk"}> : () -> ()
    %cst_33 = arith.constant dense<0.000000e+00> : vector<2x8x8xf32>
    %93 = tpu.matmul %90, %92, %cst_33 {dimension_numbers = #tpu.dot_dimension_numbers<[2], [2], [1], [1], [0, 0, 0, 1, 1, 1], [0], [0]>} : vector<2x8x8xf32>, vector<2x8x8xf32>, vector<2x8x8xf32> -> vector<2x8x8xf32>
    "tpu.trace_stop"() : () -> ()
    %94 = vector.extract_strided_slice %18 {offsets = [0, 184], sizes = [16, 8], strides = [1, 1]} : vector<16x192xf32> to vector<16x8xf32>
    %95 = vector.extract_strided_slice %9 {offsets = [7, 0, 0], sizes = [1, 8, 64], strides = [1, 1, 1]} : vector<8x8x64xf32> to vector<1x8x64xf32>
    %96 = vector.shape_cast %95 : vector<1x8x64xf32> to vector<8x64xf32>
    %cst_34 = arith.constant dense<0.000000e+00> : vector<16x64xf32>
    %97 = tpu.matmul %94, %96, %cst_34 {dimension_numbers = #tpu.dot_dimension_numbers<[1], [0], [0], [1], [0, 0, 1, 1], [], []>} : vector<16x8xf32>, vector<8x64xf32>, vector<16x64xf32> -> vector<16x64xf32>
    %98 = vector.shape_cast %97 : vector<16x64xf32> to vector<2x8x64xf32>
    %99 = vector.shape_cast %23 : vector<2x8x8xf32> to vector<2x1x8x8xf32>
    %100 = vector.shape_cast %33 : vector<2x8x8xf32> to vector<2x1x8x8xf32>
    %101 = vector.shape_cast %43 : vector<2x8x8xf32> to vector<2x1x8x8xf32>
    %102 = vector.shape_cast %53 : vector<2x8x8xf32> to vector<2x1x8x8xf32>
    %103 = vector.shape_cast %63 : vector<2x8x8xf32> to vector<2x1x8x8xf32>
    %104 = vector.shape_cast %73 : vector<2x8x8xf32> to vector<2x1x8x8xf32>
    %105 = vector.shape_cast %83 : vector<2x8x8xf32> to vector<2x1x8x8xf32>
    %106 = vector.shape_cast %93 : vector<2x8x8xf32> to vector<2x1x8x8xf32>
    %107 = tpu.concatenate %99, %100, %101, %102, %103, %104, %105, %106 in 1 : vector<2x1x8x8xf32>, vector<2x1x8x8xf32>, vector<2x1x8x8xf32>, vector<2x1x8x8xf32>, vector<2x1x8x8xf32>, vector<2x1x8x8xf32>, vector<2x1x8x8xf32>, vector<2x1x8x8xf32> -> vector<2x8x8x8xf32>
    %cst_35 = arith.constant dense<0xFF800000> : vector<2x8x8xf32>
    %108 = vector.multi_reduction <maximumf>, %107, %cst_35 [3] : vector<2x8x8x8xf32> to vector<2x8x8xf32>
    %109 = vector.shape_cast %108 : vector<2x8x8xf32> to vector<2x8x8x1xf32>
    %110 = vector.broadcast %109 : vector<2x8x8x1xf32> to vector<2x8x8x8xf32>
    %111 = arith.subf %107, %110 : vector<2x8x8x8xf32>
    %112 = math.exp %111 : vector<2x8x8x8xf32>
    %cst_36 = arith.constant dense<0.000000e+00> : vector<2x8x8xf32>
    %113 = vector.multi_reduction <add>, %112, %cst_36 [3] : vector<2x8x8x8xf32> to vector<2x8x8xf32>
    %114 = vector.shape_cast %113 : vector<2x8x8xf32> to vector<2x8x8x1xf32>
    %115 = tpu.reciprocal %114 {approx = true} : vector<2x8x8x1xf32> -> vector<2x8x8x1xf32>
    %116 = vector.broadcast %115 : vector<2x8x8x1xf32> to vector<2x8x8x8xf32>
    %117 = arith.mulf %112, %116 : vector<2x8x8x8xf32>
    %118 = vector.extract_strided_slice %117 {offsets = [0, 0, 0, 0], sizes = [2, 1, 8, 8], strides = [1, 1, 1, 1]} : vector<2x8x8x8xf32> to vector<2x1x8x8xf32>
    %119 = vector.shape_cast %118 : vector<2x1x8x8xf32> to vector<2x8x8xf32>
    %120 = vector.extract_strided_slice %117 {offsets = [0, 1, 0, 0], sizes = [2, 1, 8, 8], strides = [1, 1, 1, 1]} : vector<2x8x8x8xf32> to vector<2x1x8x8xf32>
    %121 = vector.shape_cast %120 : vector<2x1x8x8xf32> to vector<2x8x8xf32>
    %122 = vector.extract_strided_slice %117 {offsets = [0, 2, 0, 0], sizes = [2, 1, 8, 8], strides = [1, 1, 1, 1]} : vector<2x8x8x8xf32> to vector<2x1x8x8xf32>
    %123 = vector.shape_cast %122 : vector<2x1x8x8xf32> to vector<2x8x8xf32>
    %124 = vector.extract_strided_slice %117 {offsets = [0, 3, 0, 0], sizes = [2, 1, 8, 8], strides = [1, 1, 1, 1]} : vector<2x8x8x8xf32> to vector<2x1x8x8xf32>
    %125 = vector.shape_cast %124 : vector<2x1x8x8xf32> to vector<2x8x8xf32>
    %126 = vector.extract_strided_slice %117 {offsets = [0, 4, 0, 0], sizes = [2, 1, 8, 8], strides = [1, 1, 1, 1]} : vector<2x8x8x8xf32> to vector<2x1x8x8xf32>
    %127 = vector.shape_cast %126 : vector<2x1x8x8xf32> to vector<2x8x8xf32>
    %128 = vector.extract_strided_slice %117 {offsets = [0, 5, 0, 0], sizes = [2, 1, 8, 8], strides = [1, 1, 1, 1]} : vector<2x8x8x8xf32> to vector<2x1x8x8xf32>
    %129 = vector.shape_cast %128 : vector<2x1x8x8xf32> to vector<2x8x8xf32>
    %130 = vector.extract_strided_slice %117 {offsets = [0, 6, 0, 0], sizes = [2, 1, 8, 8], strides = [1, 1, 1, 1]} : vector<2x8x8x8xf32> to vector<2x1x8x8xf32>
    %131 = vector.shape_cast %130 : vector<2x1x8x8xf32> to vector<2x8x8xf32>
    %132 = vector.extract_strided_slice %117 {offsets = [0, 7, 0, 0], sizes = [2, 1, 8, 8], strides = [1, 1, 1, 1]} : vector<2x8x8x8xf32> to vector<2x1x8x8xf32>
    %133 = vector.shape_cast %132 : vector<2x1x8x8xf32> to vector<2x8x8xf32>
    %134 = tpu.concatenate %119, %121, %123, %125, %127, %129, %131, %133 in 2 : vector<2x8x8xf32>, vector<2x8x8xf32>, vector<2x8x8xf32>, vector<2x8x8xf32>, vector<2x8x8xf32>, vector<2x8x8xf32>, vector<2x8x8xf32>, vector<2x8x8xf32> -> vector<2x8x64xf32>
    %135 = tpu.concatenate %28, %38, %48, %58, %68, %78, %88, %98 in 1 : vector<2x8x64xf32>, vector<2x8x64xf32>, vector<2x8x64xf32>, vector<2x8x64xf32>, vector<2x8x64xf32>, vector<2x8x64xf32>, vector<2x8x64xf32>, vector<2x8x64xf32> -> vector<2x64x64xf32>
    "tpu.trace_start"() <{level = 10 : i32, message = "bqx,bxm->bqm"}> : () -> ()
    %cst_37 = arith.constant dense<0.000000e+00> : vector<2x8x64xf32>
    %136 = tpu.matmul %134, %135, %cst_37 {dimension_numbers = #tpu.dot_dimension_numbers<[2], [1], [1], [2], [0, 0, 0, 1, 1, 2], [0], [0]>} : vector<2x8x64xf32>, vector<2x64x64xf32>, vector<2x8x64xf32> -> vector<2x8x64xf32>
    "tpu.trace_stop"() : () -> ()
    %137 = vector.shape_cast %136 : vector<2x8x64xf32> to vector<16x64xf32>
    %138 = vector.extract_strided_slice %11 {offsets = [0, 0], sizes = [1, 64], strides = [1, 1]} : vector<6x64xf32> to vector<1x64xf32>
    %139 = vector.broadcast %138 : vector<1x64xf32> to vector<16x64xf32>
    %140 = arith.addf %137, %139 : vector<16x64xf32>
    %141 = arith.addf %7, %140 : vector<16x64xf32>
    %142 = vector.extract_strided_slice %11 {offsets = [1, 0], sizes = [1, 64], strides = [1, 1]} : vector<6x64xf32> to vector<1x64xf32>
    %143 = vector.extract_strided_slice %11 {offsets = [2, 0], sizes = [1, 64], strides = [1, 1]} : vector<6x64xf32> to vector<1x64xf32>
    %cst_38 = arith.constant dense<0.000000e+00> : vector<16xf32>
    %144 = vector.multi_reduction <add>, %141, %cst_38 [1] : vector<16x64xf32> to vector<16xf32>
    %145 = vector.shape_cast %144 : vector<16xf32> to vector<16x1xf32>
    %cst_39 = arith.constant 6.400000e+01 : f32
    %146 = vector.broadcast %cst_39 : f32 to vector<16x1xf32>
    %147 = arith.divf %145, %146 : vector<16x1xf32>
    %148 = vector.broadcast %147 : vector<16x1xf32> to vector<16x64xf32>
    %149 = arith.subf %141, %148 : vector<16x64xf32>
    %150 = arith.mulf %149, %149 : vector<16x64xf32>
    %cst_40 = arith.constant dense<0.000000e+00> : vector<16xf32>
    %151 = vector.multi_reduction <add>, %150, %cst_40 [1] : vector<16x64xf32> to vector<16xf32>
    %152 = vector.shape_cast %151 : vector<16xf32> to vector<16x1xf32>
    %cst_41 = arith.constant 6.400000e+01 : f32
    %153 = vector.broadcast %cst_41 : f32 to vector<16x1xf32>
    %154 = arith.divf %152, %153 : vector<16x1xf32>
    %155 = vector.broadcast %147 : vector<16x1xf32> to vector<16x64xf32>
    %156 = arith.subf %141, %155 : vector<16x64xf32>
    %cst_42 = arith.constant 9.99999997E-7 : f32
    %157 = vector.broadcast %cst_42 : f32 to vector<16x1xf32>
    %158 = arith.addf %154, %157 : vector<16x1xf32>
    %159 = math.rsqrt %158 : vector<16x1xf32>
    %160 = vector.broadcast %159 : vector<16x1xf32> to vector<16x64xf32>
    %161 = arith.mulf %156, %160 : vector<16x64xf32>
    %162 = vector.broadcast %142 : vector<1x64xf32> to vector<16x64xf32>
    %163 = arith.mulf %161, %162 : vector<16x64xf32>
    %164 = vector.broadcast %143 : vector<1x64xf32> to vector<16x64xf32>
    %165 = arith.addf %163, %164 : vector<16x64xf32>
    %c0_43 = arith.constant 0 : index
    %c0_44 = arith.constant 0 : index
    %c0_45 = arith.constant 0 : index
    %166 = vector.load %arg8[%c0_43, %c0_44, %c0_45] : memref<2x64x256xf32, #tpu.memory_space<vmem>>, vector<1x64x256xf32>
    %167 = vector.shape_cast %166 : vector<1x64x256xf32> to vector<64x256xf32>
    %cst_46 = arith.constant dense<0.000000e+00> : vector<16x256xf32>
    %168 = tpu.matmul %165, %167, %cst_46 {dimension_numbers = #tpu.dot_dimension_numbers<[1], [0], [0], [1], [0, 0, 1, 1], [], []>} : vector<16x64xf32>, vector<64x256xf32>, vector<16x256xf32> -> vector<16x256xf32>
    %c0_47 = arith.constant 0 : index
    %c0_48 = arith.constant 0 : index
    %c0_49 = arith.constant 0 : index
    %169 = vector.load %arg9[%c0_47, %c0_48, %c0_49] : memref<2x1x256xf32, #tpu.memory_space<vmem>>, vector<1x1x256xf32>
    %170 = vector.shape_cast %169 : vector<1x1x256xf32> to vector<1x256xf32>
    %171 = vector.broadcast %170 : vector<1x256xf32> to vector<16x256xf32>
    %172 = arith.addf %168, %171 : vector<16x256xf32>
    %cst_50 = arith.constant 5.000000e-01 : f32
    %173 = vector.broadcast %cst_50 : f32 to vector<16x256xf32>
    %174 = arith.mulf %173, %172 : vector<16x256xf32>
    %cst_51 = arith.constant 0.707106769 : f32
    %175 = vector.broadcast %cst_51 : f32 to vector<16x256xf32>
    %176 = arith.mulf %172, %175 : vector<16x256xf32>
    %cst_52 = arith.constant 0.000000e+00 : f32
    %177 = vector.broadcast %cst_52 : f32 to vector<16x256xf32>
    %178 = arith.cmpf oge, %176, %177 : vector<16x256xf32>
    %cst_53 = arith.constant 1.000000e+00 : f32
    %cst_54 = arith.constant -1.000000e+00 : f32
    %179 = vector.broadcast %cst_53 : f32 to vector<16x256xf32>
    %180 = vector.broadcast %cst_54 : f32 to vector<16x256xf32>
    %181 = arith.select %178, %179, %180 : vector<16x256xi1>, vector<16x256xf32>
    %182 = math.absf %176 : vector<16x256xf32>
    %cst_55 = arith.constant 0.327591091 : f32
    %183 = vector.broadcast %cst_55 : f32 to vector<16x256xf32>
    %184 = arith.mulf %183, %182 : vector<16x256xf32>
    %cst_56 = arith.constant 1.000000e+00 : f32
    %185 = vector.broadcast %cst_56 : f32 to vector<16x256xf32>
    %186 = arith.addf %185, %184 : vector<16x256xf32>
    %187 = tpu.reciprocal %186 {approx = true} : vector<16x256xf32> -> vector<16x256xf32>
    %cst_57 = arith.constant 1.06140542 : f32
    %188 = vector.broadcast %cst_57 : f32 to vector<16x256xf32>
    %189 = arith.mulf %188, %187 : vector<16x256xf32>
    %cst_58 = arith.constant -1.45315206 : f32
    %190 = vector.broadcast %cst_58 : f32 to vector<16x256xf32>
    %191 = arith.addf %189, %190 : vector<16x256xf32>
    %192 = arith.mulf %191, %187 : vector<16x256xf32>
    %cst_59 = arith.constant 1.42141378 : f32
    %193 = vector.broadcast %cst_59 : f32 to vector<16x256xf32>
    %194 = arith.addf %192, %193 : vector<16x256xf32>
    %195 = arith.mulf %194, %187 : vector<16x256xf32>
    %cst_60 = arith.constant -0.284496725 : f32
    %196 = vector.broadcast %cst_60 : f32 to vector<16x256xf32>
    %197 = arith.addf %195, %196 : vector<16x256xf32>
    %198 = arith.mulf %197, %187 : vector<16x256xf32>
    %cst_61 = arith.constant 0.254829586 : f32
    %199 = vector.broadcast %cst_61 : f32 to vector<16x256xf32>
    %200 = arith.addf %198, %199 : vector<16x256xf32>
    %201 = arith.mulf %200, %187 : vector<16x256xf32>
    %cst_62 = arith.constant 0.000000e+00 : f32
    %202 = vector.broadcast %cst_62 : f32 to vector<16x256xf32>
    %203 = arith.subf %202, %182 : vector<16x256xf32>
    %204 = arith.mulf %203, %182 : vector<16x256xf32>
    %205 = math.exp %204 : vector<16x256xf32>
    %206 = arith.mulf %201, %205 : vector<16x256xf32>
    %cst_63 = arith.constant 1.000000e+00 : f32
    %207 = vector.broadcast %cst_63 : f32 to vector<16x256xf32>
    %208 = arith.subf %207, %206 : vector<16x256xf32>
    %209 = arith.mulf %181, %208 : vector<16x256xf32>
    %cst_64 = arith.constant 1.000000e+00 : f32
    %210 = vector.broadcast %cst_64 : f32 to vector<16x256xf32>
    %211 = arith.addf %210, %209 : vector<16x256xf32>
    %212 = arith.mulf %174, %211 : vector<16x256xf32>
    %c0_65 = arith.constant 0 : index
    %c0_66 = arith.constant 0 : index
    %c0_67 = arith.constant 0 : index
    %213 = vector.load %arg10[%c0_65, %c0_66, %c0_67] : memref<2x256x64xf32, #tpu.memory_space<vmem>>, vector<1x256x64xf32>
    %214 = vector.shape_cast %213 : vector<1x256x64xf32> to vector<256x64xf32>
    %cst_68 = arith.constant dense<0.000000e+00> : vector<16x64xf32>
    %215 = tpu.matmul %212, %214, %cst_68 {dimension_numbers = #tpu.dot_dimension_numbers<[1], [0], [0], [1], [0, 0, 1, 1], [], []>} : vector<16x256xf32>, vector<256x64xf32>, vector<16x64xf32> -> vector<16x64xf32>
    %216 = vector.extract_strided_slice %11 {offsets = [3, 0], sizes = [1, 64], strides = [1, 1]} : vector<6x64xf32> to vector<1x64xf32>
    %217 = vector.broadcast %216 : vector<1x64xf32> to vector<16x64xf32>
    %218 = arith.addf %215, %217 : vector<16x64xf32>
    %219 = arith.addf %165, %218 : vector<16x64xf32>
    %220 = vector.extract_strided_slice %11 {offsets = [4, 0], sizes = [1, 64], strides = [1, 1]} : vector<6x64xf32> to vector<1x64xf32>
    %221 = vector.extract_strided_slice %11 {offsets = [5, 0], sizes = [1, 64], strides = [1, 1]} : vector<6x64xf32> to vector<1x64xf32>
    %cst_69 = arith.constant dense<0.000000e+00> : vector<16xf32>
    %222 = vector.multi_reduction <add>, %219, %cst_69 [1] : vector<16x64xf32> to vector<16xf32>
    %223 = vector.shape_cast %222 : vector<16xf32> to vector<16x1xf32>
    %cst_70 = arith.constant 6.400000e+01 : f32
    %224 = vector.broadcast %cst_70 : f32 to vector<16x1xf32>
    %225 = arith.divf %223, %224 : vector<16x1xf32>
    %226 = vector.broadcast %225 : vector<16x1xf32> to vector<16x64xf32>
    %227 = arith.subf %219, %226 : vector<16x64xf32>
    %228 = arith.mulf %227, %227 : vector<16x64xf32>
    %cst_71 = arith.constant dense<0.000000e+00> : vector<16xf32>
    %229 = vector.multi_reduction <add>, %228, %cst_71 [1] : vector<16x64xf32> to vector<16xf32>
    %230 = vector.shape_cast %229 : vector<16xf32> to vector<16x1xf32>
    %cst_72 = arith.constant 6.400000e+01 : f32
    %231 = vector.broadcast %cst_72 : f32 to vector<16x1xf32>
    %232 = arith.divf %230, %231 : vector<16x1xf32>
    %233 = vector.broadcast %225 : vector<16x1xf32> to vector<16x64xf32>
    %234 = arith.subf %219, %233 : vector<16x64xf32>
    %cst_73 = arith.constant 9.99999997E-7 : f32
    %235 = vector.broadcast %cst_73 : f32 to vector<16x1xf32>
    %236 = arith.addf %232, %235 : vector<16x1xf32>
    %237 = math.rsqrt %236 : vector<16x1xf32>
    %238 = vector.broadcast %237 : vector<16x1xf32> to vector<16x64xf32>
    %239 = arith.mulf %234, %238 : vector<16x64xf32>
    %240 = vector.broadcast %220 : vector<1x64xf32> to vector<16x64xf32>
    %241 = arith.mulf %239, %240 : vector<16x64xf32>
    %242 = vector.broadcast %221 : vector<1x64xf32> to vector<16x64xf32>
    %243 = arith.addf %241, %242 : vector<16x64xf32>
    %c1 = arith.constant 1 : index
    %c0_74 = arith.constant 0 : index
    %c0_75 = arith.constant 0 : index
    %c0_76 = arith.constant 0 : index
    %244 = vector.load %arg6[%c1, %c0_74, %c0_75, %c0_76] : memref<2x8x8x64xf32, #tpu.memory_space<vmem>>, vector<1x8x8x64xf32>
    %245 = vector.shape_cast %244 : vector<1x8x8x64xf32> to vector<8x8x64xf32>
    %c1_77 = arith.constant 1 : index
    %c0_78 = arith.constant 0 : index
    %c0_79 = arith.constant 0 : index
    %246 = vector.load %arg7[%c1_77, %c0_78, %c0_79] : memref<2x6x64xf32, #tpu.memory_space<vmem>>, vector<1x6x64xf32>
    %247 = vector.shape_cast %246 : vector<1x6x64xf32> to vector<6x64xf32>
    %c1_80 = arith.constant 1 : index
    %c0_81 = arith.constant 0 : index
    %c0_82 = arith.constant 0 : index
    %248 = vector.load %arg4[%c1_80, %c0_81, %c0_82] : memref<2x64x192xf32, #tpu.memory_space<vmem>>, vector<1x64x192xf32>
    %249 = vector.shape_cast %248 : vector<1x64x192xf32> to vector<64x192xf32>
    %cst_83 = arith.constant dense<0.000000e+00> : vector<16x192xf32>
    %250 = tpu.matmul %243, %249, %cst_83 {dimension_numbers = #tpu.dot_dimension_numbers<[1], [0], [0], [1], [0, 0, 1, 1], [], []>} : vector<16x64xf32>, vector<64x192xf32>, vector<16x192xf32> -> vector<16x192xf32>
    %c1_84 = arith.constant 1 : index
    %c0_85 = arith.constant 0 : index
    %c0_86 = arith.constant 0 : index
    %251 = vector.load %arg5[%c1_84, %c0_85, %c0_86] : memref<2x1x192xf32, #tpu.memory_space<vmem>>, vector<1x1x192xf32>
    %252 = vector.shape_cast %251 : vector<1x1x192xf32> to vector<1x192xf32>
    %253 = vector.broadcast %252 : vector<1x192xf32> to vector<16x192xf32>
    %254 = arith.addf %250, %253 : vector<16x192xf32>
    %255 = vector.extract_strided_slice %254 {offsets = [0, 0], sizes = [16, 8], strides = [1, 1]} : vector<16x192xf32> to vector<16x8xf32>
    %256 = vector.shape_cast %255 : vector<16x8xf32> to vector<2x8x8xf32>
    %257 = vector.extract_strided_slice %254 {offsets = [0, 64], sizes = [16, 8], strides = [1, 1]} : vector<16x192xf32> to vector<16x8xf32>
    %258 = vector.shape_cast %257 : vector<16x8xf32> to vector<2x8x8xf32>
    "tpu.trace_start"() <{level = 10 : i32, message = "bqd,bkd->bqk"}> : () -> ()
    %cst_87 = arith.constant dense<0.000000e+00> : vector<2x8x8xf32>
    %259 = tpu.matmul %256, %258, %cst_87 {dimension_numbers = #tpu.dot_dimension_numbers<[2], [2], [1], [1], [0, 0, 0, 1, 1, 1], [0], [0]>} : vector<2x8x8xf32>, vector<2x8x8xf32>, vector<2x8x8xf32> -> vector<2x8x8xf32>
    "tpu.trace_stop"() : () -> ()
    %260 = vector.extract_strided_slice %254 {offsets = [0, 128], sizes = [16, 8], strides = [1, 1]} : vector<16x192xf32> to vector<16x8xf32>
    %261 = vector.extract_strided_slice %245 {offsets = [0, 0, 0], sizes = [1, 8, 64], strides = [1, 1, 1]} : vector<8x8x64xf32> to vector<1x8x64xf32>
    %262 = vector.shape_cast %261 : vector<1x8x64xf32> to vector<8x64xf32>
    %cst_88 = arith.constant dense<0.000000e+00> : vector<16x64xf32>
    %263 = tpu.matmul %260, %262, %cst_88 {dimension_numbers = #tpu.dot_dimension_numbers<[1], [0], [0], [1], [0, 0, 1, 1], [], []>} : vector<16x8xf32>, vector<8x64xf32>, vector<16x64xf32> -> vector<16x64xf32>
    %264 = vector.shape_cast %263 : vector<16x64xf32> to vector<2x8x64xf32>
    %265 = vector.extract_strided_slice %254 {offsets = [0, 8], sizes = [16, 8], strides = [1, 1]} : vector<16x192xf32> to vector<16x8xf32>
    %266 = vector.shape_cast %265 : vector<16x8xf32> to vector<2x8x8xf32>
    %267 = vector.extract_strided_slice %254 {offsets = [0, 72], sizes = [16, 8], strides = [1, 1]} : vector<16x192xf32> to vector<16x8xf32>
    %268 = vector.shape_cast %267 : vector<16x8xf32> to vector<2x8x8xf32>
    "tpu.trace_start"() <{level = 10 : i32, message = "bqd,bkd->bqk"}> : () -> ()
    %cst_89 = arith.constant dense<0.000000e+00> : vector<2x8x8xf32>
    %269 = tpu.matmul %266, %268, %cst_89 {dimension_numbers = #tpu.dot_dimension_numbers<[2], [2], [1], [1], [0, 0, 0, 1, 1, 1], [0], [0]>} : vector<2x8x8xf32>, vector<2x8x8xf32>, vector<2x8x8xf32> -> vector<2x8x8xf32>
    "tpu.trace_stop"() : () -> ()
    %270 = vector.extract_strided_slice %254 {offsets = [0, 136], sizes = [16, 8], strides = [1, 1]} : vector<16x192xf32> to vector<16x8xf32>
    %271 = vector.extract_strided_slice %245 {offsets = [1, 0, 0], sizes = [1, 8, 64], strides = [1, 1, 1]} : vector<8x8x64xf32> to vector<1x8x64xf32>
    %272 = vector.shape_cast %271 : vector<1x8x64xf32> to vector<8x64xf32>
    %cst_90 = arith.constant dense<0.000000e+00> : vector<16x64xf32>
    %273 = tpu.matmul %270, %272, %cst_90 {dimension_numbers = #tpu.dot_dimension_numbers<[1], [0], [0], [1], [0, 0, 1, 1], [], []>} : vector<16x8xf32>, vector<8x64xf32>, vector<16x64xf32> -> vector<16x64xf32>
    %274 = vector.shape_cast %273 : vector<16x64xf32> to vector<2x8x64xf32>
    %275 = vector.extract_strided_slice %254 {offsets = [0, 16], sizes = [16, 8], strides = [1, 1]} : vector<16x192xf32> to vector<16x8xf32>
    %276 = vector.shape_cast %275 : vector<16x8xf32> to vector<2x8x8xf32>
    %277 = vector.extract_strided_slice %254 {offsets = [0, 80], sizes = [16, 8], strides = [1, 1]} : vector<16x192xf32> to vector<16x8xf32>
    %278 = vector.shape_cast %277 : vector<16x8xf32> to vector<2x8x8xf32>
    "tpu.trace_start"() <{level = 10 : i32, message = "bqd,bkd->bqk"}> : () -> ()
    %cst_91 = arith.constant dense<0.000000e+00> : vector<2x8x8xf32>
    %279 = tpu.matmul %276, %278, %cst_91 {dimension_numbers = #tpu.dot_dimension_numbers<[2], [2], [1], [1], [0, 0, 0, 1, 1, 1], [0], [0]>} : vector<2x8x8xf32>, vector<2x8x8xf32>, vector<2x8x8xf32> -> vector<2x8x8xf32>
    "tpu.trace_stop"() : () -> ()
    %280 = vector.extract_strided_slice %254 {offsets = [0, 144], sizes = [16, 8], strides = [1, 1]} : vector<16x192xf32> to vector<16x8xf32>
    %281 = vector.extract_strided_slice %245 {offsets = [2, 0, 0], sizes = [1, 8, 64], strides = [1, 1, 1]} : vector<8x8x64xf32> to vector<1x8x64xf32>
    %282 = vector.shape_cast %281 : vector<1x8x64xf32> to vector<8x64xf32>
    %cst_92 = arith.constant dense<0.000000e+00> : vector<16x64xf32>
    %283 = tpu.matmul %280, %282, %cst_92 {dimension_numbers = #tpu.dot_dimension_numbers<[1], [0], [0], [1], [0, 0, 1, 1], [], []>} : vector<16x8xf32>, vector<8x64xf32>, vector<16x64xf32> -> vector<16x64xf32>
    %284 = vector.shape_cast %283 : vector<16x64xf32> to vector<2x8x64xf32>
    %285 = vector.extract_strided_slice %254 {offsets = [0, 24], sizes = [16, 8], strides = [1, 1]} : vector<16x192xf32> to vector<16x8xf32>
    %286 = vector.shape_cast %285 : vector<16x8xf32> to vector<2x8x8xf32>
    %287 = vector.extract_strided_slice %254 {offsets = [0, 88], sizes = [16, 8], strides = [1, 1]} : vector<16x192xf32> to vector<16x8xf32>
    %288 = vector.shape_cast %287 : vector<16x8xf32> to vector<2x8x8xf32>
    "tpu.trace_start"() <{level = 10 : i32, message = "bqd,bkd->bqk"}> : () -> ()
    %cst_93 = arith.constant dense<0.000000e+00> : vector<2x8x8xf32>
    %289 = tpu.matmul %286, %288, %cst_93 {dimension_numbers = #tpu.dot_dimension_numbers<[2], [2], [1], [1], [0, 0, 0, 1, 1, 1], [0], [0]>} : vector<2x8x8xf32>, vector<2x8x8xf32>, vector<2x8x8xf32> -> vector<2x8x8xf32>
    "tpu.trace_stop"() : () -> ()
    %290 = vector.extract_strided_slice %254 {offsets = [0, 152], sizes = [16, 8], strides = [1, 1]} : vector<16x192xf32> to vector<16x8xf32>
    %291 = vector.extract_strided_slice %245 {offsets = [3, 0, 0], sizes = [1, 8, 64], strides = [1, 1, 1]} : vector<8x8x64xf32> to vector<1x8x64xf32>
    %292 = vector.shape_cast %291 : vector<1x8x64xf32> to vector<8x64xf32>
    %cst_94 = arith.constant dense<0.000000e+00> : vector<16x64xf32>
    %293 = tpu.matmul %290, %292, %cst_94 {dimension_numbers = #tpu.dot_dimension_numbers<[1], [0], [0], [1], [0, 0, 1, 1], [], []>} : vector<16x8xf32>, vector<8x64xf32>, vector<16x64xf32> -> vector<16x64xf32>
    %294 = vector.shape_cast %293 : vector<16x64xf32> to vector<2x8x64xf32>
    %295 = vector.extract_strided_slice %254 {offsets = [0, 32], sizes = [16, 8], strides = [1, 1]} : vector<16x192xf32> to vector<16x8xf32>
    %296 = vector.shape_cast %295 : vector<16x8xf32> to vector<2x8x8xf32>
    %297 = vector.extract_strided_slice %254 {offsets = [0, 96], sizes = [16, 8], strides = [1, 1]} : vector<16x192xf32> to vector<16x8xf32>
    %298 = vector.shape_cast %297 : vector<16x8xf32> to vector<2x8x8xf32>
    "tpu.trace_start"() <{level = 10 : i32, message = "bqd,bkd->bqk"}> : () -> ()
    %cst_95 = arith.constant dense<0.000000e+00> : vector<2x8x8xf32>
    %299 = tpu.matmul %296, %298, %cst_95 {dimension_numbers = #tpu.dot_dimension_numbers<[2], [2], [1], [1], [0, 0, 0, 1, 1, 1], [0], [0]>} : vector<2x8x8xf32>, vector<2x8x8xf32>, vector<2x8x8xf32> -> vector<2x8x8xf32>
    "tpu.trace_stop"() : () -> ()
    %300 = vector.extract_strided_slice %254 {offsets = [0, 160], sizes = [16, 8], strides = [1, 1]} : vector<16x192xf32> to vector<16x8xf32>
    %301 = vector.extract_strided_slice %245 {offsets = [4, 0, 0], sizes = [1, 8, 64], strides = [1, 1, 1]} : vector<8x8x64xf32> to vector<1x8x64xf32>
    %302 = vector.shape_cast %301 : vector<1x8x64xf32> to vector<8x64xf32>
    %cst_96 = arith.constant dense<0.000000e+00> : vector<16x64xf32>
    %303 = tpu.matmul %300, %302, %cst_96 {dimension_numbers = #tpu.dot_dimension_numbers<[1], [0], [0], [1], [0, 0, 1, 1], [], []>} : vector<16x8xf32>, vector<8x64xf32>, vector<16x64xf32> -> vector<16x64xf32>
    %304 = vector.shape_cast %303 : vector<16x64xf32> to vector<2x8x64xf32>
    %305 = vector.extract_strided_slice %254 {offsets = [0, 40], sizes = [16, 8], strides = [1, 1]} : vector<16x192xf32> to vector<16x8xf32>
    %306 = vector.shape_cast %305 : vector<16x8xf32> to vector<2x8x8xf32>
    %307 = vector.extract_strided_slice %254 {offsets = [0, 104], sizes = [16, 8], strides = [1, 1]} : vector<16x192xf32> to vector<16x8xf32>
    %308 = vector.shape_cast %307 : vector<16x8xf32> to vector<2x8x8xf32>
    "tpu.trace_start"() <{level = 10 : i32, message = "bqd,bkd->bqk"}> : () -> ()
    %cst_97 = arith.constant dense<0.000000e+00> : vector<2x8x8xf32>
    %309 = tpu.matmul %306, %308, %cst_97 {dimension_numbers = #tpu.dot_dimension_numbers<[2], [2], [1], [1], [0, 0, 0, 1, 1, 1], [0], [0]>} : vector<2x8x8xf32>, vector<2x8x8xf32>, vector<2x8x8xf32> -> vector<2x8x8xf32>
    "tpu.trace_stop"() : () -> ()
    %310 = vector.extract_strided_slice %254 {offsets = [0, 168], sizes = [16, 8], strides = [1, 1]} : vector<16x192xf32> to vector<16x8xf32>
    %311 = vector.extract_strided_slice %245 {offsets = [5, 0, 0], sizes = [1, 8, 64], strides = [1, 1, 1]} : vector<8x8x64xf32> to vector<1x8x64xf32>
    %312 = vector.shape_cast %311 : vector<1x8x64xf32> to vector<8x64xf32>
    %cst_98 = arith.constant dense<0.000000e+00> : vector<16x64xf32>
    %313 = tpu.matmul %310, %312, %cst_98 {dimension_numbers = #tpu.dot_dimension_numbers<[1], [0], [0], [1], [0, 0, 1, 1], [], []>} : vector<16x8xf32>, vector<8x64xf32>, vector<16x64xf32> -> vector<16x64xf32>
    %314 = vector.shape_cast %313 : vector<16x64xf32> to vector<2x8x64xf32>
    %315 = vector.extract_strided_slice %254 {offsets = [0, 48], sizes = [16, 8], strides = [1, 1]} : vector<16x192xf32> to vector<16x8xf32>
    %316 = vector.shape_cast %315 : vector<16x8xf32> to vector<2x8x8xf32>
    %317 = vector.extract_strided_slice %254 {offsets = [0, 112], sizes = [16, 8], strides = [1, 1]} : vector<16x192xf32> to vector<16x8xf32>
    %318 = vector.shape_cast %317 : vector<16x8xf32> to vector<2x8x8xf32>
    "tpu.trace_start"() <{level = 10 : i32, message = "bqd,bkd->bqk"}> : () -> ()
    %cst_99 = arith.constant dense<0.000000e+00> : vector<2x8x8xf32>
    %319 = tpu.matmul %316, %318, %cst_99 {dimension_numbers = #tpu.dot_dimension_numbers<[2], [2], [1], [1], [0, 0, 0, 1, 1, 1], [0], [0]>} : vector<2x8x8xf32>, vector<2x8x8xf32>, vector<2x8x8xf32> -> vector<2x8x8xf32>
    "tpu.trace_stop"() : () -> ()
    %320 = vector.extract_strided_slice %254 {offsets = [0, 176], sizes = [16, 8], strides = [1, 1]} : vector<16x192xf32> to vector<16x8xf32>
    %321 = vector.extract_strided_slice %245 {offsets = [6, 0, 0], sizes = [1, 8, 64], strides = [1, 1, 1]} : vector<8x8x64xf32> to vector<1x8x64xf32>
    %322 = vector.shape_cast %321 : vector<1x8x64xf32> to vector<8x64xf32>
    %cst_100 = arith.constant dense<0.000000e+00> : vector<16x64xf32>
    %323 = tpu.matmul %320, %322, %cst_100 {dimension_numbers = #tpu.dot_dimension_numbers<[1], [0], [0], [1], [0, 0, 1, 1], [], []>} : vector<16x8xf32>, vector<8x64xf32>, vector<16x64xf32> -> vector<16x64xf32>
    %324 = vector.shape_cast %323 : vector<16x64xf32> to vector<2x8x64xf32>
    %325 = vector.extract_strided_slice %254 {offsets = [0, 56], sizes = [16, 8], strides = [1, 1]} : vector<16x192xf32> to vector<16x8xf32>
    %326 = vector.shape_cast %325 : vector<16x8xf32> to vector<2x8x8xf32>
    %327 = vector.extract_strided_slice %254 {offsets = [0, 120], sizes = [16, 8], strides = [1, 1]} : vector<16x192xf32> to vector<16x8xf32>
    %328 = vector.shape_cast %327 : vector<16x8xf32> to vector<2x8x8xf32>
    "tpu.trace_start"() <{level = 10 : i32, message = "bqd,bkd->bqk"}> : () -> ()
    %cst_101 = arith.constant dense<0.000000e+00> : vector<2x8x8xf32>
    %329 = tpu.matmul %326, %328, %cst_101 {dimension_numbers = #tpu.dot_dimension_numbers<[2], [2], [1], [1], [0, 0, 0, 1, 1, 1], [0], [0]>} : vector<2x8x8xf32>, vector<2x8x8xf32>, vector<2x8x8xf32> -> vector<2x8x8xf32>
    "tpu.trace_stop"() : () -> ()
    %330 = vector.extract_strided_slice %254 {offsets = [0, 184], sizes = [16, 8], strides = [1, 1]} : vector<16x192xf32> to vector<16x8xf32>
    %331 = vector.extract_strided_slice %245 {offsets = [7, 0, 0], sizes = [1, 8, 64], strides = [1, 1, 1]} : vector<8x8x64xf32> to vector<1x8x64xf32>
    %332 = vector.shape_cast %331 : vector<1x8x64xf32> to vector<8x64xf32>
    %cst_102 = arith.constant dense<0.000000e+00> : vector<16x64xf32>
    %333 = tpu.matmul %330, %332, %cst_102 {dimension_numbers = #tpu.dot_dimension_numbers<[1], [0], [0], [1], [0, 0, 1, 1], [], []>} : vector<16x8xf32>, vector<8x64xf32>, vector<16x64xf32> -> vector<16x64xf32>
    %334 = vector.shape_cast %333 : vector<16x64xf32> to vector<2x8x64xf32>
    %335 = vector.shape_cast %259 : vector<2x8x8xf32> to vector<2x1x8x8xf32>
    %336 = vector.shape_cast %269 : vector<2x8x8xf32> to vector<2x1x8x8xf32>
    %337 = vector.shape_cast %279 : vector<2x8x8xf32> to vector<2x1x8x8xf32>
    %338 = vector.shape_cast %289 : vector<2x8x8xf32> to vector<2x1x8x8xf32>
    %339 = vector.shape_cast %299 : vector<2x8x8xf32> to vector<2x1x8x8xf32>
    %340 = vector.shape_cast %309 : vector<2x8x8xf32> to vector<2x1x8x8xf32>
    %341 = vector.shape_cast %319 : vector<2x8x8xf32> to vector<2x1x8x8xf32>
    %342 = vector.shape_cast %329 : vector<2x8x8xf32> to vector<2x1x8x8xf32>
    %343 = tpu.concatenate %335, %336, %337, %338, %339, %340, %341, %342 in 1 : vector<2x1x8x8xf32>, vector<2x1x8x8xf32>, vector<2x1x8x8xf32>, vector<2x1x8x8xf32>, vector<2x1x8x8xf32>, vector<2x1x8x8xf32>, vector<2x1x8x8xf32>, vector<2x1x8x8xf32> -> vector<2x8x8x8xf32>
    %cst_103 = arith.constant dense<0xFF800000> : vector<2x8x8xf32>
    %344 = vector.multi_reduction <maximumf>, %343, %cst_103 [3] : vector<2x8x8x8xf32> to vector<2x8x8xf32>
    %345 = vector.shape_cast %344 : vector<2x8x8xf32> to vector<2x8x8x1xf32>
    %346 = vector.broadcast %345 : vector<2x8x8x1xf32> to vector<2x8x8x8xf32>
    %347 = arith.subf %343, %346 : vector<2x8x8x8xf32>
    %348 = math.exp %347 : vector<2x8x8x8xf32>
    %cst_104 = arith.constant dense<0.000000e+00> : vector<2x8x8xf32>
    %349 = vector.multi_reduction <add>, %348, %cst_104 [3] : vector<2x8x8x8xf32> to vector<2x8x8xf32>
    %350 = vector.shape_cast %349 : vector<2x8x8xf32> to vector<2x8x8x1xf32>
    %351 = tpu.reciprocal %350 {approx = true} : vector<2x8x8x1xf32> -> vector<2x8x8x1xf32>
    %352 = vector.broadcast %351 : vector<2x8x8x1xf32> to vector<2x8x8x8xf32>
    %353 = arith.mulf %348, %352 : vector<2x8x8x8xf32>
    %354 = vector.extract_strided_slice %353 {offsets = [0, 0, 0, 0], sizes = [2, 1, 8, 8], strides = [1, 1, 1, 1]} : vector<2x8x8x8xf32> to vector<2x1x8x8xf32>
    %355 = vector.shape_cast %354 : vector<2x1x8x8xf32> to vector<2x8x8xf32>
    %356 = vector.extract_strided_slice %353 {offsets = [0, 1, 0, 0], sizes = [2, 1, 8, 8], strides = [1, 1, 1, 1]} : vector<2x8x8x8xf32> to vector<2x1x8x8xf32>
    %357 = vector.shape_cast %356 : vector<2x1x8x8xf32> to vector<2x8x8xf32>
    %358 = vector.extract_strided_slice %353 {offsets = [0, 2, 0, 0], sizes = [2, 1, 8, 8], strides = [1, 1, 1, 1]} : vector<2x8x8x8xf32> to vector<2x1x8x8xf32>
    %359 = vector.shape_cast %358 : vector<2x1x8x8xf32> to vector<2x8x8xf32>
    %360 = vector.extract_strided_slice %353 {offsets = [0, 3, 0, 0], sizes = [2, 1, 8, 8], strides = [1, 1, 1, 1]} : vector<2x8x8x8xf32> to vector<2x1x8x8xf32>
    %361 = vector.shape_cast %360 : vector<2x1x8x8xf32> to vector<2x8x8xf32>
    %362 = vector.extract_strided_slice %353 {offsets = [0, 4, 0, 0], sizes = [2, 1, 8, 8], strides = [1, 1, 1, 1]} : vector<2x8x8x8xf32> to vector<2x1x8x8xf32>
    %363 = vector.shape_cast %362 : vector<2x1x8x8xf32> to vector<2x8x8xf32>
    %364 = vector.extract_strided_slice %353 {offsets = [0, 5, 0, 0], sizes = [2, 1, 8, 8], strides = [1, 1, 1, 1]} : vector<2x8x8x8xf32> to vector<2x1x8x8xf32>
    %365 = vector.shape_cast %364 : vector<2x1x8x8xf32> to vector<2x8x8xf32>
    %366 = vector.extract_strided_slice %353 {offsets = [0, 6, 0, 0], sizes = [2, 1, 8, 8], strides = [1, 1, 1, 1]} : vector<2x8x8x8xf32> to vector<2x1x8x8xf32>
    %367 = vector.shape_cast %366 : vector<2x1x8x8xf32> to vector<2x8x8xf32>
    %368 = vector.extract_strided_slice %353 {offsets = [0, 7, 0, 0], sizes = [2, 1, 8, 8], strides = [1, 1, 1, 1]} : vector<2x8x8x8xf32> to vector<2x1x8x8xf32>
    %369 = vector.shape_cast %368 : vector<2x1x8x8xf32> to vector<2x8x8xf32>
    %370 = tpu.concatenate %355, %357, %359, %361, %363, %365, %367, %369 in 2 : vector<2x8x8xf32>, vector<2x8x8xf32>, vector<2x8x8xf32>, vector<2x8x8xf32>, vector<2x8x8xf32>, vector<2x8x8xf32>, vector<2x8x8xf32>, vector<2x8x8xf32> -> vector<2x8x64xf32>
    %371 = tpu.concatenate %264, %274, %284, %294, %304, %314, %324, %334 in 1 : vector<2x8x64xf32>, vector<2x8x64xf32>, vector<2x8x64xf32>, vector<2x8x64xf32>, vector<2x8x64xf32>, vector<2x8x64xf32>, vector<2x8x64xf32>, vector<2x8x64xf32> -> vector<2x64x64xf32>
    "tpu.trace_start"() <{level = 10 : i32, message = "bqx,bxm->bqm"}> : () -> ()
    %cst_105 = arith.constant dense<0.000000e+00> : vector<2x8x64xf32>
    %372 = tpu.matmul %370, %371, %cst_105 {dimension_numbers = #tpu.dot_dimension_numbers<[2], [1], [1], [2], [0, 0, 0, 1, 1, 2], [0], [0]>} : vector<2x8x64xf32>, vector<2x64x64xf32>, vector<2x8x64xf32> -> vector<2x8x64xf32>
    "tpu.trace_stop"() : () -> ()
    %373 = vector.shape_cast %372 : vector<2x8x64xf32> to vector<16x64xf32>
    %374 = vector.extract_strided_slice %247 {offsets = [0, 0], sizes = [1, 64], strides = [1, 1]} : vector<6x64xf32> to vector<1x64xf32>
    %375 = vector.broadcast %374 : vector<1x64xf32> to vector<16x64xf32>
    %376 = arith.addf %373, %375 : vector<16x64xf32>
    %377 = arith.addf %243, %376 : vector<16x64xf32>
    %378 = vector.extract_strided_slice %247 {offsets = [1, 0], sizes = [1, 64], strides = [1, 1]} : vector<6x64xf32> to vector<1x64xf32>
    %379 = vector.extract_strided_slice %247 {offsets = [2, 0], sizes = [1, 64], strides = [1, 1]} : vector<6x64xf32> to vector<1x64xf32>
    %cst_106 = arith.constant dense<0.000000e+00> : vector<16xf32>
    %380 = vector.multi_reduction <add>, %377, %cst_106 [1] : vector<16x64xf32> to vector<16xf32>
    %381 = vector.shape_cast %380 : vector<16xf32> to vector<16x1xf32>
    %cst_107 = arith.constant 6.400000e+01 : f32
    %382 = vector.broadcast %cst_107 : f32 to vector<16x1xf32>
    %383 = arith.divf %381, %382 : vector<16x1xf32>
    %384 = vector.broadcast %383 : vector<16x1xf32> to vector<16x64xf32>
    %385 = arith.subf %377, %384 : vector<16x64xf32>
    %386 = arith.mulf %385, %385 : vector<16x64xf32>
    %cst_108 = arith.constant dense<0.000000e+00> : vector<16xf32>
    %387 = vector.multi_reduction <add>, %386, %cst_108 [1] : vector<16x64xf32> to vector<16xf32>
    %388 = vector.shape_cast %387 : vector<16xf32> to vector<16x1xf32>
    %cst_109 = arith.constant 6.400000e+01 : f32
    %389 = vector.broadcast %cst_109 : f32 to vector<16x1xf32>
    %390 = arith.divf %388, %389 : vector<16x1xf32>
    %391 = vector.broadcast %383 : vector<16x1xf32> to vector<16x64xf32>
    %392 = arith.subf %377, %391 : vector<16x64xf32>
    %cst_110 = arith.constant 9.99999997E-7 : f32
    %393 = vector.broadcast %cst_110 : f32 to vector<16x1xf32>
    %394 = arith.addf %390, %393 : vector<16x1xf32>
    %395 = math.rsqrt %394 : vector<16x1xf32>
    %396 = vector.broadcast %395 : vector<16x1xf32> to vector<16x64xf32>
    %397 = arith.mulf %392, %396 : vector<16x64xf32>
    %398 = vector.broadcast %378 : vector<1x64xf32> to vector<16x64xf32>
    %399 = arith.mulf %397, %398 : vector<16x64xf32>
    %400 = vector.broadcast %379 : vector<1x64xf32> to vector<16x64xf32>
    %401 = arith.addf %399, %400 : vector<16x64xf32>
    %c1_111 = arith.constant 1 : index
    %c0_112 = arith.constant 0 : index
    %c0_113 = arith.constant 0 : index
    %402 = vector.load %arg8[%c1_111, %c0_112, %c0_113] : memref<2x64x256xf32, #tpu.memory_space<vmem>>, vector<1x64x256xf32>
    %403 = vector.shape_cast %402 : vector<1x64x256xf32> to vector<64x256xf32>
    %cst_114 = arith.constant dense<0.000000e+00> : vector<16x256xf32>
    %404 = tpu.matmul %401, %403, %cst_114 {dimension_numbers = #tpu.dot_dimension_numbers<[1], [0], [0], [1], [0, 0, 1, 1], [], []>} : vector<16x64xf32>, vector<64x256xf32>, vector<16x256xf32> -> vector<16x256xf32>
    %c1_115 = arith.constant 1 : index
    %c0_116 = arith.constant 0 : index
    %c0_117 = arith.constant 0 : index
    %405 = vector.load %arg9[%c1_115, %c0_116, %c0_117] : memref<2x1x256xf32, #tpu.memory_space<vmem>>, vector<1x1x256xf32>
    %406 = vector.shape_cast %405 : vector<1x1x256xf32> to vector<1x256xf32>
    %407 = vector.broadcast %406 : vector<1x256xf32> to vector<16x256xf32>
    %408 = arith.addf %404, %407 : vector<16x256xf32>
    %cst_118 = arith.constant 5.000000e-01 : f32
    %409 = vector.broadcast %cst_118 : f32 to vector<16x256xf32>
    %410 = arith.mulf %409, %408 : vector<16x256xf32>
    %cst_119 = arith.constant 0.707106769 : f32
    %411 = vector.broadcast %cst_119 : f32 to vector<16x256xf32>
    %412 = arith.mulf %408, %411 : vector<16x256xf32>
    %cst_120 = arith.constant 0.000000e+00 : f32
    %413 = vector.broadcast %cst_120 : f32 to vector<16x256xf32>
    %414 = arith.cmpf oge, %412, %413 : vector<16x256xf32>
    %cst_121 = arith.constant 1.000000e+00 : f32
    %cst_122 = arith.constant -1.000000e+00 : f32
    %415 = vector.broadcast %cst_121 : f32 to vector<16x256xf32>
    %416 = vector.broadcast %cst_122 : f32 to vector<16x256xf32>
    %417 = arith.select %414, %415, %416 : vector<16x256xi1>, vector<16x256xf32>
    %418 = math.absf %412 : vector<16x256xf32>
    %cst_123 = arith.constant 0.327591091 : f32
    %419 = vector.broadcast %cst_123 : f32 to vector<16x256xf32>
    %420 = arith.mulf %419, %418 : vector<16x256xf32>
    %cst_124 = arith.constant 1.000000e+00 : f32
    %421 = vector.broadcast %cst_124 : f32 to vector<16x256xf32>
    %422 = arith.addf %421, %420 : vector<16x256xf32>
    %423 = tpu.reciprocal %422 {approx = true} : vector<16x256xf32> -> vector<16x256xf32>
    %cst_125 = arith.constant 1.06140542 : f32
    %424 = vector.broadcast %cst_125 : f32 to vector<16x256xf32>
    %425 = arith.mulf %424, %423 : vector<16x256xf32>
    %cst_126 = arith.constant -1.45315206 : f32
    %426 = vector.broadcast %cst_126 : f32 to vector<16x256xf32>
    %427 = arith.addf %425, %426 : vector<16x256xf32>
    %428 = arith.mulf %427, %423 : vector<16x256xf32>
    %cst_127 = arith.constant 1.42141378 : f32
    %429 = vector.broadcast %cst_127 : f32 to vector<16x256xf32>
    %430 = arith.addf %428, %429 : vector<16x256xf32>
    %431 = arith.mulf %430, %423 : vector<16x256xf32>
    %cst_128 = arith.constant -0.284496725 : f32
    %432 = vector.broadcast %cst_128 : f32 to vector<16x256xf32>
    %433 = arith.addf %431, %432 : vector<16x256xf32>
    %434 = arith.mulf %433, %423 : vector<16x256xf32>
    %cst_129 = arith.constant 0.254829586 : f32
    %435 = vector.broadcast %cst_129 : f32 to vector<16x256xf32>
    %436 = arith.addf %434, %435 : vector<16x256xf32>
    %437 = arith.mulf %436, %423 : vector<16x256xf32>
    %cst_130 = arith.constant 0.000000e+00 : f32
    %438 = vector.broadcast %cst_130 : f32 to vector<16x256xf32>
    %439 = arith.subf %438, %418 : vector<16x256xf32>
    %440 = arith.mulf %439, %418 : vector<16x256xf32>
    %441 = math.exp %440 : vector<16x256xf32>
    %442 = arith.mulf %437, %441 : vector<16x256xf32>
    %cst_131 = arith.constant 1.000000e+00 : f32
    %443 = vector.broadcast %cst_131 : f32 to vector<16x256xf32>
    %444 = arith.subf %443, %442 : vector<16x256xf32>
    %445 = arith.mulf %417, %444 : vector<16x256xf32>
    %cst_132 = arith.constant 1.000000e+00 : f32
    %446 = vector.broadcast %cst_132 : f32 to vector<16x256xf32>
    %447 = arith.addf %446, %445 : vector<16x256xf32>
    %448 = arith.mulf %410, %447 : vector<16x256xf32>
    %c1_133 = arith.constant 1 : index
    %c0_134 = arith.constant 0 : index
    %c0_135 = arith.constant 0 : index
    %449 = vector.load %arg10[%c1_133, %c0_134, %c0_135] : memref<2x256x64xf32, #tpu.memory_space<vmem>>, vector<1x256x64xf32>
    %450 = vector.shape_cast %449 : vector<1x256x64xf32> to vector<256x64xf32>
    %cst_136 = arith.constant dense<0.000000e+00> : vector<16x64xf32>
    %451 = tpu.matmul %448, %450, %cst_136 {dimension_numbers = #tpu.dot_dimension_numbers<[1], [0], [0], [1], [0, 0, 1, 1], [], []>} : vector<16x256xf32>, vector<256x64xf32>, vector<16x64xf32> -> vector<16x64xf32>
    %452 = vector.extract_strided_slice %247 {offsets = [3, 0], sizes = [1, 64], strides = [1, 1]} : vector<6x64xf32> to vector<1x64xf32>
    %453 = vector.broadcast %452 : vector<1x64xf32> to vector<16x64xf32>
    %454 = arith.addf %451, %453 : vector<16x64xf32>
    %455 = arith.addf %401, %454 : vector<16x64xf32>
    %456 = vector.extract_strided_slice %247 {offsets = [4, 0], sizes = [1, 64], strides = [1, 1]} : vector<6x64xf32> to vector<1x64xf32>
    %457 = vector.extract_strided_slice %247 {offsets = [5, 0], sizes = [1, 64], strides = [1, 1]} : vector<6x64xf32> to vector<1x64xf32>
    %cst_137 = arith.constant dense<0.000000e+00> : vector<16xf32>
    %458 = vector.multi_reduction <add>, %455, %cst_137 [1] : vector<16x64xf32> to vector<16xf32>
    %459 = vector.shape_cast %458 : vector<16xf32> to vector<16x1xf32>
    %cst_138 = arith.constant 6.400000e+01 : f32
    %460 = vector.broadcast %cst_138 : f32 to vector<16x1xf32>
    %461 = arith.divf %459, %460 : vector<16x1xf32>
    %462 = vector.broadcast %461 : vector<16x1xf32> to vector<16x64xf32>
    %463 = arith.subf %455, %462 : vector<16x64xf32>
    %464 = arith.mulf %463, %463 : vector<16x64xf32>
    %cst_139 = arith.constant dense<0.000000e+00> : vector<16xf32>
    %465 = vector.multi_reduction <add>, %464, %cst_139 [1] : vector<16x64xf32> to vector<16xf32>
    %466 = vector.shape_cast %465 : vector<16xf32> to vector<16x1xf32>
    %cst_140 = arith.constant 6.400000e+01 : f32
    %467 = vector.broadcast %cst_140 : f32 to vector<16x1xf32>
    %468 = arith.divf %466, %467 : vector<16x1xf32>
    %469 = vector.broadcast %461 : vector<16x1xf32> to vector<16x64xf32>
    %470 = arith.subf %455, %469 : vector<16x64xf32>
    %cst_141 = arith.constant 9.99999997E-7 : f32
    %471 = vector.broadcast %cst_141 : f32 to vector<16x1xf32>
    %472 = arith.addf %468, %471 : vector<16x1xf32>
    %473 = math.rsqrt %472 : vector<16x1xf32>
    %474 = vector.broadcast %473 : vector<16x1xf32> to vector<16x64xf32>
    %475 = arith.mulf %470, %474 : vector<16x64xf32>
    %476 = vector.broadcast %456 : vector<1x64xf32> to vector<16x64xf32>
    %477 = arith.mulf %475, %476 : vector<16x64xf32>
    %478 = vector.broadcast %457 : vector<1x64xf32> to vector<16x64xf32>
    %479 = arith.addf %477, %478 : vector<16x64xf32>
    %c0_142 = arith.constant 0 : index
    %c0_143 = arith.constant 0 : index
    %480 = vector.load %arg11[%c0_142, %c0_143] : memref<2x64xf32, #tpu.memory_space<vmem>>, vector<2x64xf32>
    %481 = vector.extract_strided_slice %480 {offsets = [0, 0], sizes = [1, 64], strides = [1, 1]} : vector<2x64xf32> to vector<1x64xf32>
    %482 = vector.extract_strided_slice %480 {offsets = [1, 0], sizes = [1, 64], strides = [1, 1]} : vector<2x64xf32> to vector<1x64xf32>
    %cst_144 = arith.constant dense<0.000000e+00> : vector<16xf32>
    %483 = vector.multi_reduction <add>, %479, %cst_144 [1] : vector<16x64xf32> to vector<16xf32>
    %484 = vector.shape_cast %483 : vector<16xf32> to vector<16x1xf32>
    %cst_145 = arith.constant 6.400000e+01 : f32
    %485 = vector.broadcast %cst_145 : f32 to vector<16x1xf32>
    %486 = arith.divf %484, %485 : vector<16x1xf32>
    %487 = vector.broadcast %486 : vector<16x1xf32> to vector<16x64xf32>
    %488 = arith.subf %479, %487 : vector<16x64xf32>
    %489 = arith.mulf %488, %488 : vector<16x64xf32>
    %cst_146 = arith.constant dense<0.000000e+00> : vector<16xf32>
    %490 = vector.multi_reduction <add>, %489, %cst_146 [1] : vector<16x64xf32> to vector<16xf32>
    %491 = vector.shape_cast %490 : vector<16xf32> to vector<16x1xf32>
    %cst_147 = arith.constant 6.400000e+01 : f32
    %492 = vector.broadcast %cst_147 : f32 to vector<16x1xf32>
    %493 = arith.divf %491, %492 : vector<16x1xf32>
    %494 = vector.broadcast %486 : vector<16x1xf32> to vector<16x64xf32>
    %495 = arith.subf %479, %494 : vector<16x64xf32>
    %cst_148 = arith.constant 9.99999974E-6 : f32
    %496 = vector.broadcast %cst_148 : f32 to vector<16x1xf32>
    %497 = arith.addf %493, %496 : vector<16x1xf32>
    %498 = math.rsqrt %497 : vector<16x1xf32>
    %499 = vector.broadcast %498 : vector<16x1xf32> to vector<16x64xf32>
    %500 = arith.mulf %495, %499 : vector<16x64xf32>
    %501 = vector.broadcast %481 : vector<1x64xf32> to vector<16x64xf32>
    %502 = arith.mulf %500, %501 : vector<16x64xf32>
    %503 = vector.broadcast %482 : vector<1x64xf32> to vector<16x64xf32>
    %504 = arith.addf %502, %503 : vector<16x64xf32>
    %505 = vector.shape_cast %504 : vector<16x64xf32> to vector<2x8x64xf32>
    %cst_149 = arith.constant dense<0.000000e+00> : vector<2x64xf32>
    %506 = vector.multi_reduction <add>, %505, %cst_149 [1] : vector<2x8x64xf32> to vector<2x64xf32>
    %cst_150 = arith.constant 8.000000e+00 : f32
    %507 = vector.broadcast %cst_150 : f32 to vector<2x64xf32>
    %508 = arith.divf %506, %507 : vector<2x64xf32>
    %cst_151 = arith.constant dense<0xFF800000> : vector<2x64xf32>
    %509 = vector.multi_reduction <maximumf>, %505, %cst_151 [1] : vector<2x8x64xf32> to vector<2x64xf32>
    %510 = tpu.concatenate %508, %509 in 1 : vector<2x64xf32>, vector<2x64xf32> -> vector<2x128xf32>
    %c0_152 = arith.constant 0 : index
    %c0_153 = arith.constant 0 : index
    %511 = vector.load %arg12[%c0_152, %c0_153] : memref<128x256xf32, #tpu.memory_space<vmem>>, vector<128x256xf32>
    %cst_154 = arith.constant dense<0.000000e+00> : vector<2x256xf32>
    %512 = tpu.matmul %510, %511, %cst_154 {dimension_numbers = #tpu.dot_dimension_numbers<[1], [0], [0], [1], [0, 0, 1, 1], [], []>} : vector<2x128xf32>, vector<128x256xf32>, vector<2x256xf32> -> vector<2x256xf32>
    %c0_155 = arith.constant 0 : index
    %c0_156 = arith.constant 0 : index
    %513 = vector.load %arg13[%c0_155, %c0_156] : memref<1x256xf32, #tpu.memory_space<vmem>>, vector<1x256xf32>
    %514 = vector.broadcast %513 : vector<1x256xf32> to vector<2x256xf32>
    %515 = arith.addf %512, %514 : vector<2x256xf32>
    %cst_157 = arith.constant 3.000000e+00 : f32
    %516 = vector.broadcast %cst_157 : f32 to vector<2x256xf32>
    %517 = arith.addf %515, %516 : vector<2x256xf32>
    %cst_158 = arith.constant 0.000000e+00 : f32
    %cst_159 = arith.constant 6.000000e+00 : f32
    %518 = vector.broadcast %cst_158 : f32 to vector<2x256xf32>
    %519 = arith.maximumf %518, %517 : vector<2x256xf32>
    %520 = vector.broadcast %cst_159 : f32 to vector<2x256xf32>
    %521 = arith.minimumf %520, %519 : vector<2x256xf32>
    %522 = arith.mulf %515, %521 : vector<2x256xf32>
    %cst_160 = arith.constant 0.166666672 : f32
    %523 = vector.broadcast %cst_160 : f32 to vector<2x256xf32>
    %524 = arith.mulf %522, %523 : vector<2x256xf32>
    %c0_161 = arith.constant 0 : index
    %c0_162 = arith.constant 0 : index
    %525 = vector.load %arg14[%c0_161, %c0_162] : memref<256x128xf32, #tpu.memory_space<vmem>>, vector<256x128xf32>
    %cst_163 = arith.constant dense<0.000000e+00> : vector<2x128xf32>
    %526 = tpu.matmul %524, %525, %cst_163 {dimension_numbers = #tpu.dot_dimension_numbers<[1], [0], [0], [1], [0, 0, 1, 1], [], []>} : vector<2x256xf32>, vector<256x128xf32>, vector<2x128xf32> -> vector<2x128xf32>
    %c0_164 = arith.constant 0 : index
    %c0_165 = arith.constant 0 : index
    %527 = vector.load %arg15[%c0_164, %c0_165] : memref<1x128xf32, #tpu.memory_space<vmem>>, vector<1x128xf32>
    %528 = vector.broadcast %527 : vector<1x128xf32> to vector<2x128xf32>
    %529 = arith.addf %526, %528 : vector<2x128xf32>
    %c0_166 = arith.constant 0 : index
    %c0_167 = arith.constant 0 : index
    %c0_168 = arith.constant 0 : index
    %530 = vector.load %arg16[%c0_166, %c0_167, %c0_168] : memref<1x2x128xf32, #tpu.memory_space<vmem>>, vector<1x2x128xf32>
    %531 = vector.shape_cast %530 : vector<1x2x128xf32> to vector<2x128xf32>
    %532 = vector.shape_cast %529 : vector<2x128xf32> to vector<1x2x128xf32>
    tpu.vector_store %arg16[%c0_166, %c0_167, %c0_168], %532 {strides = array<i32>} : memref<1x2x128xf32, #tpu.memory_space<vmem>>, vector<1x2x128xf32>,
    return
  }
  func.func @transform_0(%arg0: i32) -> (i32, i32, i32) {
    %c0_i32 = arith.constant 0 : i32
    %c0_i32_0 = arith.constant 0 : i32
    %c0_i32_1 = arith.constant 0 : i32
    return %arg0, %c0_i32, %c0_i32_0 : i32, i32, i32
  }
  func.func @transform_1(%arg0: i32) -> (i32, i32) {
    %c0_i32 = arith.constant 0 : i32
    %c0_i32_0 = arith.constant 0 : i32
    %c0_i32_1 = arith.constant 0 : i32
    return %c0_i32, %c0_i32_0 : i32, i32
  }
  func.func @transform_2(%arg0: i32) -> (i32, i32) {
    %c0_i32 = arith.constant 0 : i32
    %c0_i32_0 = arith.constant 0 : i32
    %c0_i32_1 = arith.constant 0 : i32
    return %c0_i32, %c0_i32_0 : i32, i32
  }
  func.func @transform_3(%arg0: i32) -> (i32, i32, i32) {
    %c0_i32 = arith.constant 0 : i32
    %c0_i32_0 = arith.constant 0 : i32
    %c0_i32_1 = arith.constant 0 : i32
    %c0_i32_2 = arith.constant 0 : i32
    return %c0_i32, %c0_i32_0, %c0_i32_1 : i32, i32, i32
  }
  func.func @transform_4(%arg0: i32) -> (i32, i32, i32) {
    %c0_i32 = arith.constant 0 : i32
    %c0_i32_0 = arith.constant 0 : i32
    %c0_i32_1 = arith.constant 0 : i32
    %c0_i32_2 = arith.constant 0 : i32
    return %c0_i32, %c0_i32_0, %c0_i32_1 : i32, i32, i32
  }
  func.func @transform_5(%arg0: i32) -> (i32, i32, i32, i32) {
    %c0_i32 = arith.constant 0 : i32
    %c0_i32_0 = arith.constant 0 : i32
    %c0_i32_1 = arith.constant 0 : i32
    %c0_i32_2 = arith.constant 0 : i32
    %c0_i32_3 = arith.constant 0 : i32
    return %c0_i32, %c0_i32_0, %c0_i32_1, %c0_i32_2 : i32, i32, i32, i32
  }
  func.func @transform_6(%arg0: i32) -> (i32, i32, i32) {
    %c0_i32 = arith.constant 0 : i32
    %c0_i32_0 = arith.constant 0 : i32
    %c0_i32_1 = arith.constant 0 : i32
    %c0_i32_2 = arith.constant 0 : i32
    return %c0_i32, %c0_i32_0, %c0_i32_1 : i32, i32, i32
  }
  func.func @transform_7(%arg0: i32) -> (i32, i32, i32) {
    %c0_i32 = arith.constant 0 : i32
    %c0_i32_0 = arith.constant 0 : i32
    %c0_i32_1 = arith.constant 0 : i32
    %c0_i32_2 = arith.constant 0 : i32
    return %c0_i32, %c0_i32_0, %c0_i32_1 : i32, i32, i32
  }
  func.func @transform_8(%arg0: i32) -> (i32, i32, i32) {
    %c0_i32 = arith.constant 0 : i32
    %c0_i32_0 = arith.constant 0 : i32
    %c0_i32_1 = arith.constant 0 : i32
    %c0_i32_2 = arith.constant 0 : i32
    return %c0_i32, %c0_i32_0, %c0_i32_1 : i32, i32, i32
  }
  func.func @transform_9(%arg0: i32) -> (i32, i32, i32) {
    %c0_i32 = arith.constant 0 : i32
    %c0_i32_0 = arith.constant 0 : i32
    %c0_i32_1 = arith.constant 0 : i32
    %c0_i32_2 = arith.constant 0 : i32
    return %c0_i32, %c0_i32_0, %c0_i32_1 : i32, i32, i32
  }
  func.func @transform_10(%arg0: i32) -> (i32, i32) {
    %c0_i32 = arith.constant 0 : i32
    %c0_i32_0 = arith.constant 0 : i32
    %c0_i32_1 = arith.constant 0 : i32
    return %c0_i32, %c0_i32_0 : i32, i32
  }
  func.func @transform_11(%arg0: i32) -> (i32, i32) {
    %c0_i32 = arith.constant 0 : i32
    %c0_i32_0 = arith.constant 0 : i32
    %c0_i32_1 = arith.constant 0 : i32
    return %c0_i32, %c0_i32_0 : i32, i32
  }
  func.func @transform_12(%arg0: i32) -> (i32, i32) {
    %c0_i32 = arith.constant 0 : i32
    %c0_i32_0 = arith.constant 0 : i32
    %c0_i32_1 = arith.constant 0 : i32
    return %c0_i32, %c0_i32_0 : i32, i32
  }
  func.func @transform_13(%arg0: i32) -> (i32, i32) {
    %c0_i32 = arith.constant 0 : i32
    %c0_i32_0 = arith.constant 0 : i32
    %c0_i32_1 = arith.constant 0 : i32
    return %c0_i32, %c0_i32_0 : i32, i32
  }
  func.func @transform_14(%arg0: i32) -> (i32, i32) {
    %c0_i32 = arith.constant 0 : i32
    %c0_i32_0 = arith.constant 0 : i32
    %c0_i32_1 = arith.constant 0 : i32
    return %c0_i32, %c0_i32_0 : i32, i32
  }
  func.func @transform_15(%arg0: i32) -> (i32, i32, i32) {
    %c0_i32 = arith.constant 0 : i32
    %c0_i32_0 = arith.constant 0 : i32
    %c0_i32_1 = arith.constant 0 : i32
    return %arg0, %c0_i32, %c0_i32_0 : i32, i32, i32
  }
}

</mosaic_0001>

<bundles_post_ra>
// kernel: tpu_custom_call.1
= control target key start
LH: loop header
LB: loop body
LE: loop exit
PB: predicated region body
PF: predicated region fallthrough
CT: control target
= control target key end

     0   :  { %20 = vsyncpa [#allocation3], 0  ;;  %s9003_s0 = inlined_call_operand.vmem [shape: f32[2,8,1], index: 0, kind: input, shape index: {}]   ;;  %s9004_s1 = inlined_call_operand.vmem [shape: f32[1,64], index: 1, kind: input, shape index: {}]   ;;  %s9005_s2 = inlined_call_operand.vmem [shape: f32[16,64], index: 2, kind: input, shape index: {}]   ;;  %s9006_s3 = inlined_call_operand.vmem [shape: f32[2,64,192], index: 3, kind: input, shape index: {}]   ;;  %s9007_s4 = inlined_call_operand.vmem [shape: f32[2,1,192], index: 4, kind: input, shape index: {}]   ;;  %s9008_s5 = inlined_call_operand.hbm [shape: f32[2,8,8,64], index: 5, kind: input, shape index: {}]   ;;  %s9009_s6 = inlined_call_operand.vmem [shape: f32[2,6,64], index: 6, kind: input, shape index: {}]   ;;  %s9010_s7 = inlined_call_operand.vmem [shape: f32[2,64,256], index: 7, kind: input, shape index: {}]   ;;  %s9011_s8 = inlined_call_operand.vmem [shape: f32[2,1,256], index: 8, kind: input, shape index: {}]   ;;  %s9012_s9 = inlined_call_operand.vmem [shape: f32[2,256,64], index: 9, kind: input, shape index: {}]   ;;  %s9013_s10 = inlined_call_operand.vmem [shape: f32[2,64], index: 10, kind: input, shape index: {}]   ;;  %s9014_s11 = inlined_call_operand.vmem [shape: f32[128,256], index: 11, kind: input, shape index: {}]   ;;  %s9015_s12 = inlined_call_operand.vmem [shape: f32[1,256], index: 12, kind: input, shape index: {}]   ;;  %s9016_s13 = inlined_call_operand.hbm [shape: f32[256,128], index: 13, kind: input, shape index: {}]   ;;  %s9017_s14 = inlined_call_operand.vmem [shape: f32[1,128], index: 14, kind: input, shape index: {}]   ;;  %s9018_s15 = inlined_call_operand.hbm [shape: f32[1,2,128], index: 15, kind: output, shape index: {}]  }
   0x1   :  { %21 = vsyncpa [#allocation6], 0 }
   0x2   :  { %22 = vsyncpa [#allocation4], 0  ;;  %s7394_s18 = smov [#allocation2]   ;;  %s7322_s22 = scalar_lea.hbm %s9008_s5, 2048 }
   0x3   :  { %s38_s19 = sshll.u32 %s7394_s18, 4  ;;  %p7323_p0 = scmp.ne.s32.totalorder %s9008_s5, %s7322_s22  ;;  %s39_s19 = int_to_ptr.vmem [resolvable:$true] %s38_s19 }
   0x4   :  { %p7326_p1 = scmp.lt.u32.totalorder %s7322_s22, %s9008_s5 }
   0x6   :  { %p7328_p2 = pnand %p7326_p1, %p7323_p0 }
   0x8   :  { %7331 = shalt.err (!%p7328_p2)
}
   0x9   :  { %s7332_s27 = scalar_lea.vmem %s39_s19, 2048  ;;  %p7337_p4 = scmp.lt.s32.totalorder %s39_s19, %s39_s19 }
   0xa   :  { %p7333_p3 = scmp.ne.s32.totalorder %s39_s19, %s7332_s27  ;;  %p7338_p5 = scmp.lt.s32.totalorder %s7332_s27, %s7332_s27 }
   0xc   :  { %p7339_p6 = por %p7338_p5, %p7337_p4 }
   0xe   :  { %p7340_p7 = pnand %p7339_p6, %p7333_p3 }
  0x10   :  { %7343 = shalt.err (!%p7340_p7)
}
  0x11   :  { %s7395_s28 = smov 128   ;;  %s9021_s29 = smov 8  }
  0x12   :  { %44 = dma.hbm_to_vmem [thread:$0]  %s9008_s5, 2048, %s39_s19, [#allocation3], %s7395_s28, %s7395_s28, %s9021_s29  }
  0x13   :  { %s7397_s17 = smov [#allocation5]   ;;  %s7344_s22 = scalar_lea.hbm %s9016_s13, 4096 }
  0x14   :  { %s64_s18 = sshll.u32 %s7397_s17, 4  ;;  %p7345_p8 = scmp.ne.s32.totalorder %s9016_s13, %s7344_s22  ;;  %s65_s18 = int_to_ptr.vmem [resolvable:$true] %s64_s18 }
  0x15   :  { %p7348_p9 = scmp.lt.u32.totalorder %s7344_s22, %s9016_s13 }
  0x17   :  { %p7350_p10 = pnand %p7348_p9, %p7345_p8 }
  0x19   :  { %7353 = shalt.err (!%p7350_p10)
}
  0x1a   :  { %s7354_s27 = scalar_lea.vmem %s65_s18, 4096  ;;  %p7359_p12 = scmp.lt.s32.totalorder %s65_s18, %s65_s18 }
  0x1b   :  { %p7355_p11 = scmp.ne.s32.totalorder %s65_s18, %s7354_s27  ;;  %p7360_p13 = scmp.lt.s32.totalorder %s7354_s27, %s7354_s27 }
  0x1d   :  { %p7361_p0 = por %p7360_p13, %p7359_p12 }
  0x1f   :  { %p7362_p1 = pnand %p7361_p0, %p7355_p11 }
  0x21   :  { %7365 = shalt.err (!%p7362_p1)
}
  0x22   :  { %70 = dma.hbm_to_vmem [thread:$0]  %s9016_s13, 4096, %s65_s18, [#allocation6], %s7395_s28, %s7395_s28, %s9021_s29  }
  0x23   :  { %7388 = dma.done.wait [#allocation3], 2048  }
  0x24   :  { %7389 = vsyncadd [#allocation3], 4294965248 }
  0x25   :  { %7390 = dma.done.wait [#allocation6], 4096  }
  0x26   :  { %7391 = vsyncadd [#allocation6], 4294963200  ;;  %v7398_v0 = vmov 0   ;;  %v79_v1 = vld [vmem:[%s9003_s0] sm:$0xff]  ;;  %v80_v2 = vld [vmem:[%s9003_s0 + $0x8] sm:$0xff]  ;;  %v7399_v22 = vmov 0.0   ;;  %v131_v37 = vlaneseq }
  0x27   :  { %7141 = vset.pattern.permute.xlu0 %v7398_v0  ;;  %v114_v3 = vld [vmem:[%s9006_s3 + $0x8] sm:$0xff]  ;;  %v116_v4 = vld [vmem:[%s9006_s3 + $0x18] sm:$0xff]  ;;  %v113_v5 = vld [vmem:[%s9006_s3] sm:$0xff]  ;;  %212 = vmatprep.mubr.f32.mxu0 %v7399_v22  ;;  %vm141_vm0 = vcmask 523264   ;;  %vm7400_vm1 = vmmov 0   ;;  %s7401_s18 = smov 56  }
  0x28   :  { %84 = vperm.xlu0 %7141, %v79_v1   ;;  %v115_v6 = vld [vmem:[%s9006_s3 + $0x10] sm:$0xff]  ;;  %v6869_v7 = vpack.c.bf16 %v116_v4, %v114_v3  ;;  %v118_v9 = vld [vmem:[%s9006_s3 + $0x28] sm:$0xff]  ;;  %v120_v10 = vld [vmem:[%s9006_s3 + $0x38] sm:$0xff]  ;;  %218 = vmatprep.mubr.f32.mxu1 %v7399_v22  ;;  %v7598_v38 = vshrl.u32 %v131_v37, 7  ;;  %s7402_s23 = smov 64   ;;  %s7403_s24 = smov 48  }
  0x29   :  { %v6871_v8 = vpack.c.bf16 %v115_v6, %v113_v5  ;;  %v117_v11 = vld [vmem:[%s9006_s3 + $0x20] sm:$0xff]  ;;  %v6873_v12 = vpack.c.bf16 %v120_v10, %v118_v9  ;;  %v119_v13 = vld [vmem:[%s9006_s3 + $0x30] sm:$0xff]  ;;  %v122_v14 = vld [vmem:[%s9006_s3 + $0x48] sm:$0xff]  ;;  %s7404_s25 = smov 120   ;;  %s7405_s0 = smov 112   ;;  %vm228_vm2 = vcmask 64512  }
  0x2a   :  { %v124_v15 = vld [vmem:[%s9006_s3 + $0x58] sm:$0xff]  ;;  %6870 = vmatprep.subr.bf16.mxu0 %v6869_v7  ;;  %7109 = vmatprep.subr.bf16.mxu1 %v6869_v7  ;;  %v6875_v16 = vpack.c.bf16 %v119_v13, %v117_v11  ;;  %v121_v18 = vld [vmem:[%s9006_s3 + $0x40] sm:$0xff]  ;;  %v123_v19 = vld [vmem:[%s9006_s3 + $0x50] sm:$0xff]  ;;  %v7603_v39 = vsub.s32 0, %v7598_v38  ;;  %s7406_s26 = smov 40   ;;  %s7407_s27 = smov 32  }
  0x2b   :  { %6872 = vmatpush1.bf16.msra.mxu0 %v6871_v8  ;;  %7113 = vmatpush1.bf16.msra.mxu1 %v6871_v8  ;;  %v6877_v17 = vpack.c.bf16 %v124_v15, %v122_v14  ;;  %v126_v20 = vld [vmem:[%s9006_s3 + $0x68] sm:$0xff]  ;;  %v128_v21 = vld [vmem:[%s9006_s3 + $0x78] sm:$0xff]  ;;  %v6879_v23 = vpack.c.bf16 %v123_v19, %v121_v18  ;;  %v125_v25 = vld [vmem:[%s9006_s3 + $0x60] sm:$0xff]  ;;  %s7408_s5 = smov 104   ;;  %v7643_v49 = vsub.s32 1, %v7598_v38  ;;  %s7409_s19 = smov 96  }
  0x2c   :  { %89 = vperm.xlu0 %7141, %v80_v2   ;;  %6874 = vmatprep.subr.bf16.mxu0 %v6873_v12  ;;  %v6881_v24 = vpack.c.bf16 %v128_v21, %v126_v20  ;;  %v127_v26 = vld [vmem:[%s9006_s3 + $0x70] sm:$0xff]  ;;  %v6117_v28 = vld [vmem:[%s9004_s1] ss:$0 sm:$0xff]  ;;  %v101_v33 = vld [vmem:[%s9005_s2 + $0x8] sm:$0xff]  ;;  %s7410_s30 = smov 24   ;;  %s9027_s16 = smov 88  }
  0x2d   :  { %7110 = vmatprep.subr.bf16.mxu1 %v6873_v12  ;;  %v6883_v27 = vpack.c.bf16 %v127_v26, %v125_v25  ;;  %v100_v29 = vld [vmem:[%s9005_s2] sm:$0xff]  ;;  %v105_v48 = vld [vmem:[#allocation2 + $0x8] sm:$0xff]  ;;  %s9025_s17 = smov 16   ;;  %s9023_s20 = smov 80   ;;  %v106_v2 = vld [vmem:[#allocation2 + $0x10] sm:$0xff]  ;;  %vm2368_vm3 = vcmask 130048  }
  0x2e   :  { %v129_v40 = vld [vmem:[%s9007_s4] sm:$0x3]  ;;  %s9019_s21 = smov 72   ;;  %v107_v15 = vld [vmem:[#allocation2 + $0x18] sm:$0xff]  ;;  %v109_v26 = vld [vmem:[#allocation2 + $0x28] sm:$0xff]  ;;  %vm2371_vm4 = vcmask 195584  }
  0x2f   :  { %6876 = vmatpush1.bf16.msra.mxu0 %v6875_v16  ;;  %7114 = vmatpush1.bf16.msra.mxu1 %v6875_v16  ;;  %v134_v41 = vrot.slane %v129_v40, %v7603_v39  ;;  %v138_v50 = vrot.slane %v129_v40, %v7643_v49  ;;  %v104_v55 = vld [vmem:[#allocation2] sm:$0xff]  ;;  %v111_v40 = vld [vmem:[#allocation2 + $0x38] sm:$0xff]  ;;  %vm2374_vm5 = vcmask 261120   ;;  %vm2377_vm6 = vcmask 326656   ;;  %s9030_s1 = smov 16   ;;  %s9031_s2 = smov 80  }
  0x30   :  { %6878 = vmatprep.subr.bf16.mxu0 %v6877_v17  ;;  %7111 = vmatprep.subr.bf16.mxu1 %v6877_v17  ;;  %v108_v20 = vld [vmem:[#allocation2 + $0x20] sm:$0xff]  ;;  %vm2380_vm7 = vcmask 392192   ;;  %vm2383_vm8 = vcmask 457728  }
  0x33   :  { %6880 = vmatpush1.bf16.msra.mxu0 %v6879_v23  ;;  %7115 = vmatpush1.bf16.msra.mxu1 %v6879_v23 }
  0x34   :  { %6882 = vmatprep.subr.bf16.mxu0 %v6881_v24  ;;  %7112 = vmatprep.subr.bf16.mxu1 %v6881_v24 }
  0x37   :  { %6884 = vmatpush1.bf16.msra.mxu0 %v6883_v27  ;;  %7116 = vmatpush1.bf16.msra.mxu1 %v6883_v27 }
  0x38   :  { %6553 = vmatprep.subr.mxu1 %v7399_v22  ;;  %6578 = vmatprep.subr.mxu0 %v105_v48 }
  0xa7   :  { %v85_v30 = vpop.permute.xlu0 %84 }
  0xa8   :  { %v98_v31 = vmul.f32 %v6117_v28, %v85_v30 }
  0xaa   :  { %v7587_v32 = vadd.f32 %v100_v29, %v98_v31  ;;  %v110_v31 = vld [vmem:[#allocation2 + $0x30] sm:$0xff] }
  0xab   :  { %v90_v34 = vpop.permute.xlu0 %89 }
  0xac   :  { %v99_v35 = vmul.f32 %v6117_v28, %v90_v34  ;;  %6118 = vmatmul.mubr.msk.f32.vlgmr.msra.gmra.mrb[0].mxu0 %vm141_vm0, %v7587_v32 }
  0xad   :  { %6579 = vmatpush3.msra.mxu0 %v105_v48 }
  0xae   :  { %v7594_v36 = vadd.f32 %v101_v33, %v99_v35  ;;  %6588 = vmatprep.subr.mxu0 %v7399_v22 }
  0xb0   :  { %6119 = vmatmul.mubr.msk.f32.vlgmr.msra.gmra.mrb[0].mxu1 %vm141_vm0, %v7594_v36 }
  0xb1   :  { %6555 = vmatprep.mubr.msk.f32.mxu1 %vm7400_vm1, %v7399_v22 }
 0x17f   :  { %v214_v42 = vpop.f32.mrb[0].mxu0 }
 0x180   :  { %v7609_v43 = vadd.f32 %v214_v42, %v134_v41  ;;  %v216_v44 = vpop.f32.mrb[1].mxu0 }
 0x181   :  { %v217_v52 = vadd.f32 %v216_v44, %v138_v50 }
 0x182   :  { %463 = vrot.lane.b32.xlu0 %v7609_v43, %s7401_s18  ;;  %226 = vrot.lane.b32.xlu1 %v7609_v43, %s7402_s23 }
 0x183   :  { %v220_v45 = vpop.f32.mrb[0].mxu1 }
 0x184   :  { %v7615_v46 = vadd.f32 %v220_v45, %v134_v41  ;;  %v222_v47 = vpop.f32.mrb[1].mxu1  ;;  %v7415_v45 = vmov 0.0|0.0  }
 0x185   :  { %v223_v51 = vadd.f32 %v222_v47, %v138_v50 }
 0x186   :  { %541 = vrot.lane.b32.xlu0 %v7615_v46, %s7401_s18  ;;  %304 = vrot.lane.b32.xlu1 %v7615_v46, %s7402_s23 }
 0x18a   :  { %702 = vrot.lane.b32.xlu0 %v7609_v43, %s7403_s24  ;;  %461 = vrot.lane.b32.xlu1 %v7609_v43, %s7404_s25 }
 0x18e   :  { %700 = vrot.lane.b32.xlu0 %v7609_v43, %s7405_s0  ;;  %539 = vrot.lane.b32.xlu1 %v7615_v46, %s7404_s25 }
 0x192   :  { %941 = vrot.lane.b32.xlu0 %v7609_v43, %s7406_s26  ;;  %780 = vrot.lane.b32.xlu1 %v7615_v46, %s7403_s24 }
 0x196   :  { %1019 = vrot.lane.b32.xlu0 %v7615_v46, %s7406_s26  ;;  %778 = vrot.lane.b32.xlu1 %v7615_v46, %s7405_s0 }
 0x19a   :  { %1180 = vrot.lane.b32.xlu0 %v7609_v43, %s7407_s27  ;;  %939 = vrot.lane.b32.xlu1 %v7609_v43, %s7408_s5 }
 0x19e   :  { %1178 = vrot.lane.b32.xlu0 %v7609_v43, %s7409_s19  ;;  %1017 = vrot.lane.b32.xlu1 %v7615_v46, %s7408_s5 }
 0x1a2   :  { %1419 = vrot.lane.b32.xlu0 %v7609_v43, %s7410_s30  ;;  %1258 = vrot.lane.b32.xlu1 %v7615_v46, %s7407_s27 }
 0x1a6   :  { %619 = vrot.lane.b32.xlu0 %v223_v51, %s7404_s25  ;;  %1256 = vrot.lane.b32.xlu1 %v7615_v46, %s7409_s19 }
 0x1aa   :  { %1497 = vrot.lane.b32.xlu0 %v7615_v46, %s7410_s30  ;;  %617 = vrot.lane.b32.xlu1 %v217_v52, %s7404_s25 }
 0x1ae   :  { %858 = vrot.lane.b32.xlu0 %v223_v51, %s7405_s0  ;;  %1417 = vrot.lane.b32.xlu1 %v7609_v43, %s9027_s16 }
 0x1b2   :  { %1658 = vrot.lane.b32.xlu0 %v7609_v43, %s9025_s17  ;;  %856 = vrot.lane.b32.xlu1 %v217_v52, %s7405_s0 }
 0x1b6   :  { %1097 = vrot.lane.b32.xlu0 %v223_v51, %s7408_s5  ;;  %1495 = vrot.lane.b32.xlu1 %v7615_v46, %s9027_s16 }
 0x1ba   :  { %1656 = vrot.lane.b32.xlu0 %v7609_v43, %s9023_s20  ;;  %1095 = vrot.lane.b32.xlu1 %v217_v52, %s7408_s5 }
 0x1be   :  { %1336 = vrot.lane.b32.xlu0 %v223_v51, %s7409_s19  ;;  %1736 = vrot.lane.b32.xlu1 %v7615_v46, %s9025_s17 }
 0x1c2   :  { %1575 = vrot.lane.b32.xlu0 %v223_v51, %s9027_s16  ;;  %1334 = vrot.lane.b32.xlu1 %v217_v52, %s7409_s19 }
 0x1c6   :  { %1897 = vrot.lane.b32.xlu0 %v7609_v43, %s9021_s29  ;;  %1573 = vrot.lane.b32.xlu1 %v217_v52, %s9027_s16 }
 0x1ca   :  { %1814 = vrot.lane.b32.xlu0 %v223_v51, %s9023_s20  ;;  %1734 = vrot.lane.b32.xlu1 %v7615_v46, %s9023_s20 }
 0x1ce   :  { %1975 = vrot.lane.b32.xlu0 %v7615_v46, %s9021_s29  ;;  %1812 = vrot.lane.b32.xlu1 %v217_v52, %s9023_s20 }
 0x1d2   :  { %2051 = vrot.lane.b32.xlu0 %v217_v52, %s9019_s21  ;;  %1895 = vrot.lane.b32.xlu1 %v7609_v43, %s9019_s21 }
 0x1d6   :  { %1973 = vrot.lane.b32.xlu1 %v7615_v46, %s9019_s21 }
 0x1da   :  { %2053 = vrot.lane.b32.xlu1 %v223_v51, %s9019_s21 }
 0x1f4   :  { %v227_v53 = vpop.permute.xlu1 %226  ;;  %v464_v54 = vpop.permute.xlu0 %463 }
 0x1f5   :  { %6554 = vmatpush3.xpose.msk.msra.mxu1 %vm228_vm2, %v227_v53 }
 0x1f6   :  { %6558 = vmatprep.subr.mxu1 %v7399_v22 }
 0x1f8   :  { %6556 = vmatmul.mubr.msk.f32.vlgmr.msra.gmra.mrb[2].mxu1 %vm228_vm2, %v7609_v43  ;;  %v305_v56 = vpop.permute.xlu1 %304  ;;  %v542_v57 = vpop.permute.xlu0 %541 }
 0x1f9   :  { %6559 = vmatpush3.xpose.msk.msra.mxu1 %vm228_vm2, %v305_v56  ;;  %6560 = vmatprep.mubr.msk.f32.mxu1 %vm7400_vm1, %v7399_v22 }
 0x1fa   :  { %6563 = vmatprep.subr.mxu1 %v104_v55 }
 0x1fc   :  { %6561 = vmatmul.mubr.msk.f32.vlgmr.msra.gmra.mrb[4].mxu1 %vm228_vm2, %v7615_v46  ;;  %v462_v58 = vpop.permute.xlu1 %461  ;;  %v703_v59 = vpop.permute.xlu0 %702 }
 0x1fd   :  { %6564 = vmatpush3.msra.mxu1 %v104_v55  ;;  %6565 = vmatprep.mubr.msk.f32.mxu1 %vm228_vm2, %v217_v52 }
 0x1fe   :  { %6568 = vmatprep.subr.mxu1 %v7399_v22 }
 0x200   :  { %6566 = vmatmul.mubr.msk.f32.vlgmr.msra.gmra.mrb[6].mxu1 %vm228_vm2, %v223_v51  ;;  %v540_v60 = vpop.permute.xlu1 %539  ;;  %v701_v61 = vpop.permute.xlu0 %700 }
 0x201   :  { %6570 = vmatprep.mubr.msk.f32.mxu1 %vm7400_vm1, %v7399_v22 }
 0x204   :  { %v781_v62 = vpop.permute.xlu1 %780  ;;  %6569 = vmatpush3.xpose.msk.msra.mxu1 %vm228_vm2, %v464_v54  ;;  %v942_v63 = vpop.permute.xlu0 %941 }
 0x205   :  { %6573 = vmatprep.subr.mxu1 %v7399_v22 }
 0x207   :  { %6571 = vmatmul.mubr.msk.f32.vlgmr.msra.gmra.mrb[8].mxu1 %vm228_vm2, %v462_v58 }
 0x208   :  { %v779_v0 = vpop.permute.xlu1 %778  ;;  %6574 = vmatpush3.xpose.msk.msra.mxu1 %vm228_vm2, %v542_v57  ;;  %v1020_v1 = vpop.permute.xlu0 %1019  ;;  %6575 = vmatprep.mubr.msk.f32.mxu1 %vm7400_vm1, %v7399_v22 }
 0x209   :  { %6583 = vmatprep.subr.mxu1 %v7399_v22 }
 0x20b   :  { %6576 = vmatmul.mubr.msk.f32.vlgmr.msra.gmra.mrb[10].mxu1 %vm228_vm2, %v540_v60 }
 0x20c   :  { %v940_v3 = vpop.permute.xlu1 %939  ;;  %6584 = vmatpush3.xpose.msk.msra.mxu1 %vm228_vm2, %v703_v59  ;;  %v1181_v4 = vpop.permute.xlu0 %1180  ;;  %6585 = vmatprep.mubr.msk.f32.mxu1 %vm7400_vm1, %v7399_v22 }
 0x20d   :  { %6593 = vmatprep.subr.mxu1 %v106_v2 }
 0x20f   :  { %6586 = vmatmul.mubr.msk.f32.vlgmr.msra.gmra.mrb[12].mxu1 %vm228_vm2, %v701_v61 }
 0x210   :  { %v1018_v5 = vpop.permute.xlu1 %1017  ;;  %v1179_v6 = vpop.permute.xlu0 %1178  ;;  %6594 = vmatpush3.msra.mxu1 %v106_v2 }
 0x211   :  { %6603 = vmatprep.subr.mxu1 %v7399_v22 }
 0x214   :  { %v1259_v7 = vpop.permute.xlu1 %1258  ;;  %v1420_v8 = vpop.permute.xlu0 %1419 }
 0x218   :  { %v1257_v9 = vpop.permute.xlu1 %1256  ;;  %v620_v10 = vpop.permute.xlu0 %619 }
 0x21c   :  { %v618_v11 = vpop.permute.xlu1 %617  ;;  %v1498_v12 = vpop.permute.xlu0 %1497 }
 0x21d   :  { %6580 = vmatprep.mubr.msk.f32.mxu0 %vm228_vm2, %v618_v11 }
 0x21e   :  { %6581 = vmatmul.mubr.msk.f32.vlgmr.msra.gmra.mrb[2].mxu0 %vm228_vm2, %v620_v10 }
 0x21f   :  { %6589 = vmatpush3.xpose.msk.msra.mxu0 %vm228_vm2, %v781_v62  ;;  %6590 = vmatprep.mubr.msk.f32.mxu0 %vm7400_vm1, %v7399_v22 }
 0x220   :  { %v1418_v13 = vpop.permute.xlu1 %1417  ;;  %v859_v14 = vpop.permute.xlu0 %858  ;;  %6598 = vmatprep.subr.mxu0 %v7399_v22 }
 0x222   :  { %6591 = vmatmul.mubr.msk.f32.vlgmr.msra.gmra.mrb[4].mxu0 %vm228_vm2, %v779_v0 }
 0x223   :  { %6599 = vmatpush3.xpose.msk.msra.mxu0 %vm228_vm2, %v942_v63  ;;  %6600 = vmatprep.mubr.msk.f32.mxu0 %vm7400_vm1, %v7399_v22 }
 0x224   :  { %v857_v16 = vpop.permute.xlu1 %856  ;;  %v1659_v17 = vpop.permute.xlu0 %1658  ;;  %6608 = vmatprep.subr.mxu0 %v107_v15 }
 0x225   :  { %6595 = vmatprep.mubr.msk.f32.mxu1 %vm228_vm2, %v857_v16 }
 0x226   :  { %6596 = vmatmul.mubr.msk.f32.vlgmr.msra.gmra.mrb[14].mxu1 %vm228_vm2, %v859_v14  ;;  %6601 = vmatmul.mubr.msk.f32.vlgmr.msra.gmra.mrb[6].mxu0 %vm228_vm2, %v940_v3 }
 0x227   :  { %6604 = vmatpush3.xpose.msk.msra.mxu1 %vm228_vm2, %v1020_v1  ;;  %6609 = vmatpush3.msra.mxu0 %v107_v15 }
 0x228   :  { %v1496_v18 = vpop.permute.xlu1 %1495  ;;  %v1098_v19 = vpop.permute.xlu0 %1097  ;;  %6605 = vmatprep.mubr.msk.f32.mxu1 %vm7400_vm1, %v7399_v22  ;;  %6613 = vmatprep.subr.mxu1 %v7399_v22 }
 0x229   :  { %6618 = vmatprep.subr.mxu0 %v7399_v22 }
 0x22a   :  { %6606 = vmatmul.mubr.msk.f32.vlgmr.msra.gmra.mrb[16].mxu1 %vm228_vm2, %v1018_v5 }
 0x22b   :  { %6614 = vmatpush3.xpose.msk.msra.mxu1 %vm228_vm2, %v1181_v4  ;;  %6615 = vmatprep.mubr.msk.f32.mxu1 %vm7400_vm1, %v7399_v22 }
 0x22c   :  { %v1096_v21 = vpop.permute.xlu1 %1095  ;;  %v1657_v23 = vpop.permute.xlu0 %1656  ;;  %6623 = vmatprep.subr.mxu1 %v108_v20 }
 0x22d   :  { %6610 = vmatprep.mubr.msk.f32.mxu0 %vm228_vm2, %v1096_v21 }
 0x22e   :  { %6611 = vmatmul.mubr.msk.f32.vlgmr.msra.gmra.mrb[8].mxu0 %vm228_vm2, %v1098_v19  ;;  %6616 = vmatmul.mubr.msk.f32.vlgmr.msra.gmra.mrb[18].mxu1 %vm228_vm2, %v1179_v6 }
 0x22f   :  { %6619 = vmatpush3.xpose.msk.msra.mxu0 %vm228_vm2, %v1259_v7  ;;  %6624 = vmatpush3.msra.mxu1 %v108_v20 }
 0x230   :  { %v1737_v24 = vpop.permute.xlu1 %1736  ;;  %v1337_v25 = vpop.permute.xlu0 %1336  ;;  %6620 = vmatprep.mubr.msk.f32.mxu0 %vm7400_vm1, %v7399_v22  ;;  %6628 = vmatprep.subr.mxu0 %v7399_v22 }
 0x231   :  { %6633 = vmatprep.subr.mxu1 %v7399_v22 }
 0x232   :  { %6621 = vmatmul.mubr.msk.f32.vlgmr.msra.gmra.mrb[10].mxu0 %vm228_vm2, %v1257_v9 }
 0x233   :  { %6629 = vmatpush3.xpose.msk.msra.mxu0 %vm228_vm2, %v1420_v8  ;;  %6630 = vmatprep.mubr.msk.f32.mxu0 %vm7400_vm1, %v7399_v22 }
 0x234   :  { %v1335_v27 = vpop.permute.xlu1 %1334  ;;  %v1576_v28 = vpop.permute.xlu0 %1575  ;;  %6638 = vmatprep.subr.mxu0 %v109_v26 }
 0x235   :  { %6625 = vmatprep.mubr.msk.f32.mxu1 %vm228_vm2, %v1335_v27 }
 0x236   :  { %6626 = vmatmul.mubr.msk.f32.vlgmr.msra.gmra.mrb[20].mxu1 %vm228_vm2, %v1337_v25  ;;  %6631 = vmatmul.mubr.msk.f32.vlgmr.msra.gmra.mrb[12].mxu0 %vm228_vm2, %v1418_v13 }
 0x237   :  { %6634 = vmatpush3.xpose.msk.msra.mxu1 %vm228_vm2, %v1498_v12  ;;  %6639 = vmatpush3.msra.mxu0 %v109_v26 }
 0x238   :  { %v1574_v29 = vpop.permute.xlu1 %1573  ;;  %v1898_v30 = vpop.permute.xlu0 %1897  ;;  %6635 = vmatprep.mubr.msk.f32.mxu1 %vm7400_vm1, %v7399_v22  ;;  %6643 = vmatprep.subr.mxu1 %v7399_v22 }
 0x239   :  { %6640 = vmatprep.mubr.msk.f32.mxu0 %vm228_vm2, %v1574_v29  ;;  %6648 = vmatprep.subr.mxu0 %v7399_v22 }
 0x23a   :  { %6636 = vmatmul.mubr.msk.f32.vlgmr.msra.gmra.mrb[22].mxu1 %vm228_vm2, %v1496_v18  ;;  %6641 = vmatmul.mubr.msk.f32.vlgmr.msra.gmra.mrb[14].mxu0 %vm228_vm2, %v1576_v28 }
 0x23b   :  { %6644 = vmatpush3.xpose.msk.msra.mxu1 %vm228_vm2, %v1659_v17  ;;  %6645 = vmatprep.mubr.msk.f32.mxu1 %vm7400_vm1, %v7399_v22 }
 0x23c   :  { %v1735_v33 = vpop.permute.xlu1 %1734  ;;  %v1815_v34 = vpop.permute.xlu0 %1814  ;;  %6653 = vmatprep.subr.mxu1 %v110_v31  ;;  %6650 = vmatprep.mubr.msk.f32.mxu0 %vm7400_vm1, %v7399_v22 }
 0x23e   :  { %6649 = vmatpush3.xpose.msk.msra.mxu0 %vm228_vm2, %v1737_v24  ;;  %6646 = vmatmul.mubr.msk.f32.vlgmr.msra.gmra.mrb[24].mxu1 %vm228_vm2, %v1657_v23 }
 0x23f   :  { %6654 = vmatpush3.msra.mxu1 %v110_v31  ;;  %6658 = vmatprep.subr.mxu0 %v7399_v22 }
 0x240   :  { %v1813_v35 = vpop.permute.xlu1 %1812  ;;  %v1976_v37 = vpop.permute.xlu0 %1975  ;;  %6663 = vmatprep.subr.mxu1 %v7399_v22 }
 0x241   :  { %6651 = vmatmul.mubr.msk.f32.vlgmr.msra.gmra.mrb[16].mxu0 %vm228_vm2, %v1735_v33  ;;  %6655 = vmatprep.mubr.msk.f32.mxu1 %vm228_vm2, %v1813_v35 }
 0x242   :  { %6659 = vmatpush3.xpose.msk.msra.mxu0 %vm228_vm2, %v1898_v30  ;;  %6656 = vmatmul.mubr.msk.f32.vlgmr.msra.gmra.mrb[26].mxu1 %vm228_vm2, %v1815_v34 }
 0x243   :  { %6660 = vmatprep.mubr.msk.f32.mxu0 %vm7400_vm1, %v7399_v22  ;;  %6665 = vmatprep.mubr.msk.f32.mxu1 %vm7400_vm1, %v7399_v22 }
 0x244   :  { %v1896_v41 = vpop.permute.xlu1 %1895  ;;  %v2052_v42 = vpop.permute.xlu0 %2051  ;;  %6668 = vmatprep.subr.mxu0 %v111_v40 }
 0x245   :  { %6661 = vmatmul.mubr.msk.f32.vlgmr.msra.gmra.mrb[18].mxu0 %vm228_vm2, %v1896_v41 }
 0x246   :  { %6664 = vmatpush3.xpose.msk.msra.mxu1 %vm228_vm2, %v1976_v37  ;;  %6670 = vmatprep.mubr.msk.f32.mxu0 %vm228_vm2, %v2052_v42 }
 0x247   :  { %6669 = vmatpush3.msra.mxu0 %v111_v40  ;;  %6885 = vmatprep.subr.bf16.mxu1 %v7415_v45 }
 0x248   :  { %v1974_v43 = vpop.permute.xlu1 %1973  ;;  %6897 = vmatprep.subr.bf16.mxu0 %v7415_v45 }
 0x249   :  { %6666 = vmatmul.mubr.msk.f32.vlgmr.msra.gmra.mrb[28].mxu1 %vm228_vm2, %v1974_v43 }
 0x24a   :  { %6689 = vmatprep.mubr.msk.f32.mxu1 %vm7400_vm1, %v7399_v22 }
 0x24c   :  { %v2054_v44 = vpop.permute.xlu1 %2053 }
 0x24d   :  { %6671 = vmatmul.mubr.msk.f32.vlgmr.msra.gmra.mrb[20].mxu0 %vm228_vm2, %v2054_v44 }
 0x24e   :  { %6708 = vmatprep.mubr.msk.f32.mxu0 %vm7400_vm1, %v7399_v22 }
 0x2cb   :  { %v7792_v46 = vpop.f32.mrb[2].mxu1 }
 0x2cc   :  { %v6557_v47 = vpop.f32.mrb[3].mxu1 }
 0x2cf   :  { %v7794_v48 = vpop.f32.mrb[4].mxu1 }
 0x2d0   :  { %v6562_v50 = vpop.f32.mrb[5].mxu1 }
 0x2d3   :  { %v6567_v51 = vpop.f32.mrb[6].mxu1 }
 0x2d4   :  { %v452_v52 = vpop.f32.mrb[7].mxu1 }
 0x2da   :  { %v7796_v53 = vpop.f32.mrb[8].mxu1 }
 0x2db   :  { %v6572_v54 = vpop.f32.mrb[9].mxu1  ;;  %v2137_v9 = vsel %vm228_vm2, %v7796_v53, -inf }
 0x2de   :  { %v7798_v55 = vpop.f32.mrb[10].mxu1 }
 0x2df   :  { %v6577_v56 = vpop.f32.mrb[11].mxu1  ;;  %v2161_v15 = vsel %vm228_vm2, %v7798_v55, -inf }
 0x2e2   :  { %v7800_v57 = vpop.f32.mrb[12].mxu1 }
 0x2e3   :  { %v6587_v58 = vpop.f32.mrb[13].mxu1  ;;  %v2140_v34 = vsel %vm228_vm2, %v7800_v57, -inf }
 0x2f1   :  { %v6582_v59 = vpop.f32.mrb[2].mxu0 }
 0x2f2   :  { %v6898_v60 = vpack.c.bf16 %v6582_v59, %v6567_v51  ;;  %v691_v61 = vpop.f32.mrb[3].mxu0 }
 0x2f3   :  { %v6886_v62 = vpack.c.bf16 %v691_v61, %v452_v52 }
 0x2f4   :  { %6899 = vmatpush3.bf16.msra.mxu0 %v6898_v60 }
 0x2f5   :  { %v7802_v63 = vpop.f32.mrb[4].mxu0  ;;  %6887 = vmatpush3.bf16.msra.mxu1 %v6886_v62  ;;  %6900 = vmatprep.subr.bf16.mxu0 %v7415_v45 }
 0x2f6   :  { %v6592_v0 = vpop.f32.mrb[5].mxu0  ;;  %v2164_v1 = vsel %vm228_vm2, %v7802_v63, -inf  ;;  %6888 = vmatprep.subr.bf16.mxu1 %v7415_v45 }
 0x2f7   :  { %2165 = vmax.xlane.f32.xlu0 %v2164_v1  ;;  %v2158_v1 = vsel %vm228_vm2, %v7794_v48, -inf }
 0x2f9   :  { %v6597_v2 = vpop.f32.mrb[14].mxu1  ;;  %v7808_v3 = vpop.f32.mrb[6].mxu0 }
 0x2fa   :  { %v930_v4 = vpop.f32.mrb[15].mxu1  ;;  %v6602_v5 = vpop.f32.mrb[7].mxu0  ;;  %v2143_v6 = vsel %vm228_vm2, %v7808_v3, -inf }
 0x2fb   :  { %2144 = vmax.xlane.f32.xlu0 %v2143_v6 }
 0x2fd   :  { %v7812_v7 = vpop.f32.mrb[16].mxu1 }
 0x2fe   :  { %v6607_v8 = vpop.f32.mrb[17].mxu1  ;;  %v2167_v19 = vsel %vm228_vm2, %v7812_v7, -inf }
 0x2ff   :  { %2138 = vmax.xlane.f32.xlu0 %v2137_v9 }
 0x301   :  { %v6612_v10 = vpop.f32.mrb[8].mxu0  ;;  %v7816_v11 = vpop.f32.mrb[18].mxu1 }
 0x302   :  { %v6901_v12 = vpack.c.bf16 %v6612_v10, %v6597_v2  ;;  %v1169_v13 = vpop.f32.mrb[9].mxu0  ;;  %v6617_v14 = vpop.f32.mrb[19].mxu1  ;;  %v2146_v26 = vsel %vm228_vm2, %v7816_v11, -inf }
 0x303   :  { %v6889_v16 = vpack.c.bf16 %v1169_v13, %v930_v4  ;;  %2162 = vmax.xlane.f32.xlu0 %v2161_v15  ;;  %v2134_v4 = vsel %vm228_vm2, %v7792_v46, -inf }
 0x304   :  { %6902 = vmatpush3.bf16.msra.mxu0 %v6901_v12 }
 0x305   :  { %v7820_v17 = vpop.f32.mrb[10].mxu0  ;;  %6890 = vmatpush3.bf16.msra.mxu1 %v6889_v16  ;;  %6903 = vmatprep.subr.bf16.mxu0 %v7415_v45 }
 0x306   :  { %v6622_v18 = vpop.f32.mrb[11].mxu0  ;;  %v2170_v20 = vsel %vm228_vm2, %v7820_v17, -inf  ;;  %6891 = vmatprep.subr.bf16.mxu1 %v7415_v45 }
 0x307   :  { %2168 = vmax.xlane.f32.xlu0 %v2167_v19  ;;  %2171 = vmax.xlane.f32.xlu1 %v2170_v20 }
 0x309   :  { %v6627_v21 = vpop.f32.mrb[20].mxu1  ;;  %v7828_v23 = vpop.f32.mrb[12].mxu0 }
 0x30a   :  { %v1408_v24 = vpop.f32.mrb[21].mxu1  ;;  %v6632_v25 = vpop.f32.mrb[13].mxu0  ;;  %v2149_v27 = vsel %vm228_vm2, %v7828_v23, -inf }
 0x30b   :  { %2147 = vmax.xlane.f32.xlu0 %v2146_v26  ;;  %2150 = vmax.xlane.f32.xlu1 %v2149_v27 }
 0x30d   :  { %v7834_v28 = vpop.f32.mrb[22].mxu1  ;;  %v6642_v29 = vpop.f32.mrb[14].mxu0 }
 0x30e   :  { %v6904_v30 = vpack.c.bf16 %v6642_v29, %v6627_v21  ;;  %v6637_v31 = vpop.f32.mrb[23].mxu1  ;;  %v1647_v33 = vpop.f32.mrb[15].mxu0  ;;  %v2173_v35 = vsel %vm228_vm2, %v7834_v28, -inf }
 0x30f   :  { %v6892_v37 = vpack.c.bf16 %v1647_v33, %v1408_v24  ;;  %2141 = vmax.xlane.f32.xlu1 %v2140_v34  ;;  %2174 = vmax.xlane.f32.xlu0 %v2173_v35 }
 0x310   :  { %6905 = vmatpush3.bf16.msra.mxu0 %v6904_v30 }
 0x311   :  { %v7840_v40 = vpop.f32.mrb[24].mxu1  ;;  %6893 = vmatpush3.bf16.msra.mxu1 %v6892_v37  ;;  %6906 = vmatprep.subr.bf16.mxu0 %v7415_v45 }
 0x312   :  { %v6647_v41 = vpop.f32.mrb[25].mxu1  ;;  %6894 = vmatprep.subr.bf16.mxu1 %v7415_v45  ;;  %v2152_v58 = vsel %vm228_vm2, %v7840_v40, -inf }
 0x314   :  { %v7844_v42 = vpop.f32.mrb[16].mxu0 }
 0x315   :  { %v6652_v43 = vpop.f32.mrb[17].mxu0  ;;  %v6657_v44 = vpop.f32.mrb[26].mxu1  ;;  %v2176_v0 = vsel %vm228_vm2, %v7844_v42, -inf }
 0x316   :  { %v1886_v47 = vpop.f32.mrb[27].mxu1 }
 0x318   :  { %v7846_v50 = vpop.f32.mrb[18].mxu0 }
 0x319   :  { %v6662_v51 = vpop.f32.mrb[19].mxu0  ;;  %v2155_v52 = vsel %vm228_vm2, %v7846_v50, -inf }
 0x31a   :  { %2156 = vmax.xlane.f32.xlu1 %v2155_v52 }
 0x31c   :  { %v7850_v54 = vpop.f32.mrb[28].mxu1 }
 0x31d   :  { %v6667_v56 = vpop.f32.mrb[29].mxu1  ;;  %v2179_v59 = vsel %vm228_vm2, %v7850_v54, -inf }
 0x31e   :  { %2153 = vmax.xlane.f32.xlu1 %v2152_v58  ;;  %2180 = vmax.xlane.f32.xlu0 %v2179_v59 }
 0x320   :  { %v6672_v60 = vpop.f32.mrb[20].mxu0 }
 0x321   :  { %v6907_v61 = vpack.c.bf16 %v6672_v60, %v6657_v44  ;;  %v2125_v62 = vpop.f32.mrb[21].mxu0 }
 0x322   :  { %v6895_v2 = vpack.c.bf16 %v2125_v62, %v1886_v47  ;;  %2177 = vmax.xlane.f32.xlu1 %v2176_v0  ;;  %2159 = vmax.xlane.f32.xlu0 %v2158_v1 }
 0x323   :  { %6908 = vmatpush3.bf16.msra.mxu0 %v6907_v61 }
 0x324   :  { %6896 = vmatpush3.bf16.msra.mxu1 %v6895_v2 }
 0x326   :  { %2135 = vmax.xlane.f32.xlu1 %v2134_v4 }
 0x384   :  { %v2166_v5 = vpop.xlane.xlu0 %2165 }
 0x385   :  { %v2192_v6 = vsub.f32 %v7802_v63, %v2166_v5 }
 0x387   :  { %v2218_v8 = vmul.f32 1.442695, %v2192_v6 }
 0x388   :  { %v2145_v9 = vpop.xlane.xlu0 %2144 }
 0x389   :  { %7142 = vpow2.f32 %v2218_v8  ;;  %v2185_v10 = vsub.f32 %v7808_v3, %v2145_v9 }
 0x38b   :  { %v2204_v12 = vmul.f32 1.442695, %v2185_v10 }
 0x38c   :  { %v2139_v13 = vpop.xlane.xlu0 %2138 }
 0x38d   :  { %7144 = vpow2.f32 %v2204_v12  ;;  %v2183_v14 = vsub.f32 %v7796_v53, %v2139_v13 }
 0x38f   :  { %v2200_v15 = vmul.f32 1.442695, %v2183_v14 }
 0x390   :  { %v2163_v16 = vpop.xlane.xlu0 %2162 }
 0x391   :  { %7146 = vpow2.f32 %v2200_v15  ;;  %v2191_v18 = vsub.f32 %v7798_v55, %v2163_v16 }
 0x393   :  { %v7866_v19 = vpop.eup %7142  ;;  %v2216_v20 = vmul.f32 1.442695, %v2191_v18 }
 0x394   :  { %v2172_v21 = vpop.xlane.xlu1 %2171  ;;  %v2169_v63 = vpop.xlane.xlu0 %2168  ;;  %v2260_v24 = vsel %vm228_vm2, %v7866_v19, 0.0 }
 0x395   :  { %7148 = vpow2.f32 %v2216_v20  ;;  %v2194_v3 = vsub.f32 %v7820_v17, %v2172_v21  ;;  %2261 = vadd.xlane.f32.xlu0 %v2260_v24  ;;  %v2193_v31 = vsub.f32 %v7812_v7, %v2169_v63 }
 0x397   :  { %v7871_v25 = vpop.eup %7144  ;;  %v2222_v53 = vmul.f32 1.442695, %v2194_v3  ;;  %v2220_v41 = vmul.f32 1.442695, %v2193_v31 }
 0x398   :  { %v2151_v26 = vpop.xlane.xlu1 %2150  ;;  %v2239_v27 = vsel %vm228_vm2, %v7871_v25, 0.0  ;;  %v2148_v29 = vpop.xlane.xlu0 %2147 }
 0x399   :  { %7150 = vpow2.f32 %v2222_v53  ;;  %v2187_v55 = vsub.f32 %v7828_v23, %v2151_v26  ;;  %2240 = vadd.xlane.f32.xlu1 %v2239_v27  ;;  %v2186_v23 = vsub.f32 %v7816_v11, %v2148_v29 }
 0x39b   :  { %v7876_v30 = vpop.eup %7146  ;;  %v2208_v33 = vmul.f32 1.442695, %v2187_v55  ;;  %v2206_v51 = vmul.f32 1.442695, %v2186_v23 }
 0x39c   :  { %v2142_v34 = vpop.xlane.xlu1 %2141  ;;  %v2233_v17 = vsel %vm228_vm2, %v7876_v30, 0.0  ;;  %v2175_v44 = vpop.xlane.xlu0 %2174 }
 0x39d   :  { %7152 = vpow2.f32 %v2208_v33  ;;  %v2184_v35 = vsub.f32 %v7800_v57, %v2142_v34  ;;  %2234 = vadd.xlane.f32.xlu1 %v2233_v17  ;;  %v2195_v52 = vsub.f32 %v7834_v28, %v2175_v44 }
 0x39f   :  { %v7882_v37 = vpop.eup %7148  ;;  %v2202_v43 = vmul.f32 1.442695, %v2184_v35  ;;  %v2224_v11 = vmul.f32 1.442695, %v2195_v52 }
 0x3a0   :  { %v2257_v47 = vsel %vm228_vm2, %v7882_v37, 0.0 }
 0x3a1   :  { %7154 = vpow2.f32 %v2202_v43  ;;  %2258 = vadd.xlane.f32.xlu0 %v2257_v47 }
 0x3a2   :  { %7156 = vpow2.f32 %v2220_v41 }
 0x3a3   :  { %v7887_v7 = vpop.eup %7150  ;;  %7158 = vpow2.f32 %v2206_v51 }
 0x3a4   :  { %v2266_v57 = vsel %vm228_vm2, %v7887_v7, 0.0  ;;  %7160 = vpow2.f32 %v2224_v11 }
 0x3a5   :  { %2267 = vadd.xlane.f32.xlu1 %v2266_v57 }
 0x3a7   :  { %v7892_v56 = vpop.eup %7152  ;;  %v2157_v58 = vpop.xlane.xlu1 %2156 }
 0x3a8   :  { %v2189_v59 = vsub.f32 %v7846_v50, %v2157_v58  ;;  %v2245_v60 = vsel %vm228_vm2, %v7892_v56, 0.0 }
 0x3a9   :  { %2246 = vadd.xlane.f32.xlu1 %v2245_v60 }
 0x3aa   :  { %v2212_v61 = vmul.f32 1.442695, %v2189_v59 }
 0x3ab   :  { %v7897_v62 = vpop.eup %7154  ;;  %v2154_v28 = vpop.xlane.xlu1 %2153 }
 0x3ac   :  { %v2181_v0 = vpop.xlane.xlu0 %2180  ;;  %7162 = vpow2.f32 %v2212_v61  ;;  %v2188_v1 = vsub.f32 %v7840_v40, %v2154_v28  ;;  %v2236_v4 = vsel %vm228_vm2, %v7897_v62, 0.0  ;;  %v7903_v5 = vpop.eup %7156 }
 0x3ad   :  { %v2197_v2 = vsub.f32 %v7850_v54, %v2181_v0  ;;  %2237 = vadd.xlane.f32.xlu0 %v2236_v4  ;;  %v2263_v40 = vsel %vm228_vm2, %v7903_v5, 0.0  ;;  %v7909_v13 = vpop.eup %7158 }
 0x3ae   :  { %v2210_v50 = vmul.f32 1.442695, %v2188_v1  ;;  %v2242_v18 = vsel %vm228_vm2, %v7909_v13, 0.0  ;;  %v7914_v20 = vpop.eup %7160 }
 0x3af   :  { %v2228_v6 = vmul.f32 1.442695, %v2197_v2  ;;  %v2178_v8 = vpop.xlane.xlu1 %2177  ;;  %v2269_v63 = vsel %vm228_vm2, %v7914_v20, 0.0 }
 0x3b0   :  { %v2160_v9 = vpop.xlane.xlu0 %2159  ;;  %7164 = vpow2.f32 %v2210_v50  ;;  %v2196_v10 = vsub.f32 %v7844_v42, %v2178_v8 }
 0x3b1   :  { %v2190_v12 = vsub.f32 %v7794_v48, %v2160_v9  ;;  %7166 = vpow2.f32 %v2228_v6  ;;  %2264 = vadd.xlane.f32.xlu0 %v2263_v40 }
 0x3b2   :  { %v2226_v54 = vmul.f32 1.442695, %v2196_v10 }
 0x3b3   :  { %v2214_v14 = vmul.f32 1.442695, %v2190_v12  ;;  %v2136_v15 = vpop.xlane.xlu1 %2135 }
 0x3b4   :  { %7168 = vpow2.f32 %v2226_v54  ;;  %v2182_v16 = vsub.f32 %v7792_v46, %v2136_v15 }
 0x3b5   :  { %7170 = vpow2.f32 %v2214_v14  ;;  %2243 = vadd.xlane.f32.xlu0 %v2242_v18 }
 0x3b6   :  { %v7916_v48 = vpop.eup %7162  ;;  %v2198_v42 = vmul.f32 1.442695, %v2182_v16 }
 0x3b7   :  { %v2251_v21 = vsel %vm228_vm2, %v7916_v48, 0.0 }
 0x3b8   :  { %7172 = vpow2.f32 %v2198_v42  ;;  %2252 = vadd.xlane.f32.xlu1 %v2251_v21 }
 0x3b9   :  { %2270 = vadd.xlane.f32.xlu0 %v2269_v63 }
 0x3ba   :  { %v7922_v46 = vpop.eup %7164 }
 0x3bb   :  { %v7924_v24 = vpop.eup %7166  ;;  %v2248_v3 = vsel %vm228_vm2, %v7922_v46, 0.0 }
 0x3bc   :  { %2249 = vadd.xlane.f32.xlu1 %v2248_v3  ;;  %v2275_v53 = vsel %vm228_vm2, %v7924_v24, 0.0 }
 0x3bd   :  { %2276 = vadd.xlane.f32.xlu0 %v2275_v53 }
 0x3be   :  { %v7930_v26 = vpop.eup %7168 }
 0x3bf   :  { %v7932_v27 = vpop.eup %7170  ;;  %v2272_v55 = vsel %vm228_vm2, %v7930_v26, 0.0 }
 0x3c0   :  { %2273 = vadd.xlane.f32.xlu1 %v2272_v55  ;;  %v2254_v29 = vsel %vm228_vm2, %v7932_v27, 0.0 }
 0x3c1   :  { %2255 = vadd.xlane.f32.xlu0 %v2254_v29 }
 0x3c2   :  { %v7938_v31 = vpop.eup %7172 }
 0x3c3   :  { %v2230_v33 = vsel %vm228_vm2, %v7938_v31, 0.0 }
 0x3c4   :  { %2231 = vadd.xlane.f32.xlu1 %v2230_v33 }
 0x422   :  { %v2262_v34 = vpop.xlane.xlu0 %2261 }
 0x423   :  { %7174 = vrcp.f32 %v2262_v34 }
 0x426   :  { %v2241_v17 = vpop.xlane.xlu1 %2240 }
 0x427   :  { %7176 = vrcp.f32 %v2241_v17 }
 0x42a   :  { %v2235_v35 = vpop.xlane.xlu1 %2234 }
 0x42b   :  { %7178 = vrcp.f32 %v2235_v35 }
 0x42d   :  { %v7175_v41 = vpop.eup %7174 }
 0x42e   :  { %v2304_v23 = vmul.f32 %v7175_v41, %v7866_v19  ;;  %v2259_v44 = vpop.xlane.xlu0 %2258 }
 0x430   :  { %2322 = vrot.lane.b32.xlu0 %v2304_v23, %s9025_s17 }
 0x431   :  { %v7177_v43 = vpop.eup %7176 }
 0x432   :  { %v2268_v47 = vpop.xlane.xlu1 %2267  ;;  %v2297_v51 = vmul.f32 %v7177_v43, %v7871_v25 }
 0x433   :  { %7180 = vrcp.f32 %v2268_v47 }
 0x434   :  { %2328 = vrot.lane.b32.xlu1 %v2297_v51, %s7410_s30  ;;  %7182 = vrcp.f32 %v2259_v44 }
 0x435   :  { %v7179_v52 = vpop.eup %7178 }
 0x436   :  { %v2247_v57 = vpop.xlane.xlu1 %2246  ;;  %v2295_v11 = vmul.f32 %v7179_v52, %v7876_v30 }
 0x437   :  { %7184 = vrcp.f32 %v2247_v57 }
 0x438   :  { %2312 = vrot.lane.b32.xlu1 %v2295_v11, %s9021_s29 }
 0x43a   :  { %v2238_v58 = vpop.xlane.xlu0 %2237 }
 0x43b   :  { %7186 = vrcp.f32 %v2238_v58 }
 0x43d   :  { %v7181_v19 = vpop.eup %7180 }
 0x43e   :  { %v2265_v59 = vpop.xlane.xlu0 %2264  ;;  %v2306_v60 = vmul.f32 %v7181_v19, %v7887_v7  ;;  %v7183_v61 = vpop.eup %7182 }
 0x43f   :  { %7188 = vrcp.f32 %v2265_v59  ;;  %v2303_v0 = vmul.f32 %v7183_v61, %v7882_v37 }
 0x440   :  { %2338 = vrot.lane.b32.xlu0 %v2306_v60, %s7407_s27 }
 0x441   :  { %v7185_v25 = vpop.eup %7184 }
 0x442   :  { %v2299_v28 = vmul.f32 %v7185_v25, %v7892_v56  ;;  %v2244_v1 = vpop.xlane.xlu0 %2243 }
 0x444   :  { %2344 = vrot.lane.b32.xlu1 %v2299_v28, %s7406_s26  ;;  %2314 = vrot.lane.b32.xlu0 %v2303_v0, %s9021_s29  ;;  %v7992_v0 = vld [vmem:[%s9009_s6] sm:$0x3f] }
 0x445   :  { %v7187_v30 = vpop.eup %7186  ;;  %v2253_v2 = vpop.xlane.xlu1 %2252 }
 0x446   :  { %7190 = vrcp.f32 %v2253_v2  ;;  %v2296_v4 = vmul.f32 %v7187_v30, %v7897_v62  ;;  %v2271_v56 = vpop.xlane.xlu0 %2270  ;;  %v2535_v30 = vrot.slane %v7992_v0, %v7603_v39 }
 0x447   :  { %7192 = vrcp.f32 %v2244_v1 }
 0x448   :  { %2320 = vrot.lane.b32.xlu0 %v2296_v4, %s9025_s17 }
 0x449   :  { %v7189_v7 = vpop.eup %7188  ;;  %v2250_v50 = vpop.xlane.xlu1 %2249 }
 0x44a   :  { %v2305_v6 = vmul.f32 %v7189_v7, %v7903_v5  ;;  %7194 = vrcp.f32 %v2250_v50  ;;  %v2277_v9 = vpop.xlane.xlu0 %2276 }
 0x44c   :  { %2330 = vrot.lane.b32.xlu0 %v2305_v6, %s7410_s30 }
 0x44d   :  { %v2274_v37 = vpop.xlane.xlu1 %2273 }
 0x44e   :  { %7196 = vrcp.f32 %v2274_v37 }
 0x44f   :  { %7198 = vrcp.f32 %v2271_v56 }
 0x450   :  { %v7191_v8 = vpop.eup %7190  ;;  %7200 = vrcp.f32 %v2277_v9 }
 0x451   :  { %v2301_v10 = vmul.f32 %v7191_v8, %v7916_v48  ;;  %v7193_v12 = vpop.eup %7192  ;;  %v2256_v48 = vpop.xlane.xlu0 %2255 }
 0x452   :  { %v2298_v62 = vmul.f32 %v7193_v12, %v7909_v13  ;;  %v2232_v42 = vpop.xlane.xlu1 %2231 }
 0x453   :  { %2360 = vrot.lane.b32.xlu1 %v2301_v10, %s7401_s18  ;;  %7202 = vrcp.f32 %v2232_v42  ;;  %v2581_v42 = vld [vmem:[%s9010_s7 + $0x10] sm:$0xff] }
 0x454   :  { %v7195_v40 = vpop.eup %7194  ;;  %7204 = vrcp.f32 %v2256_v48  ;;  %v2579_v48 = vld [vmem:[%s9010_s7] sm:$0xff] }
 0x455   :  { %v2300_v14 = vmul.f32 %v7195_v40, %v7922_v46 }
 0x457   :  { %2336 = vrot.lane.b32.xlu1 %v2298_v62, %s7407_s27 }
 0x458   :  { %v7197_v5 = vpop.eup %7196 }
 0x459   :  { %v2308_v54 = vmul.f32 %v7197_v5, %v7930_v26  ;;  %v7199_v15 = vpop.eup %7198 }
 0x45a   :  { %v2307_v16 = vmul.f32 %v7199_v15, %v7914_v20  ;;  %v7201_v18 = vpop.eup %7200 }
 0x45b   :  { %2354 = vrot.lane.b32.xlu0 %v2308_v54, %s7403_s24  ;;  %2352 = vrot.lane.b32.xlu1 %v2300_v14, %s7403_s24  ;;  %v2309_v13 = vmul.f32 %v7201_v18, %v7924_v24  ;;  %v2582_v18 = vld [vmem:[%s9010_s7 + $0x18] sm:$0xff] }
 0x45d   :  { %v7203_v26 = vpop.eup %7202 }
 0x45e   :  { %v2294_v20 = vmul.f32 %v7203_v26, %v7938_v31  ;;  %v7205_v33 = vpop.eup %7204  ;;  %v2585_v26 = vld [vmem:[%s9010_s7 + $0x30] sm:$0xff] }
 0x45f   :  { %2346 = vrot.lane.b32.xlu1 %v2307_v16, %s7406_s26  ;;  %v2302_v35 = vmul.f32 %v7205_v33, %v7932_v27 }
 0x463   :  { %2362 = vrot.lane.b32.xlu1 %v2309_v13, %s7401_s18 }
 0x4a2   :  { %v2323_v21 = vpop.permute.xlu0 %2322 }
 0x4a6   :  { %v2329_v63 = vpop.permute.xlu1 %2328 }
 0x4aa   :  { %v2313_v3 = vpop.permute.xlu1 %2312 }
 0x4ab   :  { %v2366_v34 = vsel %vm228_vm2, %v2294_v20, %v2313_v3  ;;  %v2588_v20 = vld [vmem:[%s9010_s7 + $0x48] sm:$0xff] }
 0x4b2   :  { %v2339_v46 = vpop.permute.xlu0 %2338 }
 0x4b6   :  { %v2315_v53 = vpop.permute.xlu0 %2314  ;;  %v2345_v55 = vpop.permute.xlu1 %2344 }
 0x4b7   :  { %v2367_v43 = vsel %vm228_vm2, %v2302_v35, %v2315_v53  ;;  %v2583_v53 = vld [vmem:[%s9010_s7 + $0x20] sm:$0xff]  ;;  %v2592_v35 = vld [vmem:[%s9010_s7 + $0x68] sm:$0xff] }
 0x4b8   :  { %v2370_v47 = vsel %vm2368_vm3, %v2367_v43, %v2323_v21  ;;  %v6911_v21 = vpack.c.bf16 %v2581_v42, %v2579_v48  ;;  %v2800_v42 = vld [vmem:[%s9012_s9 + $0x30] sm:$0xff] }
 0x4ba   :  { %v2321_v29 = vpop.permute.xlu0 %2320 }
 0x4bb   :  { %v2369_v17 = vsel %vm2368_vm3, %v2366_v34, %v2321_v29  ;;  %v2590_v29 = vld [vmem:[%s9010_s7 + $0x58] sm:$0xff]  ;;  %v2587_v34 = vld [vmem:[%s9010_s7 + $0x40] sm:$0xff] }
 0x4bc   :  { %v2372_v23 = vsel %vm2371_vm4, %v2369_v17, %v2329_v63  ;;  %v2584_v63 = vld [vmem:[%s9010_s7 + $0x28] sm:$0xff]  ;;  %v6917_v33 = vpack.c.bf16 %v2590_v29, %v2588_v20  ;;  %v2820_v29 = vld [vmem:[%s9012_s9 + $0xd0] sm:$0xff] }
 0x4be   :  { %v2331_v31 = vpop.permute.xlu0 %2330 }
 0x4bf   :  { %v2373_v57 = vsel %vm2371_vm4, %v2370_v47, %v2331_v31 }
 0x4c0   :  { %v2376_v19 = vsel %vm2374_vm5, %v2373_v57, %v2339_v46  ;;  %v2586_v46 = vld [vmem:[%s9010_s7 + $0x38] sm:$0xff] }
 0x4c1   :  { %v6913_v3 = vpack.c.bf16 %v2586_v46, %v2584_v63  ;;  %v2818_v46 = vld [vmem:[%s9012_s9 + $0xc0] sm:$0xff] }
 0x4c5   :  { %v2361_v24 = vpop.permute.xlu1 %2360 }
 0x4c9   :  { %v2337_v41 = vpop.permute.xlu1 %2336 }
 0x4ca   :  { %v2375_v44 = vsel %vm2374_vm5, %v2372_v23, %v2337_v41  ;;  %v2594_v41 = vld [vmem:[%s9010_s7 + $0x78] sm:$0xff]  ;;  %v2591_v23 = vld [vmem:[%s9010_s7 + $0x60] sm:$0xff] }
 0x4cb   :  { %v2378_v52 = vsel %vm2377_vm6, %v2375_v44, %v2345_v55  ;;  %v6915_v55 = vpack.c.bf16 %v2585_v26, %v2583_v53  ;;  %v6921_v43 = vpack.c.bf16 %v2594_v41, %v2592_v35  ;;  %v2593_v44 = vld [vmem:[%s9010_s7 + $0x70] sm:$0xff]  ;;  %v2802_v26 = vld [vmem:[%s9012_s9 + $0x40] sm:$0xff] }
 0x4cc   :  { %v6923_v31 = vpack.c.bf16 %v2593_v44, %v2591_v23  ;;  %v2822_v41 = vld [vmem:[%s9012_s9 + $0xe0] sm:$0xff]  ;;  %v2823_v23 = vld [vmem:[%s9012_s9 + $0xe8] sm:$0xff] }
 0x4cd   :  { %v2353_v51 = vpop.permute.xlu1 %2352  ;;  %v2355_v60 = vpop.permute.xlu0 %2354  ;;  %v2806_v44 = vld [vmem:[%s9012_s9 + $0x60] sm:$0xff] }
 0x4ce   :  { %v2381_v27 = vsel %vm2380_vm7, %v2378_v52, %v2353_v51 }
 0x4cf   :  { %v2384_v11 = vsel %vm2383_vm8, %v2381_v27, %v2361_v24  ;;  %v2589_v24 = vld [vmem:[%s9010_s7 + $0x50] sm:$0xff] }
 0x4d0   :  { %6690 = vmatmul.mubr.msk.f32.vlgmr.msra.gmra.mrb[30].mxu1 %vm141_vm0, %v2384_v11  ;;  %v6919_v17 = vpack.c.bf16 %v2589_v24, %v2587_v34  ;;  %v2804_v24 = vld [vmem:[%s9012_s9 + $0x50] sm:$0xff] }
 0x4d1   :  { %v2347_v58 = vpop.permute.xlu1 %2346  ;;  %2677 = vmatprep.mubr.f32.mxu1 %v7399_v22 }
 0x4d2   :  { %v2379_v59 = vsel %vm2377_vm6, %v2376_v19, %v2347_v58  ;;  %v2575_v58 = vsub.s32 2, %v7598_v38  ;;  %v2570_v19 = vrot.slane %v7992_v0, %v7643_v49 }
 0x4d3   :  { %v2382_v25 = vsel %vm2380_vm7, %v2379_v59, %v2355_v60 }
 0x4d5   :  { %v2363_v61 = vpop.permute.xlu1 %2362 }
 0x4d6   :  { %v2385_v28 = vsel %vm2383_vm8, %v2382_v25, %v2363_v61  ;;  %v2576_v61 = vrot.slane %v7992_v0, %v2575_v58 }
 0x4d7   :  { %6709 = vmatmul.mubr.msk.f32.vlgmr.msra.gmra.mrb[22].mxu0 %vm141_vm0, %v2385_v28 }
 0x5a3   :  { %v2455_v1 = vpop.f32.mrb[30].mxu1 }
 0x5a4   :  { %v2536_v2 = vadd.f32 %v2535_v30, %v2455_v1  ;;  %v6691_v4 = vpop.f32.mrb[31].mxu1 }
 0x5a6   :  { %v2538_v7 = vadd.f32 %v2536_v2, %v7587_v32 }
 0x5a8   :  { %v2540_v50 = vsel %vm141_vm0, %v2538_v7, 0.0 }
 0x5a9   :  { %2541 = vadd.xlane.f32.xlu0 %v2540_v50  ;;  %v2811_v50 = vld [vmem:[%s9012_s9 + $0x88] sm:$0xff] }
 0x5aa   :  { %v2528_v6 = vpop.f32.mrb[22].mxu0 }
 0x5ab   :  { %v2537_v56 = vadd.f32 %v2535_v30, %v2528_v6  ;;  %v6710_v37 = vpop.f32.mrb[23].mxu0 }
 0x5ac   :  { %v2795_v37 = vld [vmem:[%s9012_s9 + $0x8] sm:$0xff] }
 0x5ad   :  { %v2539_v8 = vadd.f32 %v2537_v56, %v7594_v36  ;;  %v2580_v36 = vld [vmem:[%s9010_s7 + $0x8] sm:$0xff]  ;;  %v2794_v56 = vld [vmem:[%s9012_s9] sm:$0xff] }
 0x5ae   :  { %v6909_v13 = vpack.c.bf16 %v2582_v18, %v2580_v36  ;;  %v2816_v18 = vld [vmem:[%s9012_s9 + $0xb0] sm:$0xff] }
 0x5af   :  { %v2543_v9 = vsel %vm141_vm0, %v2539_v8, 0.0 }
 0x5b0   :  { %2544 = vadd.xlane.f32.xlu1 %v2543_v9  ;;  %6910 = vmatprep.subr.bf16.mxu1 %v6909_v13  ;;  %v2812_v9 = vld [vmem:[%s9012_s9 + $0x90] sm:$0xff]  ;;  %v2817_v13 = vld [vmem:[%s9012_s9 + $0xb8] sm:$0xff] }
 0x5b1   :  { %6912 = vmatpush1.bf16.msra.mxu1 %v6911_v21  ;;  %v6937_v48 = vpack.c.bf16 %v2817_v13, %v2816_v18  ;;  %v2801_v21 = vld [vmem:[%s9012_s9 + $0x38] sm:$0xff] }
 0x5b2   :  { %6914 = vmatprep.subr.bf16.mxu1 %v6913_v3  ;;  %v6939_v63 = vpack.c.bf16 %v2801_v21, %v2800_v42  ;;  %v2819_v3 = vld [vmem:[%s9012_s9 + $0xc8] sm:$0xff] }
 0x5b3   :  { %v6941_v53 = vpack.c.bf16 %v2819_v3, %v2818_v46 }
 0x5b5   :  { %6916 = vmatpush1.bf16.msra.mxu1 %v6915_v55  ;;  %v2803_v55 = vld [vmem:[%s9012_s9 + $0x48] sm:$0xff] }
 0x5b6   :  { %6918 = vmatprep.subr.bf16.mxu1 %v6917_v33  ;;  %v6943_v20 = vpack.c.bf16 %v2803_v55, %v2802_v26  ;;  %v2821_v33 = vld [vmem:[%s9012_s9 + $0xd8] sm:$0xff] }
 0x5b7   :  { %v6945_v34 = vpack.c.bf16 %v2821_v33, %v2820_v29 }
 0x5b9   :  { %6920 = vmatpush1.bf16.msra.mxu1 %v6919_v17  ;;  %v2805_v17 = vld [vmem:[%s9012_s9 + $0x58] sm:$0xff] }
 0x5ba   :  { %6922 = vmatprep.subr.bf16.mxu1 %v6921_v43  ;;  %v6947_v35 = vpack.c.bf16 %v2805_v17, %v2804_v24  ;;  %v6949_v43 = vpack.c.bf16 %v2823_v23, %v2822_v41 }
 0x5bd   :  { %6924 = vmatpush1.bf16.msra.mxu1 %v6923_v31  ;;  %v2807_v31 = vld [vmem:[%s9012_s9 + $0x68] sm:$0xff] }
 0x636   :  { %v2542_v10 = vpop.xlane.xlu0 %2541 }
 0x637   :  { %v2547_v12 = vmul.f32 0.015625, %v2542_v10  ;;  %v2813_v10 = vld [vmem:[%s9012_s9 + $0x98] sm:$0xff] }
 0x639   :  { %v2549_v62 = vsub.f32 %v2538_v7, %v2547_v12  ;;  %v2810_v7 = vld [vmem:[%s9012_s9 + $0x80] sm:$0xff]  ;;  %v6929_v12 = vpack.c.bf16 %v2813_v10, %v2812_v9 }
 0x63a   :  { %v6925_v6 = vpack.c.bf16 %v2811_v50, %v2810_v7 }
 0x63b   :  { %v2551_v40 = vmul.f32 %v2549_v62, %v2549_v62 }
 0x63c   :  { %6926 = vmatprep.subr.bf16.mxu0 %v6925_v6 }
 0x63d   :  { %v2545_v5 = vpop.xlane.xlu1 %2544  ;;  %v2553_v54 = vsel %vm141_vm0, %v2551_v40, 0.0  ;;  %v2797_v40 = vld [vmem:[%s9012_s9 + $0x18] sm:$0xff] }
 0x63e   :  { %v2548_v14 = vmul.f32 0.015625, %v2545_v5  ;;  %2554 = vadd.xlane.f32.xlu0 %v2553_v54  ;;  %v2814_v54 = vld [vmem:[%s9012_s9 + $0xa0] sm:$0xff] }
 0x640   :  { %v2550_v32 = vsub.f32 %v2539_v8, %v2548_v14  ;;  %v6927_v8 = vpack.c.bf16 %v2795_v37, %v2794_v56  ;;  %v2815_v14 = vld [vmem:[%s9012_s9 + $0xa8] sm:$0xff] }
 0x642   :  { %v2552_v15 = vmul.f32 %v2550_v32, %v2550_v32  ;;  %6928 = vmatpush3.bf16.msra.mxu0 %v6927_v8 }
 0x643   :  { %6930 = vmatprep.subr.bf16.mxu0 %v6929_v12 }
 0x644   :  { %v2556_v16 = vsel %vm141_vm0, %v2552_v15, 0.0  ;;  %v2798_v15 = vld [vmem:[%s9012_s9 + $0x20] sm:$0xff] }
 0x645   :  { %2557 = vadd.xlane.f32.xlu0 %v2556_v16  ;;  %v2799_v16 = vld [vmem:[%s9012_s9 + $0x28] sm:$0xff] }
 0x646   :  { %v6935_v36 = vpack.c.bf16 %v2799_v16, %v2798_v15 }
 0x6cb   :  { %v2555_v47 = vpop.xlane.xlu0 %2554 }
 0x6cc   :  { %v2559_v51 = vmul.f32 0.015625, %v2555_v47  ;;  %v6951_v47 = vpack.c.bf16 %v2807_v31, %v2806_v44 }
 0x6ce   :  { %v2561_v52 = vadd.f32 1e-06, %v2559_v51  ;;  %v2824_v51 = vld [vmem:[%s9012_s9 + $0xf0] sm:$0xff] }
 0x6d0   :  { %7206 = vrsqrt.f32 %v2561_v52  ;;  %v2825_v52 = vld [vmem:[%s9012_s9 + $0xf8] sm:$0xff] }
 0x6d2   :  { %v2558_v57 = vpop.xlane.xlu0 %2557 }
 0x6d3   :  { %v2560_v27 = vmul.f32 0.015625, %v2558_v57  ;;  %v6953_v57 = vpack.c.bf16 %v2825_v52, %v2824_v51 }
 0x6d5   :  { %v2562_v11 = vadd.f32 1e-06, %v2560_v27  ;;  %v2808_v27 = vld [vmem:[%s9012_s9 + $0x70] sm:$0xff] }
 0x6d7   :  { %7208 = vrsqrt.f32 %v2562_v11  ;;  %v2809_v11 = vld [vmem:[%s9012_s9 + $0x78] sm:$0xff] }
 0x6da   :  { %v7207_v59 = vpop.eup %7206 }
 0x6db   :  { %v2565_v60 = vmul.f32 %v7207_v59, %v2549_v62  ;;  %v2796_v62 = vld [vmem:[%s9012_s9 + $0x10] sm:$0xff]  ;;  %v2595_v59 = vld [vmem:[%s9011_s8] sm:$0x3] }
 0x6dc   :  { %v6931_v5 = vpack.c.bf16 %v2797_v40, %v2796_v62 }
 0x6dd   :  { %v2571_v25 = vmul.f32 %v2570_v19, %v2565_v60  ;;  %v2600_v60 = vrot.slane %v2595_v59, %v7603_v39 }
 0x6de   :  { %6932 = vmatpush3.bf16.msra.mxu0 %v6931_v5 }
 0x6df   :  { %v8056_v28 = vadd.f32 %v2576_v61, %v2571_v25 }
 0x6e1   :  { %v7209_v30 = vpop.eup %7208  ;;  %6170 = vmatmul.mubr.msk.f32.vlgmr.msra.gmra.mrb[32].mxu1 %vm141_vm0, %v8056_v28 }
 0x6e2   :  { %2683 = vmatprep.mubr.f32.mxu1 %v7399_v22  ;;  %v2566_v1 = vmul.f32 %v7209_v30, %v2550_v32  ;;  %v6933_v32 = vpack.c.bf16 %v2815_v14, %v2814_v54 }
 0x6e4   :  { %v2572_v2 = vmul.f32 %v2570_v19, %v2566_v1  ;;  %6934 = vmatprep.subr.bf16.mxu0 %v6933_v32  ;;  %v6955_v19 = vpack.c.bf16 %v2809_v11, %v2808_v27 }
 0x6e5   :  { %6936 = vmatpush3.bf16.msra.mxu0 %v6935_v36 }
 0x6e6   :  { %v8061_v4 = vadd.f32 %v2576_v61, %v2572_v2  ;;  %6938 = vmatprep.subr.bf16.mxu0 %v6937_v48  ;;  %v2604_v61 = vrot.slane %v2595_v59, %v7643_v49 }
 0x6e8   :  { %6171 = vmatmul.mubr.msk.f32.gmra.mrb[34].mxu1 %vm141_vm0, %v8061_v4 }
 0x6e9   :  { %3056 = vmatprep.mubr.f32.mxu1 %v7399_v22  ;;  %6940 = vmatpush3.bf16.msra.mxu0 %v6939_v63 }
 0x6ea   :  { %6942 = vmatprep.subr.bf16.mxu0 %v6941_v53 }
 0x6ed   :  { %6944 = vmatpush3.bf16.msra.mxu0 %v6943_v20 }
 0x6ee   :  { %6946 = vmatprep.subr.bf16.mxu0 %v6945_v34 }
 0x6f1   :  { %6948 = vmatpush3.bf16.msra.mxu0 %v6947_v35 }
 0x6f2   :  { %6950 = vmatprep.subr.bf16.mxu0 %v6949_v43 }
 0x6f5   :  { %6952 = vmatpush3.bf16.msra.mxu0 %v6951_v47 }
 0x6f6   :  { %6954 = vmatprep.subr.bf16.mxu0 %v6953_v57 }
 0x6f9   :  { %6956 = vmatpush3.bf16.msra.mxu0 %v6955_v19 }
 0x6fa   :  { %6716 = vmatprep.subr.mxu0 %v7399_v22 }
 0x7b4   :  { %v2679_v25 = vpop.f32.mrb[32].mxu1 }
 0x7b5   :  { %v8168_v30 = vadd.f32 %v2679_v25, %v2600_v60  ;;  %v2681_v1 = vpop.f32.mrb[33].mxu1 }
 0x7b6   :  { %v8170_v2 = vadd.f32 %v2681_v1, %v2604_v61 }
 0x7b7   :  { %v8173_v7 = vmul.f32 0.70710677, %v8168_v30 }
 0x7b8   :  { %v8176_v50 = vmul.f32 0.70710677, %v8170_v2 }
 0x7b9   :  { %v2706_v6 = vand.u32 2147483647, %v8173_v7  ;;  %vm2698_vm9 = vcmp.ge.f32.partialorder %v8173_v7, 0.0 }
 0x7ba   :  { %v2707_v56 = vand.u32 2147483647, %v8176_v50  ;;  %vm2699_vm10 = vcmp.ge.f32.partialorder %v8176_v50, 0.0  ;;  %v2691_v50 = vmul.f32 0.5, %v8170_v2 }
 0x7bb   :  { %v2710_v37 = vmul.f32 0.3275911, %v2706_v6  ;;  %v2685_v8 = vpop.f32.mrb[34].mxu1  ;;  %v2758_v13 = vsub.f32 0.0, %v2706_v6 }
 0x7bc   :  { %v2711_v9 = vmul.f32 0.3275911, %v2707_v56  ;;  %v8180_v10 = vadd.f32 %v2685_v8, %v2600_v60  ;;  %v2687_v12 = vpop.f32.mrb[35].mxu1  ;;  %v2759_v42 = vsub.f32 0.0, %v2707_v56 }
 0x7bd   :  { %v2714_v62 = vadd.f32 1.0, %v2710_v37  ;;  %v8182_v40 = vadd.f32 %v2687_v12, %v2604_v61  ;;  %v2762_v63 = vmul.f32 %v2758_v13, %v2706_v6 }
 0x7be   :  { %v2715_v5 = vadd.f32 1.0, %v2711_v9  ;;  %v8185_v54 = vmul.f32 0.70710677, %v8180_v10  ;;  %v2763_v53 = vmul.f32 %v2759_v42, %v2707_v56 }
 0x7bf   :  { %7210 = vrcp.f32 %v2714_v62  ;;  %v8188_v14 = vmul.f32 0.70710677, %v8182_v40  ;;  %v2766_v29 = vmul.f32 1.442695, %v2762_v63 }
 0x7c0   :  { %7212 = vrcp.f32 %v2715_v5  ;;  %v2708_v32 = vand.u32 2147483647, %v8185_v54  ;;  %v2768_v17 = vmul.f32 1.442695, %v2763_v53  ;;  %vm2700_vm11 = vcmp.ge.f32.partialorder %v8185_v54, 0.0 }
 0x7c1   :  { %v2709_v15 = vand.u32 2147483647, %v8188_v14  ;;  %vm2701_vm12 = vcmp.ge.f32.partialorder %v8188_v14, 0.0 }
 0x7c2   :  { %v2712_v16 = vmul.f32 0.3275911, %v2708_v32  ;;  %v2760_v20 = vsub.f32 0.0, %v2708_v32 }
 0x7c3   :  { %v2713_v36 = vmul.f32 0.3275911, %v2709_v15  ;;  %v2761_v33 = vsub.f32 0.0, %v2709_v15 }
 0x7c4   :  { %v2716_v18 = vadd.f32 1.0, %v2712_v16  ;;  %v2764_v43 = vmul.f32 %v2760_v20, %v2708_v32 }
 0x7c5   :  { %v2717_v48 = vadd.f32 1.0, %v2713_v36  ;;  %v2765_v31 = vmul.f32 %v2761_v33, %v2709_v15 }
 0x7c6   :  { %7214 = vrcp.f32 %v2716_v18  ;;  %v2770_v59 = vmul.f32 1.442695, %v2764_v43 }
 0x7c7   :  { %7216 = vrcp.f32 %v2717_v48  ;;  %v2772_v61 = vmul.f32 1.442695, %v2765_v31 }
 0x7c8   :  { %7218 = vpow2.f32 %v2766_v29 }
 0x7c9   :  { %v7211_v21 = vpop.eup %7210  ;;  %7220 = vpow2.f32 %v2768_v17 }
 0x7ca   :  { %v7213_v46 = vpop.eup %7212  ;;  %v2722_v3 = vmul.f32 1.0614054, %v7211_v21  ;;  %7222 = vpow2.f32 %v2770_v59 }
 0x7cb   :  { %v2723_v26 = vmul.f32 1.0614054, %v7213_v46  ;;  %7224 = vpow2.f32 %v2772_v61 }
 0x7cc   :  { %v2726_v55 = vadd.f32 -1.4531521, %v2722_v3 }
 0x7cd   :  { %v2727_v34 = vadd.f32 -1.4531521, %v2723_v26 }
 0x7ce   :  { %v2730_v24 = vmul.f32 %v7211_v21, %v2726_v55  ;;  %v7416_v55 = vmov -1.0  }
 0x7cf   :  { %v2731_v35 = vmul.f32 %v7213_v46, %v2727_v34  ;;  %v2702_v20 = vsel %vm2698_vm9, 1.0, %v7416_v55 }
 0x7d0   :  { %v7215_v41 = vpop.eup %7214  ;;  %v2734_v23 = vadd.f32 1.4214138, %v2730_v24 }
 0x7d1   :  { %v7217_v44 = vpop.eup %7216  ;;  %v2735_v47 = vadd.f32 1.4214138, %v2731_v35  ;;  %v2724_v51 = vmul.f32 1.0614054, %v7215_v41 }
 0x7d2   :  { %v2738_v52 = vmul.f32 %v7211_v21, %v2734_v23  ;;  %v2725_v57 = vmul.f32 1.0614054, %v7217_v44  ;;  %v7219_v16 = vpop.eup %7218 }
 0x7d3   :  { %v2739_v27 = vmul.f32 %v7213_v46, %v2735_v47  ;;  %v2728_v11 = vadd.f32 -1.4531521, %v2724_v51  ;;  %v7221_v13 = vpop.eup %7220  ;;  %v2690_v51 = vmul.f32 0.5, %v8168_v30  ;;  %v2692_v30 = vmul.f32 0.5, %v8180_v10 }
 0x7d4   :  { %v2742_v19 = vadd.f32 -0.28449672, %v2738_v52  ;;  %v2729_v60 = vadd.f32 -1.4531521, %v2725_v57  ;;  %v7223_v7 = vpop.eup %7222 }
 0x7d5   :  { %v2743_v25 = vadd.f32 -0.28449672, %v2739_v27  ;;  %v2732_v1 = vmul.f32 %v7215_v41, %v2728_v11  ;;  %v7225_v43 = vpop.eup %7224 }
 0x7d6   :  { %v2746_v6 = vmul.f32 %v7211_v21, %v2742_v19  ;;  %v2733_v56 = vmul.f32 %v7217_v44, %v2729_v60  ;;  %v2693_v60 = vmul.f32 0.5, %v8182_v40 }
 0x7d7   :  { %v2747_v37 = vmul.f32 %v7213_v46, %v2743_v25  ;;  %v2736_v8 = vadd.f32 1.4214138, %v2732_v1  ;;  %v2828_v1 = vsub.s32 3, %v7598_v38 }
 0x7d8   :  { %v2750_v9 = vadd.f32 0.2548296, %v2746_v6  ;;  %v2737_v12 = vadd.f32 1.4214138, %v2733_v56 }
 0x7d9   :  { %v2751_v62 = vadd.f32 0.2548296, %v2747_v37  ;;  %v2740_v5 = vmul.f32 %v7215_v41, %v2736_v8  ;;  %v2829_v56 = vrot.slane %v7992_v0, %v2828_v1 }
 0x7da   :  { %v2754_v32 = vmul.f32 %v7211_v21, %v2750_v9  ;;  %v2741_v15 = vmul.f32 %v7217_v44, %v2737_v12 }
 0x7db   :  { %v2755_v36 = vmul.f32 %v7213_v46, %v2751_v62  ;;  %v2744_v18 = vadd.f32 -0.28449672, %v2740_v5  ;;  %v2703_v46 = vsel %vm2699_vm10, 1.0, %v7416_v55 }
 0x7dc   :  { %v2774_v48 = vmul.f32 %v7219_v16, %v2754_v32  ;;  %v2745_v42 = vadd.f32 -0.28449672, %v2741_v15 }
 0x7dd   :  { %v2775_v63 = vmul.f32 %v7221_v13, %v2755_v36  ;;  %v2748_v3 = vmul.f32 %v7215_v41, %v2744_v18 }
 0x7de   :  { %v2778_v53 = vsub.f32 1.0, %v2774_v48  ;;  %v2749_v26 = vmul.f32 %v7217_v44, %v2745_v42 }
 0x7df   :  { %v2779_v29 = vsub.f32 1.0, %v2775_v63  ;;  %v2752_v21 = vadd.f32 0.2548296, %v2748_v3 }
 0x7e0   :  { %v2782_v33 = vmul.f32 %v2778_v53, %v2702_v20  ;;  %v2753_v34 = vadd.f32 0.2548296, %v2749_v26  ;;  %v6176_v20 = vld [vmem:[%s9006_s3 + $0x98] sm:$0xff] }
 0x7e1   :  { %v2783_v24 = vmul.f32 %v2779_v29, %v2703_v46  ;;  %v2756_v17 = vmul.f32 %v7215_v41, %v2752_v21  ;;  %v2704_v41 = vsel %vm2700_vm11, 1.0, %v7416_v55  ;;  %v6173_v21 = vld [vmem:[%s9006_s3 + $0x80] sm:$0xff] }
 0x7e2   :  { %v2786_v35 = vadd.f32 1.0, %v2782_v33  ;;  %v2757_v23 = vmul.f32 %v7217_v44, %v2753_v34  ;;  %v2705_v44 = vsel %vm2701_vm12, 1.0, %v7416_v55  ;;  %v6175_v33 = vld [vmem:[%s9006_s3 + $0x90] sm:$0xff]  ;;  %v6178_v34 = vld [vmem:[%s9006_s3 + $0xa8] sm:$0xff] }
 0x7e3   :  { %v2787_v31 = vadd.f32 1.0, %v2783_v24  ;;  %v2776_v47 = vmul.f32 %v7223_v7, %v2756_v17  ;;  %v6959_v46 = vpack.c.bf16 %v6175_v33, %v6173_v21  ;;  %v6180_v24 = vld [vmem:[%s9006_s3 + $0xb8] sm:$0xff]  ;;  %v6177_v7 = vld [vmem:[%s9006_s3 + $0xa0] sm:$0xff] }
 0x7e4   :  { %v2777_v52 = vmul.f32 %v7225_v43, %v2757_v23  ;;  %v2790_v11 = vmul.f32 %v2786_v35, %v2690_v51  ;;  %v6961_v17 = vpack.c.bf16 %v6180_v24, %v6178_v34  ;;  %v6179_v35 = vld [vmem:[%s9006_s3 + $0xb0] sm:$0xff]  ;;  %v6182_v43 = vld [vmem:[%s9006_s3 + $0xc8] sm:$0xff] }
 0x7e5   :  { %v2791_v57 = vmul.f32 %v2787_v31, %v2691_v50  ;;  %v2780_v27 = vsub.f32 1.0, %v2776_v47  ;;  %v6963_v23 = vpack.c.bf16 %v6179_v35, %v6177_v7  ;;  %v6184_v50 = vld [vmem:[%s9006_s3 + $0xd8] sm:$0xff]  ;;  %v6181_v47 = vld [vmem:[%s9006_s3 + $0xc0] sm:$0xff]  ;;  %v6183_v51 = vld [vmem:[%s9006_s3 + $0xd0] sm:$0xff] }
 0x7e6   :  { %v2781_v19 = vsub.f32 1.0, %v2777_v52  ;;  %v6965_v31 = vpack.c.bf16 %v6184_v50, %v6182_v43  ;;  %v6967_v52 = vpack.c.bf16 %v6183_v51, %v6181_v47  ;;  %v2947_v35 = vld [vmem:[#allocation2 + $0x48] sm:$0xff] }
 0x7e7   :  { %2894 = vmatprep.mubr.f32.mxu0 %v2791_v57  ;;  %v2784_v59 = vmul.f32 %v2780_v27, %v2704_v41  ;;  %v6186_v57 = vld [vmem:[%s9006_s3 + $0xe8] sm:$0xff]  ;;  %v6188_v27 = vld [vmem:[%s9006_s3 + $0xf8] sm:$0xff]  ;;  %v6185_v41 = vld [vmem:[%s9006_s3 + $0xe0] sm:$0xff] }
 0x7e8   :  { %2895 = vmatmul.mubr.f32.vlgmr.msra.gmra.mrb[24].mxu0 %v2790_v11  ;;  %v2785_v2 = vmul.f32 %v2781_v19, %v2705_v44  ;;  %v6969_v11 = vpack.c.bf16 %v6188_v27, %v6186_v57  ;;  %v6187_v19 = vld [vmem:[%s9006_s3 + $0xf0] sm:$0xff] }
 0x7e9   :  { %v2788_v54 = vadd.f32 1.0, %v2784_v59  ;;  %v6971_v44 = vpack.c.bf16 %v6187_v19, %v6185_v41  ;;  %v2948_v27 = vld [vmem:[#allocation2 + $0x50] sm:$0xff] }
 0x7ea   :  { %v2789_v61 = vadd.f32 1.0, %v2785_v2 }
 0x7eb   :  { %v2792_v25 = vmul.f32 %v2788_v54, %v2692_v30  ;;  %v2935_v30 = vsub.s32 4, %v7598_v38 }
 0x7ec   :  { %v2793_v14 = vmul.f32 %v2789_v61, %v2693_v60 }
 0x7ee   :  { %2899 = vmatprep.mubr.f32.mxu0 %v2793_v14 }
 0x7ef   :  { %2900 = vmatmul.mubr.f32.gmra.mrb[26].mxu0 %v2792_v25  ;;  %v2941_v25 = vsub.s32 5, %v7598_v38 }
 0x7f0   :  { %6718 = vmatprep.mubr.msk.f32.mxu0 %vm7400_vm1, %v7399_v22 }
 0x8bb   :  { %v6400_v6 = vpop.f32.mrb[24].mxu0 }
 0x8bc   :  { %v6401_v37 = vpop.f32.mrb[25].mxu0 }
 0x8bd   :  { %v6402_v8 = vadd.f32 %v6401_v37, %v6400_v6  ;;  %v2936_v6 = vrot.slane %v7992_v0, %v2935_v30 }
 0x8bf   :  { %v2897_v40 = vadd.f32 %v6402_v8, %v2829_v56  ;;  %v2942_v8 = vrot.slane %v7992_v0, %v2941_v25  ;;  %v6189_v0 = vld [vmem:[%s9007_s4 + $0x2] sm:$0x3]  ;;  %s9029_s4 = smov 88  }
 0x8c1   :  { %v2905_v9 = vadd.f32 %v2897_v40, %v8056_v28 }
 0x8c2   :  { %v6403_v10 = vpop.f32.mrb[26].mxu0 }
 0x8c3   :  { %v6404_v12 = vpop.f32.mrb[27].mxu0  ;;  %v2907_v62 = vsel %vm141_vm0, %v2905_v9, 0.0 }
 0x8c4   :  { %v6405_v5 = vadd.f32 %v6404_v12, %v6403_v10  ;;  %2908 = vadd.xlane.f32.xlu1 %v2907_v62 }
 0x8c6   :  { %v2902_v32 = vadd.f32 %v6405_v5, %v2829_v56 }
 0x8c8   :  { %v2906_v15 = vadd.f32 %v2902_v32, %v8061_v4  ;;  %v6174_v4 = vld [vmem:[%s9006_s3 + $0x88] sm:$0xff]  ;;  %v2979_v32 = vrot.slane %v6189_v0, %v7603_v39 }
 0x8c9   :  { %v6957_v29 = vpack.c.bf16 %v6176_v20, %v6174_v4 }
 0x8ca   :  { %v2910_v16 = vsel %vm141_vm0, %v2906_v15, 0.0 }
 0x8cb   :  { %2911 = vadd.xlane.f32.xlu0 %v2910_v16  ;;  %6958 = vmatprep.subr.bf16.mxu1 %v6957_v29 }
 0x8cc   :  { %6960 = vmatpush1.bf16.msra.mxu1 %v6959_v46 }
 0x8cd   :  { %6962 = vmatprep.subr.bf16.mxu1 %v6961_v17 }
 0x8d0   :  { %6964 = vmatpush1.bf16.msra.mxu1 %v6963_v23 }
 0x8d1   :  { %6966 = vmatprep.subr.bf16.mxu1 %v6965_v31 }
 0x8d4   :  { %6968 = vmatpush1.bf16.msra.mxu1 %v6967_v52 }
 0x8d5   :  { %6970 = vmatprep.subr.bf16.mxu1 %v6969_v11 }
 0x8d8   :  { %6972 = vmatpush1.bf16.msra.mxu1 %v6971_v44 }
 0x8d9   :  { %6711 = vmatprep.subr.mxu1 %v7399_v22 }
 0x951   :  { %v2909_v36 = vpop.xlane.xlu1 %2908 }
 0x952   :  { %v2913_v18 = vmul.f32 0.015625, %v2909_v36 }
 0x954   :  { %v2915_v13 = vsub.f32 %v2905_v9, %v2913_v18 }
 0x956   :  { %v2917_v48 = vmul.f32 %v2915_v13, %v2915_v13 }
 0x958   :  { %v2912_v42 = vpop.xlane.xlu0 %2911  ;;  %v2919_v63 = vsel %vm141_vm0, %v2917_v48, 0.0  ;;  %v2983_v48 = vrot.slane %v6189_v0, %v7643_v49 }
 0x959   :  { %v2914_v28 = vmul.f32 0.015625, %v2912_v42  ;;  %2920 = vadd.xlane.f32.xlu1 %v2919_v63 }
 0x95b   :  { %v2916_v3 = vsub.f32 %v2906_v15, %v2914_v28 }
 0x95d   :  { %v2918_v53 = vmul.f32 %v2916_v3, %v2916_v3 }
 0x95f   :  { %v2922_v26 = vsel %vm141_vm0, %v2918_v53, 0.0 }
 0x960   :  { %2923 = vadd.xlane.f32.xlu0 %v2922_v26 }
 0x9e6   :  { %v2921_v59 = vpop.xlane.xlu1 %2920 }
 0x9e7   :  { %v2925_v2 = vmul.f32 0.015625, %v2921_v59  ;;  %v2949_v59 = vld [vmem:[#allocation2 + $0x58] sm:$0xff] }
 0x9e9   :  { %v2927_v54 = vadd.f32 1e-06, %v2925_v2 }
 0x9eb   :  { %7226 = vrsqrt.f32 %v2927_v54 }
 0x9ed   :  { %v2924_v60 = vpop.xlane.xlu0 %2923 }
 0x9ee   :  { %v2926_v61 = vmul.f32 0.015625, %v2924_v60  ;;  %v2950_v60 = vld [vmem:[#allocation2 + $0x60] sm:$0xff] }
 0x9f0   :  { %v2928_v14 = vadd.f32 1e-06, %v2926_v61 }
 0x9f2   :  { %7228 = vrsqrt.f32 %v2928_v14 }
 0x9f5   :  { %v7227_v56 = vpop.eup %7226 }
 0x9f6   :  { %v2931_v37 = vmul.f32 %v7227_v56, %v2915_v13 }
 0x9f8   :  { %v2937_v40 = vmul.f32 %v2936_v6, %v2931_v37  ;;  %v2951_v37 = vld [vmem:[#allocation2 + $0x68] sm:$0xff] }
 0x9fa   :  { %v8273_v9 = vadd.f32 %v2942_v8, %v2937_v40 }
 0x9fc   :  { %v7229_v10 = vpop.eup %7228  ;;  %6190 = vmatmul.mubr.msk.f32.vlgmr.msra.gmra.mrb[36].mxu1 %vm141_vm0, %v8273_v9 }
 0x9fd   :  { %3062 = vmatprep.mubr.f32.mxu1 %v7399_v22  ;;  %v2932_v12 = vmul.f32 %v7229_v10, %v2916_v3  ;;  %v2946_v3 = vld [vmem:[#allocation2 + $0x40] sm:$0xff] }
 0x9ff   :  { %v2938_v62 = vmul.f32 %v2936_v6, %v2932_v12 }
 0xa01   :  { %v8278_v5 = vadd.f32 %v2942_v8, %v2938_v62  ;;  %v2952_v62 = vld [vmem:[#allocation2 + $0x70] sm:$0xff] }
 0xa03   :  { %6191 = vmatmul.mubr.msk.f32.gmra.mrb[38].mxu1 %vm141_vm0, %v8278_v5 }
 0xa04   :  { %6713 = vmatprep.mubr.msk.f32.mxu1 %vm7400_vm1, %v7399_v22 }
 0xacf   :  { %v3058_v15 = vpop.f32.mrb[36].mxu1 }
 0xad0   :  { %v3059_v16 = vadd.f32 %v3058_v15, %v2979_v32  ;;  %v3060_v36 = vpop.f32.mrb[37].mxu1 }
 0xad1   :  { %v3061_v42 = vadd.f32 %v3060_v36, %v2983_v48  ;;  %v2953_v36 = vld [vmem:[#allocation2 + $0x78] sm:$0xff] }
 0xad2   :  { %3070 = vrot.lane.b32.xlu1 %v3059_v16, %s7402_s23  ;;  %3545 = vrot.lane.b32.xlu0 %v3059_v16, %s7403_s24 }
 0xad6   :  { %3306 = vrot.lane.b32.xlu1 %v3059_v16, %s7401_s18  ;;  %3543 = vrot.lane.b32.xlu0 %v3059_v16, %s7405_s0  ;;  %v3064_v18 = vpop.f32.mrb[38].mxu1 }
 0xad7   :  { %v3066_v13 = vpop.f32.mrb[39].mxu1  ;;  %v3065_v63 = vadd.f32 %v3064_v18, %v2979_v32 }
 0xad8   :  { %v3067_v28 = vadd.f32 %v3066_v13, %v2983_v48 }
 0xada   :  { %3304 = vrot.lane.b32.xlu1 %v3059_v16, %s7404_s25  ;;  %3784 = vrot.lane.b32.xlu0 %v3059_v16, %s7406_s26 }
 0xade   :  { %3782 = vrot.lane.b32.xlu1 %v3059_v16, %s7408_s5  ;;  %4023 = vrot.lane.b32.xlu0 %v3059_v16, %s7407_s27 }
 0xae2   :  { %3460 = vrot.lane.b32.xlu1 %v3061_v42, %s7404_s25  ;;  %4021 = vrot.lane.b32.xlu0 %v3059_v16, %s7409_s19 }
 0xae6   :  { %3699 = vrot.lane.b32.xlu1 %v3061_v42, %s7405_s0  ;;  %3147 = vrot.lane.b32.xlu0 %v3065_v63, %s7402_s23 }
 0xaea   :  { %3938 = vrot.lane.b32.xlu1 %v3061_v42, %s7408_s5  ;;  %4262 = vrot.lane.b32.xlu0 %v3059_v16, %s7410_s30 }
 0xaee   :  { %4177 = vrot.lane.b32.xlu1 %v3061_v42, %s7409_s19  ;;  %3384 = vrot.lane.b32.xlu0 %v3065_v63, %s7401_s18 }
 0xaf2   :  { %4260 = vrot.lane.b32.xlu1 %v3059_v16, %s9029_s4  ;;  %3862 = vrot.lane.b32.xlu0 %v3065_v63, %s7406_s26 }
 0xaf6   :  { %3382 = vrot.lane.b32.xlu1 %v3065_v63, %s7404_s25  ;;  %3462 = vrot.lane.b32.xlu0 %v3067_v28, %s7404_s25  ;;  %s9032_s25 = smov 8  }
 0xafa   :  { %3623 = vrot.lane.b32.xlu1 %v3065_v63, %s7403_s24  ;;  %4340 = vrot.lane.b32.xlu0 %v3065_v63, %s7410_s30 }
 0xafe   :  { %3621 = vrot.lane.b32.xlu1 %v3065_v63, %s7405_s0  ;;  %3701 = vrot.lane.b32.xlu0 %v3067_v28, %s7405_s0  ;;  %s9033_s0 = smov 72  }
 0xb02   :  { %3860 = vrot.lane.b32.xlu1 %v3065_v63, %s7408_s5  ;;  %4501 = vrot.lane.b32.xlu0 %v3059_v16, %s9030_s1 }
 0xb06   :  { %4101 = vrot.lane.b32.xlu1 %v3065_v63, %s7407_s27  ;;  %3940 = vrot.lane.b32.xlu0 %v3067_v28, %s7408_s5 }
 0xb0a   :  { %4099 = vrot.lane.b32.xlu1 %v3065_v63, %s7409_s19  ;;  %4499 = vrot.lane.b32.xlu0 %v3059_v16, %s9031_s2 }
 0xb0e   :  { %4338 = vrot.lane.b32.xlu1 %v3065_v63, %s9029_s4  ;;  %4179 = vrot.lane.b32.xlu0 %v3067_v28, %s7409_s19 }
 0xb12   :  { %4416 = vrot.lane.b32.xlu1 %v3061_v42, %s9029_s4  ;;  %4418 = vrot.lane.b32.xlu0 %v3067_v28, %s9029_s4 }
 0xb16   :  { %4579 = vrot.lane.b32.xlu1 %v3065_v63, %s9030_s1  ;;  %4740 = vrot.lane.b32.xlu0 %v3059_v16, %s9032_s25 }
 0xb1a   :  { %4577 = vrot.lane.b32.xlu1 %v3065_v63, %s9031_s2  ;;  %4657 = vrot.lane.b32.xlu0 %v3067_v28, %s9031_s2 }
 0xb1e   :  { %4655 = vrot.lane.b32.xlu1 %v3061_v42, %s9031_s2  ;;  %4818 = vrot.lane.b32.xlu0 %v3065_v63, %s9032_s25 }
 0xb22   :  { %4738 = vrot.lane.b32.xlu1 %v3059_v16, %s9033_s0  ;;  %4894 = vrot.lane.b32.xlu0 %v3061_v42, %s9033_s0 }
 0xb26   :  { %4816 = vrot.lane.b32.xlu1 %v3065_v63, %s9033_s0 }
 0xb2a   :  { %4896 = vrot.lane.b32.xlu1 %v3067_v28, %s9033_s0 }
 0xb44   :  { %v3071_v53 = vpop.permute.xlu1 %3070  ;;  %v3546_v26 = vpop.permute.xlu0 %3545 }
 0xb45   :  { %6712 = vmatpush3.xpose.msk.msra.mxu1 %vm228_vm2, %v3071_v53 }
 0xb46   :  { %6721 = vmatprep.subr.mxu1 %v2946_v3 }
 0xb48   :  { %v3307_v4 = vpop.permute.xlu1 %3306  ;;  %6714 = vmatmul.mubr.msk.f32.vlgmr.msra.gmra.mrb[40].mxu1 %vm228_vm2, %v3059_v16  ;;  %v3544_v20 = vpop.permute.xlu0 %3543 }
 0xb49   :  { %6723 = vmatprep.mubr.msk.f32.mxu1 %vm228_vm2, %v3061_v42  ;;  %6722 = vmatpush3.msra.mxu1 %v2946_v3 }
 0xb4a   :  { %6731 = vmatprep.subr.mxu1 %v7399_v22 }
 0xb4c   :  { %v3305_v29 = vpop.permute.xlu1 %3304  ;;  %6724 = vmatmul.mubr.msk.f32.vlgmr.msra.gmra.mrb[42].mxu1 %vm228_vm2, %v3067_v28  ;;  %v3785_v21 = vpop.permute.xlu0 %3784 }
 0xb4d   :  { %6733 = vmatprep.mubr.msk.f32.mxu1 %vm7400_vm1, %v7399_v22 }
 0xb50   :  { %v3783_v33 = vpop.permute.xlu1 %3782  ;;  %v4024_v46 = vpop.permute.xlu0 %4023 }
 0xb54   :  { %v3461_v34 = vpop.permute.xlu1 %3460  ;;  %v8340_v24 = vpop.permute.xlu0 %4021 }
 0xb58   :  { %v3700_v17 = vpop.permute.xlu1 %3699  ;;  %v3148_v7 = vpop.permute.xlu0 %3147 }
 0xb59   :  { %6717 = vmatpush3.xpose.msk.msra.mxu0 %vm228_vm2, %v3148_v7 }
 0xb5a   :  { %6726 = vmatprep.subr.mxu0 %v7399_v22 }
 0xb5c   :  { %v3939_v23 = vpop.permute.xlu1 %3938  ;;  %6719 = vmatmul.mubr.msk.f32.vlgmr.msra.gmra.mrb[28].mxu0 %vm228_vm2, %v3065_v63  ;;  %v8345_v43 = vpop.permute.xlu0 %4262 }
 0xb5d   :  { %6727 = vmatpush3.xpose.msk.msra.mxu0 %vm228_vm2, %v3307_v4  ;;  %6728 = vmatprep.mubr.msk.f32.mxu0 %vm7400_vm1, %v7399_v22 }
 0xb5e   :  { %6736 = vmatprep.subr.mxu0 %v2947_v35 }
 0xb60   :  { %v4178_v50 = vpop.permute.xlu1 %4177  ;;  %6729 = vmatmul.mubr.msk.f32.vlgmr.msra.gmra.mrb[30].mxu0 %vm228_vm2, %v3305_v29  ;;  %v3385_v31 = vpop.permute.xlu0 %3384 }
 0xb61   :  { %6732 = vmatpush3.xpose.msk.msra.mxu1 %vm228_vm2, %v3385_v31  ;;  %6738 = vmatprep.mubr.msk.f32.mxu0 %vm228_vm2, %v3461_v34 }
 0xb62   :  { %6737 = vmatpush3.msra.mxu0 %v2947_v35  ;;  %6741 = vmatprep.subr.mxu1 %v7399_v22 }
 0xb63   :  { %6746 = vmatprep.subr.mxu0 %v7399_v22 }
 0xb64   :  { %v4261_v47 = vpop.permute.xlu1 %4260  ;;  %v3863_v51 = vpop.permute.xlu0 %3862 }
 0xb68   :  { %v3383_v52 = vpop.permute.xlu1 %3382  ;;  %v3463_v57 = vpop.permute.xlu0 %3462 }
 0xb69   :  { %6734 = vmatmul.mubr.msk.f32.vlgmr.msra.gmra.mrb[44].mxu1 %vm228_vm2, %v3383_v52  ;;  %6739 = vmatmul.mubr.msk.f32.vlgmr.msra.gmra.mrb[32].mxu0 %vm228_vm2, %v3463_v57 }
 0xb6a   :  { %6742 = vmatpush3.xpose.msk.msra.mxu1 %vm228_vm2, %v3546_v26  ;;  %6743 = vmatprep.mubr.msk.f32.mxu1 %vm7400_vm1, %v7399_v22 }
 0xb6b   :  { %6751 = vmatprep.subr.mxu1 %v2948_v27  ;;  %6748 = vmatprep.mubr.msk.f32.mxu0 %vm7400_vm1, %v7399_v22 }
 0xb6c   :  { %v3624_v11 = vpop.permute.xlu1 %3623  ;;  %v4341_v41 = vpop.permute.xlu0 %4340 }
 0xb6d   :  { %6744 = vmatmul.mubr.msk.f32.vlgmr.msra.gmra.mrb[46].mxu1 %vm228_vm2, %v3544_v20  ;;  %6747 = vmatpush3.xpose.msk.msra.mxu0 %vm228_vm2, %v3624_v11 }
 0xb6e   :  { %6752 = vmatpush3.msra.mxu1 %v2948_v27  ;;  %6753 = vmatprep.mubr.msk.f32.mxu1 %vm228_vm2, %v3700_v17 }
 0xb6f   :  { %6756 = vmatprep.subr.mxu0 %v7399_v22  ;;  %6761 = vmatprep.subr.mxu1 %v7399_v22 }
 0xb70   :  { %v3622_v19 = vpop.permute.xlu1 %3621  ;;  %v3702_v44 = vpop.permute.xlu0 %3701 }
 0xb71   :  { %6749 = vmatmul.mubr.msk.f32.vlgmr.msra.gmra.mrb[34].mxu0 %vm228_vm2, %v3622_v19  ;;  %6754 = vmatmul.mubr.msk.f32.vlgmr.msra.gmra.mrb[48].mxu1 %vm228_vm2, %v3702_v44 }
 0xb72   :  { %6757 = vmatpush3.xpose.msk.msra.mxu0 %vm228_vm2, %v3785_v21  ;;  %6758 = vmatprep.mubr.msk.f32.mxu0 %vm7400_vm1, %v7399_v22 }
 0xb73   :  { %6766 = vmatprep.subr.mxu0 %v2949_v59  ;;  %6763 = vmatprep.mubr.msk.f32.mxu1 %vm7400_vm1, %v7399_v22 }
 0xb74   :  { %v3861_v2 = vpop.permute.xlu1 %3860  ;;  %v4502_v54 = vpop.permute.xlu0 %4501 }
 0xb75   :  { %6762 = vmatpush3.xpose.msk.msra.mxu1 %vm228_vm2, %v3863_v51  ;;  %6759 = vmatmul.mubr.msk.f32.vlgmr.msra.gmra.mrb[36].mxu0 %vm228_vm2, %v3783_v33 }
 0xb76   :  { %6767 = vmatpush3.msra.mxu0 %v2949_v59  ;;  %6768 = vmatprep.mubr.msk.f32.mxu0 %vm228_vm2, %v3939_v23 }
 0xb77   :  { %6771 = vmatprep.subr.mxu1 %v7399_v22  ;;  %6776 = vmatprep.subr.mxu0 %v7399_v22 }
 0xb78   :  { %6764 = vmatmul.mubr.msk.f32.vlgmr.msra.gmra.mrb[50].mxu1 %vm228_vm2, %v3861_v2  ;;  %v4102_v61 = vpop.permute.xlu1 %4101  ;;  %v3941_v14 = vpop.permute.xlu0 %3940 }
 0xb79   :  { %6772 = vmatpush3.xpose.msk.msra.mxu1 %vm228_vm2, %v4024_v46  ;;  %6769 = vmatmul.mubr.msk.f32.vlgmr.msra.gmra.mrb[38].mxu0 %vm228_vm2, %v3941_v14 }
 0xb7a   :  { %6773 = vmatprep.mubr.msk.f32.mxu1 %vm7400_vm1, %v7399_v22  ;;  %6781 = vmatprep.subr.mxu1 %v2950_v60 }
 0xb7b   :  { %6778 = vmatprep.mubr.msk.f32.mxu0 %vm7400_vm1, %v7399_v22 }
 0xb7c   :  { %6774 = vmatmul.mubr.msk.f32.vlgmr.msra.gmra.mrb[52].mxu1 %vm228_vm2, %v8340_v24  ;;  %v4100_v6 = vpop.permute.xlu1 %4099  ;;  %v4500_v56 = vpop.permute.xlu0 %4499 }
 0xb7d   :  { %6777 = vmatpush3.xpose.msk.msra.mxu0 %vm228_vm2, %v4102_v61  ;;  %6782 = vmatpush3.msra.mxu1 %v2950_v60 }
 0xb7e   :  { %6783 = vmatprep.mubr.msk.f32.mxu1 %vm228_vm2, %v4178_v50  ;;  %6786 = vmatprep.subr.mxu0 %v7399_v22 }
 0xb7f   :  { %6791 = vmatprep.subr.mxu1 %v7399_v22 }
 0xb80   :  { %6779 = vmatmul.mubr.msk.f32.vlgmr.msra.gmra.mrb[40].mxu0 %vm228_vm2, %v4100_v6  ;;  %v4339_v8 = vpop.permute.xlu1 %4338  ;;  %v4180_v40 = vpop.permute.xlu0 %4179 }
 0xb81   :  { %6787 = vmatpush3.xpose.msk.msra.mxu0 %vm228_vm2, %v8345_v43  ;;  %6784 = vmatmul.mubr.msk.f32.vlgmr.msra.gmra.mrb[54].mxu1 %vm228_vm2, %v4180_v40 }
 0xb82   :  { %6788 = vmatprep.mubr.msk.f32.mxu0 %vm7400_vm1, %v7399_v22  ;;  %6796 = vmatprep.subr.mxu0 %v2951_v37 }
 0xb83   :  { %6793 = vmatprep.mubr.msk.f32.mxu1 %vm7400_vm1, %v7399_v22 }
 0xb84   :  { %6789 = vmatmul.mubr.msk.f32.vlgmr.msra.gmra.mrb[42].mxu0 %vm228_vm2, %v4261_v47  ;;  %6792 = vmatpush3.xpose.msk.msra.mxu1 %vm228_vm2, %v4341_v41  ;;  %v4417_v10 = vpop.permute.xlu1 %4416  ;;  %v4419_v12 = vpop.permute.xlu0 %4418 }
 0xb85   :  { %6797 = vmatpush3.msra.mxu0 %v2951_v37  ;;  %6798 = vmatprep.mubr.msk.f32.mxu0 %vm228_vm2, %v4417_v10 }
 0xb86   :  { %6801 = vmatprep.subr.mxu1 %v7399_v22  ;;  %6806 = vmatprep.subr.mxu0 %v7399_v22 }
 0xb87   :  { %6794 = vmatmul.mubr.msk.f32.vlgmr.msra.gmra.mrb[56].mxu1 %vm228_vm2, %v4339_v8 }
 0xb88   :  { %6799 = vmatmul.mubr.msk.f32.vlgmr.msra.gmra.mrb[44].mxu0 %vm228_vm2, %v4419_v12  ;;  %6802 = vmatpush3.xpose.msk.msra.mxu1 %vm228_vm2, %v4502_v54  ;;  %v4580_v0 = vpop.permute.xlu1 %4579  ;;  %v4741_v32 = vpop.permute.xlu0 %4740 }
 0xb89   :  { %6803 = vmatprep.mubr.msk.f32.mxu1 %vm7400_vm1, %v7399_v22  ;;  %6811 = vmatprep.subr.mxu1 %v2952_v62 }
 0xb8a   :  { %6808 = vmatprep.mubr.msk.f32.mxu0 %vm7400_vm1, %v7399_v22 }
 0xb8b   :  { %6804 = vmatmul.mubr.msk.f32.vlgmr.msra.gmra.mrb[58].mxu1 %vm228_vm2, %v4500_v56 }
 0xb8c   :  { %6807 = vmatpush3.xpose.msk.msra.mxu0 %vm228_vm2, %v4580_v0  ;;  %6812 = vmatpush3.msra.mxu1 %v2952_v62  ;;  %v4578_v15 = vpop.permute.xlu1 %4577  ;;  %v4658_v16 = vpop.permute.xlu0 %4657 }
 0xb8d   :  { %6816 = vmatprep.subr.mxu0 %v7399_v22  ;;  %6821 = vmatprep.subr.mxu1 %v7399_v22 }
 0xb8f   :  { %6809 = vmatmul.mubr.msk.f32.vlgmr.msra.gmra.mrb[46].mxu0 %vm228_vm2, %v4578_v15 }
 0xb90   :  { %6817 = vmatpush3.xpose.msk.msra.mxu0 %vm228_vm2, %v4741_v32  ;;  %v4656_v18 = vpop.permute.xlu1 %4655  ;;  %v4819_v13 = vpop.permute.xlu0 %4818  ;;  %6818 = vmatprep.mubr.msk.f32.mxu0 %vm7400_vm1, %v7399_v22 }
 0xb91   :  { %6813 = vmatprep.mubr.msk.f32.mxu1 %vm228_vm2, %v4656_v18  ;;  %6826 = vmatprep.subr.mxu0 %v2953_v36 }
 0xb92   :  { %6814 = vmatmul.mubr.msk.f32.vlgmr.msra.gmra.mrb[60].mxu1 %vm228_vm2, %v4658_v16 }
 0xb93   :  { %6822 = vmatpush3.xpose.msk.msra.mxu1 %vm228_vm2, %v4819_v13  ;;  %6823 = vmatprep.mubr.msk.f32.mxu1 %vm7400_vm1, %v7399_v22 }
 0xb94   :  { %v4739_v48 = vpop.permute.xlu1 %4738  ;;  %v4895_v42 = vpop.permute.xlu0 %4894  ;;  %6973 = vmatprep.subr.bf16.mxu1 %v7415_v45 }
 0xb95   :  { %6819 = vmatmul.mubr.msk.f32.vlgmr.msra.gmra.mrb[48].mxu0 %vm228_vm2, %v4739_v48 }
 0xb96   :  { %6828 = vmatprep.mubr.msk.f32.mxu0 %vm228_vm2, %v4895_v42  ;;  %6827 = vmatpush3.msra.mxu0 %v2953_v36 }
 0xb97   :  { %6985 = vmatprep.subr.bf16.mxu0 %v7415_v45 }
 0xb98   :  { %v4817_v63 = vpop.permute.xlu1 %4816 }
 0xb99   :  { %6824 = vmatmul.mubr.msk.f32.vlgmr.msra.gmra.mrb[62].mxu1 %vm228_vm2, %v4817_v63 }
 0xb9a   :  { %6847 = vmatprep.mubr.msk.f32.mxu1 %vm7400_vm1, %v7399_v22 }
 0xb9c   :  { %v4897_v28 = vpop.permute.xlu1 %4896 }
 0xb9d   :  { %6829 = vmatmul.mubr.msk.f32.vlgmr.msra.gmra.mrb[50].mxu0 %vm228_vm2, %v4897_v28 }
 0xb9e   :  { %6866 = vmatprep.mubr.msk.f32.mxu0 %vm7400_vm1, %v7399_v22 }
 0xc1b   :  { %v8435_v3 = vpop.f32.mrb[40].mxu1 }
 0xc1c   :  { %v6715_v53 = vpop.f32.mrb[41].mxu1 }
 0xc1f   :  { %v6725_v26 = vpop.f32.mrb[42].mxu1 }
 0xc20   :  { %v3295_v4 = vpop.f32.mrb[43].mxu1 }
 0xc2f   :  { %v8437_v20 = vpop.f32.mrb[28].mxu0 }
 0xc30   :  { %v6720_v29 = vpop.f32.mrb[29].mxu0 }
 0xc33   :  { %v8439_v21 = vpop.f32.mrb[30].mxu0 }
 0xc34   :  { %v6730_v33 = vpop.f32.mrb[31].mxu0  ;;  %v4980_v31 = vsel %vm228_vm2, %v8439_v21, -inf }
 0xc3c   :  { %v8441_v46 = vpop.f32.mrb[44].mxu1  ;;  %v6740_v34 = vpop.f32.mrb[32].mxu0 }
 0xc3d   :  { %v6986_v24 = vpack.c.bf16 %v6740_v34, %v6725_v26  ;;  %v6735_v17 = vpop.f32.mrb[45].mxu1  ;;  %v3534_v7 = vpop.f32.mrb[33].mxu0  ;;  %v5004_v35 = vsel %vm228_vm2, %v8441_v46, -inf }
 0xc3e   :  { %v6974_v23 = vpack.c.bf16 %v3534_v7, %v3295_v4  ;;  %5005 = vmax.xlane.f32.xlu0 %v5004_v35 }
 0xc3f   :  { %6987 = vmatpush3.bf16.msra.mxu0 %v6986_v24 }
 0xc40   :  { %v8445_v43 = vpop.f32.mrb[46].mxu1  ;;  %6975 = vmatpush3.bf16.msra.mxu1 %v6974_v23  ;;  %6988 = vmatprep.subr.bf16.mxu0 %v7415_v45 }
 0xc41   :  { %v6745_v50 = vpop.f32.mrb[47].mxu1  ;;  %v4983_v47 = vsel %vm228_vm2, %v8445_v43, -inf  ;;  %6976 = vmatprep.subr.bf16.mxu1 %v7415_v45 }
 0xc42   :  { %4981 = vmax.xlane.f32.xlu0 %v4980_v31  ;;  %4984 = vmax.xlane.f32.xlu1 %v4983_v47 }
 0xc44   :  { %v8453_v51 = vpop.f32.mrb[34].mxu0  ;;  %v6755_v52 = vpop.f32.mrb[48].mxu1 }
 0xc45   :  { %v6750_v57 = vpop.f32.mrb[35].mxu0  ;;  %v3773_v27 = vpop.f32.mrb[49].mxu1  ;;  %v5007_v11 = vsel %vm228_vm2, %v8453_v51, -inf }
 0xc46   :  { %5008 = vmax.xlane.f32.xlu0 %v5007_v11  ;;  %v5001_v11 = vsel %vm228_vm2, %v8437_v20, -inf }
 0xc48   :  { %v8457_v41 = vpop.f32.mrb[36].mxu0 }
 0xc49   :  { %v6760_v19 = vpop.f32.mrb[37].mxu0  ;;  %v4986_v37 = vsel %vm228_vm2, %v8457_v41, -inf }
 0xc4b   :  { %v8459_v44 = vpop.f32.mrb[50].mxu1 }
 0xc4c   :  { %v6765_v59 = vpop.f32.mrb[51].mxu1  ;;  %v5010_v2 = vsel %vm228_vm2, %v8459_v44, -inf  ;;  %v6770_v54 = vpop.f32.mrb[38].mxu0 }
 0xc4d   :  { %5011 = vmax.xlane.f32.xlu0 %v5010_v2  ;;  %v6989_v60 = vpack.c.bf16 %v6770_v54, %v6755_v52  ;;  %v4012_v61 = vpop.f32.mrb[39].mxu0 }
 0xc4e   :  { %v6977_v14 = vpack.c.bf16 %v4012_v61, %v3773_v27  ;;  %v4977_v27 = vsel %vm228_vm2, %v8435_v3, -inf }
 0xc4f   :  { %v8463_v6 = vpop.f32.mrb[52].mxu1  ;;  %6990 = vmatpush3.bf16.msra.mxu0 %v6989_v60 }
 0xc50   :  { %v6775_v56 = vpop.f32.mrb[53].mxu1  ;;  %6978 = vmatpush3.bf16.msra.mxu1 %v6977_v14  ;;  %6991 = vmatprep.subr.bf16.mxu0 %v7415_v45  ;;  %v4989_v10 = vsel %vm228_vm2, %v8463_v6, -inf }
 0xc51   :  { %4987 = vmax.xlane.f32.xlu0 %v4986_v37  ;;  %6979 = vmatprep.subr.bf16.mxu1 %v7415_v45 }
 0xc53   :  { %v8469_v8 = vpop.f32.mrb[40].mxu0 }
 0xc54   :  { %v6780_v40 = vpop.f32.mrb[41].mxu0  ;;  %v5013_v12 = vsel %vm228_vm2, %v8469_v8, -inf  ;;  %v6785_v62 = vpop.f32.mrb[54].mxu1 }
 0xc55   :  { %4990 = vmax.xlane.f32.xlu0 %v4989_v10  ;;  %5014 = vmax.xlane.f32.xlu1 %v5013_v12  ;;  %v4251_v0 = vpop.f32.mrb[55].mxu1 }
 0xc57   :  { %v8475_v32 = vpop.f32.mrb[42].mxu0 }
 0xc58   :  { %v6790_v15 = vpop.f32.mrb[43].mxu0  ;;  %v4992_v16 = vsel %vm228_vm2, %v8475_v32, -inf }
 0xc59   :  { %4993 = vmax.xlane.f32.xlu1 %v4992_v16 }
 0xc5a   :  { %v8479_v36 = vpop.f32.mrb[56].mxu1 }
 0xc5b   :  { %v6795_v18 = vpop.f32.mrb[57].mxu1  ;;  %v6800_v13 = vpop.f32.mrb[44].mxu0  ;;  %v5016_v48 = vsel %vm228_vm2, %v8479_v36, -inf }
 0xc5c   :  { %v6992_v42 = vpack.c.bf16 %v6800_v13, %v6785_v62  ;;  %5017 = vmax.xlane.f32.xlu0 %v5016_v48  ;;  %v4490_v63 = vpop.f32.mrb[45].mxu0 }
 0xc5d   :  { %v6980_v28 = vpack.c.bf16 %v4490_v63, %v4251_v0 }
 0xc5e   :  { %v8483_v53 = vpop.f32.mrb[58].mxu1  ;;  %6993 = vmatpush3.bf16.msra.mxu0 %v6992_v42 }
 0xc5f   :  { %v6805_v26 = vpop.f32.mrb[59].mxu1  ;;  %6981 = vmatpush3.bf16.msra.mxu1 %v6980_v28  ;;  %v4995_v4 = vsel %vm228_vm2, %v8483_v53, -inf  ;;  %6994 = vmatprep.subr.bf16.mxu0 %v7415_v45 }
 0xc60   :  { %4996 = vmax.xlane.f32.xlu1 %v4995_v4  ;;  %6982 = vmatprep.subr.bf16.mxu1 %v7415_v45 }
 0xc62   :  { %v8489_v29 = vpop.f32.mrb[46].mxu0 }
 0xc63   :  { %v6810_v33 = vpop.f32.mrb[47].mxu0  ;;  %v5019_v31 = vsel %vm228_vm2, %v8489_v29, -inf }
 0xc65   :  { %v6815_v34 = vpop.f32.mrb[60].mxu1 }
 0xc66   :  { %v4729_v24 = vpop.f32.mrb[61].mxu1 }
 0xc68   :  { %v8491_v17 = vpop.f32.mrb[48].mxu0 }
 0xc69   :  { %v6820_v7 = vpop.f32.mrb[49].mxu0  ;;  %v4998_v35 = vsel %vm228_vm2, %v8491_v17, -inf }
 0xc6a   :  { %4999 = vmax.xlane.f32.xlu1 %v4998_v35 }
 0xc6c   :  { %v8495_v23 = vpop.f32.mrb[62].mxu1 }
 0xc6d   :  { %v6825_v50 = vpop.f32.mrb[63].mxu1  ;;  %v5022_v45 = vsel %vm228_vm2, %v8495_v23, -inf }
 0xc6e   :  { %5020 = vmax.xlane.f32.xlu1 %v5019_v31  ;;  %5023 = vmax.xlane.f32.xlu0 %v5022_v45 }
 0xc70   :  { %v6830_v47 = vpop.f32.mrb[50].mxu0 }
 0xc71   :  { %v6995_v52 = vpack.c.bf16 %v6830_v47, %v6815_v34  ;;  %v4968_v57 = vpop.f32.mrb[51].mxu0 }
 0xc72   :  { %v6983_v19 = vpack.c.bf16 %v4968_v57, %v4729_v24  ;;  %4978 = vmax.xlane.f32.xlu1 %v4977_v27  ;;  %5002 = vmax.xlane.f32.xlu0 %v5001_v11 }
 0xc73   :  { %6996 = vmatpush3.bf16.msra.mxu0 %v6995_v52 }
 0xc74   :  { %6984 = vmatpush3.bf16.msra.mxu1 %v6983_v19 }
 0xccb   :  { %v5006_v59 = vpop.xlane.xlu0 %5005 }
 0xccc   :  { %v5034_v2 = vsub.f32 %v8441_v46, %v5006_v59 }
 0xcce   :  { %v5059_v54 = vmul.f32 1.442695, %v5034_v2 }
 0xccf   :  { %v4985_v60 = vpop.xlane.xlu1 %4984  ;;  %v4982_v61 = vpop.xlane.xlu0 %4981 }
 0xcd0   :  { %7230 = vpow2.f32 %v5059_v54  ;;  %v5027_v14 = vsub.f32 %v8445_v43, %v4985_v60  ;;  %v5026_v56 = vsub.f32 %v8439_v21, %v4982_v61 }
 0xcd2   :  { %v5045_v37 = vmul.f32 1.442695, %v5027_v14  ;;  %v5043_v40 = vmul.f32 1.442695, %v5026_v56 }
 0xcd3   :  { %v5009_v10 = vpop.xlane.xlu0 %5008 }
 0xcd4   :  { %7232 = vpow2.f32 %v5045_v37  ;;  %v5035_v12 = vsub.f32 %v8453_v51, %v5009_v10 }
 0xcd5   :  { %7234 = vpow2.f32 %v5043_v40 }
 0xcd6   :  { %v5061_v62 = vmul.f32 1.442695, %v5035_v12 }
 0xcd8   :  { %7236 = vpow2.f32 %v5061_v62 }
 0xcda   :  { %v8509_v0 = vpop.eup %7230  ;;  %v5012_v46 = vpop.xlane.xlu0 %5011 }
 0xcdb   :  { %v5036_v15 = vsub.f32 %v8459_v44, %v5012_v46  ;;  %v5100_v16 = vsel %vm228_vm2, %v8509_v0, 0.0 }
 0xcdc   :  { %5101 = vadd.xlane.f32.xlu0 %v5100_v16 }
 0xcdd   :  { %v5063_v43 = vmul.f32 1.442695, %v5036_v15 }
 0xcde   :  { %v8514_v21 = vpop.eup %7232  ;;  %v4988_v18 = vpop.xlane.xlu0 %4987 }
 0xcdf   :  { %v8516_v13 = vpop.eup %7234  ;;  %7238 = vpow2.f32 %v5063_v43  ;;  %v5028_v51 = vsub.f32 %v8457_v41, %v4988_v18  ;;  %v5079_v48 = vsel %vm228_vm2, %v8514_v21, 0.0 }
 0xce0   :  { %5080 = vadd.xlane.f32.xlu0 %v5079_v48  ;;  %v5076_v44 = vsel %vm228_vm2, %v8516_v13, 0.0 }
 0xce1   :  { %v5047_v42 = vmul.f32 1.442695, %v5028_v51  ;;  %5077 = vadd.xlane.f32.xlu1 %v5076_v44 }
 0xce2   :  { %v8523_v63 = vpop.eup %7236  ;;  %v5015_v28 = vpop.xlane.xlu1 %5014 }
 0xce3   :  { %v4991_v26 = vpop.xlane.xlu0 %4990  ;;  %7240 = vpow2.f32 %v5047_v42  ;;  %v5037_v4 = vsub.f32 %v8469_v8, %v5015_v28  ;;  %v5103_v41 = vsel %vm228_vm2, %v8523_v63, 0.0 }
 0xce4   :  { %v5029_v33 = vsub.f32 %v8463_v6, %v4991_v26  ;;  %5104 = vadd.xlane.f32.xlu0 %v5103_v41 }
 0xce5   :  { %v5065_v34 = vmul.f32 1.442695, %v5037_v4 }
 0xce6   :  { %v5049_v24 = vmul.f32 1.442695, %v5029_v33  ;;  %v4994_v7 = vpop.xlane.xlu1 %4993 }
 0xce7   :  { %7242 = vpow2.f32 %v5065_v34  ;;  %v5030_v35 = vsub.f32 %v8475_v32, %v4994_v7 }
 0xce8   :  { %7244 = vpow2.f32 %v5049_v24 }
 0xce9   :  { %v8530_v50 = vpop.eup %7238  ;;  %v5051_v31 = vmul.f32 1.442695, %v5030_v35  ;;  %v5018_v45 = vpop.xlane.xlu0 %5017 }
 0xcea   :  { %v5038_v47 = vsub.f32 %v8479_v36, %v5018_v45  ;;  %v5106_v6 = vsel %vm228_vm2, %v8530_v50, 0.0 }
 0xceb   :  { %7246 = vpow2.f32 %v5051_v31  ;;  %5107 = vadd.xlane.f32.xlu0 %v5106_v6 }
 0xcec   :  { %v5067_v8 = vmul.f32 1.442695, %v5038_v47 }
 0xced   :  { %v8535_v52 = vpop.eup %7240  ;;  %v4997_v57 = vpop.xlane.xlu1 %4996 }
 0xcee   :  { %7248 = vpow2.f32 %v5067_v8  ;;  %v5031_v27 = vsub.f32 %v8483_v53, %v4997_v57  ;;  %v5082_v32 = vsel %vm228_vm2, %v8535_v52, 0.0 }
 0xcef   :  { %5083 = vadd.xlane.f32.xlu1 %v5082_v32 }
 0xcf0   :  { %v5053_v11 = vmul.f32 1.442695, %v5031_v27 }
 0xcf1   :  { %v8540_v19 = vpop.eup %7242 }
 0xcf2   :  { %v8542_v36 = vpop.eup %7244  ;;  %7250 = vpow2.f32 %v5053_v11  ;;  %v5109_v59 = vsel %vm228_vm2, %v8540_v19, 0.0 }
 0xcf3   :  { %5110 = vadd.xlane.f32.xlu1 %v5109_v59  ;;  %v5085_v2 = vsel %vm228_vm2, %v8542_v36, 0.0 }
 0xcf4   :  { %5086 = vadd.xlane.f32.xlu0 %v5085_v2 }
 0xcf5   :  { %v8548_v54 = vpop.eup %7246 }
 0xcf6   :  { %v5088_v53 = vsel %vm228_vm2, %v8548_v54, 0.0 }
 0xcf7   :  { %5089 = vadd.xlane.f32.xlu1 %v5088_v53  ;;  %v5000_v60 = vpop.xlane.xlu1 %4999 }
 0xcf8   :  { %v8552_v61 = vpop.eup %7248  ;;  %v5032_v14 = vsub.f32 %v8491_v17, %v5000_v60 }
 0xcf9   :  { %v5112_v56 = vsel %vm228_vm2, %v8552_v61, 0.0 }
 0xcfa   :  { %v5055_v37 = vmul.f32 1.442695, %v5032_v14  ;;  %5113 = vadd.xlane.f32.xlu0 %v5112_v56 }
 0xcfb   :  { %v5021_v40 = vpop.xlane.xlu1 %5020  ;;  %v5024_v10 = vpop.xlane.xlu0 %5023 }
 0xcfc   :  { %v8557_v12 = vpop.eup %7250  ;;  %7252 = vpow2.f32 %v5055_v37  ;;  %v5039_v62 = vsub.f32 %v8489_v29, %v5021_v40  ;;  %v5040_v46 = vsub.f32 %v8495_v23, %v5024_v10 }
 0xcfd   :  { %v5091_v15 = vsel %vm228_vm2, %v8557_v12, 0.0 }
 0xcfe   :  { %v5069_v16 = vmul.f32 1.442695, %v5039_v62  ;;  %v5071_v43 = vmul.f32 1.442695, %v5040_v46  ;;  %5092 = vadd.xlane.f32.xlu1 %v5091_v15 }
 0xcff   :  { %v4979_v17 = vpop.xlane.xlu1 %4978  ;;  %v5003_v18 = vpop.xlane.xlu0 %5002 }
 0xd00   :  { %7254 = vpow2.f32 %v5069_v16  ;;  %v5025_v51 = vsub.f32 %v8435_v3, %v4979_v17  ;;  %v5033_v48 = vsub.f32 %v8437_v20, %v5003_v18 }
 0xd01   :  { %7256 = vpow2.f32 %v5071_v43 }
 0xd02   :  { %v5041_v44 = vmul.f32 1.442695, %v5025_v51  ;;  %v5057_v42 = vmul.f32 1.442695, %v5033_v48 }
 0xd04   :  { %7258 = vpow2.f32 %v5041_v44 }
 0xd05   :  { %7260 = vpow2.f32 %v5057_v42 }
 0xd06   :  { %v8565_v29 = vpop.eup %7252 }
 0xd07   :  { %v5094_v23 = vsel %vm228_vm2, %v8565_v29, 0.0 }
 0xd08   :  { %5095 = vadd.xlane.f32.xlu1 %v5094_v23 }
 0xd0a   :  { %v8569_v28 = vpop.eup %7254 }
 0xd0b   :  { %v8571_v26 = vpop.eup %7256  ;;  %v5115_v3 = vsel %vm228_vm2, %v8569_v28, 0.0 }
 0xd0c   :  { %5116 = vadd.xlane.f32.xlu1 %v5115_v3  ;;  %v5118_v20 = vsel %vm228_vm2, %v8571_v26, 0.0 }
 0xd0d   :  { %5119 = vadd.xlane.f32.xlu0 %v5118_v20 }
 0xd0e   :  { %v8577_v4 = vpop.eup %7258 }
 0xd0f   :  { %v8579_v33 = vpop.eup %7260  ;;  %v5073_v41 = vsel %vm228_vm2, %v8577_v4, 0.0 }
 0xd10   :  { %5074 = vadd.xlane.f32.xlu1 %v5073_v41  ;;  %v5097_v34 = vsel %vm228_vm2, %v8579_v33, 0.0 }
 0xd11   :  { %5098 = vadd.xlane.f32.xlu0 %v5097_v34 }
 0xd69   :  { %v5102_v24 = vpop.xlane.xlu0 %5101 }
 0xd6a   :  { %7262 = vrcp.f32 %v5102_v24 }
 0xd6d   :  { %v5081_v7 = vpop.xlane.xlu0 %5080 }
 0xd6e   :  { %v5078_v35 = vpop.xlane.xlu1 %5077  ;;  %7264 = vrcp.f32 %v5081_v7 }
 0xd6f   :  { %7266 = vrcp.f32 %v5078_v35 }
 0xd71   :  { %v5105_v31 = vpop.xlane.xlu0 %5104 }
 0xd72   :  { %7268 = vrcp.f32 %v5105_v31 }
 0xd74   :  { %v7263_v45 = vpop.eup %7262 }
 0xd75   :  { %v5146_v47 = vmul.f32 %v7263_v45, %v8509_v0 }
 0xd77   :  { %5157 = vrot.lane.b32.xlu0 %v5146_v47, %s9032_s25 }
 0xd78   :  { %v7265_v6 = vpop.eup %7264  ;;  %v5108_v8 = vpop.xlane.xlu0 %5107 }
 0xd79   :  { %v7267_v57 = vpop.eup %7266  ;;  %7270 = vrcp.f32 %v5108_v8  ;;  %v5139_v27 = vmul.f32 %v7265_v6, %v8514_v21 }
 0xd7a   :  { %v5138_v32 = vmul.f32 %v7267_v57, %v8516_v13 }
 0xd7b   :  { %5163 = vrot.lane.b32.xlu0 %v5139_v27, %s9030_s1 }
 0xd7c   :  { %v7269_v11 = vpop.eup %7268  ;;  %5155 = vrot.lane.b32.xlu1 %v5138_v32, %s9032_s25  ;;  %v5084_v59 = vpop.xlane.xlu1 %5083 }
 0xd7d   :  { %7272 = vrcp.f32 %v5084_v59  ;;  %v5147_v2 = vmul.f32 %v7269_v11, %v8523_v63 }
 0xd7f   :  { %5165 = vrot.lane.b32.xlu0 %v5147_v2, %s9030_s1 }
 0xd80   :  { %v5111_v0 = vpop.xlane.xlu1 %5110 }
 0xd81   :  { %7274 = vrcp.f32 %v5111_v0  ;;  %v5087_v53 = vpop.xlane.xlu0 %5086 }
 0xd82   :  { %7276 = vrcp.f32 %v5087_v53 }
 0xd83   :  { %v7271_v60 = vpop.eup %7270 }
 0xd84   :  { %v5148_v21 = vmul.f32 %v7271_v60, %v8530_v50  ;;  %v5090_v14 = vpop.xlane.xlu1 %5089 }
 0xd86   :  { %5173 = vrot.lane.b32.xlu0 %v5148_v21, %s7410_s30 }
 0xd87   :  { %v7273_v13 = vpop.eup %7272  ;;  %v5114_v56 = vpop.xlane.xlu0 %5113 }
 0xd88   :  { %7278 = vrcp.f32 %v5114_v56  ;;  %v5140_v37 = vmul.f32 %v7273_v13, %v8535_v52 }
 0xd89   :  { %7280 = vrcp.f32 %v5090_v14 }
 0xd8a   :  { %5171 = vrot.lane.b32.xlu1 %v5140_v37, %s7410_s30 }
 0xd8b   :  { %v7275_v63 = vpop.eup %7274  ;;  %v5093_v40 = vpop.xlane.xlu1 %5092 }
 0xd8c   :  { %v7277_v10 = vpop.eup %7276  ;;  %v5149_v62 = vmul.f32 %v7275_v63, %v8540_v19  ;;  %7282 = vrcp.f32 %v5093_v40  ;;  %v8635_v40 = vld [vmem:[%s9009_s6 + $0x8] sm:$0x3f] }
 0xd8d   :  { %v5141_v46 = vmul.f32 %v7277_v10, %v8542_v36  ;;  %v5372_v10 = vrot.slane %v8635_v40, %v7603_v39 }
 0xd8e   :  { %5181 = vrot.lane.b32.xlu0 %v5149_v62, %s7407_s27 }
 0xd8f   :  { %5179 = vrot.lane.b32.xlu1 %v5141_v46, %s7407_s27 }
 0xd92   :  { %v7279_v50 = vpop.eup %7278 }
 0xd93   :  { %v5150_v15 = vmul.f32 %v7279_v50, %v8552_v61  ;;  %v7281_v16 = vpop.eup %7280 }
 0xd94   :  { %v5142_v43 = vmul.f32 %v7281_v16, %v8548_v54 }
 0xd95   :  { %5189 = vrot.lane.b32.xlu1 %v5150_v15, %s7406_s26  ;;  %v5096_v52 = vpop.xlane.xlu1 %5095 }
 0xd96   :  { %7284 = vrcp.f32 %v5096_v52  ;;  %v7283_v17 = vpop.eup %7282 }
 0xd97   :  { %v5143_v18 = vmul.f32 %v7283_v17, %v8557_v12 }
 0xd99   :  { %5187 = vrot.lane.b32.xlu1 %v5142_v43, %s7406_s26  ;;  %v5117_v19 = vpop.xlane.xlu1 %5116 }
 0xd9a   :  { %7286 = vrcp.f32 %v5117_v19  ;;  %v5120_v36 = vpop.xlane.xlu0 %5119 }
 0xd9b   :  { %7288 = vrcp.f32 %v5120_v36 }
 0xd9d   :  { %5195 = vrot.lane.b32.xlu1 %v5143_v18, %s7403_s24  ;;  %v5075_v23 = vpop.xlane.xlu1 %5074 }
 0xd9e   :  { %v5099_v12 = vpop.xlane.xlu0 %5098  ;;  %7290 = vrcp.f32 %v5075_v23 }
 0xd9f   :  { %7292 = vrcp.f32 %v5099_v12  ;;  %v6245_v12 = vld [vmem:[%s9010_s7 + $0x98] sm:$0xff] }
 0xda0   :  { %v7285_v51 = vpop.eup %7284 }
 0xda1   :  { %v5144_v61 = vmul.f32 %v7285_v51, %v8565_v29 }
 0xda3   :  { %5203 = vrot.lane.b32.xlu1 %v5144_v61, %s7401_s18 }
 0xda4   :  { %v7287_v48 = vpop.eup %7286 }
 0xda5   :  { %v7289_v44 = vpop.eup %7288  ;;  %v5151_v54 = vmul.f32 %v7287_v48, %v8569_v28 }
 0xda6   :  { %v5152_v42 = vmul.f32 %v7289_v44, %v8571_v26 }
 0xda7   :  { %5197 = vrot.lane.b32.xlu0 %v5151_v54, %s7403_s24 }
 0xda8   :  { %5205 = vrot.lane.b32.xlu1 %v5152_v42, %s7401_s18  ;;  %v7291_v7 = vpop.eup %7290  ;;  %s7417_s18 = smov [#allocation7]  }
 0xda9   :  { %v5137_v28 = vmul.f32 %v7291_v7, %v8577_v4  ;;  %v7293_v45 = vpop.eup %7292  ;;  %v6249_v7 = vld [vmem:[%s9010_s7 + $0xb8] sm:$0xff]  ;;  %s6107_s24 = sshll.u32 %s7417_s18, 4  ;;  %s6108_s24 = int_to_ptr.vmem [resolvable:$true] %s6107_s24 }
 0xdaa   :  { %v5145_v27 = vmul.f32 %v7293_v45, %v8579_v33  ;;  %v6251_v45 = vld [vmem:[%s9010_s7 + $0xc8] sm:$0xff]  ;;  %s7366_s6 = scalar_lea.vmem %s6108_s24, 32  ;;  %p7371_p3 = scmp.lt.s32.totalorder %s6108_s24, %s6108_s24 }
 0xdab   :  { %p7367_p2 = scmp.ne.s32.totalorder %s6108_s24, %s7366_s6  ;;  %p7372_p4 = scmp.lt.s32.totalorder %s7366_s6, %s7366_s6 }
 0xdad   :  { %p7373_p5 = por %p7372_p4, %p7371_p3 }
 0xdaf   :  { %p7374_p6 = pnand %p7373_p5, %p7367_p2 }
 0xde9   :  { %v5158_v41 = vpop.permute.xlu0 %5157 }
 0xdea   :  { %v5210_v59 = vsel %vm228_vm2, %v5145_v27, %v5158_v41  ;;  %v6242_v41 = vld [vmem:[%s9010_s7 + $0x80] sm:$0xff] }
 0xded   :  { %v5164_v29 = vpop.permute.xlu0 %5163 }
 0xdee   :  { %v5156_v3 = vpop.permute.xlu1 %5155 }
 0xdef   :  { %v5209_v26 = vsel %vm228_vm2, %v5137_v28, %v5156_v3  ;;  %v6246_v28 = vld [vmem:[%s9010_s7 + $0xa0] sm:$0xff]  ;;  %vm5856_vm2 = vcmask 1041409  }
 0xdf0   :  { %v5211_v47 = vsel %vm2368_vm3, %v5209_v26, %v5164_v29 }
 0xdf1   :  { %v5166_v31 = vpop.permute.xlu0 %5165 }
 0xdf2   :  { %v5212_v53 = vsel %vm2368_vm3, %v5210_v59, %v5166_v31  ;;  %v6248_v31 = vld [vmem:[%s9010_s7 + $0xb0] sm:$0xff]  ;;  %v6254_v59 = vld [vmem:[%s9010_s7 + $0xe0] sm:$0xff] }
 0xdf3   :  { %v7003_v26 = vpack.c.bf16 %v6248_v31, %v6246_v28  ;;  %v6286_v28 = vld [vmem:[%s9012_s9 + $0x1c8] sm:$0xff] }
 0xdf8   :  { %v5174_v6 = vpop.permute.xlu0 %5173 }
 0xdf9   :  { %v5214_v21 = vsel %vm2371_vm4, %v5212_v53, %v5174_v6 }
 0xdfc   :  { %v5172_v20 = vpop.permute.xlu1 %5171 }
 0xdfd   :  { %v5213_v57 = vsel %vm2371_vm4, %v5211_v47, %v5172_v20  ;;  %v6253_v47 = vld [vmem:[%s9010_s7 + $0xd8] sm:$0xff] }
 0xdfe   :  { %v7005_v6 = vpack.c.bf16 %v6253_v47, %v6251_v45  ;;  %v6270_v45 = vld [vmem:[%s9012_s9 + $0x148] sm:$0xff] }
 0xe00   :  { %v5182_v2 = vpop.permute.xlu0 %5181 }
 0xe01   :  { %v5180_v34 = vpop.permute.xlu1 %5179  ;;  %v5216_v33 = vsel %vm2374_vm5, %v5214_v21, %v5182_v2 }
 0xe02   :  { %v5215_v32 = vsel %vm2374_vm5, %v5213_v57, %v5180_v34  ;;  %v6244_v34 = vld [vmem:[%s9010_s7 + $0x90] sm:$0xff] }
 0xe03   :  { %v6999_v29 = vpack.c.bf16 %v6244_v34, %v6242_v41  ;;  %v6252_v57 = vld [vmem:[%s9010_s7 + $0xd0] sm:$0xff]  ;;  %v6284_v41 = vld [vmem:[%s9012_s9 + $0x1b8] sm:$0xff] }
 0xe07   :  { %v5190_v24 = vpop.permute.xlu1 %5189 }
 0xe08   :  { %v5218_v13 = vsel %vm2377_vm6, %v5216_v33, %v5190_v24  ;;  %v6247_v24 = vld [vmem:[%s9010_s7 + $0xa8] sm:$0xff] }
 0xe0b   :  { %v5188_v35 = vpop.permute.xlu1 %5187 }
 0xe0c   :  { %v5217_v11 = vsel %vm2377_vm6, %v5215_v32, %v5188_v35  ;;  %v7001_v35 = vpack.c.bf16 %v6249_v7, %v6247_v24  ;;  %v6255_v32 = vld [vmem:[%s9010_s7 + $0xe8] sm:$0xff]  ;;  %v6268_v24 = vld [vmem:[%s9012_s9 + $0x138] sm:$0xff] }
 0xe0f   :  { %v5196_v8 = vpop.permute.xlu1 %5195 }
 0xe10   :  { %v5219_v4 = vsel %vm2380_vm7, %v5217_v11, %v5196_v8  ;;  %v6250_v8 = vld [vmem:[%s9010_s7 + $0xc0] sm:$0xff]  ;;  %v6257_v11 = vld [vmem:[%s9010_s7 + $0xf8] sm:$0xff] }
 0xe11   :  { %v7007_v27 = vpack.c.bf16 %v6252_v57, %v6250_v8  ;;  %v7009_v2 = vpack.c.bf16 %v6257_v11, %v6255_v32  ;;  %v6288_v8 = vld [vmem:[%s9012_s9 + $0x1d8] sm:$0xff] }
 0xe12   :  { %v6272_v32 = vld [vmem:[%s9012_s9 + $0x158] sm:$0xff] }
 0xe15   :  { %v5204_v0 = vpop.permute.xlu1 %5203 }
 0xe16   :  { %v5221_v60 = vsel %vm2383_vm8, %v5219_v4, %v5204_v0  ;;  %v6256_v4 = vld [vmem:[%s9010_s7 + $0xf0] sm:$0xff] }
 0xe17   :  { %6848 = vmatmul.mubr.msk.f32.vlgmr.msra.gmra.mrb[64].mxu1 %vm141_vm0, %v5221_v60  ;;  %v7011_v0 = vpack.c.bf16 %v6256_v4, %v6254_v59  ;;  %v6289_v59 = vld [vmem:[%s9012_s9 + $0x1e0] sm:$0xff] }
 0xe18   :  { %5515 = vmatprep.mubr.f32.mxu1 %v7399_v22 }
 0xe19   :  { %v5198_v14 = vpop.permute.xlu0 %5197 }
 0xe1a   :  { %v5206_v56 = vpop.permute.xlu1 %5205  ;;  %v5220_v37 = vsel %vm2380_vm7, %v5218_v13, %v5198_v14 }
 0xe1b   :  { %v5222_v63 = vsel %vm2383_vm8, %v5220_v37, %v5206_v56  ;;  %v5406_v56 = vrot.slane %v8635_v40, %v7643_v49 }
 0xe1c   :  { %6867 = vmatmul.mubr.msk.f32.vlgmr.msra.gmra.mrb[52].mxu0 %vm141_vm0, %v5222_v63 }
 0xeea   :  { %v5292_v62 = vpop.f32.mrb[64].mxu1 }
 0xeeb   :  { %v5373_v46 = vadd.f32 %v5372_v10, %v5292_v62  ;;  %v6849_v50 = vpop.f32.mrb[65].mxu1 }
 0xeed   :  { %v5375_v15 = vadd.f32 %v5373_v46, %v8273_v9 }
 0xeef   :  { %v5365_v16 = vpop.f32.mrb[52].mxu0  ;;  %v5377_v52 = vsel %vm141_vm0, %v5375_v15, 0.0 }
 0xef0   :  { %v5374_v43 = vadd.f32 %v5372_v10, %v5365_v16  ;;  %5378 = vadd.xlane.f32.xlu0 %v5377_v52  ;;  %v6868_v17 = vpop.f32.mrb[53].mxu0  ;;  %v5412_v10 = vrot.slane %v8635_v40, %v2575_v58  ;;  %v6277_v58 = vld [vmem:[%s9012_s9 + $0x180] sm:$0xff] }
 0xef2   :  { %v5376_v19 = vadd.f32 %v5374_v43, %v8278_v5  ;;  %v6243_v5 = vld [vmem:[%s9010_s7 + $0x88] sm:$0xff] }
 0xef3   :  { %v6997_v20 = vpack.c.bf16 %v6245_v12, %v6243_v5  ;;  %v6278_v43 = vld [vmem:[%s9012_s9 + $0x188] sm:$0xff] }
 0xef4   :  { %v5380_v36 = vsel %vm141_vm0, %v5376_v19, 0.0  ;;  %v7013_v17 = vpack.c.bf16 %v6278_v43, %v6277_v58  ;;  %v6266_v5 = vld [vmem:[%s9012_s9 + $0x128] sm:$0xff] }
 0xef5   :  { %5381 = vadd.xlane.f32.xlu1 %v5380_v36  ;;  %6998 = vmatprep.subr.bf16.mxu1 %v6997_v20  ;;  %v6262_v36 = vld [vmem:[%s9012_s9 + $0x108] sm:$0xff]  ;;  %v6283_v20 = vld [vmem:[%s9012_s9 + $0x1b0] sm:$0xff] }
 0xef6   :  { %7000 = vmatpush1.bf16.msra.mxu1 %v6999_v29  ;;  %7014 = vmatprep.subr.bf16.mxu0 %v7013_v17  ;;  %v7025_v34 = vpack.c.bf16 %v6284_v41, %v6283_v20  ;;  %v6267_v29 = vld [vmem:[%s9012_s9 + $0x130] sm:$0xff] }
 0xef7   :  { %7002 = vmatprep.subr.bf16.mxu1 %v7001_v35  ;;  %v7027_v7 = vpack.c.bf16 %v6268_v24, %v6267_v29  ;;  %v6285_v35 = vld [vmem:[%s9012_s9 + $0x1c0] sm:$0xff] }
 0xef8   :  { %v7029_v31 = vpack.c.bf16 %v6286_v28, %v6285_v35 }
 0xefa   :  { %7004 = vmatpush1.bf16.msra.mxu1 %v7003_v26  ;;  %v6269_v26 = vld [vmem:[%s9012_s9 + $0x140] sm:$0xff] }
 0xefb   :  { %7006 = vmatprep.subr.bf16.mxu1 %v7005_v6  ;;  %v7031_v47 = vpack.c.bf16 %v6270_v45, %v6269_v26  ;;  %v6287_v6 = vld [vmem:[%s9012_s9 + $0x1d0] sm:$0xff] }
 0xefc   :  { %v7033_v57 = vpack.c.bf16 %v6288_v8, %v6287_v6 }
 0xefe   :  { %7008 = vmatpush1.bf16.msra.mxu1 %v7007_v27  ;;  %v6271_v27 = vld [vmem:[%s9012_s9 + $0x150] sm:$0xff] }
 0xeff   :  { %7010 = vmatprep.subr.bf16.mxu1 %v7009_v2  ;;  %v7035_v11 = vpack.c.bf16 %v6272_v32, %v6271_v27  ;;  %v6290_v2 = vld [vmem:[%s9012_s9 + $0x1e8] sm:$0xff] }
 0xf00   :  { %v7037_v4 = vpack.c.bf16 %v6290_v2, %v6289_v59 }
 0xf02   :  { %7012 = vmatpush1.bf16.msra.mxu1 %v7011_v0  ;;  %v6273_v0 = vld [vmem:[%s9012_s9 + $0x160] sm:$0xff] }
 0xf7d   :  { %v5379_v18 = vpop.xlane.xlu0 %5378 }
 0xf7e   :  { %v5383_v51 = vmul.f32 0.015625, %v5379_v18 }
 0xf80   :  { %v5385_v61 = vsub.f32 %v5375_v15, %v5383_v51  ;;  %v6280_v51 = vld [vmem:[%s9012_s9 + $0x198] sm:$0xff] }
 0xf82   :  { %v5382_v48 = vpop.xlane.xlu1 %5381  ;;  %v5387_v44 = vmul.f32 %v5385_v61, %v5385_v61 }
 0xf83   :  { %v5384_v54 = vmul.f32 0.015625, %v5382_v48  ;;  %v6263_v48 = vld [vmem:[%s9012_s9 + $0x110] sm:$0xff] }
 0xf84   :  { %v5389_v42 = vsel %vm141_vm0, %v5387_v44, 0.0  ;;  %v6264_v44 = vld [vmem:[%s9012_s9 + $0x118] sm:$0xff] }
 0xf85   :  { %v5386_v9 = vsub.f32 %v5376_v19, %v5384_v54  ;;  %5390 = vadd.xlane.f32.xlu0 %v5389_v42  ;;  %v6261_v19 = vld [vmem:[%s9012_s9 + $0x100] sm:$0xff]  ;;  %v7019_v54 = vpack.c.bf16 %v6264_v44, %v6263_v48 }
 0xf86   :  { %v7015_v18 = vpack.c.bf16 %v6262_v36, %v6261_v19  ;;  %v6281_v42 = vld [vmem:[%s9012_s9 + $0x1a0] sm:$0xff] }
 0xf87   :  { %v5388_v23 = vmul.f32 %v5386_v9, %v5386_v9 }
 0xf88   :  { %7016 = vmatpush3.bf16.msra.mxu0 %v7015_v18 }
 0xf89   :  { %v5392_v3 = vsel %vm141_vm0, %v5388_v23, 0.0 }
 0xf8a   :  { %5393 = vadd.xlane.f32.xlu0 %v5392_v3  ;;  %v6265_v3 = vld [vmem:[%s9012_s9 + $0x120] sm:$0xff] }
 0xf8b   :  { %v7023_v12 = vpack.c.bf16 %v6266_v5, %v6265_v3 }
0x1012   :  { %v5391_v53 = vpop.xlane.xlu0 %5390 }
0x1013   :  { %v5395_v60 = vmul.f32 0.015625, %v5391_v53  ;;  %v6274_v53 = vld [vmem:[%s9012_s9 + $0x168] sm:$0xff] }
0x1015   :  { %v5397_v21 = vadd.f32 1e-06, %v5395_v60  ;;  %v7039_v60 = vpack.c.bf16 %v6274_v53, %v6273_v0 }
0x1017   :  { %7294 = vrsqrt.f32 %v5397_v21  ;;  %v5394_v33 = vpop.xlane.xlu0 %5393  ;;  %v6291_v21 = vld [vmem:[%s9012_s9 + $0x1f0] sm:$0xff] }
0x1018   :  { %v5396_v13 = vmul.f32 0.015625, %v5394_v33  ;;  %v6292_v33 = vld [vmem:[%s9012_s9 + $0x1f8] sm:$0xff] }
0x101a   :  { %v5398_v14 = vadd.f32 1e-06, %v5396_v13  ;;  %v7041_v13 = vpack.c.bf16 %v6292_v33, %v6291_v21 }
0x101c   :  { %7296 = vrsqrt.f32 %v5398_v14  ;;  %v6275_v14 = vld [vmem:[%s9012_s9 + $0x170] sm:$0xff] }
0x1021   :  { %v7295_v37 = vpop.eup %7294 }
0x1022   :  { %v5401_v63 = vmul.f32 %v7295_v37, %v5385_v61 }
0x1024   :  { %v5407_v62 = vmul.f32 %v5406_v56, %v5401_v63  ;;  %v6258_v63 = vld [vmem:[%s9011_s8 + $0x2] sm:$0x3] }
0x1026   :  { %v7297_v46 = vpop.eup %7296  ;;  %v8698_v50 = vadd.f32 %v5412_v10, %v5407_v62  ;;  %v5442_v62 = vrot.slane %v6258_v63, %v7643_v49 }
0x1027   :  { %v5402_v15 = vmul.f32 %v7297_v46, %v5386_v9  ;;  %v6282_v9 = vld [vmem:[%s9012_s9 + $0x1a8] sm:$0xff] }
0x1028   :  { %6259 = vmatmul.mubr.msk.f32.vlgmr.msra.gmra.mrb[66].mxu1 %vm141_vm0, %v8698_v50  ;;  %v7021_v23 = vpack.c.bf16 %v6282_v9, %v6281_v42 }
0x1029   :  { %5521 = vmatprep.mubr.f32.mxu1 %v7399_v22  ;;  %v5408_v16 = vmul.f32 %v5406_v56, %v5402_v15  ;;  %v6276_v56 = vld [vmem:[%s9012_s9 + $0x178] sm:$0xff] }
0x102a   :  { %v7043_v37 = vpack.c.bf16 %v6276_v56, %v6275_v14 }
0x102b   :  { %v8703_v52 = vadd.f32 %v5412_v10, %v5408_v16  ;;  %v5438_v10 = vrot.slane %v6258_v63, %v7603_v39 }
0x102d   :  { %6260 = vmatmul.mubr.msk.f32.gmra.mrb[68].mxu1 %vm141_vm0, %v8703_v52 }
0x102e   :  { %5974 = vmatprep.mubr.f32.mxu1 %v7399_v22  ;;  %v6279_v22 = vld [vmem:[%s9012_s9 + $0x190] sm:$0xff] }
0x102f   :  { %v7017_v61 = vpack.c.bf16 %v6280_v51, %v6279_v22 }
0x1031   :  { %7018 = vmatprep.subr.bf16.mxu0 %v7017_v61 }
0x1032   :  { %7020 = vmatpush3.bf16.msra.mxu0 %v7019_v54 }
0x1033   :  { %7022 = vmatprep.subr.bf16.mxu0 %v7021_v23 }
0x1036   :  { %7024 = vmatpush3.bf16.msra.mxu0 %v7023_v12 }
0x1037   :  { %7026 = vmatprep.subr.bf16.mxu0 %v7025_v34 }
0x103a   :  { %7028 = vmatpush3.bf16.msra.mxu0 %v7027_v7 }
0x103b   :  { %7030 = vmatprep.subr.bf16.mxu0 %v7029_v31 }
0x103e   :  { %7032 = vmatpush3.bf16.msra.mxu0 %v7031_v47 }
0x103f   :  { %7034 = vmatprep.subr.bf16.mxu0 %v7033_v57 }
0x1042   :  { %7036 = vmatpush3.bf16.msra.mxu0 %v7035_v11 }
0x1043   :  { %7038 = vmatprep.subr.bf16.mxu0 %v7037_v4 }
0x1046   :  { %7040 = vmatpush3.bf16.msra.mxu0 %v7039_v60 }
0x1047   :  { %7042 = vmatprep.subr.bf16.mxu0 %v7041_v13 }
0x104a   :  { %7044 = vmatpush3.bf16.msra.mxu0 %v7043_v37 }
0x10fb   :  { %v5517_v46 = vpop.f32.mrb[66].mxu1 }
0x10fc   :  { %v8809_v15 = vadd.f32 %v5517_v46, %v5438_v10  ;;  %v5519_v16 = vpop.f32.mrb[67].mxu1 }
0x10fd   :  { %v8811_v58 = vadd.f32 %v5519_v16, %v5442_v62 }
0x10fe   :  { %v8814_v43 = vmul.f32 0.70710677, %v8809_v15 }
0x10ff   :  { %v8817_v17 = vmul.f32 0.70710677, %v8811_v58 }
0x1100   :  { %v5544_v19 = vand.u32 2147483647, %v8814_v43  ;;  %v5523_v36 = vpop.f32.mrb[68].mxu1  ;;  %vm5536_vm13 = vcmp.ge.f32.partialorder %v8814_v43, 0.0 }
0x1101   :  { %v5545_v18 = vand.u32 2147483647, %v8817_v17  ;;  %v8821_v22 = vadd.f32 %v5523_v36, %v5438_v10  ;;  %v5525_v51 = vpop.f32.mrb[69].mxu1  ;;  %vm5537_vm14 = vcmp.ge.f32.partialorder %v8817_v17, 0.0 }
0x1102   :  { %v5548_v61 = vmul.f32 0.3275911, %v5544_v19  ;;  %v8823_v48 = vadd.f32 %v5525_v51, %v5442_v62  ;;  %v5596_v34 = vsub.f32 0.0, %v5544_v19 }
0x1103   :  { %v5549_v44 = vmul.f32 0.3275911, %v5545_v18  ;;  %v8826_v54 = vmul.f32 0.70710677, %v8821_v22  ;;  %v5597_v24 = vsub.f32 0.0, %v5545_v18 }
0x1104   :  { %v5552_v42 = vadd.f32 1.0, %v5548_v61  ;;  %v8829_v9 = vmul.f32 0.70710677, %v8823_v48  ;;  %v5600_v35 = vmul.f32 %v5596_v34, %v5544_v19 }
0x1105   :  { %v5553_v23 = vadd.f32 1.0, %v5549_v44  ;;  %v5546_v3 = vand.u32 2147483647, %v8826_v54  ;;  %v5601_v26 = vmul.f32 %v5597_v24, %v5545_v18  ;;  %vm5538_vm15 = vcmp.ge.f32.partialorder %v8826_v54, 0.0 }
0x1106   :  { %7298 = vrcp.f32 %v5552_v42  ;;  %v5547_v12 = vand.u32 2147483647, %v8829_v9  ;;  %v5604_v8 = vmul.f32 1.442695, %v5600_v35  ;;  %vm5539_vm1 = vcmp.ge.f32.partialorder %v8829_v9, 0.0 }
0x1107   :  { %7300 = vrcp.f32 %v5553_v23  ;;  %v5550_v5 = vmul.f32 0.3275911, %v5546_v3  ;;  %v5598_v45 = vsub.f32 0.0, %v5546_v3  ;;  %v5606_v59 = vmul.f32 1.442695, %v5601_v26 }
0x1108   :  { %v5551_v41 = vmul.f32 0.3275911, %v5547_v12  ;;  %v5599_v57 = vsub.f32 0.0, %v5547_v12 }
0x1109   :  { %v5554_v20 = vadd.f32 1.0, %v5550_v5  ;;  %v5602_v2 = vmul.f32 %v5598_v45, %v5546_v3 }
0x110a   :  { %v5555_v29 = vadd.f32 1.0, %v5551_v41  ;;  %v5603_v21 = vmul.f32 %v5599_v57, %v5547_v12 }
0x110b   :  { %7302 = vrcp.f32 %v5554_v20  ;;  %v5608_v56 = vmul.f32 1.442695, %v5602_v2 }
0x110c   :  { %7304 = vrcp.f32 %v5555_v29  ;;  %v5610_v16 = vmul.f32 1.442695, %v5603_v21 }
0x110d   :  { %7306 = vpow2.f32 %v5604_v8  ;;  %v5540_v8 = vsel %vm5536_vm13, 1.0, %v7416_v55 }
0x110e   :  { %7308 = vpow2.f32 %v5606_v59 }
0x110f   :  { %7310 = vpow2.f32 %v5608_v56 }
0x1110   :  { %v7299_v7 = vpop.eup %7298  ;;  %7312 = vpow2.f32 %v5610_v16 }
0x1111   :  { %v7301_v28 = vpop.eup %7300  ;;  %v5560_v31 = vmul.f32 1.0614054, %v7299_v7 }
0x1112   :  { %v5561_v47 = vmul.f32 1.0614054, %v7301_v28 }
0x1113   :  { %v5564_v6 = vadd.f32 -1.4531521, %v5560_v31 }
0x1114   :  { %v5565_v27 = vadd.f32 -1.4531521, %v5561_v47 }
0x1115   :  { %v7303_v32 = vpop.eup %7302  ;;  %v5568_v11 = vmul.f32 %v7299_v7, %v5564_v6 }
0x1116   :  { %v5569_v4 = vmul.f32 %v7301_v28, %v5565_v27  ;;  %v5562_v0 = vmul.f32 1.0614054, %v7303_v32  ;;  %v7305_v60 = vpop.eup %7304 }
0x1117   :  { %v5572_v53 = vadd.f32 1.4214138, %v5568_v11  ;;  %v5563_v37 = vmul.f32 1.0614054, %v7305_v60  ;;  %v7307_v41 = vpop.eup %7306 }
0x1118   :  { %v5573_v33 = vadd.f32 1.4214138, %v5569_v4  ;;  %v5566_v13 = vadd.f32 -1.4531521, %v5562_v0  ;;  %v7309_v24 = vpop.eup %7308 }
0x1119   :  { %v5576_v14 = vmul.f32 %v7299_v7, %v5572_v53  ;;  %v5567_v46 = vadd.f32 -1.4531521, %v5563_v37  ;;  %v5529_v53 = vmul.f32 0.5, %v8811_v58  ;;  %v5531_v58 = vmul.f32 0.5, %v8823_v48 }
0x111a   :  { %v5577_v63 = vmul.f32 %v7301_v28, %v5573_v33  ;;  %v5570_v10 = vmul.f32 %v7303_v32, %v5566_v13  ;;  %v5528_v13 = vmul.f32 0.5, %v8809_v15  ;;  %v5530_v15 = vmul.f32 0.5, %v8821_v22 }
0x111b   :  { %v5580_v62 = vadd.f32 -0.28449672, %v5576_v14  ;;  %v5571_v51 = vmul.f32 %v7305_v60, %v5567_v46 }
0x111c   :  { %v5581_v19 = vadd.f32 -0.28449672, %v5577_v63  ;;  %v5574_v36 = vadd.f32 1.4214138, %v5570_v10  ;;  %v5543_v10 = vsel %vm5539_vm1, 1.0, %v7416_v55 }
0x111d   :  { %v5584_v18 = vmul.f32 %v7299_v7, %v5580_v62  ;;  %v5575_v23 = vadd.f32 1.4214138, %v5571_v51 }
0x111e   :  { %v5585_v61 = vmul.f32 %v7301_v28, %v5581_v19  ;;  %v5578_v44 = vmul.f32 %v7303_v32, %v5574_v36  ;;  %v5668_v36 = vrot.slane %v8635_v40, %v2828_v1 }
0x111f   :  { %v5588_v42 = vadd.f32 0.2548296, %v5584_v18  ;;  %v5579_v20 = vmul.f32 %v7305_v60, %v5575_v23 }
0x1120   :  { %v5589_v3 = vadd.f32 0.2548296, %v5585_v61  ;;  %v5582_v5 = vadd.f32 -0.28449672, %v5578_v44 }
0x1121   :  { %v5592_v12 = vmul.f32 %v7299_v7, %v5588_v42  ;;  %v5583_v31 = vadd.f32 -0.28449672, %v5579_v20  ;;  %v7311_v7 = vpop.eup %7310 }
0x1122   :  { %v5593_v34 = vmul.f32 %v7301_v28, %v5589_v3  ;;  %v5586_v29 = vmul.f32 %v7303_v32, %v5582_v5  ;;  %v5541_v28 = vsel %vm5537_vm14, 1.0, %v7416_v55  ;;  %v7313_v17 = vpop.eup %7312 }
0x1123   :  { %v5612_v35 = vmul.f32 %v7307_v41, %v5592_v12  ;;  %v5587_v6 = vmul.f32 %v7305_v60, %v5583_v31 }
0x1124   :  { %v5613_v26 = vmul.f32 %v7309_v24, %v5593_v34  ;;  %v5590_v45 = vadd.f32 0.2548296, %v5586_v29 }
0x1125   :  { %v5616_v47 = vsub.f32 1.0, %v5612_v35  ;;  %v5591_v59 = vadd.f32 0.2548296, %v5587_v6 }
0x1126   :  { %v5617_v57 = vsub.f32 1.0, %v5613_v26  ;;  %v5594_v27 = vmul.f32 %v7303_v32, %v5590_v45  ;;  %v5542_v32 = vsel %vm5538_vm15, 1.0, %v7416_v55 }
0x1127   :  { %v5620_v11 = vmul.f32 %v5616_v47, %v5540_v8  ;;  %v5595_v0 = vmul.f32 %v7305_v60, %v5591_v59 }
0x1128   :  { %v5621_v43 = vmul.f32 %v5617_v57, %v5541_v28  ;;  %v5614_v2 = vmul.f32 %v7311_v7, %v5594_v27  ;;  %v5775_v57 = vrot.slane %v8635_v40, %v2935_v30 }
0x1129   :  { %v5624_v4 = vadd.f32 1.0, %v5620_v11  ;;  %v5615_v14 = vmul.f32 %v7313_v17, %v5595_v0  ;;  %v5781_v11 = vrot.slane %v8635_v40, %v2941_v25 }
0x112a   :  { %v5625_v21 = vadd.f32 1.0, %v5621_v43  ;;  %v5618_v33 = vsub.f32 1.0, %v5614_v2 }
0x112b   :  { %v5628_v63 = vmul.f32 %v5624_v4, %v5528_v13  ;;  %v5619_v54 = vsub.f32 1.0, %v5615_v14 }
0x112c   :  { %v5629_v56 = vmul.f32 %v5625_v21, %v5529_v53  ;;  %v5622_v37 = vmul.f32 %v5618_v33, %v5542_v32 }
0x112d   :  { %v5623_v60 = vmul.f32 %v5619_v54, %v5543_v10  ;;  %v5866_v54 = vld [vmem:[%s9014_s11] sm:$0xff] }
0x112e   :  { %5733 = vmatprep.mubr.f32.mxu0 %v5629_v56  ;;  %v5626_v62 = vadd.f32 1.0, %v5622_v37  ;;  %v5867_v37 = vld [vmem:[%s9014_s11 + $0x8] sm:$0xff] }
0x112f   :  { %5734 = vmatmul.mubr.f32.vlgmr.msra.gmra.mrb[54].mxu0 %v5628_v63  ;;  %v5627_v46 = vadd.f32 1.0, %v5623_v60  ;;  %v5869_v63 = vld [vmem:[%s9014_s11 + $0x18] sm:$0xff]  ;;  %v5868_v60 = vld [vmem:[%s9014_s11 + $0x10] sm:$0xff] }
0x1130   :  { %v5630_v19 = vmul.f32 %v5626_v62, %v5530_v15  ;;  %v7045_v10 = vpack.c.bf16 %v5869_v63, %v5867_v37  ;;  %v5871_v62 = vld [vmem:[%s9014_s11 + $0x28] sm:$0xff] }
0x1131   :  { %v5631_v16 = vmul.f32 %v5627_v46, %v5531_v58  ;;  %v5873_v58 = vld [vmem:[%s9014_s11 + $0x38] sm:$0xff]  ;;  %v7047_v46 = vpack.c.bf16 %v5868_v60, %v5866_v54 }
0x1132   :  { %v7049_v15 = vpack.c.bf16 %v5873_v58, %v5871_v62  ;;  %7046 = vmatprep.subr.bf16.mxu1 %v7045_v10 }
0x1133   :  { %5738 = vmatprep.mubr.f32.mxu0 %v5631_v16  ;;  %v5870_v16 = vld [vmem:[%s9014_s11 + $0x20] sm:$0xff]  ;;  %7048 = vmatpush1.bf16.msra.mxu1 %v7047_v46 }
0x1134   :  { %5739 = vmatmul.mubr.f32.gmra.mrb[56].mxu0 %v5630_v19  ;;  %v5872_v19 = vld [vmem:[%s9014_s11 + $0x30] sm:$0xff]  ;;  %7050 = vmatprep.subr.bf16.mxu1 %v7049_v15 }
0x1202   :  { %v6512_v9 = vpop.f32.mrb[54].mxu0 }
0x1203   :  { %v6513_v18 = vpop.f32.mrb[55].mxu0 }
0x1204   :  { %v6514_v55 = vadd.f32 %v6513_v18, %v6512_v9  ;;  %v5875_v9 = vld [vmem:[%s9014_s11 + $0x48] sm:$0xff]  ;;  %v7051_v18 = vpack.c.bf16 %v5872_v19, %v5870_v16 }
0x1206   :  { %v5736_v51 = vadd.f32 %v6514_v55, %v5668_v36  ;;  %7052 = vmatpush1.bf16.msra.mxu1 %v7051_v18 }
0x1207   :  { %v6515_v44 = vpop.f32.mrb[56].mxu0 }
0x1208   :  { %v5744_v61 = vadd.f32 %v5736_v51, %v8698_v50  ;;  %v6516_v42 = vpop.f32.mrb[57].mxu0  ;;  %v5874_v51 = vld [vmem:[%s9014_s11 + $0x40] sm:$0xff] }
0x1209   :  { %v6517_v23 = vadd.f32 %v6516_v42, %v6515_v44  ;;  %v5879_v44 = vld [vmem:[%s9014_s11 + $0x68] sm:$0xff]  ;;  %v5881_v42 = vld [vmem:[%s9014_s11 + $0x78] sm:$0xff] }
0x120a   :  { %v5746_v48 = vsel %vm141_vm0, %v5744_v61, 0.0 }
0x120b   :  { %5747 = vadd.xlane.f32.xlu1 %v5746_v48  ;;  %v5741_v22 = vadd.f32 %v6517_v23, %v5668_v36  ;;  %v5877_v36 = vld [vmem:[%s9014_s11 + $0x58] sm:$0xff]  ;;  %v7057_v23 = vpack.c.bf16 %v5881_v42, %v5879_v44  ;;  %v6007_v44 = vld [vmem:[#allocation5 + $0x80] sm:$0xff]  ;;  %v6008_v42 = vld [vmem:[#allocation5 + $0x88] sm:$0xff] }
0x120c   :  { %v7053_v55 = vpack.c.bf16 %v5877_v36, %v5875_v9 }
0x120d   :  { %v5745_v3 = vadd.f32 %v5741_v22, %v8703_v52  ;;  %v5878_v22 = vld [vmem:[%s9014_s11 + $0x60] sm:$0xff] }
0x120e   :  { %7054 = vmatprep.subr.bf16.mxu1 %v7053_v55 }
0x120f   :  { %v5749_v5 = vsel %vm141_vm0, %v5745_v3, 0.0 }
0x1210   :  { %5750 = vadd.xlane.f32.xlu0 %v5749_v5  ;;  %v5883_v5 = vld [vmem:[%s9014_s11 + $0x88] sm:$0xff] }
0x1298   :  { %v5748_v12 = vpop.xlane.xlu1 %5747 }
0x1299   :  { %v5752_v20 = vmul.f32 0.015625, %v5748_v12  ;;  %v5885_v12 = vld [vmem:[%s9014_s11 + $0x98] sm:$0xff] }
0x129b   :  { %v5754_v1 = vsub.f32 %v5744_v61, %v5752_v20  ;;  %v5876_v61 = vld [vmem:[%s9014_s11 + $0x50] sm:$0xff] }
0x129c   :  { %v7055_v48 = vpack.c.bf16 %v5876_v61, %v5874_v51 }
0x129d   :  { %v5756_v41 = vmul.f32 %v5754_v1, %v5754_v1  ;;  %v5751_v34 = vpop.xlane.xlu0 %5750 }
0x129e   :  { %v5753_v50 = vmul.f32 0.015625, %v5751_v34  ;;  %7056 = vmatpush1.bf16.msra.mxu1 %v7055_v48  ;;  %v5884_v34 = vld [vmem:[%s9014_s11 + $0x90] sm:$0xff]  ;;  %v5991_v48 = vld [vmem:[#allocation5] sm:$0xff] }
0x129f   :  { %v5758_v29 = vsel %vm141_vm0, %v5756_v41, 0.0  ;;  %7058 = vmatprep.subr.bf16.mxu1 %v7057_v23  ;;  %v5882_v41 = vld [vmem:[%s9014_s11 + $0x80] sm:$0xff] }
0x12a0   :  { %5759 = vadd.xlane.f32.xlu1 %v5758_v29  ;;  %v5755_v24 = vsub.f32 %v5745_v3, %v5753_v50  ;;  %v5880_v3 = vld [vmem:[%s9014_s11 + $0x70] sm:$0xff]  ;;  %v5887_v29 = vld [vmem:[%s9014_s11 + $0xa8] sm:$0xff]  ;;  %v5889_v50 = vld [vmem:[%s9014_s11 + $0xb8] sm:$0xff] }
0x12a1   :  { %v7059_v20 = vpack.c.bf16 %v5880_v3, %v5878_v22  ;;  %v7077_v3 = vpack.c.bf16 %v6008_v42, %v6007_v44  ;;  %v6021_v42 = vld [vmem:[#allocation5 + $0xf0] sm:$0xff] }
0x12a2   :  { %v5757_v35 = vmul.f32 %v5755_v24, %v5755_v24 }
0x12a3   :  { %7060 = vmatpush1.bf16.msra.mxu1 %v7059_v20  ;;  %v6010_v20 = vld [vmem:[#allocation5 + $0x98] sm:$0xff]  ;;  %7078 = vmatprep.subr.bf16.mxu0 %v7077_v3 }
0x12a4   :  { %v5761_v31 = vsel %vm141_vm0, %v5757_v35, 0.0  ;;  %v7065_v35 = vpack.c.bf16 %v5889_v50, %v5887_v29  ;;  %v5994_v29 = vld [vmem:[#allocation5 + $0x18] sm:$0xff]  ;;  %v6011_v50 = vld [vmem:[#allocation5 + $0xa0] sm:$0xff] }
0x12a5   :  { %5762 = vadd.xlane.f32.xlu0 %v5761_v31  ;;  %v5886_v31 = vld [vmem:[%s9014_s11 + $0xa0] sm:$0xff] }
0x132d   :  { %v5760_v26 = vpop.xlane.xlu1 %5759 }
0x132e   :  { %v5764_v45 = vmul.f32 0.015625, %v5760_v26  ;;  %v5888_v26 = vld [vmem:[%s9014_s11 + $0xb0] sm:$0xff] }
0x1330   :  { %v5766_v52 = vadd.f32 1e-06, %v5764_v45  ;;  %v5891_v45 = vld [vmem:[%s9014_s11 + $0xc8] sm:$0xff] }
0x1332   :  { %7314 = vrsqrt.f32 %v5766_v52  ;;  %v5763_v47 = vpop.xlane.xlu0 %5762  ;;  %v5893_v52 = vld [vmem:[%s9014_s11 + $0xd8] sm:$0xff] }
0x1333   :  { %v5765_v6 = vmul.f32 0.015625, %v5763_v47  ;;  %v7067_v47 = vpack.c.bf16 %v5888_v26, %v5886_v31  ;;  %v6012_v26 = vld [vmem:[#allocation5 + $0xa8] sm:$0xff] }
0x1335   :  { %v5767_v8 = vadd.f32 1e-06, %v5765_v6  ;;  %v7069_v6 = vpack.c.bf16 %v5893_v52, %v5891_v45 }
0x1337   :  { %7316 = vrsqrt.f32 %v5767_v8  ;;  %v5890_v8 = vld [vmem:[%s9014_s11 + $0xc0] sm:$0xff] }
0x133c   :  { %v7315_v27 = vpop.eup %7314 }
0x133d   :  { %v5770_v7 = vmul.f32 %v7315_v27, %v5754_v1  ;;  %v7061_v1 = vpack.c.bf16 %v5885_v12, %v5883_v5  ;;  %v5895_v27 = vld [vmem:[%s9014_s11 + $0xe8] sm:$0xff]  ;;  %v6009_v12 = vld [vmem:[#allocation5 + $0x90] sm:$0xff] }
0x133e   :  { %v5992_v5 = vld [vmem:[#allocation5 + $0x8] sm:$0xff] }
0x133f   :  { %v5776_v28 = vmul.f32 %v5775_v57, %v5770_v7  ;;  %7062 = vmatprep.subr.bf16.mxu1 %v7061_v1  ;;  %v5897_v7 = vld [vmem:[%s9014_s11 + $0xf8] sm:$0xff]  ;;  %v7079_v1 = vpack.c.bf16 %v5992_v5, %v5991_v48  ;;  %v5898_v5 = vld [vmem:[%s9015_s12] sm:$0x3] }
0x1340   :  { %v6022_v48 = vld [vmem:[#allocation5 + $0xf8] sm:$0xff] }
0x1341   :  { %v5782_v59 = vadd.f32 %v5781_v11, %v5776_v28  ;;  %v7317_v43 = vpop.eup %7316  ;;  %v7073_v28 = vpack.c.bf16 %v5897_v7, %v5895_v27  ;;  %7080 = vmatpush3.bf16.msra.mxu0 %v7079_v1  ;;  %v5996_v27 = vld [vmem:[#allocation5 + $0x28] sm:$0xff]  ;;  %v6013_v7 = vld [vmem:[#allocation5 + $0xb0] sm:$0xff] }
0x1342   :  { %v5771_v4 = vmul.f32 %v7317_v43, %v5755_v24  ;;  %v7063_v24 = vpack.c.bf16 %v5884_v34, %v5882_v41  ;;  %v5896_v43 = vld [vmem:[%s9014_s11 + $0xf0] sm:$0xff]  ;;  %v7081_v41 = vpack.c.bf16 %v6010_v20, %v6009_v12  ;;  %v5903_v12 = vrot.slane %v5898_v5, %v7603_v39 }
0x1343   :  { %v5785_v2 = vsel %vm141_vm0, %v5782_v59, 0.0  ;;  %v5993_v34 = vld [vmem:[#allocation5 + $0x10] sm:$0xff]  ;;  %v5907_v20 = vrot.slane %v5898_v5, %v7643_v49 }
0x1344   :  { %5786 = vadd.xlane.f32.xlu1 %v5785_v2  ;;  %v5777_v0 = vmul.f32 %v5775_v57, %v5771_v4  ;;  %7064 = vmatpush1.bf16.msra.mxu1 %v7063_v24  ;;  %v5892_v57 = vld [vmem:[%s9014_s11 + $0xd0] sm:$0xff]  ;;  %v7083_v45 = vpack.c.bf16 %v5994_v29, %v5993_v34 }
0x1345   :  { %7066 = vmatprep.subr.bf16.mxu1 %v7065_v35  ;;  %7082 = vmatprep.subr.bf16.mxu0 %v7081_v41 }
0x1346   :  { %v5783_v17 = vadd.f32 %v5781_v11, %v5777_v0  ;;  %v7071_v11 = vpack.c.bf16 %v5892_v57, %v5890_v8  ;;  %v7085_v8 = vpack.c.bf16 %v6012_v26, %v6011_v50  ;;  %v5995_v57 = vld [vmem:[#allocation5 + $0x20] sm:$0xff]  ;;  %7084 = vmatpush3.bf16.msra.mxu0 %v7083_v45 }
0x1348   :  { %v5788_v53 = vsel %vm141_vm0, %v5783_v17, 0.0  ;;  %7068 = vmatpush1.bf16.msra.mxu1 %v7067_v47  ;;  %7086 = vmatprep.subr.bf16.mxu0 %v7085_v8 }
0x1349   :  { %5789 = vadd.xlane.f32.xlu0 %v5788_v53  ;;  %7070 = vmatprep.subr.bf16.mxu1 %v7069_v6 }
0x134c   :  { %7072 = vmatpush1.bf16.msra.mxu1 %v7071_v11  ;;  %v6014_v11 = vld [vmem:[#allocation5 + $0xb8] sm:$0xff] }
0x134d   :  { %7074 = vmatprep.subr.bf16.mxu1 %v7073_v28 }
0x13d1   :  { %v5787_v21 = vpop.xlane.xlu1 %5786 }
0x13d2   :  { %v5791_v30 = vmul.f32 0.015625, %v5787_v21 }
0x13d4   :  { %v8862_v33 = vsub.f32 %v5782_v59, %v5791_v30  ;;  %v5894_v59 = vld [vmem:[%s9014_s11 + $0xe0] sm:$0xff] }
0x13d5   :  { %v7075_v2 = vpack.c.bf16 %v5896_v43, %v5894_v59 }
0x13d6   :  { %v5795_v38 = vmul.f32 %v8862_v33, %v8862_v33  ;;  %v5790_v25 = vpop.xlane.xlu0 %5789 }
0x13d7   :  { %v5792_v13 = vmul.f32 0.015625, %v5790_v25  ;;  %7076 = vmatpush1.bf16.msra.mxu1 %v7075_v2  ;;  %v7087_v2 = vpack.c.bf16 %v5996_v27, %v5995_v57 }
0x13d8   :  { %v5797_v40 = vsel %vm141_vm0, %v5795_v38, 0.0  ;;  %v5784_v38 = vld [vmem:[%s9013_s10] sm:$0x3] }
0x13d9   :  { %5798 = vadd.xlane.f32.xlu1 %v5797_v40  ;;  %v8867_v32 = vsub.f32 %v5783_v17, %v5792_v13  ;;  %v5814_v25 = vrot.slane %v5784_v38, %v7603_v39  ;;  %7088 = vmatpush3.bf16.msra.mxu0 %v7087_v2  ;;  %v6293_v39 = vld [vmem:[%s9017_s14] ss:$0 sm:$0xff] }
0x13db   :  { %v5796_v14 = vmul.f32 %v8867_v32, %v8867_v32 }
0x13dd   :  { %v5800_v56 = vsel %vm141_vm0, %v5796_v14, 0.0  ;;  %v5820_v14 = vrot.slane %v5784_v38, %v7643_v49  ;;  %v6015_v38 = vld [vmem:[#allocation5 + $0xc0] sm:$0xff] }
0x13de   :  { %5801 = vadd.xlane.f32.xlu0 %v5800_v56 }
0x1466   :  { %v5799_v4 = vpop.xlane.xlu1 %5798 }
0x1467   :  { %v5803_v0 = vmul.f32 0.015625, %v5799_v4 }
0x1469   :  { %v5805_v17 = vadd.f32 1e-05, %v5803_v0 }
0x146b   :  { %7318 = vrsqrt.f32 %v5805_v17  ;;  %v5802_v53 = vpop.xlane.xlu0 %5801 }
0x146c   :  { %v5804_v21 = vmul.f32 0.015625, %v5802_v53  ;;  %v7089_v53 = vpack.c.bf16 %v6014_v11, %v6013_v7 }
0x146e   :  { %v5806_v30 = vadd.f32 1e-05, %v5804_v21  ;;  %v5997_v21 = vld [vmem:[#allocation5 + $0x30] sm:$0xff]  ;;  %7090 = vmatprep.subr.bf16.mxu0 %v7089_v53 }
0x1470   :  { %7320 = vrsqrt.f32 %v5806_v30  ;;  %v5998_v30 = vld [vmem:[#allocation5 + $0x38] sm:$0xff] }
0x1475   :  { %v7319_v40 = vpop.eup %7318 }
0x1476   :  { %v5809_v13 = vmul.f32 %v7319_v40, %v8862_v33 }
0x1478   :  { %v5815_v56 = vmul.f32 %v5814_v25, %v5809_v13 }
0x147a   :  { %v5821_v37 = vadd.f32 %v5820_v14, %v5815_v56  ;;  %v7321_v63 = vpop.eup %7320  ;;  %v7091_v56 = vpack.c.bf16 %v5998_v30, %v5997_v21 }
0x147b   :  { %v5810_v60 = vmul.f32 %v7321_v63, %v8867_v32 }
0x147c   :  { %v5840_v54 = vsel %vm141_vm0, %v5821_v37, -inf  ;;  %v5823_v10 = vsel %vm141_vm0, %v5821_v37, 0.0  ;;  %7092 = vmatpush3.bf16.msra.mxu0 %v7091_v56 }
0x147d   :  { %v5841_v62 = vrot.slane %v5840_v54, 4  ;;  %v5824_v58 = vrot.slane %v5823_v10, 4  ;;  %v5816_v46 = vmul.f32 %v5814_v25, %v5810_v60  ;;  %v6016_v25 = vld [vmem:[#allocation5 + $0xc8] sm:$0xff]  ;;  %v5999_v60 = vld [vmem:[#allocation5 + $0x40] sm:$0xff] }
0x147e   :  { %v7093_v63 = vpack.c.bf16 %v6016_v25, %v6015_v38 }
0x147f   :  { %v5842_v15 = vmax.f32 %v5840_v54, %v5841_v62  ;;  %v5825_v16 = vadd.f32 %v5824_v58, %v5823_v10  ;;  %v5822_v19 = vadd.f32 %v5820_v14, %v5816_v46  ;;  %v6000_v62 = vld [vmem:[#allocation5 + $0x48] sm:$0xff]  ;;  %v6017_v46 = vld [vmem:[#allocation5 + $0xd0] sm:$0xff] }
0x1480   :  { %7094 = vmatprep.subr.bf16.mxu0 %v7093_v63  ;;  %v7095_v58 = vpack.c.bf16 %v6000_v62, %v5999_v60 }
0x1481   :  { %v5826_v9 = vrot.slane %v5825_v16, 2  ;;  %v5843_v36 = vrot.slane %v5842_v15, 2  ;;  %v5847_v33 = vsel %vm141_vm0, %v5822_v19, -inf  ;;  %v5830_v18 = vsel %vm141_vm0, %v5822_v19, 0.0  ;;  %v6001_v19 = vld [vmem:[#allocation5 + $0x50] sm:$0xff] }
0x1482   :  { %v5848_v55 = vrot.slane %v5847_v33, 4  ;;  %v5831_v61 = vrot.slane %v5830_v18, 4  ;;  %7096 = vmatpush3.bf16.msra.mxu0 %v7095_v58 }
0x1483   :  { %v5827_v51 = vadd.f32 %v5826_v9, %v5825_v16  ;;  %v5844_v23 = vmax.f32 %v5842_v15, %v5843_v36  ;;  %v6018_v15 = vld [vmem:[#allocation5 + $0xd8] sm:$0xff] }
0x1484   :  { %v5849_v32 = vmax.f32 %v5847_v33, %v5848_v55  ;;  %v5832_v22 = vadd.f32 %v5831_v61, %v5830_v18  ;;  %v7097_v16 = vpack.c.bf16 %v6018_v15, %v6017_v46  ;;  %v6002_v9 = vld [vmem:[#allocation5 + $0x58] sm:$0xff]  ;;  %v6019_v33 = vld [vmem:[#allocation5 + $0xe0] sm:$0xff]  ;;  %v6020_v18 = vld [vmem:[#allocation5 + $0xe8] sm:$0xff] }
0x1485   :  { %v5828_v35 = vrot.slane %v5827_v51, 1  ;;  %v5845_v52 = vrot.slane %v5844_v23, 1  ;;  %v7099_v36 = vpack.c.bf16 %v6002_v9, %v6001_v19  ;;  %v7101_v55 = vpack.c.bf16 %v6020_v18, %v6019_v33  ;;  %v6004_v61 = vld [vmem:[#allocation5 + $0x68] sm:$0xff] }
0x1486   :  { %v5850_v24 = vrot.slane %v5849_v32, 2  ;;  %v5833_v31 = vrot.slane %v5832_v22, 2  ;;  %7098 = vmatprep.subr.bf16.mxu0 %v7097_v16 }
0x1487   :  { %v5829_v59 = vadd.f32 %v5828_v35, %v5827_v51  ;;  %v5846_v4 = vmax.f32 %v5844_v23, %v5845_v52  ;;  %7100 = vmatpush3.bf16.msra.mxu0 %v7099_v36  ;;  %v6003_v51 = vld [vmem:[#allocation5 + $0x60] sm:$0xff]  ;;  %v7105_v23 = vpack.c.bf16 %v6022_v48, %v6021_v42 }
0x1488   :  { %v5851_v47 = vmax.f32 %v5849_v32, %v5850_v24  ;;  %v5834_v6 = vadd.f32 %v5833_v31, %v5832_v22  ;;  %v7103_v44 = vpack.c.bf16 %v6004_v61, %v6003_v51  ;;  %7102 = vmatprep.subr.bf16.mxu0 %v7101_v55  ;;  %v6005_v32 = vld [vmem:[#allocation5 + $0x70] sm:$0xff]  ;;  %v6006_v22 = vld [vmem:[#allocation5 + $0x78] sm:$0xff] }
0x1489   :  { %v5838_v13 = vmul.f32 0.125, %v5829_v59  ;;  %v7107_v3 = vpack.c.bf16 %v6006_v22, %v6005_v32 }
0x148a   :  { %v5852_v28 = vrot.slane %v5851_v47, 1  ;;  %v5835_v43 = vrot.slane %v5834_v6, 1 }
0x148b   :  { %7104 = vmatpush3.bf16.msra.mxu0 %v7103_v44 }
0x148c   :  { %v5853_v0 = vmax.f32 %v5851_v47, %v5852_v28  ;;  %v5836_v17 = vadd.f32 %v5835_v43, %v5834_v6  ;;  %7106 = vmatprep.subr.bf16.mxu0 %v7105_v23 }
0x148e   :  { %v5861_v40 = vsel %vm5856_vm2, %v5853_v0, %v5846_v4  ;;  %v5839_v14 = vmul.f32 0.125, %v5836_v17 }
0x148f   :  { %5862 = vrot.lane.b32.xlu1 %v5861_v40, %s7402_s23  ;;  %7108 = vmatpush3.bf16.msra.mxu0 %v7107_v3 }
0x1490   :  { %v5857_v37 = vsel %vm5856_vm2, %v5839_v14, %v5838_v13 }
0x1501   :  { %v5863_v54 = vpop.permute.xlu1 %5862 }
0x1502   :  { %v5865_v10 = vsel %vm141_vm0, %v5857_v37, %v5863_v54 }
0x1503   :  { %5975 = vmatmul.mubr.f32.vlgmr.msra.gmra.mrb[70].mxu1 %v5865_v10 }
0x15d6   :  { %v5976_v1 = vpop.f32.mrb[70].mxu1 }
0x15d7   :  { %v5977_v41 = vadd.f32 %v5976_v1, %v5903_v12  ;;  %v5978_v34 = vpop.f32.mrb[71].mxu1 }
0x15d8   :  { %v5979_v29 = vadd.f32 %v5978_v34, %v5907_v20 }
0x15d9   :  { %v5981_v50 = vadd.f32 3.0, %v5977_v41 }
0x15da   :  { %v5982_v24 = vadd.f32 3.0, %v5979_v29 }
0x15db   :  { %v5983_v35 = vmax.f32 %v5981_v50, 0.0 }
0x15dc   :  { %v5984_v31 = vmax.f32 %v5982_v24, 0.0 }
0x15dd   :  { %v5985_v26 = vmin.f32 %v5983_v35, 6.0 }
0x15de   :  { %v5986_v45 = vmin.f32 %v5984_v31, 6.0 }
0x15df   :  { %v5987_v52 = vmul.f32 %v5985_v26, %v5977_v41 }
0x15e0   :  { %v5988_v47 = vmul.f32 %v5986_v45, %v5979_v29 }
0x15e1   :  { %v5989_v8 = vmul.f32 0.16666667, %v5987_v52 }
0x15e2   :  { %v5990_v6 = vmul.f32 0.16666667, %v5988_v47 }
0x15e4   :  { %6094 = vmatprep.mubr.f32.mxu0 %v5990_v6 }
0x15e5   :  { %6095 = vmatmul.mubr.f32.vlgmr.msra.gmra.mrb[58].mxu0 %v5989_v8 }
0x16b8   :  { %v6550_v57 = vpop.f32.mrb[58].mxu0 }
0x16b9   :  { %v6551_v49 = vpop.f32.mrb[59].mxu0 }
0x16ba   :  { %v6552_v27 = vadd.f32 %v6551_v49, %v6550_v57 }
0x16bc   :  { %v6097_v7 = vadd.f32 %v6552_v27, %v6293_v39 }
0x16be   :  { %6100 = vst [vmem:[#allocation7] sm:$0x3] %v6097_v7 }
0x16bf   :  { %7377 = shalt.err (!%p7374_p6)
}
0x16c0   :  { %s7378_s5 = scalar_lea.hbm %s9018_s15, 32 }
0x16c1   :  { %p7379_p7 = scmp.ne.s32.totalorder %s9018_s15, %s7378_s5  ;;  %p7382_p8 = scmp.lt.u32.totalorder %s7378_s5, %s9018_s15 }
0x16c3   :  { %p7384_p9 = pnand %p7382_p8, %p7379_p7 }
0x16c5   :  { %7387 = shalt.err (!%p7384_p9)
}
0x16c6   :  { %6110 = dma.vmem_to_hbm [thread:$0]  %s6108_s24, 32, %s9018_s15, [#allocation4]  }
0x16c7   :  { %7392 = dma.done.wait [#allocation4], 32  }
0x16c8   :  { %7393 = vsyncadd [#allocation4], 4294967264 }
0x16c9   :  { %6114 = vsyncpa [#allocation3], 1 }
0x16ca   :  { %6115 = vsyncpa [#allocation6], 1 }
0x16cb   :  { %6116 = vsyncpa [#allocation4], 1 }

// kernel: tpu_custom_call.1
= control target key start
LH: loop header
LB: loop body
LE: loop exit
PB: predicated region body
PF: predicated region fallthrough
CT: control target
= control target key end

     0   :  { %20 = vsyncpa [#allocation3], 0  ;;  %s9003_s0 = inlined_call_operand.vmem [shape: f32[2,8,1], index: 0, kind: input, shape index: {}]   ;;  %s9004_s1 = inlined_call_operand.vmem [shape: f32[1,64], index: 1, kind: input, shape index: {}]   ;;  %s9005_s2 = inlined_call_operand.vmem [shape: f32[16,64], index: 2, kind: input, shape index: {}]   ;;  %s9006_s3 = inlined_call_operand.vmem [shape: f32[2,64,192], index: 3, kind: input, shape index: {}]   ;;  %s9007_s4 = inlined_call_operand.vmem [shape: f32[2,1,192], index: 4, kind: input, shape index: {}]   ;;  %s9008_s5 = inlined_call_operand.hbm [shape: f32[2,8,8,64], index: 5, kind: input, shape index: {}]   ;;  %s9009_s6 = inlined_call_operand.vmem [shape: f32[2,6,64], index: 6, kind: input, shape index: {}]   ;;  %s9010_s7 = inlined_call_operand.vmem [shape: f32[2,64,256], index: 7, kind: input, shape index: {}]   ;;  %s9011_s8 = inlined_call_operand.vmem [shape: f32[2,1,256], index: 8, kind: input, shape index: {}]   ;;  %s9012_s9 = inlined_call_operand.vmem [shape: f32[2,256,64], index: 9, kind: input, shape index: {}]   ;;  %s9013_s10 = inlined_call_operand.vmem [shape: f32[2,64], index: 10, kind: input, shape index: {}]   ;;  %s9014_s11 = inlined_call_operand.vmem [shape: f32[128,256], index: 11, kind: input, shape index: {}]   ;;  %s9015_s12 = inlined_call_operand.vmem [shape: f32[1,256], index: 12, kind: input, shape index: {}]   ;;  %s9016_s13 = inlined_call_operand.hbm [shape: f32[256,128], index: 13, kind: input, shape index: {}]   ;;  %s9017_s14 = inlined_call_operand.vmem [shape: f32[1,128], index: 14, kind: input, shape index: {}]   ;;  %s9018_s15 = inlined_call_operand.hbm [shape: f32[1,2,128], index: 15, kind: output, shape index: {}]  }
   0x1   :  { %21 = vsyncpa [#allocation6], 0 }
   0x2   :  { %22 = vsyncpa [#allocation4], 0  ;;  %s7394_s18 = smov [#allocation2]   ;;  %s7322_s22 = scalar_lea.hbm %s9008_s5, 2048 }
   0x3   :  { %s38_s19 = sshll.u32 %s7394_s18, 4  ;;  %p7323_p0 = scmp.ne.s32.totalorder %s9008_s5, %s7322_s22  ;;  %s39_s19 = int_to_ptr.vmem [resolvable:$true] %s38_s19 }
   0x4   :  { %p7326_p1 = scmp.lt.u32.totalorder %s7322_s22, %s9008_s5 }
   0x6   :  { %p7328_p2 = pnand %p7326_p1, %p7323_p0 }
   0x8   :  { %7331 = shalt.err (!%p7328_p2)
}
   0x9   :  { %s7332_s27 = scalar_lea.vmem %s39_s19, 2048  ;;  %p7337_p4 = scmp.lt.s32.totalorder %s39_s19, %s39_s19 }
   0xa   :  { %p7333_p3 = scmp.ne.s32.totalorder %s39_s19, %s7332_s27  ;;  %p7338_p5 = scmp.lt.s32.totalorder %s7332_s27, %s7332_s27 }
   0xc   :  { %p7339_p6 = por %p7338_p5, %p7337_p4 }
   0xe   :  { %p7340_p7 = pnand %p7339_p6, %p7333_p3 }
  0x10   :  { %7343 = shalt.err (!%p7340_p7)
}
  0x11   :  { %s7395_s28 = smov 128   ;;  %s9021_s29 = smov 8  }
  0x12   :  { %44 = dma.hbm_to_vmem [thread:$0]  %s9008_s5, 2048, %s39_s19, [#allocation3], %s7395_s28, %s7395_s28, %s9021_s29  }
  0x13   :  { %s7397_s17 = smov [#allocation5]   ;;  %s7344_s22 = scalar_lea.hbm %s9016_s13, 4096 }
  0x14   :  { %s64_s18 = sshll.u32 %s7397_s17, 4  ;;  %p7345_p8 = scmp.ne.s32.totalorder %s9016_s13, %s7344_s22  ;;  %s65_s18 = int_to_ptr.vmem [resolvable:$true] %s64_s18 }
  0x15   :  { %p7348_p9 = scmp.lt.u32.totalorder %s7344_s22, %s9016_s13 }
  0x17   :  { %p7350_p10 = pnand %p7348_p9, %p7345_p8 }
  0x19   :  { %7353 = shalt.err (!%p7350_p10)
}
  0x1a   :  { %s7354_s27 = scalar_lea.vmem %s65_s18, 4096  ;;  %p7359_p12 = scmp.lt.s32.totalorder %s65_s18, %s65_s18 }
  0x1b   :  { %p7355_p11 = scmp.ne.s32.totalorder %s65_s18, %s7354_s27  ;;  %p7360_p13 = scmp.lt.s32.totalorder %s7354_s27, %s7354_s27 }
  0x1d   :  { %p7361_p0 = por %p7360_p13, %p7359_p12 }
  0x1f   :  { %p7362_p1 = pnand %p7361_p0, %p7355_p11 }
  0x21   :  { %7365 = shalt.err (!%p7362_p1)
}
  0x22   :  { %70 = dma.hbm_to_vmem [thread:$0]  %s9016_s13, 4096, %s65_s18, [#allocation6], %s7395_s28, %s7395_s28, %s9021_s29  }
  0x23   :  { %7388 = dma.done.wait [#allocation3], 2048  }
  0x24   :  { %7389 = vsyncadd [#allocation3], 4294965248 }
  0x25   :  { %7390 = dma.done.wait [#allocation6], 4096  }
  0x26   :  { %7391 = vsyncadd [#allocation6], 4294963200  ;;  %v7398_v0 = vmov 0   ;;  %v79_v1 = vld [vmem:[%s9003_s0] sm:$0xff]  ;;  %v80_v2 = vld [vmem:[%s9003_s0 + $0x8] sm:$0xff]  ;;  %v7399_v22 = vmov 0.0   ;;  %v131_v37 = vlaneseq }
  0x27   :  { %7141 = vset.pattern.permute.xlu0 %v7398_v0  ;;  %v114_v3 = vld [vmem:[%s9006_s3 + $0x8] sm:$0xff]  ;;  %v116_v4 = vld [vmem:[%s9006_s3 + $0x18] sm:$0xff]  ;;  %v113_v5 = vld [vmem:[%s9006_s3] sm:$0xff]  ;;  %212 = vmatprep.mubr.f32.mxu0 %v7399_v22  ;;  %vm141_vm0 = vcmask 523264   ;;  %vm7400_vm1 = vmmov 0   ;;  %s7401_s18 = smov 56  }
  0x28   :  { %84 = vperm.xlu0 %7141, %v79_v1   ;;  %v115_v6 = vld [vmem:[%s9006_s3 + $0x10] sm:$0xff]  ;;  %v6869_v7 = vpack.c.bf16 %v116_v4, %v114_v3  ;;  %v118_v9 = vld [vmem:[%s9006_s3 + $0x28] sm:$0xff]  ;;  %v120_v10 = vld [vmem:[%s9006_s3 + $0x38] sm:$0xff]  ;;  %218 = vmatprep.mubr.f32.mxu1 %v7399_v22  ;;  %v7598_v38 = vshrl.u32 %v131_v37, 7  ;;  %s7402_s23 = smov 64   ;;  %s7403_s24 = smov 48  }
  0x29   :  { %v6871_v8 = vpack.c.bf16 %v115_v6, %v113_v5  ;;  %v117_v11 = vld [vmem:[%s9006_s3 + $0x20] sm:$0xff]  ;;  %v6873_v12 = vpack.c.bf16 %v120_v10, %v118_v9  ;;  %v119_v13 = vld [vmem:[%s9006_s3 + $0x30] sm:$0xff]  ;;  %v122_v14 = vld [vmem:[%s9006_s3 + $0x48] sm:$0xff]  ;;  %s7404_s25 = smov 120   ;;  %s7405_s0 = smov 112   ;;  %vm228_vm2 = vcmask 64512  }
  0x2a   :  { %v124_v15 = vld [vmem:[%s9006_s3 + $0x58] sm:$0xff]  ;;  %6870 = vmatprep.subr.bf16.mxu0 %v6869_v7  ;;  %7109 = vmatprep.subr.bf16.mxu1 %v6869_v7  ;;  %v6875_v16 = vpack.c.bf16 %v119_v13, %v117_v11  ;;  %v121_v18 = vld [vmem:[%s9006_s3 + $0x40] sm:$0xff]  ;;  %v123_v19 = vld [vmem:[%s9006_s3 + $0x50] sm:$0xff]  ;;  %v7603_v39 = vsub.s32 0, %v7598_v38  ;;  %s7406_s26 = smov 40   ;;  %s7407_s27 = smov 32  }
  0x2b   :  { %6872 = vmatpush1.bf16.msra.mxu0 %v6871_v8  ;;  %7113 = vmatpush1.bf16.msra.mxu1 %v6871_v8  ;;  %v6877_v17 = vpack.c.bf16 %v124_v15, %v122_v14  ;;  %v126_v20 = vld [vmem:[%s9006_s3 + $0x68] sm:$0xff]  ;;  %v128_v21 = vld [vmem:[%s9006_s3 + $0x78] sm:$0xff]  ;;  %v6879_v23 = vpack.c.bf16 %v123_v19, %v121_v18  ;;  %v125_v25 = vld [vmem:[%s9006_s3 + $0x60] sm:$0xff]  ;;  %s7408_s5 = smov 104   ;;  %v7643_v49 = vsub.s32 1, %v7598_v38  ;;  %s7409_s19 = smov 96  }
  0x2c   :  { %89 = vperm.xlu0 %7141, %v80_v2   ;;  %6874 = vmatprep.subr.bf16.mxu0 %v6873_v12  ;;  %v6881_v24 = vpack.c.bf16 %v128_v21, %v126_v20  ;;  %v127_v26 = vld [vmem:[%s9006_s3 + $0x70] sm:$0xff]  ;;  %v6117_v28 = vld [vmem:[%s9004_s1] ss:$0 sm:$0xff]  ;;  %v101_v33 = vld [vmem:[%s9005_s2 + $0x8] sm:$0xff]  ;;  %s7410_s30 = smov 24   ;;  %s9027_s16 = smov 88  }
  0x2d   :  { %7110 = vmatprep.subr.bf16.mxu1 %v6873_v12  ;;  %v6883_v27 = vpack.c.bf16 %v127_v26, %v125_v25  ;;  %v100_v29 = vld [vmem:[%s9005_s2] sm:$0xff]  ;;  %v105_v48 = vld [vmem:[#allocation2 + $0x8] sm:$0xff]  ;;  %s9025_s17 = smov 16   ;;  %s9023_s20 = smov 80   ;;  %v106_v2 = vld [vmem:[#allocation2 + $0x10] sm:$0xff]  ;;  %vm2368_vm3 = vcmask 130048  }
  0x2e   :  { %v129_v40 = vld [vmem:[%s9007_s4] sm:$0x3]  ;;  %s9019_s21 = smov 72   ;;  %v107_v15 = vld [vmem:[#allocation2 + $0x18] sm:$0xff]  ;;  %v109_v26 = vld [vmem:[#allocation2 + $0x28] sm:$0xff]  ;;  %vm2371_vm4 = vcmask 195584  }
  0x2f   :  { %6876 = vmatpush1.bf16.msra.mxu0 %v6875_v16  ;;  %7114 = vmatpush1.bf16.msra.mxu1 %v6875_v16  ;;  %v134_v41 = vrot.slane %v129_v40, %v7603_v39  ;;  %v138_v50 = vrot.slane %v129_v40, %v7643_v49  ;;  %v104_v55 = vld [vmem:[#allocation2] sm:$0xff]  ;;  %v111_v40 = vld [vmem:[#allocation2 + $0x38] sm:$0xff]  ;;  %vm2374_vm5 = vcmask 261120   ;;  %vm2377_vm6 = vcmask 326656   ;;  %s9030_s1 = smov 16   ;;  %s9031_s2 = smov 80  }
  0x30   :  { %6878 = vmatprep.subr.bf16.mxu0 %v6877_v17  ;;  %7111 = vmatprep.subr.bf16.mxu1 %v6877_v17  ;;  %v108_v20 = vld [vmem:[#allocation2 + $0x20] sm:$0xff]  ;;  %vm2380_vm7 = vcmask 392192   ;;  %vm2383_vm8 = vcmask 457728  }
  0x33   :  { %6880 = vmatpush1.bf16.msra.mxu0 %v6879_v23  ;;  %7115 = vmatpush1.bf16.msra.mxu1 %v6879_v23 }
  0x34   :  { %6882 = vmatprep.subr.bf16.mxu0 %v6881_v24  ;;  %7112 = vmatprep.subr.bf16.mxu1 %v6881_v24 }
  0x37   :  { %6884 = vmatpush1.bf16.msra.mxu0 %v6883_v27  ;;  %7116 = vmatpush1.bf16.msra.mxu1 %v6883_v27 }
  0x38   :  { %6553 = vmatprep.subr.mxu1 %v7399_v22  ;;  %6578 = vmatprep.subr.mxu0 %v105_v48 }
  0xa7   :  { %v85_v30 = vpop.permute.xlu0 %84 }
  0xa8   :  { %v98_v31 = vmul.f32 %v6117_v28, %v85_v30 }
  0xaa   :  { %v7587_v32 = vadd.f32 %v100_v29, %v98_v31  ;;  %v110_v31 = vld [vmem:[#allocation2 + $0x30] sm:$0xff] }
  0xab   :  { %v90_v34 = vpop.permute.xlu0 %89 }
  0xac   :  { %v99_v35 = vmul.f32 %v6117_v28, %v90_v34  ;;  %6118 = vmatmul.mubr.msk.f32.vlgmr.msra.gmra.mrb[0].mxu0 %vm141_vm0, %v7587_v32 }
  0xad   :  { %6579 = vmatpush3.msra.mxu0 %v105_v48 }
  0xae   :  { %v7594_v36 = vadd.f32 %v101_v33, %v99_v35  ;;  %6588 = vmatprep.subr.mxu0 %v7399_v22 }
  0xb0   :  { %6119 = vmatmul.mubr.msk.f32.vlgmr.msra.gmra.mrb[0].mxu1 %vm141_vm0, %v7594_v36 }
  0xb1   :  { %6555 = vmatprep.mubr.msk.f32.mxu1 %vm7400_vm1, %v7399_v22 }
 0x17f   :  { %v214_v42 = vpop.f32.mrb[0].mxu0 }
 0x180   :  { %v7609_v43 = vadd.f32 %v214_v42, %v134_v41  ;;  %v216_v44 = vpop.f32.mrb[1].mxu0 }
 0x181   :  { %v217_v52 = vadd.f32 %v216_v44, %v138_v50 }
 0x182   :  { %463 = vrot.lane.b32.xlu0 %v7609_v43, %s7401_s18  ;;  %226 = vrot.lane.b32.xlu1 %v7609_v43, %s7402_s23 }
 0x183   :  { %v220_v45 = vpop.f32.mrb[0].mxu1 }
 0x184   :  { %v7615_v46 = vadd.f32 %v220_v45, %v134_v41  ;;  %v222_v47 = vpop.f32.mrb[1].mxu1  ;;  %v7415_v45 = vmov 0.0|0.0  }
 0x185   :  { %v223_v51 = vadd.f32 %v222_v47, %v138_v50 }
 0x186   :  { %541 = vrot.lane.b32.xlu0 %v7615_v46, %s7401_s18  ;;  %304 = vrot.lane.b32.xlu1 %v7615_v46, %s7402_s23 }
 0x18a   :  { %702 = vrot.lane.b32.xlu0 %v7609_v43, %s7403_s24  ;;  %461 = vrot.lane.b32.xlu1 %v7609_v43, %s7404_s25 }
 0x18e   :  { %700 = vrot.lane.b32.xlu0 %v7609_v43, %s7405_s0  ;;  %539 = vrot.lane.b32.xlu1 %v7615_v46, %s7404_s25 }
 0x192   :  { %941 = vrot.lane.b32.xlu0 %v7609_v43, %s7406_s26  ;;  %780 = vrot.lane.b32.xlu1 %v7615_v46, %s7403_s24 }
 0x196   :  { %1019 = vrot.lane.b32.xlu0 %v7615_v46, %s7406_s26  ;;  %778 = vrot.lane.b32.xlu1 %v7615_v46, %s7405_s0 }
 0x19a   :  { %1180 = vrot.lane.b32.xlu0 %v7609_v43, %s7407_s27  ;;  %939 = vrot.lane.b32.xlu1 %v7609_v43, %s7408_s5 }
 0x19e   :  { %1178 = vrot.lane.b32.xlu0 %v7609_v43, %s7409_s19  ;;  %1017 = vrot.lane.b32.xlu1 %v7615_v46, %s7408_s5 }
 0x1a2   :  { %1419 = vrot.lane.b32.xlu0 %v7609_v43, %s7410_s30  ;;  %1258 = vrot.lane.b32.xlu1 %v7615_v46, %s7407_s27 }
 0x1a6   :  { %619 = vrot.lane.b32.xlu0 %v223_v51, %s7404_s25  ;;  %1256 = vrot.lane.b32.xlu1 %v7615_v46, %s7409_s19 }
 0x1aa   :  { %1497 = vrot.lane.b32.xlu0 %v7615_v46, %s7410_s30  ;;  %617 = vrot.lane.b32.xlu1 %v217_v52, %s7404_s25 }
 0x1ae   :  { %858 = vrot.lane.b32.xlu0 %v223_v51, %s7405_s0  ;;  %1417 = vrot.lane.b32.xlu1 %v7609_v43, %s9027_s16 }
 0x1b2   :  { %1658 = vrot.lane.b32.xlu0 %v7609_v43, %s9025_s17  ;;  %856 = vrot.lane.b32.xlu1 %v217_v52, %s7405_s0 }
 0x1b6   :  { %1097 = vrot.lane.b32.xlu0 %v223_v51, %s7408_s5  ;;  %1495 = vrot.lane.b32.xlu1 %v7615_v46, %s9027_s16 }
 0x1ba   :  { %1656 = vrot.lane.b32.xlu0 %v7609_v43, %s9023_s20  ;;  %1095 = vrot.lane.b32.xlu1 %v217_v52, %s7408_s5 }
 0x1be   :  { %1336 = vrot.lane.b32.xlu0 %v223_v51, %s7409_s19  ;;  %1736 = vrot.lane.b32.xlu1 %v7615_v46, %s9025_s17 }
 0x1c2   :  { %1575 = vrot.lane.b32.xlu0 %v223_v51, %s9027_s16  ;;  %1334 = vrot.lane.b32.xlu1 %v217_v52, %s7409_s19 }
 0x1c6   :  { %1897 = vrot.lane.b32.xlu0 %v7609_v43, %s9021_s29  ;;  %1573 = vrot.lane.b32.xlu1 %v217_v52, %s9027_s16 }
 0x1ca   :  { %1814 = vrot.lane.b32.xlu0 %v223_v51, %s9023_s20  ;;  %1734 = vrot.lane.b32.xlu1 %v7615_v46, %s9023_s20 }
 0x1ce   :  { %1975 = vrot.lane.b32.xlu0 %v7615_v46, %s9021_s29  ;;  %1812 = vrot.lane.b32.xlu1 %v217_v52, %s9023_s20 }
 0x1d2   :  { %2051 = vrot.lane.b32.xlu0 %v217_v52, %s9019_s21  ;;  %1895 = vrot.lane.b32.xlu1 %v7609_v43, %s9019_s21 }
 0x1d6   :  { %1973 = vrot.lane.b32.xlu1 %v7615_v46, %s9019_s21 }
 0x1da   :  { %2053 = vrot.lane.b32.xlu1 %v223_v51, %s9019_s21 }
 0x1f4   :  { %v227_v53 = vpop.permute.xlu1 %226  ;;  %v464_v54 = vpop.permute.xlu0 %463 }
 0x1f5   :  { %6554 = vmatpush3.xpose.msk.msra.mxu1 %vm228_vm2, %v227_v53 }
 0x1f6   :  { %6558 = vmatprep.subr.mxu1 %v7399_v22 }
 0x1f8   :  { %6556 = vmatmul.mubr.msk.f32.vlgmr.msra.gmra.mrb[2].mxu1 %vm228_vm2, %v7609_v43  ;;  %v305_v56 = vpop.permute.xlu1 %304  ;;  %v542_v57 = vpop.permute.xlu0 %541 }
 0x1f9   :  { %6559 = vmatpush3.xpose.msk.msra.mxu1 %vm228_vm2, %v305_v56  ;;  %6560 = vmatprep.mubr.msk.f32.mxu1 %vm7400_vm1, %v7399_v22 }
 0x1fa   :  { %6563 = vmatprep.subr.mxu1 %v104_v55 }
 0x1fc   :  { %6561 = vmatmul.mubr.msk.f32.vlgmr.msra.gmra.mrb[4].mxu1 %vm228_vm2, %v7615_v46  ;;  %v462_v58 = vpop.permute.xlu1 %461  ;;  %v703_v59 = vpop.permute.xlu0 %702 }
 0x1fd   :  { %6564 = vmatpush3.msra.mxu1 %v104_v55  ;;  %6565 = vmatprep.mubr.msk.f32.mxu1 %vm228_vm2, %v217_v52 }
 0x1fe   :  { %6568 = vmatprep.subr.mxu1 %v7399_v22 }
 0x200   :  { %6566 = vmatmul.mubr.msk.f32.vlgmr.msra.gmra.mrb[6].mxu1 %vm228_vm2, %v223_v51  ;;  %v540_v60 = vpop.permute.xlu1 %539  ;;  %v701_v61 = vpop.permute.xlu0 %700 }
 0x201   :  { %6570 = vmatprep.mubr.msk.f32.mxu1 %vm7400_vm1, %v7399_v22 }
 0x204   :  { %v781_v62 = vpop.permute.xlu1 %780  ;;  %6569 = vmatpush3.xpose.msk.msra.mxu1 %vm228_vm2, %v464_v54  ;;  %v942_v63 = vpop.permute.xlu0 %941 }
 0x205   :  { %6573 = vmatprep.subr.mxu1 %v7399_v22 }
 0x207   :  { %6571 = vmatmul.mubr.msk.f32.vlgmr.msra.gmra.mrb[8].mxu1 %vm228_vm2, %v462_v58 }
 0x208   :  { %v779_v0 = vpop.permute.xlu1 %778  ;;  %6574 = vmatpush3.xpose.msk.msra.mxu1 %vm228_vm2, %v542_v57  ;;  %v1020_v1 = vpop.permute.xlu0 %1019  ;;  %6575 = vmatprep.mubr.msk.f32.mxu1 %vm7400_vm1, %v7399_v22 }
 0x209   :  { %6583 = vmatprep.subr.mxu1 %v7399_v22 }
 0x20b   :  { %6576 = vmatmul.mubr.msk.f32.vlgmr.msra.gmra.mrb[10].mxu1 %vm228_vm2, %v540_v60 }
 0x20c   :  { %v940_v3 = vpop.permute.xlu1 %939  ;;  %6584 = vmatpush3.xpose.msk.msra.mxu1 %vm228_vm2, %v703_v59  ;;  %v1181_v4 = vpop.permute.xlu0 %1180  ;;  %6585 = vmatprep.mubr.msk.f32.mxu1 %vm7400_vm1, %v7399_v22 }
 0x20d   :  { %6593 = vmatprep.subr.mxu1 %v106_v2 }
 0x20f   :  { %6586 = vmatmul.mubr.msk.f32.vlgmr.msra.gmra.mrb[12].mxu1 %vm228_vm2, %v701_v61 }
 0x210   :  { %v1018_v5 = vpop.permute.xlu1 %1017  ;;  %v1179_v6 = vpop.permute.xlu0 %1178  ;;  %6594 = vmatpush3.msra.mxu1 %v106_v2 }
 0x211   :  { %6603 = vmatprep.subr.mxu1 %v7399_v22 }
 0x214   :  { %v1259_v7 = vpop.permute.xlu1 %1258  ;;  %v1420_v8 = vpop.permute.xlu0 %1419 }
 0x218   :  { %v1257_v9 = vpop.permute.xlu1 %1256  ;;  %v620_v10 = vpop.permute.xlu0 %619 }
 0x21c   :  { %v618_v11 = vpop.permute.xlu1 %617  ;;  %v1498_v12 = vpop.permute.xlu0 %1497 }
 0x21d   :  { %6580 = vmatprep.mubr.msk.f32.mxu0 %vm228_vm2, %v618_v11 }
 0x21e   :  { %6581 = vmatmul.mubr.msk.f32.vlgmr.msra.gmra.mrb[2].mxu0 %vm228_vm2, %v620_v10 }
 0x21f   :  { %6589 = vmatpush3.xpose.msk.msra.mxu0 %vm228_vm2, %v781_v62  ;;  %6590 = vmatprep.mubr.msk.f32.mxu0 %vm7400_vm1, %v7399_v22 }
 0x220   :  { %v1418_v13 = vpop.permute.xlu1 %1417  ;;  %v859_v14 = vpop.permute.xlu0 %858  ;;  %6598 = vmatprep.subr.mxu0 %v7399_v22 }
 0x222   :  { %6591 = vmatmul.mubr.msk.f32.vlgmr.msra.gmra.mrb[4].mxu0 %vm228_vm2, %v779_v0 }
 0x223   :  { %6599 = vmatpush3.xpose.msk.msra.mxu0 %vm228_vm2, %v942_v63  ;;  %6600 = vmatprep.mubr.msk.f32.mxu0 %vm7400_vm1, %v7399_v22 }
 0x224   :  { %v857_v16 = vpop.permute.xlu1 %856  ;;  %v1659_v17 = vpop.permute.xlu0 %1658  ;;  %6608 = vmatprep.subr.mxu0 %v107_v15 }
 0x225   :  { %6595 = vmatprep.mubr.msk.f32.mxu1 %vm228_vm2, %v857_v16 }
 0x226   :  { %6596 = vmatmul.mubr.msk.f32.vlgmr.msra.gmra.mrb[14].mxu1 %vm228_vm2, %v859_v14  ;;  %6601 = vmatmul.mubr.msk.f32.vlgmr.msra.gmra.mrb[6].mxu0 %vm228_vm2, %v940_v3 }
 0x227   :  { %6604 = vmatpush3.xpose.msk.msra.mxu1 %vm228_vm2, %v1020_v1  ;;  %6609 = vmatpush3.msra.mxu0 %v107_v15 }
 0x228   :  { %v1496_v18 = vpop.permute.xlu1 %1495  ;;  %v1098_v19 = vpop.permute.xlu0 %1097  ;;  %6605 = vmatprep.mubr.msk.f32.mxu1 %vm7400_vm1, %v7399_v22  ;;  %6613 = vmatprep.subr.mxu1 %v7399_v22 }
 0x229   :  { %6618 = vmatprep.subr.mxu0 %v7399_v22 }
 0x22a   :  { %6606 = vmatmul.mubr.msk.f32.vlgmr.msra.gmra.mrb[16].mxu1 %vm228_vm2, %v1018_v5 }
 0x22b   :  { %6614 = vmatpush3.xpose.msk.msra.mxu1 %vm228_vm2, %v1181_v4  ;;  %6615 = vmatprep.mubr.msk.f32.mxu1 %vm7400_vm1, %v7399_v22 }
 0x22c   :  { %v1096_v21 = vpop.permute.xlu1 %1095  ;;  %v1657_v23 = vpop.permute.xlu0 %1656  ;;  %6623 = vmatprep.subr.mxu1 %v108_v20 }
 0x22d   :  { %6610 = vmatprep.mubr.msk.f32.mxu0 %vm228_vm2, %v1096_v21 }
 0x22e   :  { %6611 = vmatmul.mubr.msk.f32.vlgmr.msra.gmra.mrb[8].mxu0 %vm228_vm2, %v1098_v19  ;;  %6616 = vmatmul.mubr.msk.f32.vlgmr.msra.gmra.mrb[18].mxu1 %vm228_vm2, %v1179_v6 }
 0x22f   :  { %6619 = vmatpush3.xpose.msk.msra.mxu0 %vm228_vm2, %v1259_v7  ;;  %6624 = vmatpush3.msra.mxu1 %v108_v20 }
 0x230   :  { %v1737_v24 = vpop.permute.xlu1 %1736  ;;  %v1337_v25 = vpop.permute.xlu0 %1336  ;;  %6620 = vmatprep.mubr.msk.f32.mxu0 %vm7400_vm1, %v7399_v22  ;;  %6628 = vmatprep.subr.mxu0 %v7399_v22 }
 0x231   :  { %6633 = vmatprep.subr.mxu1 %v7399_v22 }
 0x232   :  { %6621 = vmatmul.mubr.msk.f32.vlgmr.msra.gmra.mrb[10].mxu0 %vm228_vm2, %v1257_v9 }
 0x233   :  { %6629 = vmatpush3.xpose.msk.msra.mxu0 %vm228_vm2, %v1420_v8  ;;  %6630 = vmatprep.mubr.msk.f32.mxu0 %vm7400_vm1, %v7399_v22 }
 0x234   :  { %v1335_v27 = vpop.permute.xlu1 %1334  ;;  %v1576_v28 = vpop.permute.xlu0 %1575  ;;  %6638 = vmatprep.subr.mxu0 %v109_v26 }
 0x235   :  { %6625 = vmatprep.mubr.msk.f32.mxu1 %vm228_vm2, %v1335_v27 }
 0x236   :  { %6626 = vmatmul.mubr.msk.f32.vlgmr.msra.gmra.mrb[20].mxu1 %vm228_vm2, %v1337_v25  ;;  %6631 = vmatmul.mubr.msk.f32.vlgmr.msra.gmra.mrb[12].mxu0 %vm228_vm2, %v1418_v13 }
 0x237   :  { %6634 = vmatpush3.xpose.msk.msra.mxu1 %vm228_vm2, %v1498_v12  ;;  %6639 = vmatpush3.msra.mxu0 %v109_v26 }
 0x238   :  { %v1574_v29 = vpop.permute.xlu1 %1573  ;;  %v1898_v30 = vpop.permute.xlu0 %1897  ;;  %6635 = vmatprep.mubr.msk.f32.mxu1 %vm7400_vm1, %v7399_v22  ;;  %6643 = vmatprep.subr.mxu1 %v7399_v22 }
 0x239   :  { %6640 = vmatprep.mubr.msk.f32.mxu0 %vm228_vm2, %v1574_v29  ;;  %6648 = vmatprep.subr.mxu0 %v7399_v22 }
 0x23a   :  { %6636 = vmatmul.mubr.msk.f32.vlgmr.msra.gmra.mrb[22].mxu1 %vm228_vm2, %v1496_v18  ;;  %6641 = vmatmul.mubr.msk.f32.vlgmr.msra.gmra.mrb[14].mxu0 %vm228_vm2, %v1576_v28 }
 0x23b   :  { %6644 = vmatpush3.xpose.msk.msra.mxu1 %vm228_vm2, %v1659_v17  ;;  %6645 = vmatprep.mubr.msk.f32.mxu1 %vm7400_vm1, %v7399_v22 }
 0x23c   :  { %v1735_v33 = vpop.permute.xlu1 %1734  ;;  %v1815_v34 = vpop.permute.xlu0 %1814  ;;  %6653 = vmatprep.subr.mxu1 %v110_v31  ;;  %6650 = vmatprep.mubr.msk.f32.mxu0 %vm7400_vm1, %v7399_v22 }
 0x23e   :  { %6649 = vmatpush3.xpose.msk.msra.mxu0 %vm228_vm2, %v1737_v24  ;;  %6646 = vmatmul.mubr.msk.f32.vlgmr.msra.gmra.mrb[24].mxu1 %vm228_vm2, %v1657_v23 }
 0x23f   :  { %6654 = vmatpush3.msra.mxu1 %v110_v31  ;;  %6658 = vmatprep.subr.mxu0 %v7399_v22 }
 0x240   :  { %v1813_v35 = vpop.permute.xlu1 %1812  ;;  %v1976_v37 = vpop.permute.xlu0 %1975  ;;  %6663 = vmatprep.subr.mxu1 %v7399_v22 }
 0x241   :  { %6651 = vmatmul.mubr.msk.f32.vlgmr.msra.gmra.mrb[16].mxu0 %vm228_vm2, %v1735_v33  ;;  %6655 = vmatprep.mubr.msk.f32.mxu1 %vm228_vm2, %v1813_v35 }
 0x242   :  { %6659 = vmatpush3.xpose.msk.msra.mxu0 %vm228_vm2, %v1898_v30  ;;  %6656 = vmatmul.mubr.msk.f32.vlgmr.msra.gmra.mrb[26].mxu1 %vm228_vm2, %v1815_v34 }
 0x243   :  { %6660 = vmatprep.mubr.msk.f32.mxu0 %vm7400_vm1, %v7399_v22  ;;  %6665 = vmatprep.mubr.msk.f32.mxu1 %vm7400_vm1, %v7399_v22 }
 0x244   :  { %v1896_v41 = vpop.permute.xlu1 %1895  ;;  %v2052_v42 = vpop.permute.xlu0 %2051  ;;  %6668 = vmatprep.subr.mxu0 %v111_v40 }
 0x245   :  { %6661 = vmatmul.mubr.msk.f32.vlgmr.msra.gmra.mrb[18].mxu0 %vm228_vm2, %v1896_v41 }
 0x246   :  { %6664 = vmatpush3.xpose.msk.msra.mxu1 %vm228_vm2, %v1976_v37  ;;  %6670 = vmatprep.mubr.msk.f32.mxu0 %vm228_vm2, %v2052_v42 }
 0x247   :  { %6669 = vmatpush3.msra.mxu0 %v111_v40  ;;  %6885 = vmatprep.subr.bf16.mxu1 %v7415_v45 }
 0x248   :  { %v1974_v43 = vpop.permute.xlu1 %1973  ;;  %6897 = vmatprep.subr.bf16.mxu0 %v7415_v45 }
 0x249   :  { %6666 = vmatmul.mubr.msk.f32.vlgmr.msra.gmra.mrb[28].mxu1 %vm228_vm2, %v1974_v43 }
 0x24a   :  { %6689 = vmatprep.mubr.msk.f32.mxu1 %vm7400_vm1, %v7399_v22 }
 0x24c   :  { %v2054_v44 = vpop.permute.xlu1 %2053 }
 0x24d   :  { %6671 = vmatmul.mubr.msk.f32.vlgmr.msra.gmra.mrb[20].mxu0 %vm228_vm2, %v2054_v44 }
 0x24e   :  { %6708 = vmatprep.mubr.msk.f32.mxu0 %vm7400_vm1, %v7399_v22 }
 0x2cb   :  { %v7792_v46 = vpop.f32.mrb[2].mxu1 }
 0x2cc   :  { %v6557_v47 = vpop.f32.mrb[3].mxu1 }
 0x2cf   :  { %v7794_v48 = vpop.f32.mrb[4].mxu1 }
 0x2d0   :  { %v6562_v50 = vpop.f32.mrb[5].mxu1 }
 0x2d3   :  { %v6567_v51 = vpop.f32.mrb[6].mxu1 }
 0x2d4   :  { %v452_v52 = vpop.f32.mrb[7].mxu1 }
 0x2da   :  { %v7796_v53 = vpop.f32.mrb[8].mxu1 }
 0x2db   :  { %v6572_v54 = vpop.f32.mrb[9].mxu1  ;;  %v2137_v9 = vsel %vm228_vm2, %v7796_v53, -inf }
 0x2de   :  { %v7798_v55 = vpop.f32.mrb[10].mxu1 }
 0x2df   :  { %v6577_v56 = vpop.f32.mrb[11].mxu1  ;;  %v2161_v15 = vsel %vm228_vm2, %v7798_v55, -inf }
 0x2e2   :  { %v7800_v57 = vpop.f32.mrb[12].mxu1 }
 0x2e3   :  { %v6587_v58 = vpop.f32.mrb[13].mxu1  ;;  %v2140_v34 = vsel %vm228_vm2, %v7800_v57, -inf }
 0x2f1   :  { %v6582_v59 = vpop.f32.mrb[2].mxu0 }
 0x2f2   :  { %v6898_v60 = vpack.c.bf16 %v6582_v59, %v6567_v51  ;;  %v691_v61 = vpop.f32.mrb[3].mxu0 }
 0x2f3   :  { %v6886_v62 = vpack.c.bf16 %v691_v61, %v452_v52 }
 0x2f4   :  { %6899 = vmatpush3.bf16.msra.mxu0 %v6898_v60 }
 0x2f5   :  { %v7802_v63 = vpop.f32.mrb[4].mxu0  ;;  %6887 = vmatpush3.bf16.msra.mxu1 %v6886_v62  ;;  %6900 = vmatprep.subr.bf16.mxu0 %v7415_v45 }
 0x2f6   :  { %v6592_v0 = vpop.f32.mrb[5].mxu0  ;;  %v2164_v1 = vsel %vm228_vm2, %v7802_v63, -inf  ;;  %6888 = vmatprep.subr.bf16.mxu1 %v7415_v45 }
 0x2f7   :  { %2165 = vmax.xlane.f32.xlu0 %v2164_v1  ;;  %v2158_v1 = vsel %vm228_vm2, %v7794_v48, -inf }
 0x2f9   :  { %v6597_v2 = vpop.f32.mrb[14].mxu1  ;;  %v7808_v3 = vpop.f32.mrb[6].mxu0 }
 0x2fa   :  { %v930_v4 = vpop.f32.mrb[15].mxu1  ;;  %v6602_v5 = vpop.f32.mrb[7].mxu0  ;;  %v2143_v6 = vsel %vm228_vm2, %v7808_v3, -inf }
 0x2fb   :  { %2144 = vmax.xlane.f32.xlu0 %v2143_v6 }
 0x2fd   :  { %v7812_v7 = vpop.f32.mrb[16].mxu1 }
 0x2fe   :  { %v6607_v8 = vpop.f32.mrb[17].mxu1  ;;  %v2167_v19 = vsel %vm228_vm2, %v7812_v7, -inf }
 0x2ff   :  { %2138 = vmax.xlane.f32.xlu0 %v2137_v9 }
 0x301   :  { %v6612_v10 = vpop.f32.mrb[8].mxu0  ;;  %v7816_v11 = vpop.f32.mrb[18].mxu1 }
 0x302   :  { %v6901_v12 = vpack.c.bf16 %v6612_v10, %v6597_v2  ;;  %v1169_v13 = vpop.f32.mrb[9].mxu0  ;;  %v6617_v14 = vpop.f32.mrb[19].mxu1  ;;  %v2146_v26 = vsel %vm228_vm2, %v7816_v11, -inf }
 0x303   :  { %v6889_v16 = vpack.c.bf16 %v1169_v13, %v930_v4  ;;  %2162 = vmax.xlane.f32.xlu0 %v2161_v15  ;;  %v2134_v4 = vsel %vm228_vm2, %v7792_v46, -inf }
 0x304   :  { %6902 = vmatpush3.bf16.msra.mxu0 %v6901_v12 }
 0x305   :  { %v7820_v17 = vpop.f32.mrb[10].mxu0  ;;  %6890 = vmatpush3.bf16.msra.mxu1 %v6889_v16  ;;  %6903 = vmatprep.subr.bf16.mxu0 %v7415_v45 }
 0x306   :  { %v6622_v18 = vpop.f32.mrb[11].mxu0  ;;  %v2170_v20 = vsel %vm228_vm2, %v7820_v17, -inf  ;;  %6891 = vmatprep.subr.bf16.mxu1 %v7415_v45 }
 0x307   :  { %2168 = vmax.xlane.f32.xlu0 %v2167_v19  ;;  %2171 = vmax.xlane.f32.xlu1 %v2170_v20 }
 0x309   :  { %v6627_v21 = vpop.f32.mrb[20].mxu1  ;;  %v7828_v23 = vpop.f32.mrb[12].mxu0 }
 0x30a   :  { %v1408_v24 = vpop.f32.mrb[21].mxu1  ;;  %v6632_v25 = vpop.f32.mrb[13].mxu0  ;;  %v2149_v27 = vsel %vm228_vm2, %v7828_v23, -inf }
 0x30b   :  { %2147 = vmax.xlane.f32.xlu0 %v2146_v26  ;;  %2150 = vmax.xlane.f32.xlu1 %v2149_v27 }
 0x30d   :  { %v7834_v28 = vpop.f32.mrb[22].mxu1  ;;  %v6642_v29 = vpop.f32.mrb[14].mxu0 }
 0x30e   :  { %v6904_v30 = vpack.c.bf16 %v6642_v29, %v6627_v21  ;;  %v6637_v31 = vpop.f32.mrb[23].mxu1  ;;  %v1647_v33 = vpop.f32.mrb[15].mxu0  ;;  %v2173_v35 = vsel %vm228_vm2, %v7834_v28, -inf }
 0x30f   :  { %v6892_v37 = vpack.c.bf16 %v1647_v33, %v1408_v24  ;;  %2141 = vmax.xlane.f32.xlu1 %v2140_v34  ;;  %2174 = vmax.xlane.f32.xlu0 %v2173_v35 }
 0x310   :  { %6905 = vmatpush3.bf16.msra.mxu0 %v6904_v30 }
 0x311   :  { %v7840_v40 = vpop.f32.mrb[24].mxu1  ;;  %6893 = vmatpush3.bf16.msra.mxu1 %v6892_v37  ;;  %6906 = vmatprep.subr.bf16.mxu0 %v7415_v45 }
 0x312   :  { %v6647_v41 = vpop.f32.mrb[25].mxu1  ;;  %6894 = vmatprep.subr.bf16.mxu1 %v7415_v45  ;;  %v2152_v58 = vsel %vm228_vm2, %v7840_v40, -inf }
 0x314   :  { %v7844_v42 = vpop.f32.mrb[16].mxu0 }
 0x315   :  { %v6652_v43 = vpop.f32.mrb[17].mxu0  ;;  %v6657_v44 = vpop.f32.mrb[26].mxu1  ;;  %v2176_v0 = vsel %vm228_vm2, %v7844_v42, -inf }
 0x316   :  { %v1886_v47 = vpop.f32.mrb[27].mxu1 }
 0x318   :  { %v7846_v50 = vpop.f32.mrb[18].mxu0 }
 0x319   :  { %v6662_v51 = vpop.f32.mrb[19].mxu0  ;;  %v2155_v52 = vsel %vm228_vm2, %v7846_v50, -inf }
 0x31a   :  { %2156 = vmax.xlane.f32.xlu1 %v2155_v52 }
 0x31c   :  { %v7850_v54 = vpop.f32.mrb[28].mxu1 }
 0x31d   :  { %v6667_v56 = vpop.f32.mrb[29].mxu1  ;;  %v2179_v59 = vsel %vm228_vm2, %v7850_v54, -inf }
 0x31e   :  { %2153 = vmax.xlane.f32.xlu1 %v2152_v58  ;;  %2180 = vmax.xlane.f32.xlu0 %v2179_v59 }
 0x320   :  { %v6672_v60 = vpop.f32.mrb[20].mxu0 }
 0x321   :  { %v6907_v61 = vpack.c.bf16 %v6672_v60, %v6657_v44  ;;  %v2125_v62 = vpop.f32.mrb[21].mxu0 }
 0x322   :  { %v6895_v2 = vpack.c.bf16 %v2125_v62, %v1886_v47  ;;  %2177 = vmax.xlane.f32.xlu1 %v2176_v0  ;;  %2159 = vmax.xlane.f32.xlu0 %v2158_v1 }
 0x323   :  { %6908 = vmatpush3.bf16.msra.mxu0 %v6907_v61 }
 0x324   :  { %6896 = vmatpush3.bf16.msra.mxu1 %v6895_v2 }
 0x326   :  { %2135 = vmax.xlane.f32.xlu1 %v2134_v4 }
 0x384   :  { %v2166_v5 = vpop.xlane.xlu0 %2165 }
 0x385   :  { %v2192_v6 = vsub.f32 %v7802_v63, %v2166_v5 }
 0x387   :  { %v2218_v8 = vmul.f32 1.442695, %v2192_v6 }
 0x388   :  { %v2145_v9 = vpop.xlane.xlu0 %2144 }
 0x389   :  { %7142 = vpow2.f32 %v2218_v8  ;;  %v2185_v10 = vsub.f32 %v7808_v3, %v2145_v9 }
 0x38b   :  { %v2204_v12 = vmul.f32 1.442695, %v2185_v10 }
 0x38c   :  { %v2139_v13 = vpop.xlane.xlu0 %2138 }
 0x38d   :  { %7144 = vpow2.f32 %v2204_v12  ;;  %v2183_v14 = vsub.f32 %v7796_v53, %v2139_v13 }
 0x38f   :  { %v2200_v15 = vmul.f32 1.442695, %v2183_v14 }
 0x390   :  { %v2163_v16 = vpop.xlane.xlu0 %2162 }
 0x391   :  { %7146 = vpow2.f32 %v2200_v15  ;;  %v2191_v18 = vsub.f32 %v7798_v55, %v2163_v16 }
 0x393   :  { %v7866_v19 = vpop.eup %7142  ;;  %v2216_v20 = vmul.f32 1.442695, %v2191_v18 }
 0x394   :  { %v2172_v21 = vpop.xlane.xlu1 %2171  ;;  %v2169_v63 = vpop.xlane.xlu0 %2168  ;;  %v2260_v24 = vsel %vm228_vm2, %v7866_v19, 0.0 }
 0x395   :  { %7148 = vpow2.f32 %v2216_v20  ;;  %v2194_v3 = vsub.f32 %v7820_v17, %v2172_v21  ;;  %2261 = vadd.xlane.f32.xlu0 %v2260_v24  ;;  %v2193_v31 = vsub.f32 %v7812_v7, %v2169_v63 }
 0x397   :  { %v7871_v25 = vpop.eup %7144  ;;  %v2222_v53 = vmul.f32 1.442695, %v2194_v3  ;;  %v2220_v41 = vmul.f32 1.442695, %v2193_v31 }
 0x398   :  { %v2151_v26 = vpop.xlane.xlu1 %2150  ;;  %v2239_v27 = vsel %vm228_vm2, %v7871_v25, 0.0  ;;  %v2148_v29 = vpop.xlane.xlu0 %2147 }
 0x399   :  { %7150 = vpow2.f32 %v2222_v53  ;;  %v2187_v55 = vsub.f32 %v7828_v23, %v2151_v26  ;;  %2240 = vadd.xlane.f32.xlu1 %v2239_v27  ;;  %v2186_v23 = vsub.f32 %v7816_v11, %v2148_v29 }
 0x39b   :  { %v7876_v30 = vpop.eup %7146  ;;  %v2208_v33 = vmul.f32 1.442695, %v2187_v55  ;;  %v2206_v51 = vmul.f32 1.442695, %v2186_v23 }
 0x39c   :  { %v2142_v34 = vpop.xlane.xlu1 %2141  ;;  %v2233_v17 = vsel %vm228_vm2, %v7876_v30, 0.0  ;;  %v2175_v44 = vpop.xlane.xlu0 %2174 }
 0x39d   :  { %7152 = vpow2.f32 %v2208_v33  ;;  %v2184_v35 = vsub.f32 %v7800_v57, %v2142_v34  ;;  %2234 = vadd.xlane.f32.xlu1 %v2233_v17  ;;  %v2195_v52 = vsub.f32 %v7834_v28, %v2175_v44 }
 0x39f   :  { %v7882_v37 = vpop.eup %7148  ;;  %v2202_v43 = vmul.f32 1.442695, %v2184_v35  ;;  %v2224_v11 = vmul.f32 1.442695, %v2195_v52 }
 0x3a0   :  { %v2257_v47 = vsel %vm228_vm2, %v7882_v37, 0.0 }
 0x3a1   :  { %7154 = vpow2.f32 %v2202_v43  ;;  %2258 = vadd.xlane.f32.xlu0 %v2257_v47 }
 0x3a2   :  { %7156 = vpow2.f32 %v2220_v41 }
 0x3a3   :  { %v7887_v7 = vpop.eup %7150  ;;  %7158 = vpow2.f32 %v2206_v51 }
 0x3a4   :  { %v2266_v57 = vsel %vm228_vm2, %v7887_v7, 0.0  ;;  %7160 = vpow2.f32 %v2224_v11 }
 0x3a5   :  { %2267 = vadd.xlane.f32.xlu1 %v2266_v57 }
 0x3a7   :  { %v7892_v56 = vpop.eup %7152  ;;  %v2157_v58 = vpop.xlane.xlu1 %2156 }
 0x3a8   :  { %v2189_v59 = vsub.f32 %v7846_v50, %v2157_v58  ;;  %v2245_v60 = vsel %vm228_vm2, %v7892_v56, 0.0 }
 0x3a9   :  { %2246 = vadd.xlane.f32.xlu1 %v2245_v60 }
 0x3aa   :  { %v2212_v61 = vmul.f32 1.442695, %v2189_v59 }
 0x3ab   :  { %v7897_v62 = vpop.eup %7154  ;;  %v2154_v28 = vpop.xlane.xlu1 %2153 }
 0x3ac   :  { %v2181_v0 = vpop.xlane.xlu0 %2180  ;;  %7162 = vpow2.f32 %v2212_v61  ;;  %v2188_v1 = vsub.f32 %v7840_v40, %v2154_v28  ;;  %v2236_v4 = vsel %vm228_vm2, %v7897_v62, 0.0  ;;  %v7903_v5 = vpop.eup %7156 }
 0x3ad   :  { %v2197_v2 = vsub.f32 %v7850_v54, %v2181_v0  ;;  %2237 = vadd.xlane.f32.xlu0 %v2236_v4  ;;  %v2263_v40 = vsel %vm228_vm2, %v7903_v5, 0.0  ;;  %v7909_v13 = vpop.eup %7158 }
 0x3ae   :  { %v2210_v50 = vmul.f32 1.442695, %v2188_v1  ;;  %v2242_v18 = vsel %vm228_vm2, %v7909_v13, 0.0  ;;  %v7914_v20 = vpop.eup %7160 }
 0x3af   :  { %v2228_v6 = vmul.f32 1.442695, %v2197_v2  ;;  %v2178_v8 = vpop.xlane.xlu1 %2177  ;;  %v2269_v63 = vsel %vm228_vm2, %v7914_v20, 0.0 }
 0x3b0   :  { %v2160_v9 = vpop.xlane.xlu0 %2159  ;;  %7164 = vpow2.f32 %v2210_v50  ;;  %v2196_v10 = vsub.f32 %v7844_v42, %v2178_v8 }
 0x3b1   :  { %v2190_v12 = vsub.f32 %v7794_v48, %v2160_v9  ;;  %7166 = vpow2.f32 %v2228_v6  ;;  %2264 = vadd.xlane.f32.xlu0 %v2263_v40 }
 0x3b2   :  { %v2226_v54 = vmul.f32 1.442695, %v2196_v10 }
 0x3b3   :  { %v2214_v14 = vmul.f32 1.442695, %v2190_v12  ;;  %v2136_v15 = vpop.xlane.xlu1 %2135 }
 0x3b4   :  { %7168 = vpow2.f32 %v2226_v54  ;;  %v2182_v16 = vsub.f32 %v7792_v46, %v2136_v15 }
 0x3b5   :  { %7170 = vpow2.f32 %v2214_v14  ;;  %2243 = vadd.xlane.f32.xlu0 %v2242_v18 }
 0x3b6   :  { %v7916_v48 = vpop.eup %7162  ;;  %v2198_v42 = vmul.f32 1.442695, %v2182_v16 }
 0x3b7   :  { %v2251_v21 = vsel %vm228_vm2, %v7916_v48, 0.0 }
 0x3b8   :  { %7172 = vpow2.f32 %v2198_v42  ;;  %2252 = vadd.xlane.f32.xlu1 %v2251_v21 }
 0x3b9   :  { %2270 = vadd.xlane.f32.xlu0 %v2269_v63 }
 0x3ba   :  { %v7922_v46 = vpop.eup %7164 }
 0x3bb   :  { %v7924_v24 = vpop.eup %7166  ;;  %v2248_v3 = vsel %vm228_vm2, %v7922_v46, 0.0 }
 0x3bc   :  { %2249 = vadd.xlane.f32.xlu1 %v2248_v3  ;;  %v2275_v53 = vsel %vm228_vm2, %v7924_v24, 0.0 }
 0x3bd   :  { %2276 = vadd.xlane.f32.xlu0 %v2275_v53 }
 0x3be   :  { %v7930_v26 = vpop.eup %7168 }
 0x3bf   :  { %v7932_v27 = vpop.eup %7170  ;;  %v2272_v55 = vsel %vm228_vm2, %v7930_v26, 0.0 }
 0x3c0   :  { %2273 = vadd.xlane.f32.xlu1 %v2272_v55  ;;  %v2254_v29 = vsel %vm228_vm2, %v7932_v27, 0.0 }
 0x3c1   :  { %2255 = vadd.xlane.f32.xlu0 %v2254_v29 }
 0x3c2   :  { %v7938_v31 = vpop.eup %7172 }
 0x3c3   :  { %v2230_v33 = vsel %vm228_vm2, %v7938_v31, 0.0 }
 0x3c4   :  { %2231 = vadd.xlane.f32.xlu1 %v2230_v33 }
 0x422   :  { %v2262_v34 = vpop.xlane.xlu0 %2261 }
 0x423   :  { %7174 = vrcp.f32 %v2262_v34 }
 0x426   :  { %v2241_v17 = vpop.xlane.xlu1 %2240 }
 0x427   :  { %7176 = vrcp.f32 %v2241_v17 }
 0x42a   :  { %v2235_v35 = vpop.xlane.xlu1 %2234 }
 0x42b   :  { %7178 = vrcp.f32 %v2235_v35 }
 0x42d   :  { %v7175_v41 = vpop.eup %7174 }
 0x42e   :  { %v2304_v23 = vmul.f32 %v7175_v41, %v7866_v19  ;;  %v2259_v44 = vpop.xlane.xlu0 %2258 }
 0x430   :  { %2322 = vrot.lane.b32.xlu0 %v2304_v23, %s9025_s17 }
 0x431   :  { %v7177_v43 = vpop.eup %7176 }
 0x432   :  { %v2268_v47 = vpop.xlane.xlu1 %2267  ;;  %v2297_v51 = vmul.f32 %v7177_v43, %v7871_v25 }
 0x433   :  { %7180 = vrcp.f32 %v2268_v47 }
 0x434   :  { %2328 = vrot.lane.b32.xlu1 %v2297_v51, %s7410_s30  ;;  %7182 = vrcp.f32 %v2259_v44 }
 0x435   :  { %v7179_v52 = vpop.eup %7178 }
 0x436   :  { %v2247_v57 = vpop.xlane.xlu1 %2246  ;;  %v2295_v11 = vmul.f32 %v7179_v52, %v7876_v30 }
 0x437   :  { %7184 = vrcp.f32 %v2247_v57 }
 0x438   :  { %2312 = vrot.lane.b32.xlu1 %v2295_v11, %s9021_s29 }
 0x43a   :  { %v2238_v58 = vpop.xlane.xlu0 %2237 }
 0x43b   :  { %7186 = vrcp.f32 %v2238_v58 }
 0x43d   :  { %v7181_v19 = vpop.eup %7180 }
 0x43e   :  { %v2265_v59 = vpop.xlane.xlu0 %2264  ;;  %v2306_v60 = vmul.f32 %v7181_v19, %v7887_v7  ;;  %v7183_v61 = vpop.eup %7182 }
 0x43f   :  { %7188 = vrcp.f32 %v2265_v59  ;;  %v2303_v0 = vmul.f32 %v7183_v61, %v7882_v37 }
 0x440   :  { %2338 = vrot.lane.b32.xlu0 %v2306_v60, %s7407_s27 }
 0x441   :  { %v7185_v25 = vpop.eup %7184 }
 0x442   :  { %v2299_v28 = vmul.f32 %v7185_v25, %v7892_v56  ;;  %v2244_v1 = vpop.xlane.xlu0 %2243 }
 0x444   :  { %2344 = vrot.lane.b32.xlu1 %v2299_v28, %s7406_s26  ;;  %2314 = vrot.lane.b32.xlu0 %v2303_v0, %s9021_s29  ;;  %v7992_v0 = vld [vmem:[%s9009_s6] sm:$0x3f] }
 0x445   :  { %v7187_v30 = vpop.eup %7186  ;;  %v2253_v2 = vpop.xlane.xlu1 %2252 }
 0x446   :  { %7190 = vrcp.f32 %v2253_v2  ;;  %v2296_v4 = vmul.f32 %v7187_v30, %v7897_v62  ;;  %v2271_v56 = vpop.xlane.xlu0 %2270  ;;  %v2535_v30 = vrot.slane %v7992_v0, %v7603_v39 }
 0x447   :  { %7192 = vrcp.f32 %v2244_v1 }
 0x448   :  { %2320 = vrot.lane.b32.xlu0 %v2296_v4, %s9025_s17 }
 0x449   :  { %v7189_v7 = vpop.eup %7188  ;;  %v2250_v50 = vpop.xlane.xlu1 %2249 }
 0x44a   :  { %v2305_v6 = vmul.f32 %v7189_v7, %v7903_v5  ;;  %7194 = vrcp.f32 %v2250_v50  ;;  %v2277_v9 = vpop.xlane.xlu0 %2276 }
 0x44c   :  { %2330 = vrot.lane.b32.xlu0 %v2305_v6, %s7410_s30 }
 0x44d   :  { %v2274_v37 = vpop.xlane.xlu1 %2273 }
 0x44e   :  { %7196 = vrcp.f32 %v2274_v37 }
 0x44f   :  { %7198 = vrcp.f32 %v2271_v56 }
 0x450   :  { %v7191_v8 = vpop.eup %7190  ;;  %7200 = vrcp.f32 %v2277_v9 }
 0x451   :  { %v2301_v10 = vmul.f32 %v7191_v8, %v7916_v48  ;;  %v7193_v12 = vpop.eup %7192  ;;  %v2256_v48 = vpop.xlane.xlu0 %2255 }
 0x452   :  { %v2298_v62 = vmul.f32 %v7193_v12, %v7909_v13  ;;  %v2232_v42 = vpop.xlane.xlu1 %2231 }
 0x453   :  { %2360 = vrot.lane.b32.xlu1 %v2301_v10, %s7401_s18  ;;  %7202 = vrcp.f32 %v2232_v42  ;;  %v2581_v42 = vld [vmem:[%s9010_s7 + $0x10] sm:$0xff] }
 0x454   :  { %v7195_v40 = vpop.eup %7194  ;;  %7204 = vrcp.f32 %v2256_v48  ;;  %v2579_v48 = vld [vmem:[%s9010_s7] sm:$0xff] }
 0x455   :  { %v2300_v14 = vmul.f32 %v7195_v40, %v7922_v46 }
 0x457   :  { %2336 = vrot.lane.b32.xlu1 %v2298_v62, %s7407_s27 }
 0x458   :  { %v7197_v5 = vpop.eup %7196 }
 0x459   :  { %v2308_v54 = vmul.f32 %v7197_v5, %v7930_v26  ;;  %v7199_v15 = vpop.eup %7198 }
 0x45a   :  { %v2307_v16 = vmul.f32 %v7199_v15, %v7914_v20  ;;  %v7201_v18 = vpop.eup %7200 }
 0x45b   :  { %2354 = vrot.lane.b32.xlu0 %v2308_v54, %s7403_s24  ;;  %2352 = vrot.lane.b32.xlu1 %v2300_v14, %s7403_s24  ;;  %v2309_v13 = vmul.f32 %v7201_v18, %v7924_v24  ;;  %v2582_v18 = vld [vmem:[%s9010_s7 + $0x18] sm:$0xff] }
 0x45d   :  { %v7203_v26 = vpop.eup %7202 }
 0x45e   :  { %v2294_v20 = vmul.f32 %v7203_v26, %v7938_v31  ;;  %v7205_v33 = vpop.eup %7204  ;;  %v2585_v26 = vld [vmem:[%s9010_s7 + $0x30] sm:$0xff] }
 0x45f   :  { %2346 = vrot.lane.b32.xlu1 %v2307_v16, %s7406_s26  ;;  %v2302_v35 = vmul.f32 %v7205_v33, %v7932_v27 }
 0x463   :  { %2362 = vrot.lane.b32.xlu1 %v2309_v13, %s7401_s18 }
 0x4a2   :  { %v2323_v21 = vpop.permute.xlu0 %2322 }
 0x4a6   :  { %v2329_v63 = vpop.permute.xlu1 %2328 }
 0x4aa   :  { %v2313_v3 = vpop.permute.xlu1 %2312 }
 0x4ab   :  { %v2366_v34 = vsel %vm228_vm2, %v2294_v20, %v2313_v3  ;;  %v2588_v20 = vld [vmem:[%s9010_s7 + $0x48] sm:$0xff] }
 0x4b2   :  { %v2339_v46 = vpop.permute.xlu0 %2338 }
 0x4b6   :  { %v2315_v53 = vpop.permute.xlu0 %2314  ;;  %v2345_v55 = vpop.permute.xlu1 %2344 }
 0x4b7   :  { %v2367_v43 = vsel %vm228_vm2, %v2302_v35, %v2315_v53  ;;  %v2583_v53 = vld [vmem:[%s9010_s7 + $0x20] sm:$0xff]  ;;  %v2592_v35 = vld [vmem:[%s9010_s7 + $0x68] sm:$0xff] }
 0x4b8   :  { %v2370_v47 = vsel %vm2368_vm3, %v2367_v43, %v2323_v21  ;;  %v6911_v21 = vpack.c.bf16 %v2581_v42, %v2579_v48  ;;  %v2800_v42 = vld [vmem:[%s9012_s9 + $0x30] sm:$0xff] }
 0x4ba   :  { %v2321_v29 = vpop.permute.xlu0 %2320 }
 0x4bb   :  { %v2369_v17 = vsel %vm2368_vm3, %v2366_v34, %v2321_v29  ;;  %v2590_v29 = vld [vmem:[%s9010_s7 + $0x58] sm:$0xff]  ;;  %v2587_v34 = vld [vmem:[%s9010_s7 + $0x40] sm:$0xff] }
 0x4bc   :  { %v2372_v23 = vsel %vm2371_vm4, %v2369_v17, %v2329_v63  ;;  %v2584_v63 = vld [vmem:[%s9010_s7 + $0x28] sm:$0xff]  ;;  %v6917_v33 = vpack.c.bf16 %v2590_v29, %v2588_v20  ;;  %v2820_v29 = vld [vmem:[%s9012_s9 + $0xd0] sm:$0xff] }
 0x4be   :  { %v2331_v31 = vpop.permute.xlu0 %2330 }
 0x4bf   :  { %v2373_v57 = vsel %vm2371_vm4, %v2370_v47, %v2331_v31 }
 0x4c0   :  { %v2376_v19 = vsel %vm2374_vm5, %v2373_v57, %v2339_v46  ;;  %v2586_v46 = vld [vmem:[%s9010_s7 + $0x38] sm:$0xff] }
 0x4c1   :  { %v6913_v3 = vpack.c.bf16 %v2586_v46, %v2584_v63  ;;  %v2818_v46 = vld [vmem:[%s9012_s9 + $0xc0] sm:$0xff] }
 0x4c5   :  { %v2361_v24 = vpop.permute.xlu1 %2360 }
 0x4c9   :  { %v2337_v41 = vpop.permute.xlu1 %2336 }
 0x4ca   :  { %v2375_v44 = vsel %vm2374_vm5, %v2372_v23, %v2337_v41  ;;  %v2594_v41 = vld [vmem:[%s9010_s7 + $0x78] sm:$0xff]  ;;  %v2591_v23 = vld [vmem:[%s9010_s7 + $0x60] sm:$0xff] }
 0x4cb   :  { %v2378_v52 = vsel %vm2377_vm6, %v2375_v44, %v2345_v55  ;;  %v6915_v55 = vpack.c.bf16 %v2585_v26, %v2583_v53  ;;  %v6921_v43 = vpack.c.bf16 %v2594_v41, %v2592_v35  ;;  %v2593_v44 = vld [vmem:[%s9010_s7 + $0x70] sm:$0xff]  ;;  %v2802_v26 = vld [vmem:[%s9012_s9 + $0x40] sm:$0xff] }
 0x4cc   :  { %v6923_v31 = vpack.c.bf16 %v2593_v44, %v2591_v23  ;;  %v2822_v41 = vld [vmem:[%s9012_s9 + $0xe0] sm:$0xff]  ;;  %v2823_v23 = vld [vmem:[%s9012_s9 + $0xe8] sm:$0xff] }
 0x4cd   :  { %v2353_v51 = vpop.permute.xlu1 %2352  ;;  %v2355_v60 = vpop.permute.xlu0 %2354  ;;  %v2806_v44 = vld [vmem:[%s9012_s9 + $0x60] sm:$0xff] }
 0x4ce   :  { %v2381_v27 = vsel %vm2380_vm7, %v2378_v52, %v2353_v51 }
 0x4cf   :  { %v2384_v11 = vsel %vm2383_vm8, %v2381_v27, %v2361_v24  ;;  %v2589_v24 = vld [vmem:[%s9010_s7 + $0x50] sm:$0xff] }
 0x4d0   :  { %6690 = vmatmul.mubr.msk.f32.vlgmr.msra.gmra.mrb[30].mxu1 %vm141_vm0, %v2384_v11  ;;  %v6919_v17 = vpack.c.bf16 %v2589_v24, %v2587_v34  ;;  %v2804_v24 = vld [vmem:[%s9012_s9 + $0x50] sm:$0xff] }
 0x4d1   :  { %v2347_v58 = vpop.permute.xlu1 %2346  ;;  %2677 = vmatprep.mubr.f32.mxu1 %v7399_v22 }
 0x4d2   :  { %v2379_v59 = vsel %vm2377_vm6, %v2376_v19, %v2347_v58  ;;  %v2575_v58 = vsub.s32 2, %v7598_v38  ;;  %v2570_v19 = vrot.slane %v7992_v0, %v7643_v49 }
 0x4d3   :  { %v2382_v25 = vsel %vm2380_vm7, %v2379_v59, %v2355_v60 }
 0x4d5   :  { %v2363_v61 = vpop.permute.xlu1 %2362 }
 0x4d6   :  { %v2385_v28 = vsel %vm2383_vm8, %v2382_v25, %v2363_v61  ;;  %v2576_v61 = vrot.slane %v7992_v0, %v2575_v58 }
 0x4d7   :  { %6709 = vmatmul.mubr.msk.f32.vlgmr.msra.gmra.mrb[22].mxu0 %vm141_vm0, %v2385_v28 }
 0x5a3   :  { %v2455_v1 = vpop.f32.mrb[30].mxu1 }
 0x5a4   :  { %v2536_v2 = vadd.f32 %v2535_v30, %v2455_v1  ;;  %v6691_v4 = vpop.f32.mrb[31].mxu1 }
 0x5a6   :  { %v2538_v7 = vadd.f32 %v2536_v2, %v7587_v32 }
 0x5a8   :  { %v2540_v50 = vsel %vm141_vm0, %v2538_v7, 0.0 }
 0x5a9   :  { %2541 = vadd.xlane.f32.xlu0 %v2540_v50  ;;  %v2811_v50 = vld [vmem:[%s9012_s9 + $0x88] sm:$0xff] }
 0x5aa   :  { %v2528_v6 = vpop.f32.mrb[22].mxu0 }
 0x5ab   :  { %v2537_v56 = vadd.f32 %v2535_v30, %v2528_v6  ;;  %v6710_v37 = vpop.f32.mrb[23].mxu0 }
 0x5ac   :  { %v2795_v37 = vld [vmem:[%s9012_s9 + $0x8] sm:$0xff] }
 0x5ad   :  { %v2539_v8 = vadd.f32 %v2537_v56, %v7594_v36  ;;  %v2580_v36 = vld [vmem:[%s9010_s7 + $0x8] sm:$0xff]  ;;  %v2794_v56 = vld [vmem:[%s9012_s9] sm:$0xff] }
 0x5ae   :  { %v6909_v13 = vpack.c.bf16 %v2582_v18, %v2580_v36  ;;  %v2816_v18 = vld [vmem:[%s9012_s9 + $0xb0] sm:$0xff] }
 0x5af   :  { %v2543_v9 = vsel %vm141_vm0, %v2539_v8, 0.0 }
 0x5b0   :  { %2544 = vadd.xlane.f32.xlu1 %v2543_v9  ;;  %6910 = vmatprep.subr.bf16.mxu1 %v6909_v13  ;;  %v2812_v9 = vld [vmem:[%s9012_s9 + $0x90] sm:$0xff]  ;;  %v2817_v13 = vld [vmem:[%s9012_s9 + $0xb8] sm:$0xff] }
 0x5b1   :  { %6912 = vmatpush1.bf16.msra.mxu1 %v6911_v21  ;;  %v6937_v48 = vpack.c.bf16 %v2817_v13, %v2816_v18  ;;  %v2801_v21 = vld [vmem:[%s9012_s9 + $0x38] sm:$0xff] }
 0x5b2   :  { %6914 = vmatprep.subr.bf16.mxu1 %v6913_v3  ;;  %v6939_v63 = vpack.c.bf16 %v2801_v21, %v2800_v42  ;;  %v2819_v3 = vld [vmem:[%s9012_s9 + $0xc8] sm:$0xff] }
 0x5b3   :  { %v6941_v53 = vpack.c.bf16 %v2819_v3, %v2818_v46 }
 0x5b5   :  { %6916 = vmatpush1.bf16.msra.mxu1 %v6915_v55  ;;  %v2803_v55 = vld [vmem:[%s9012_s9 + $0x48] sm:$0xff] }
 0x5b6   :  { %6918 = vmatprep.subr.bf16.mxu1 %v6917_v33  ;;  %v6943_v20 = vpack.c.bf16 %v2803_v55, %v2802_v26  ;;  %v2821_v33 = vld [vmem:[%s9012_s9 + $0xd8] sm:$0xff] }
 0x5b7   :  { %v6945_v34 = vpack.c.bf16 %v2821_v33, %v2820_v29 }
 0x5b9   :  { %6920 = vmatpush1.bf16.msra.mxu1 %v6919_v17  ;;  %v2805_v17 = vld [vmem:[%s9012_s9 + $0x58] sm:$0xff] }
 0x5ba   :  { %6922 = vmatprep.subr.bf16.mxu1 %v6921_v43  ;;  %v6947_v35 = vpack.c.bf16 %v2805_v17, %v2804_v24  ;;  %v6949_v43 = vpack.c.bf16 %v2823_v23, %v2822_v41 }
 0x5bd   :  { %6924 = vmatpush1.bf16.msra.mxu1 %v6923_v31  ;;  %v2807_v31 = vld [vmem:[%s9012_s9 + $0x68] sm:$0xff] }
 0x636   :  { %v2542_v10 = vpop.xlane.xlu0 %2541 }
 0x637   :  { %v2547_v12 = vmul.f32 0.015625, %v2542_v10  ;;  %v2813_v10 = vld [vmem:[%s9012_s9 + $0x98] sm:$0xff] }
 0x639   :  { %v2549_v62 = vsub.f32 %v2538_v7, %v2547_v12  ;;  %v2810_v7 = vld [vmem:[%s9012_s9 + $0x80] sm:$0xff]  ;;  %v6929_v12 = vpack.c.bf16 %v2813_v10, %v2812_v9 }
 0x63a   :  { %v6925_v6 = vpack.c.bf16 %v2811_v50, %v2810_v7 }
 0x63b   :  { %v2551_v40 = vmul.f32 %v2549_v62, %v2549_v62 }
 0x63c   :  { %6926 = vmatprep.subr.bf16.mxu0 %v6925_v6 }
 0x63d   :  { %v2545_v5 = vpop.xlane.xlu1 %2544  ;;  %v2553_v54 = vsel %vm141_vm0, %v2551_v40, 0.0  ;;  %v2797_v40 = vld [vmem:[%s9012_s9 + $0x18] sm:$0xff] }
 0x63e   :  { %v2548_v14 = vmul.f32 0.015625, %v2545_v5  ;;  %2554 = vadd.xlane.f32.xlu0 %v2553_v54  ;;  %v2814_v54 = vld [vmem:[%s9012_s9 + $0xa0] sm:$0xff] }
 0x640   :  { %v2550_v32 = vsub.f32 %v2539_v8, %v2548_v14  ;;  %v6927_v8 = vpack.c.bf16 %v2795_v37, %v2794_v56  ;;  %v2815_v14 = vld [vmem:[%s9012_s9 + $0xa8] sm:$0xff] }
 0x642   :  { %v2552_v15 = vmul.f32 %v2550_v32, %v2550_v32  ;;  %6928 = vmatpush3.bf16.msra.mxu0 %v6927_v8 }
 0x643   :  { %6930 = vmatprep.subr.bf16.mxu0 %v6929_v12 }
 0x644   :  { %v2556_v16 = vsel %vm141_vm0, %v2552_v15, 0.0  ;;  %v2798_v15 = vld [vmem:[%s9012_s9 + $0x20] sm:$0xff] }
 0x645   :  { %2557 = vadd.xlane.f32.xlu0 %v2556_v16  ;;  %v2799_v16 = vld [vmem:[%s9012_s9 + $0x28] sm:$0xff] }
 0x646   :  { %v6935_v36 = vpack.c.bf16 %v2799_v16, %v2798_v15 }
 0x6cb   :  { %v2555_v47 = vpop.xlane.xlu0 %2554 }
 0x6cc   :  { %v2559_v51 = vmul.f32 0.015625, %v2555_v47  ;;  %v6951_v47 = vpack.c.bf16 %v2807_v31, %v2806_v44 }
 0x6ce   :  { %v2561_v52 = vadd.f32 1e-06, %v2559_v51  ;;  %v2824_v51 = vld [vmem:[%s9012_s9 + $0xf0] sm:$0xff] }
 0x6d0   :  { %7206 = vrsqrt.f32 %v2561_v52  ;;  %v2825_v52 = vld [vmem:[%s9012_s9 + $0xf8] sm:$0xff] }
 0x6d2   :  { %v2558_v57 = vpop.xlane.xlu0 %2557 }
 0x6d3   :  { %v2560_v27 = vmul.f32 0.015625, %v2558_v57  ;;  %v6953_v57 = vpack.c.bf16 %v2825_v52, %v2824_v51 }
 0x6d5   :  { %v2562_v11 = vadd.f32 1e-06, %v2560_v27  ;;  %v2808_v27 = vld [vmem:[%s9012_s9 + $0x70] sm:$0xff] }
 0x6d7   :  { %7208 = vrsqrt.f32 %v2562_v11  ;;  %v2809_v11 = vld [vmem:[%s9012_s9 + $0x78] sm:$0xff] }
 0x6da   :  { %v7207_v59 = vpop.eup %7206 }
 0x6db   :  { %v2565_v60 = vmul.f32 %v7207_v59, %v2549_v62  ;;  %v2796_v62 = vld [vmem:[%s9012_s9 + $0x10] sm:$0xff]  ;;  %v2595_v59 = vld [vmem:[%s9011_s8] sm:$0x3] }
 0x6dc   :  { %v6931_v5 = vpack.c.bf16 %v2797_v40, %v2796_v62 }
 0x6dd   :  { %v2571_v25 = vmul.f32 %v2570_v19, %v2565_v60  ;;  %v2600_v60 = vrot.slane %v2595_v59, %v7603_v39 }
 0x6de   :  { %6932 = vmatpush3.bf16.msra.mxu0 %v6931_v5 }
 0x6df   :  { %v8056_v28 = vadd.f32 %v2576_v61, %v2571_v25 }
 0x6e1   :  { %v7209_v30 = vpop.eup %7208  ;;  %6170 = vmatmul.mubr.msk.f32.vlgmr.msra.gmra.mrb[32].mxu1 %vm141_vm0, %v8056_v28 }
 0x6e2   :  { %2683 = vmatprep.mubr.f32.mxu1 %v7399_v22  ;;  %v2566_v1 = vmul.f32 %v7209_v30, %v2550_v32  ;;  %v6933_v32 = vpack.c.bf16 %v2815_v14, %v2814_v54 }
 0x6e4   :  { %v2572_v2 = vmul.f32 %v2570_v19, %v2566_v1  ;;  %6934 = vmatprep.subr.bf16.mxu0 %v6933_v32  ;;  %v6955_v19 = vpack.c.bf16 %v2809_v11, %v2808_v27 }
 0x6e5   :  { %6936 = vmatpush3.bf16.msra.mxu0 %v6935_v36 }
 0x6e6   :  { %v8061_v4 = vadd.f32 %v2576_v61, %v2572_v2  ;;  %6938 = vmatprep.subr.bf16.mxu0 %v6937_v48  ;;  %v2604_v61 = vrot.slane %v2595_v59, %v7643_v49 }
 0x6e8   :  { %6171 = vmatmul.mubr.msk.f32.gmra.mrb[34].mxu1 %vm141_vm0, %v8061_v4 }
 0x6e9   :  { %3056 = vmatprep.mubr.f32.mxu1 %v7399_v22  ;;  %6940 = vmatpush3.bf16.msra.mxu0 %v6939_v63 }
 0x6ea   :  { %6942 = vmatprep.subr.bf16.mxu0 %v6941_v53 }
 0x6ed   :  { %6944 = vmatpush3.bf16.msra.mxu0 %v6943_v20 }
 0x6ee   :  { %6946 = vmatprep.subr.bf16.mxu0 %v6945_v34 }
 0x6f1   :  { %6948 = vmatpush3.bf16.msra.mxu0 %v6947_v35 }
 0x6f2   :  { %6950 = vmatprep.subr.bf16.mxu0 %v6949_v43 }
 0x6f5   :  { %6952 = vmatpush3.bf16.msra.mxu0 %v6951_v47 }
 0x6f6   :  { %6954 = vmatprep.subr.bf16.mxu0 %v6953_v57 }
 0x6f9   :  { %6956 = vmatpush3.bf16.msra.mxu0 %v6955_v19 }
 0x6fa   :  { %6716 = vmatprep.subr.mxu0 %v7399_v22 }
 0x7b4   :  { %v2679_v25 = vpop.f32.mrb[32].mxu1 }
 0x7b5   :  { %v8168_v30 = vadd.f32 %v2679_v25, %v2600_v60  ;;  %v2681_v1 = vpop.f32.mrb[33].mxu1 }
 0x7b6   :  { %v8170_v2 = vadd.f32 %v2681_v1, %v2604_v61 }
 0x7b7   :  { %v8173_v7 = vmul.f32 0.70710677, %v8168_v30 }
 0x7b8   :  { %v8176_v50 = vmul.f32 0.70710677, %v8170_v2 }
 0x7b9   :  { %v2706_v6 = vand.u32 2147483647, %v8173_v7  ;;  %vm2698_vm9 = vcmp.ge.f32.partialorder %v8173_v7, 0.0 }
 0x7ba   :  { %v2707_v56 = vand.u32 2147483647, %v8176_v50  ;;  %vm2699_vm10 = vcmp.ge.f32.partialorder %v8176_v50, 0.0  ;;  %v2691_v50 = vmul.f32 0.5, %v8170_v2 }
 0x7bb   :  { %v2710_v37 = vmul.f32 0.3275911, %v2706_v6  ;;  %v2685_v8 = vpop.f32.mrb[34].mxu1  ;;  %v2758_v13 = vsub.f32 0.0, %v2706_v6 }
 0x7bc   :  { %v2711_v9 = vmul.f32 0.3275911, %v2707_v56  ;;  %v8180_v10 = vadd.f32 %v2685_v8, %v2600_v60  ;;  %v2687_v12 = vpop.f32.mrb[35].mxu1  ;;  %v2759_v42 = vsub.f32 0.0, %v2707_v56 }
 0x7bd   :  { %v2714_v62 = vadd.f32 1.0, %v2710_v37  ;;  %v8182_v40 = vadd.f32 %v2687_v12, %v2604_v61  ;;  %v2762_v63 = vmul.f32 %v2758_v13, %v2706_v6 }
 0x7be   :  { %v2715_v5 = vadd.f32 1.0, %v2711_v9  ;;  %v8185_v54 = vmul.f32 0.70710677, %v8180_v10  ;;  %v2763_v53 = vmul.f32 %v2759_v42, %v2707_v56 }
 0x7bf   :  { %7210 = vrcp.f32 %v2714_v62  ;;  %v8188_v14 = vmul.f32 0.70710677, %v8182_v40  ;;  %v2766_v29 = vmul.f32 1.442695, %v2762_v63 }
 0x7c0   :  { %7212 = vrcp.f32 %v2715_v5  ;;  %v2708_v32 = vand.u32 2147483647, %v8185_v54  ;;  %v2768_v17 = vmul.f32 1.442695, %v2763_v53  ;;  %vm2700_vm11 = vcmp.ge.f32.partialorder %v8185_v54, 0.0 }
 0x7c1   :  { %v2709_v15 = vand.u32 2147483647, %v8188_v14  ;;  %vm2701_vm12 = vcmp.ge.f32.partialorder %v8188_v14, 0.0 }
 0x7c2   :  { %v2712_v16 = vmul.f32 0.3275911, %v2708_v32  ;;  %v2760_v20 = vsub.f32 0.0, %v2708_v32 }
 0x7c3   :  { %v2713_v36 = vmul.f32 0.3275911, %v2709_v15  ;;  %v2761_v33 = vsub.f32 0.0, %v2709_v15 }
 0x7c4   :  { %v2716_v18 = vadd.f32 1.0, %v2712_v16  ;;  %v2764_v43 = vmul.f32 %v2760_v20, %v2708_v32 }
 0x7c5   :  { %v2717_v48 = vadd.f32 1.0, %v2713_v36  ;;  %v2765_v31 = vmul.f32 %v2761_v33, %v2709_v15 }
 0x7c6   :  { %7214 = vrcp.f32 %v2716_v18  ;;  %v2770_v59 = vmul.f32 1.442695, %v2764_v43 }
 0x7c7   :  { %7216 = vrcp.f32 %v2717_v48  ;;  %v2772_v61 = vmul.f32 1.442695, %v2765_v31 }
 0x7c8   :  { %7218 = vpow2.f32 %v2766_v29 }
 0x7c9   :  { %v7211_v21 = vpop.eup %7210  ;;  %7220 = vpow2.f32 %v2768_v17 }
 0x7ca   :  { %v7213_v46 = vpop.eup %7212  ;;  %v2722_v3 = vmul.f32 1.0614054, %v7211_v21  ;;  %7222 = vpow2.f32 %v2770_v59 }
 0x7cb   :  { %v2723_v26 = vmul.f32 1.0614054, %v7213_v46  ;;  %7224 = vpow2.f32 %v2772_v61 }
 0x7cc   :  { %v2726_v55 = vadd.f32 -1.4531521, %v2722_v3 }
 0x7cd   :  { %v2727_v34 = vadd.f32 -1.4531521, %v2723_v26 }
 0x7ce   :  { %v2730_v24 = vmul.f32 %v7211_v21, %v2726_v55  ;;  %v7416_v55 = vmov -1.0  }
 0x7cf   :  { %v2731_v35 = vmul.f32 %v7213_v46, %v2727_v34  ;;  %v2702_v20 = vsel %vm2698_vm9, 1.0, %v7416_v55 }
 0x7d0   :  { %v7215_v41 = vpop.eup %7214  ;;  %v2734_v23 = vadd.f32 1.4214138, %v2730_v24 }
 0x7d1   :  { %v7217_v44 = vpop.eup %7216  ;;  %v2735_v47 = vadd.f32 1.4214138, %v2731_v35  ;;  %v2724_v51 = vmul.f32 1.0614054, %v7215_v41 }
 0x7d2   :  { %v2738_v52 = vmul.f32 %v7211_v21, %v2734_v23  ;;  %v2725_v57 = vmul.f32 1.0614054, %v7217_v44  ;;  %v7219_v16 = vpop.eup %7218 }
 0x7d3   :  { %v2739_v27 = vmul.f32 %v7213_v46, %v2735_v47  ;;  %v2728_v11 = vadd.f32 -1.4531521, %v2724_v51  ;;  %v7221_v13 = vpop.eup %7220  ;;  %v2690_v51 = vmul.f32 0.5, %v8168_v30  ;;  %v2692_v30 = vmul.f32 0.5, %v8180_v10 }
 0x7d4   :  { %v2742_v19 = vadd.f32 -0.28449672, %v2738_v52  ;;  %v2729_v60 = vadd.f32 -1.4531521, %v2725_v57  ;;  %v7223_v7 = vpop.eup %7222 }
 0x7d5   :  { %v2743_v25 = vadd.f32 -0.28449672, %v2739_v27  ;;  %v2732_v1 = vmul.f32 %v7215_v41, %v2728_v11  ;;  %v7225_v43 = vpop.eup %7224 }
 0x7d6   :  { %v2746_v6 = vmul.f32 %v7211_v21, %v2742_v19  ;;  %v2733_v56 = vmul.f32 %v7217_v44, %v2729_v60  ;;  %v2693_v60 = vmul.f32 0.5, %v8182_v40 }
 0x7d7   :  { %v2747_v37 = vmul.f32 %v7213_v46, %v2743_v25  ;;  %v2736_v8 = vadd.f32 1.4214138, %v2732_v1  ;;  %v2828_v1 = vsub.s32 3, %v7598_v38 }
 0x7d8   :  { %v2750_v9 = vadd.f32 0.2548296, %v2746_v6  ;;  %v2737_v12 = vadd.f32 1.4214138, %v2733_v56 }
 0x7d9   :  { %v2751_v62 = vadd.f32 0.2548296, %v2747_v37  ;;  %v2740_v5 = vmul.f32 %v7215_v41, %v2736_v8  ;;  %v2829_v56 = vrot.slane %v7992_v0, %v2828_v1 }
 0x7da   :  { %v2754_v32 = vmul.f32 %v7211_v21, %v2750_v9  ;;  %v2741_v15 = vmul.f32 %v7217_v44, %v2737_v12 }
 0x7db   :  { %v2755_v36 = vmul.f32 %v7213_v46, %v2751_v62  ;;  %v2744_v18 = vadd.f32 -0.28449672, %v2740_v5  ;;  %v2703_v46 = vsel %vm2699_vm10, 1.0, %v7416_v55 }
 0x7dc   :  { %v2774_v48 = vmul.f32 %v7219_v16, %v2754_v32  ;;  %v2745_v42 = vadd.f32 -0.28449672, %v2741_v15 }
 0x7dd   :  { %v2775_v63 = vmul.f32 %v7221_v13, %v2755_v36  ;;  %v2748_v3 = vmul.f32 %v7215_v41, %v2744_v18 }
 0x7de   :  { %v2778_v53 = vsub.f32 1.0, %v2774_v48  ;;  %v2749_v26 = vmul.f32 %v7217_v44, %v2745_v42 }
 0x7df   :  { %v2779_v29 = vsub.f32 1.0, %v2775_v63  ;;  %v2752_v21 = vadd.f32 0.2548296, %v2748_v3 }
 0x7e0   :  { %v2782_v33 = vmul.f32 %v2778_v53, %v2702_v20  ;;  %v2753_v34 = vadd.f32 0.2548296, %v2749_v26  ;;  %v6176_v20 = vld [vmem:[%s9006_s3 + $0x98] sm:$0xff] }
 0x7e1   :  { %v2783_v24 = vmul.f32 %v2779_v29, %v2703_v46  ;;  %v2756_v17 = vmul.f32 %v7215_v41, %v2752_v21  ;;  %v2704_v41 = vsel %vm2700_vm11, 1.0, %v7416_v55  ;;  %v6173_v21 = vld [vmem:[%s9006_s3 + $0x80] sm:$0xff] }
 0x7e2   :  { %v2786_v35 = vadd.f32 1.0, %v2782_v33  ;;  %v2757_v23 = vmul.f32 %v7217_v44, %v2753_v34  ;;  %v2705_v44 = vsel %vm2701_vm12, 1.0, %v7416_v55  ;;  %v6175_v33 = vld [vmem:[%s9006_s3 + $0x90] sm:$0xff]  ;;  %v6178_v34 = vld [vmem:[%s9006_s3 + $0xa8] sm:$0xff] }
 0x7e3   :  { %v2787_v31 = vadd.f32 1.0, %v2783_v24  ;;  %v2776_v47 = vmul.f32 %v7223_v7, %v2756_v17  ;;  %v6959_v46 = vpack.c.bf16 %v6175_v33, %v6173_v21  ;;  %v6180_v24 = vld [vmem:[%s9006_s3 + $0xb8] sm:$0xff]  ;;  %v6177_v7 = vld [vmem:[%s9006_s3 + $0xa0] sm:$0xff] }
 0x7e4   :  { %v2777_v52 = vmul.f32 %v7225_v43, %v2757_v23  ;;  %v2790_v11 = vmul.f32 %v2786_v35, %v2690_v51  ;;  %v6961_v17 = vpack.c.bf16 %v6180_v24, %v6178_v34  ;;  %v6179_v35 = vld [vmem:[%s9006_s3 + $0xb0] sm:$0xff]  ;;  %v6182_v43 = vld [vmem:[%s9006_s3 + $0xc8] sm:$0xff] }
 0x7e5   :  { %v2791_v57 = vmul.f32 %v2787_v31, %v2691_v50  ;;  %v2780_v27 = vsub.f32 1.0, %v2776_v47  ;;  %v6963_v23 = vpack.c.bf16 %v6179_v35, %v6177_v7  ;;  %v6184_v50 = vld [vmem:[%s9006_s3 + $0xd8] sm:$0xff]  ;;  %v6181_v47 = vld [vmem:[%s9006_s3 + $0xc0] sm:$0xff]  ;;  %v6183_v51 = vld [vmem:[%s9006_s3 + $0xd0] sm:$0xff] }
 0x7e6   :  { %v2781_v19 = vsub.f32 1.0, %v2777_v52  ;;  %v6965_v31 = vpack.c.bf16 %v6184_v50, %v6182_v43  ;;  %v6967_v52 = vpack.c.bf16 %v6183_v51, %v6181_v47  ;;  %v2947_v35 = vld [vmem:[#allocation2 + $0x48] sm:$0xff] }
 0x7e7   :  { %2894 = vmatprep.mubr.f32.mxu0 %v2791_v57  ;;  %v2784_v59 = vmul.f32 %v2780_v27, %v2704_v41  ;;  %v6186_v57 = vld [vmem:[%s9006_s3 + $0xe8] sm:$0xff]  ;;  %v6188_v27 = vld [vmem:[%s9006_s3 + $0xf8] sm:$0xff]  ;;  %v6185_v41 = vld [vmem:[%s9006_s3 + $0xe0] sm:$0xff] }
 0x7e8   :  { %2895 = vmatmul.mubr.f32.vlgmr.msra.gmra.mrb[24].mxu0 %v2790_v11  ;;  %v2785_v2 = vmul.f32 %v2781_v19, %v2705_v44  ;;  %v6969_v11 = vpack.c.bf16 %v6188_v27, %v6186_v57  ;;  %v6187_v19 = vld [vmem:[%s9006_s3 + $0xf0] sm:$0xff] }
 0x7e9   :  { %v2788_v54 = vadd.f32 1.0, %v2784_v59  ;;  %v6971_v44 = vpack.c.bf16 %v6187_v19, %v6185_v41  ;;  %v2948_v27 = vld [vmem:[#allocation2 + $0x50] sm:$0xff] }
 0x7ea   :  { %v2789_v61 = vadd.f32 1.0, %v2785_v2 }
 0x7eb   :  { %v2792_v25 = vmul.f32 %v2788_v54, %v2692_v30  ;;  %v2935_v30 = vsub.s32 4, %v7598_v38 }
 0x7ec   :  { %v2793_v14 = vmul.f32 %v2789_v61, %v2693_v60 }
 0x7ee   :  { %2899 = vmatprep.mubr.f32.mxu0 %v2793_v14 }
 0x7ef   :  { %2900 = vmatmul.mubr.f32.gmra.mrb[26].mxu0 %v2792_v25  ;;  %v2941_v25 = vsub.s32 5, %v7598_v38 }
 0x7f0   :  { %6718 = vmatprep.mubr.msk.f32.mxu0 %vm7400_vm1, %v7399_v22 }
 0x8bb   :  { %v6400_v6 = vpop.f32.mrb[24].mxu0 }
 0x8bc   :  { %v6401_v37 = vpop.f32.mrb[25].mxu0 }
 0x8bd   :  { %v6402_v8 = vadd.f32 %v6401_v37, %v6400_v6  ;;  %v2936_v6 = vrot.slane %v7992_v0, %v2935_v30 }
 0x8bf   :  { %v2897_v40 = vadd.f32 %v6402_v8, %v2829_v56  ;;  %v2942_v8 = vrot.slane %v7992_v0, %v2941_v25  ;;  %v6189_v0 = vld [vmem:[%s9007_s4 + $0x2] sm:$0x3]  ;;  %s9029_s4 = smov 88  }
 0x8c1   :  { %v2905_v9 = vadd.f32 %v2897_v40, %v8056_v28 }
 0x8c2   :  { %v6403_v10 = vpop.f32.mrb[26].mxu0 }
 0x8c3   :  { %v6404_v12 = vpop.f32.mrb[27].mxu0  ;;  %v2907_v62 = vsel %vm141_vm0, %v2905_v9, 0.0 }
 0x8c4   :  { %v6405_v5 = vadd.f32 %v6404_v12, %v6403_v10  ;;  %2908 = vadd.xlane.f32.xlu1 %v2907_v62 }
 0x8c6   :  { %v2902_v32 = vadd.f32 %v6405_v5, %v2829_v56 }
 0x8c8   :  { %v2906_v15 = vadd.f32 %v2902_v32, %v8061_v4  ;;  %v6174_v4 = vld [vmem:[%s9006_s3 + $0x88] sm:$0xff]  ;;  %v2979_v32 = vrot.slane %v6189_v0, %v7603_v39 }
 0x8c9   :  { %v6957_v29 = vpack.c.bf16 %v6176_v20, %v6174_v4 }
 0x8ca   :  { %v2910_v16 = vsel %vm141_vm0, %v2906_v15, 0.0 }
 0x8cb   :  { %2911 = vadd.xlane.f32.xlu0 %v2910_v16  ;;  %6958 = vmatprep.subr.bf16.mxu1 %v6957_v29 }
 0x8cc   :  { %6960 = vmatpush1.bf16.msra.mxu1 %v6959_v46 }
 0x8cd   :  { %6962 = vmatprep.subr.bf16.mxu1 %v6961_v17 }
 0x8d0   :  { %6964 = vmatpush1.bf16.msra.mxu1 %v6963_v23 }
 0x8d1   :  { %6966 = vmatprep.subr.bf16.mxu1 %v6965_v31 }
 0x8d4   :  { %6968 = vmatpush1.bf16.msra.mxu1 %v6967_v52 }
 0x8d5   :  { %6970 = vmatprep.subr.bf16.mxu1 %v6969_v11 }
 0x8d8   :  { %6972 = vmatpush1.bf16.msra.mxu1 %v6971_v44 }
 0x8d9   :  { %6711 = vmatprep.subr.mxu1 %v7399_v22 }
 0x951   :  { %v2909_v36 = vpop.xlane.xlu1 %2908 }
 0x952   :  { %v2913_v18 = vmul.f32 0.015625, %v2909_v36 }
 0x954   :  { %v2915_v13 = vsub.f32 %v2905_v9, %v2913_v18 }
 0x956   :  { %v2917_v48 = vmul.f32 %v2915_v13, %v2915_v13 }
 0x958   :  { %v2912_v42 = vpop.xlane.xlu0 %2911  ;;  %v2919_v63 = vsel %vm141_vm0, %v2917_v48, 0.0  ;;  %v2983_v48 = vrot.slane %v6189_v0, %v7643_v49 }
 0x959   :  { %v2914_v28 = vmul.f32 0.015625, %v2912_v42  ;;  %2920 = vadd.xlane.f32.xlu1 %v2919_v63 }
 0x95b   :  { %v2916_v3 = vsub.f32 %v2906_v15, %v2914_v28 }
 0x95d   :  { %v2918_v53 = vmul.f32 %v2916_v3, %v2916_v3 }
 0x95f   :  { %v2922_v26 = vsel %vm141_vm0, %v2918_v53, 0.0 }
 0x960   :  { %2923 = vadd.xlane.f32.xlu0 %v2922_v26 }
 0x9e6   :  { %v2921_v59 = vpop.xlane.xlu1 %2920 }
 0x9e7   :  { %v2925_v2 = vmul.f32 0.015625, %v2921_v59  ;;  %v2949_v59 = vld [vmem:[#allocation2 + $0x58] sm:$0xff] }
 0x9e9   :  { %v2927_v54 = vadd.f32 1e-06, %v2925_v2 }
 0x9eb   :  { %7226 = vrsqrt.f32 %v2927_v54 }
 0x9ed   :  { %v2924_v60 = vpop.xlane.xlu0 %2923 }
 0x9ee   :  { %v2926_v61 = vmul.f32 0.015625, %v2924_v60  ;;  %v2950_v60 = vld [vmem:[#allocation2 + $0x60] sm:$0xff] }
 0x9f0   :  { %v2928_v14 = vadd.f32 1e-06, %v2926_v61 }
 0x9f2   :  { %7228 = vrsqrt.f32 %v2928_v14 }
 0x9f5   :  { %v7227_v56 = vpop.eup %7226 }
 0x9f6   :  { %v2931_v37 = vmul.f32 %v7227_v56, %v2915_v13 }
 0x9f8   :  { %v2937_v40 = vmul.f32 %v2936_v6, %v2931_v37  ;;  %v2951_v37 = vld [vmem:[#allocation2 + $0x68] sm:$0xff] }
 0x9fa   :  { %v8273_v9 = vadd.f32 %v2942_v8, %v2937_v40 }
 0x9fc   :  { %v7229_v10 = vpop.eup %7228  ;;  %6190 = vmatmul.mubr.msk.f32.vlgmr.msra.gmra.mrb[36].mxu1 %vm141_vm0, %v8273_v9 }
 0x9fd   :  { %3062 = vmatprep.mubr.f32.mxu1 %v7399_v22  ;;  %v2932_v12 = vmul.f32 %v7229_v10, %v2916_v3  ;;  %v2946_v3 = vld [vmem:[#allocation2 + $0x40] sm:$0xff] }
 0x9ff   :  { %v2938_v62 = vmul.f32 %v2936_v6, %v2932_v12 }
 0xa01   :  { %v8278_v5 = vadd.f32 %v2942_v8, %v2938_v62  ;;  %v2952_v62 = vld [vmem:[#allocation2 + $0x70] sm:$0xff] }
 0xa03   :  { %6191 = vmatmul.mubr.msk.f32.gmra.mrb[38].mxu1 %vm141_vm0, %v8278_v5 }
 0xa04   :  { %6713 = vmatprep.mubr.msk.f32.mxu1 %vm7400_vm1, %v7399_v22 }
 0xacf   :  { %v3058_v15 = vpop.f32.mrb[36].mxu1 }
 0xad0   :  { %v3059_v16 = vadd.f32 %v3058_v15, %v2979_v32  ;;  %v3060_v36 = vpop.f32.mrb[37].mxu1 }
 0xad1   :  { %v3061_v42 = vadd.f32 %v3060_v36, %v2983_v48  ;;  %v2953_v36 = vld [vmem:[#allocation2 + $0x78] sm:$0xff] }
 0xad2   :  { %3070 = vrot.lane.b32.xlu1 %v3059_v16, %s7402_s23  ;;  %3545 = vrot.lane.b32.xlu0 %v3059_v16, %s7403_s24 }
 0xad6   :  { %3306 = vrot.lane.b32.xlu1 %v3059_v16, %s7401_s18  ;;  %3543 = vrot.lane.b32.xlu0 %v3059_v16, %s7405_s0  ;;  %v3064_v18 = vpop.f32.mrb[38].mxu1 }
 0xad7   :  { %v3066_v13 = vpop.f32.mrb[39].mxu1  ;;  %v3065_v63 = vadd.f32 %v3064_v18, %v2979_v32 }
 0xad8   :  { %v3067_v28 = vadd.f32 %v3066_v13, %v2983_v48 }
 0xada   :  { %3304 = vrot.lane.b32.xlu1 %v3059_v16, %s7404_s25  ;;  %3784 = vrot.lane.b32.xlu0 %v3059_v16, %s7406_s26 }
 0xade   :  { %3782 = vrot.lane.b32.xlu1 %v3059_v16, %s7408_s5  ;;  %4023 = vrot.lane.b32.xlu0 %v3059_v16, %s7407_s27 }
 0xae2   :  { %3460 = vrot.lane.b32.xlu1 %v3061_v42, %s7404_s25  ;;  %4021 = vrot.lane.b32.xlu0 %v3059_v16, %s7409_s19 }
 0xae6   :  { %3699 = vrot.lane.b32.xlu1 %v3061_v42, %s7405_s0  ;;  %3147 = vrot.lane.b32.xlu0 %v3065_v63, %s7402_s23 }
 0xaea   :  { %3938 = vrot.lane.b32.xlu1 %v3061_v42, %s7408_s5  ;;  %4262 = vrot.lane.b32.xlu0 %v3059_v16, %s7410_s30 }
 0xaee   :  { %4177 = vrot.lane.b32.xlu1 %v3061_v42, %s7409_s19  ;;  %3384 = vrot.lane.b32.xlu0 %v3065_v63, %s7401_s18 }
 0xaf2   :  { %4260 = vrot.lane.b32.xlu1 %v3059_v16, %s9029_s4  ;;  %3862 = vrot.lane.b32.xlu0 %v3065_v63, %s7406_s26 }
 0xaf6   :  { %3382 = vrot.lane.b32.xlu1 %v3065_v63, %s7404_s25  ;;  %3462 = vrot.lane.b32.xlu0 %v3067_v28, %s7404_s25  ;;  %s9032_s25 = smov 8  }
 0xafa   :  { %3623 = vrot.lane.b32.xlu1 %v3065_v63, %s7403_s24  ;;  %4340 = vrot.lane.b32.xlu0 %v3065_v63, %s7410_s30 }
 0xafe   :  { %3621 = vrot.lane.b32.xlu1 %v3065_v63, %s7405_s0  ;;  %3701 = vrot.lane.b32.xlu0 %v3067_v28, %s7405_s0  ;;  %s9033_s0 = smov 72  }
 0xb02   :  { %3860 = vrot.lane.b32.xlu1 %v3065_v63, %s7408_s5  ;;  %4501 = vrot.lane.b32.xlu0 %v3059_v16, %s9030_s1 }
 0xb06   :  { %4101 = vrot.lane.b32.xlu1 %v3065_v63, %s7407_s27  ;;  %3940 = vrot.lane.b32.xlu0 %v3067_v28, %s7408_s5 }
 0xb0a   :  { %4099 = vrot.lane.b32.xlu1 %v3065_v63, %s7409_s19  ;;  %4499 = vrot.lane.b32.xlu0 %v3059_v16, %s9031_s2 }
 0xb0e   :  { %4338 = vrot.lane.b32.xlu1 %v3065_v63, %s9029_s4  ;;  %4179 = vrot.lane.b32.xlu0 %v3067_v28, %s7409_s19 }
 0xb12   :  { %4416 = vrot.lane.b32.xlu1 %v3061_v42, %s9029_s4  ;;  %4418 = vrot.lane.b32.xlu0 %v3067_v28, %s9029_s4 }
 0xb16   :  { %4579 = vrot.lane.b32.xlu1 %v3065_v63, %s9030_s1  ;;  %4740 = vrot.lane.b32.xlu0 %v3059_v16, %s9032_s25 }
 0xb1a   :  { %4577 = vrot.lane.b32.xlu1 %v3065_v63, %s9031_s2  ;;  %4657 = vrot.lane.b32.xlu0 %v3067_v28, %s9031_s2 }
 0xb1e   :  { %4655 = vrot.lane.b32.xlu1 %v3061_v42, %s9031_s2  ;;  %4818 = vrot.lane.b32.xlu0 %v3065_v63, %s9032_s25 }
 0xb22   :  { %4738 = vrot.lane.b32.xlu1 %v3059_v16, %s9033_s0  ;;  %4894 = vrot.lane.b32.xlu0 %v3061_v42, %s9033_s0 }
 0xb26   :  { %4816 = vrot.lane.b32.xlu1 %v3065_v63, %s9033_s0 }
 0xb2a   :  { %4896 = vrot.lane.b32.xlu1 %v3067_v28, %s9033_s0 }
 0xb44   :  { %v3071_v53 = vpop.permute.xlu1 %3070  ;;  %v3546_v26 = vpop.permute.xlu0 %3545 }
 0xb45   :  { %6712 = vmatpush3.xpose.msk.msra.mxu1 %vm228_vm2, %v3071_v53 }
 0xb46   :  { %6721 = vmatprep.subr.mxu1 %v2946_v3 }
 0xb48   :  { %v3307_v4 = vpop.permute.xlu1 %3306  ;;  %6714 = vmatmul.mubr.msk.f32.vlgmr.msra.gmra.mrb[40].mxu1 %vm228_vm2, %v3059_v16  ;;  %v3544_v20 = vpop.permute.xlu0 %3543 }
 0xb49   :  { %6723 = vmatprep.mubr.msk.f32.mxu1 %vm228_vm2, %v3061_v42  ;;  %6722 = vmatpush3.msra.mxu1 %v2946_v3 }
 0xb4a   :  { %6731 = vmatprep.subr.mxu1 %v7399_v22 }
 0xb4c   :  { %v3305_v29 = vpop.permute.xlu1 %3304  ;;  %6724 = vmatmul.mubr.msk.f32.vlgmr.msra.gmra.mrb[42].mxu1 %vm228_vm2, %v3067_v28  ;;  %v3785_v21 = vpop.permute.xlu0 %3784 }
 0xb4d   :  { %6733 = vmatprep.mubr.msk.f32.mxu1 %vm7400_vm1, %v7399_v22 }
 0xb50   :  { %v3783_v33 = vpop.permute.xlu1 %3782  ;;  %v4024_v46 = vpop.permute.xlu0 %4023 }
 0xb54   :  { %v3461_v34 = vpop.permute.xlu1 %3460  ;;  %v8340_v24 = vpop.permute.xlu0 %4021 }
 0xb58   :  { %v3700_v17 = vpop.permute.xlu1 %3699  ;;  %v3148_v7 = vpop.permute.xlu0 %3147 }
 0xb59   :  { %6717 = vmatpush3.xpose.msk.msra.mxu0 %vm228_vm2, %v3148_v7 }
 0xb5a   :  { %6726 = vmatprep.subr.mxu0 %v7399_v22 }
 0xb5c   :  { %v3939_v23 = vpop.permute.xlu1 %3938  ;;  %6719 = vmatmul.mubr.msk.f32.vlgmr.msra.gmra.mrb[28].mxu0 %vm228_vm2, %v3065_v63  ;;  %v8345_v43 = vpop.permute.xlu0 %4262 }
 0xb5d   :  { %6727 = vmatpush3.xpose.msk.msra.mxu0 %vm228_vm2, %v3307_v4  ;;  %6728 = vmatprep.mubr.msk.f32.mxu0 %vm7400_vm1, %v7399_v22 }
 0xb5e   :  { %6736 = vmatprep.subr.mxu0 %v2947_v35 }
 0xb60   :  { %v4178_v50 = vpop.permute.xlu1 %4177  ;;  %6729 = vmatmul.mubr.msk.f32.vlgmr.msra.gmra.mrb[30].mxu0 %vm228_vm2, %v3305_v29  ;;  %v3385_v31 = vpop.permute.xlu0 %3384 }
 0xb61   :  { %6732 = vmatpush3.xpose.msk.msra.mxu1 %vm228_vm2, %v3385_v31  ;;  %6738 = vmatprep.mubr.msk.f32.mxu0 %vm228_vm2, %v3461_v34 }
 0xb62   :  { %6737 = vmatpush3.msra.mxu0 %v2947_v35  ;;  %6741 = vmatprep.subr.mxu1 %v7399_v22 }
 0xb63   :  { %6746 = vmatprep.subr.mxu0 %v7399_v22 }
 0xb64   :  { %v4261_v47 = vpop.permute.xlu1 %4260  ;;  %v3863_v51 = vpop.permute.xlu0 %3862 }
 0xb68   :  { %v3383_v52 = vpop.permute.xlu1 %3382  ;;  %v3463_v57 = vpop.permute.xlu0 %3462 }
 0xb69   :  { %6734 = vmatmul.mubr.msk.f32.vlgmr.msra.gmra.mrb[44].mxu1 %vm228_vm2, %v3383_v52  ;;  %6739 = vmatmul.mubr.msk.f32.vlgmr.msra.gmra.mrb[32].mxu0 %vm228_vm2, %v3463_v57 }
 0xb6a   :  { %6742 = vmatpush3.xpose.msk.msra.mxu1 %vm228_vm2, %v3546_v26  ;;  %6743 = vmatprep.mubr.msk.f32.mxu1 %vm7400_vm1, %v7399_v22 }
 0xb6b   :  { %6751 = vmatprep.subr.mxu1 %v2948_v27  ;;  %6748 = vmatprep.mubr.msk.f32.mxu0 %vm7400_vm1, %v7399_v22 }
 0xb6c   :  { %v3624_v11 = vpop.permute.xlu1 %3623  ;;  %v4341_v41 = vpop.permute.xlu0 %4340 }
 0xb6d   :  { %6744 = vmatmul.mubr.msk.f32.vlgmr.msra.gmra.mrb[46].mxu1 %vm228_vm2, %v3544_v20  ;;  %6747 = vmatpush3.xpose.msk.msra.mxu0 %vm228_vm2, %v3624_v11 }
 0xb6e   :  { %6752 = vmatpush3.msra.mxu1 %v2948_v27  ;;  %6753 = vmatprep.mubr.msk.f32.mxu1 %vm228_vm2, %v3700_v17 }
 0xb6f   :  { %6756 = vmatprep.subr.mxu0 %v7399_v22  ;;  %6761 = vmatprep.subr.mxu1 %v7399_v22 }
 0xb70   :  { %v3622_v19 = vpop.permute.xlu1 %3621  ;;  %v3702_v44 = vpop.permute.xlu0 %3701 }
 0xb71   :  { %6749 = vmatmul.mubr.msk.f32.vlgmr.msra.gmra.mrb[34].mxu0 %vm228_vm2, %v3622_v19  ;;  %6754 = vmatmul.mubr.msk.f32.vlgmr.msra.gmra.mrb[48].mxu1 %vm228_vm2, %v3702_v44 }
 0xb72   :  { %6757 = vmatpush3.xpose.msk.msra.mxu0 %vm228_vm2, %v3785_v21  ;;  %6758 = vmatprep.mubr.msk.f32.mxu0 %vm7400_vm1, %v7399_v22 }
 0xb73   :  { %6766 = vmatprep.subr.mxu0 %v2949_v59  ;;  %6763 = vmatprep.mubr.msk.f32.mxu1 %vm7400_vm1, %v7399_v22 }
 0xb74   :  { %v3861_v2 = vpop.permute.xlu1 %3860  ;;  %v4502_v54 = vpop.permute.xlu0 %4501 }
 0xb75   :  { %6762 = vmatpush3.xpose.msk.msra.mxu1 %vm228_vm2, %v3863_v51  ;;  %6759 = vmatmul.mubr.msk.f32.vlgmr.msra.gmra.mrb[36].mxu0 %vm228_vm2, %v3783_v33 }
 0xb76   :  { %6767 = vmatpush3.msra.mxu0 %v2949_v59  ;;  %6768 = vmatprep.mubr.msk.f32.mxu0 %vm228_vm2, %v3939_v23 }
 0xb77   :  { %6771 = vmatprep.subr.mxu1 %v7399_v22  ;;  %6776 = vmatprep.subr.mxu0 %v7399_v22 }
 0xb78   :  { %6764 = vmatmul.mubr.msk.f32.vlgmr.msra.gmra.mrb[50].mxu1 %vm228_vm2, %v3861_v2  ;;  %v4102_v61 = vpop.permute.xlu1 %4101  ;;  %v3941_v14 = vpop.permute.xlu0 %3940 }
 0xb79   :  { %6772 = vmatpush3.xpose.msk.msra.mxu1 %vm228_vm2, %v4024_v46  ;;  %6769 = vmatmul.mubr.msk.f32.vlgmr.msra.gmra.mrb[38].mxu0 %vm228_vm2, %v3941_v14 }
 0xb7a   :  { %6773 = vmatprep.mubr.msk.f32.mxu1 %vm7400_vm1, %v7399_v22  ;;  %6781 = vmatprep.subr.mxu1 %v2950_v60 }
 0xb7b   :  { %6778 = vmatprep.mubr.msk.f32.mxu0 %vm7400_vm1, %v7399_v22 }
 0xb7c   :  { %6774 = vmatmul.mubr.msk.f32.vlgmr.msra.gmra.mrb[52].mxu1 %vm228_vm2, %v8340_v24  ;;  %v4100_v6 = vpop.permute.xlu1 %4099  ;;  %v4500_v56 = vpop.permute.xlu0 %4499 }
 0xb7d   :  { %6777 = vmatpush3.xpose.msk.msra.mxu0 %vm228_vm2, %v4102_v61  ;;  %6782 = vmatpush3.msra.mxu1 %v2950_v60 }
 0xb7e   :  { %6783 = vmatprep.mubr.msk.f32.mxu1 %vm228_vm2, %v4178_v50  ;;  %6786 = vmatprep.subr.mxu0 %v7399_v22 }
 0xb7f   :  { %6791 = vmatprep.subr.mxu1 %v7399_v22 }
 0xb80   :  { %6779 = vmatmul.mubr.msk.f32.vlgmr.msra.gmra.mrb[40].mxu0 %vm228_vm2, %v4100_v6  ;;  %v4339_v8 = vpop.permute.xlu1 %4338  ;;  %v4180_v40 = vpop.permute.xlu0 %4179 }
 0xb81   :  { %6787 = vmatpush3.xpose.msk.msra.mxu0 %vm228_vm2, %v8345_v43  ;;  %6784 = vmatmul.mubr.msk.f32.vlgmr.msra.gmra.mrb[54].mxu1 %vm228_vm2, %v4180_v40 }
 0xb82   :  { %6788 = vmatprep.mubr.msk.f32.mxu0 %vm7400_vm1, %v7399_v22  ;;  %6796 = vmatprep.subr.mxu0 %v2951_v37 }
 0xb83   :  { %6793 = vmatprep.mubr.msk.f32.mxu1 %vm7400_vm1, %v7399_v22 }
 0xb84   :  { %6789 = vmatmul.mubr.msk.f32.vlgmr.msra.gmra.mrb[42].mxu0 %vm228_vm2, %v4261_v47  ;;  %6792 = vmatpush3.xpose.msk.msra.mxu1 %vm228_vm2, %v4341_v41  ;;  %v4417_v10 = vpop.permute.xlu1 %4416  ;;  %v4419_v12 = vpop.permute.xlu0 %4418 }
 0xb85   :  { %6797 = vmatpush3.msra.mxu0 %v2951_v37  ;;  %6798 = vmatprep.mubr.msk.f32.mxu0 %vm228_vm2, %v4417_v10 }
 0xb86   :  { %6801 = vmatprep.subr.mxu1 %v7399_v22  ;;  %6806 = vmatprep.subr.mxu0 %v7399_v22 }
 0xb87   :  { %6794 = vmatmul.mubr.msk.f32.vlgmr.msra.gmra.mrb[56].mxu1 %vm228_vm2, %v4339_v8 }
 0xb88   :  { %6799 = vmatmul.mubr.msk.f32.vlgmr.msra.gmra.mrb[44].mxu0 %vm228_vm2, %v4419_v12  ;;  %6802 = vmatpush3.xpose.msk.msra.mxu1 %vm228_vm2, %v4502_v54  ;;  %v4580_v0 = vpop.permute.xlu1 %4579  ;;  %v4741_v32 = vpop.permute.xlu0 %4740 }
 0xb89   :  { %6803 = vmatprep.mubr.msk.f32.mxu1 %vm7400_vm1, %v7399_v22  ;;  %6811 = vmatprep.subr.mxu1 %v2952_v62 }
 0xb8a   :  { %6808 = vmatprep.mubr.msk.f32.mxu0 %vm7400_vm1, %v7399_v22 }
 0xb8b   :  { %6804 = vmatmul.mubr.msk.f32.vlgmr.msra.gmra.mrb[58].mxu1 %vm228_vm2, %v4500_v56 }
 0xb8c   :  { %6807 = vmatpush3.xpose.msk.msra.mxu0 %vm228_vm2, %v4580_v0  ;;  %6812 = vmatpush3.msra.mxu1 %v2952_v62  ;;  %v4578_v15 = vpop.permute.xlu1 %4577  ;;  %v4658_v16 = vpop.permute.xlu0 %4657 }
 0xb8d   :  { %6816 = vmatprep.subr.mxu0 %v7399_v22  ;;  %6821 = vmatprep.subr.mxu1 %v7399_v22 }
 0xb8f   :  { %6809 = vmatmul.mubr.msk.f32.vlgmr.msra.gmra.mrb[46].mxu0 %vm228_vm2, %v4578_v15 }
 0xb90   :  { %6817 = vmatpush3.xpose.msk.msra.mxu0 %vm228_vm2, %v4741_v32  ;;  %v4656_v18 = vpop.permute.xlu1 %4655  ;;  %v4819_v13 = vpop.permute.xlu0 %4818  ;;  %6818 = vmatprep.mubr.msk.f32.mxu0 %vm7400_vm1, %v7399_v22 }
 0xb91   :  { %6813 = vmatprep.mubr.msk.f32.mxu1 %vm228_vm2, %v4656_v18  ;;  %6826 = vmatprep.subr.mxu0 %v2953_v36 }
 0xb92   :  { %6814 = vmatmul.mubr.msk.f32.vlgmr.msra.gmra.mrb[60].mxu1 %vm228_vm2, %v4658_v16 }
 0xb93   :  { %6822 = vmatpush3.xpose.msk.msra.mxu1 %vm228_vm2, %v4819_v13  ;;  %6823 = vmatprep.mubr.msk.f32.mxu1 %vm7400_vm1, %v7399_v22 }
 0xb94   :  { %v4739_v48 = vpop.permute.xlu1 %4738  ;;  %v4895_v42 = vpop.permute.xlu0 %4894  ;;  %6973 = vmatprep.subr.bf16.mxu1 %v7415_v45 }
 0xb95   :  { %6819 = vmatmul.mubr.msk.f32.vlgmr.msra.gmra.mrb[48].mxu0 %vm228_vm2, %v4739_v48 }
 0xb96   :  { %6828 = vmatprep.mubr.msk.f32.mxu0 %vm228_vm2, %v4895_v42  ;;  %6827 = vmatpush3.msra.mxu0 %v2953_v36 }
 0xb97   :  { %6985 = vmatprep.subr.bf16.mxu0 %v7415_v45 }
 0xb98   :  { %v4817_v63 = vpop.permute.xlu1 %4816 }
 0xb99   :  { %6824 = vmatmul.mubr.msk.f32.vlgmr.msra.gmra.mrb[62].mxu1 %vm228_vm2, %v4817_v63 }
 0xb9a   :  { %6847 = vmatprep.mubr.msk.f32.mxu1 %vm7400_vm1, %v7399_v22 }
 0xb9c   :  { %v4897_v28 = vpop.permute.xlu1 %4896 }
 0xb9d   :  { %6829 = vmatmul.mubr.msk.f32.vlgmr.msra.gmra.mrb[50].mxu0 %vm228_vm2, %v4897_v28 }
 0xb9e   :  { %6866 = vmatprep.mubr.msk.f32.mxu0 %vm7400_vm1, %v7399_v22 }
 0xc1b   :  { %v8435_v3 = vpop.f32.mrb[40].mxu1 }
 0xc1c   :  { %v6715_v53 = vpop.f32.mrb[41].mxu1 }
 0xc1f   :  { %v6725_v26 = vpop.f32.mrb[42].mxu1 }
 0xc20   :  { %v3295_v4 = vpop.f32.mrb[43].mxu1 }
 0xc2f   :  { %v8437_v20 = vpop.f32.mrb[28].mxu0 }
 0xc30   :  { %v6720_v29 = vpop.f32.mrb[29].mxu0 }
 0xc33   :  { %v8439_v21 = vpop.f32.mrb[30].mxu0 }
 0xc34   :  { %v6730_v33 = vpop.f32.mrb[31].mxu0  ;;  %v4980_v31 = vsel %vm228_vm2, %v8439_v21, -inf }
 0xc3c   :  { %v8441_v46 = vpop.f32.mrb[44].mxu1  ;;  %v6740_v34 = vpop.f32.mrb[32].mxu0 }
 0xc3d   :  { %v6986_v24 = vpack.c.bf16 %v6740_v34, %v6725_v26  ;;  %v6735_v17 = vpop.f32.mrb[45].mxu1  ;;  %v3534_v7 = vpop.f32.mrb[33].mxu0  ;;  %v5004_v35 = vsel %vm228_vm2, %v8441_v46, -inf }
 0xc3e   :  { %v6974_v23 = vpack.c.bf16 %v3534_v7, %v3295_v4  ;;  %5005 = vmax.xlane.f32.xlu0 %v5004_v35 }
 0xc3f   :  { %6987 = vmatpush3.bf16.msra.mxu0 %v6986_v24 }
 0xc40   :  { %v8445_v43 = vpop.f32.mrb[46].mxu1  ;;  %6975 = vmatpush3.bf16.msra.mxu1 %v6974_v23  ;;  %6988 = vmatprep.subr.bf16.mxu0 %v7415_v45 }
 0xc41   :  { %v6745_v50 = vpop.f32.mrb[47].mxu1  ;;  %v4983_v47 = vsel %vm228_vm2, %v8445_v43, -inf  ;;  %6976 = vmatprep.subr.bf16.mxu1 %v7415_v45 }
 0xc42   :  { %4981 = vmax.xlane.f32.xlu0 %v4980_v31  ;;  %4984 = vmax.xlane.f32.xlu1 %v4983_v47 }
 0xc44   :  { %v8453_v51 = vpop.f32.mrb[34].mxu0  ;;  %v6755_v52 = vpop.f32.mrb[48].mxu1 }
 0xc45   :  { %v6750_v57 = vpop.f32.mrb[35].mxu0  ;;  %v3773_v27 = vpop.f32.mrb[49].mxu1  ;;  %v5007_v11 = vsel %vm228_vm2, %v8453_v51, -inf }
 0xc46   :  { %5008 = vmax.xlane.f32.xlu0 %v5007_v11  ;;  %v5001_v11 = vsel %vm228_vm2, %v8437_v20, -inf }
 0xc48   :  { %v8457_v41 = vpop.f32.mrb[36].mxu0 }
 0xc49   :  { %v6760_v19 = vpop.f32.mrb[37].mxu0  ;;  %v4986_v37 = vsel %vm228_vm2, %v8457_v41, -inf }
 0xc4b   :  { %v8459_v44 = vpop.f32.mrb[50].mxu1 }
 0xc4c   :  { %v6765_v59 = vpop.f32.mrb[51].mxu1  ;;  %v5010_v2 = vsel %vm228_vm2, %v8459_v44, -inf  ;;  %v6770_v54 = vpop.f32.mrb[38].mxu0 }
 0xc4d   :  { %5011 = vmax.xlane.f32.xlu0 %v5010_v2  ;;  %v6989_v60 = vpack.c.bf16 %v6770_v54, %v6755_v52  ;;  %v4012_v61 = vpop.f32.mrb[39].mxu0 }
 0xc4e   :  { %v6977_v14 = vpack.c.bf16 %v4012_v61, %v3773_v27  ;;  %v4977_v27 = vsel %vm228_vm2, %v8435_v3, -inf }
 0xc4f   :  { %v8463_v6 = vpop.f32.mrb[52].mxu1  ;;  %6990 = vmatpush3.bf16.msra.mxu0 %v6989_v60 }
 0xc50   :  { %v6775_v56 = vpop.f32.mrb[53].mxu1  ;;  %6978 = vmatpush3.bf16.msra.mxu1 %v6977_v14  ;;  %6991 = vmatprep.subr.bf16.mxu0 %v7415_v45  ;;  %v4989_v10 = vsel %vm228_vm2, %v8463_v6, -inf }
 0xc51   :  { %4987 = vmax.xlane.f32.xlu0 %v4986_v37  ;;  %6979 = vmatprep.subr.bf16.mxu1 %v7415_v45 }
 0xc53   :  { %v8469_v8 = vpop.f32.mrb[40].mxu0 }
 0xc54   :  { %v6780_v40 = vpop.f32.mrb[41].mxu0  ;;  %v5013_v12 = vsel %vm228_vm2, %v8469_v8, -inf  ;;  %v6785_v62 = vpop.f32.mrb[54].mxu1 }
 0xc55   :  { %4990 = vmax.xlane.f32.xlu0 %v4989_v10  ;;  %5014 = vmax.xlane.f32.xlu1 %v5013_v12  ;;  %v4251_v0 = vpop.f32.mrb[55].mxu1 }
 0xc57   :  { %v8475_v32 = vpop.f32.mrb[42].mxu0 }
 0xc58   :  { %v6790_v15 = vpop.f32.mrb[43].mxu0  ;;  %v4992_v16 = vsel %vm228_vm2, %v8475_v32, -inf }
 0xc59   :  { %4993 = vmax.xlane.f32.xlu1 %v4992_v16 }
 0xc5a   :  { %v8479_v36 = vpop.f32.mrb[56].mxu1 }
 0xc5b   :  { %v6795_v18 = vpop.f32.mrb[57].mxu1  ;;  %v6800_v13 = vpop.f32.mrb[44].mxu0  ;;  %v5016_v48 = vsel %vm228_vm2, %v8479_v36, -inf }
 0xc5c   :  { %v6992_v42 = vpack.c.bf16 %v6800_v13, %v6785_v62  ;;  %5017 = vmax.xlane.f32.xlu0 %v5016_v48  ;;  %v4490_v63 = vpop.f32.mrb[45].mxu0 }
 0xc5d   :  { %v6980_v28 = vpack.c.bf16 %v4490_v63, %v4251_v0 }
 0xc5e   :  { %v8483_v53 = vpop.f32.mrb[58].mxu1  ;;  %6993 = vmatpush3.bf16.msra.mxu0 %v6992_v42 }
 0xc5f   :  { %v6805_v26 = vpop.f32.mrb[59].mxu1  ;;  %6981 = vmatpush3.bf16.msra.mxu1 %v6980_v28  ;;  %v4995_v4 = vsel %vm228_vm2, %v8483_v53, -inf  ;;  %6994 = vmatprep.subr.bf16.mxu0 %v7415_v45 }
 0xc60   :  { %4996 = vmax.xlane.f32.xlu1 %v4995_v4  ;;  %6982 = vmatprep.subr.bf16.mxu1 %v7415_v45 }
 0xc62   :  { %v8489_v29 = vpop.f32.mrb[46].mxu0 }
 0xc63   :  { %v6810_v33 = vpop.f32.mrb[47].mxu0  ;;  %v5019_v31 = vsel %vm228_vm2, %v8489_v29, -inf }
 0xc65   :  { %v6815_v34 = vpop.f32.mrb[60].mxu1 }
 0xc66   :  { %v4729_v24 = vpop.f32.mrb[61].mxu1 }
 0xc68   :  { %v8491_v17 = vpop.f32.mrb[48].mxu0 }
 0xc69   :  { %v6820_v7 = vpop.f32.mrb[49].mxu0  ;;  %v4998_v35 = vsel %vm228_vm2, %v8491_v17, -inf }
 0xc6a   :  { %4999 = vmax.xlane.f32.xlu1 %v4998_v35 }
 0xc6c   :  { %v8495_v23 = vpop.f32.mrb[62].mxu1 }
 0xc6d   :  { %v6825_v50 = vpop.f32.mrb[63].mxu1  ;;  %v5022_v45 = vsel %vm228_vm2, %v8495_v23, -inf }
 0xc6e   :  { %5020 = vmax.xlane.f32.xlu1 %v5019_v31  ;;  %5023 = vmax.xlane.f32.xlu0 %v5022_v45 }
 0xc70   :  { %v6830_v47 = vpop.f32.mrb[50].mxu0 }
 0xc71   :  { %v6995_v52 = vpack.c.bf16 %v6830_v47, %v6815_v34  ;;  %v4968_v57 = vpop.f32.mrb[51].mxu0 }
 0xc72   :  { %v6983_v19 = vpack.c.bf16 %v4968_v57, %v4729_v24  ;;  %4978 = vmax.xlane.f32.xlu1 %v4977_v27  ;;  %5002 = vmax.xlane.f32.xlu0 %v5001_v11 }
 0xc73   :  { %6996 = vmatpush3.bf16.msra.mxu0 %v6995_v52 }
 0xc74   :  { %6984 = vmatpush3.bf16.msra.mxu1 %v6983_v19 }
 0xccb   :  { %v5006_v59 = vpop.xlane.xlu0 %5005 }
 0xccc   :  { %v5034_v2 = vsub.f32 %v8441_v46, %v5006_v59 }
 0xcce   :  { %v5059_v54 = vmul.f32 1.442695, %v5034_v2 }
 0xccf   :  { %v4985_v60 = vpop.xlane.xlu1 %4984  ;;  %v4982_v61 = vpop.xlane.xlu0 %4981 }
 0xcd0   :  { %7230 = vpow2.f32 %v5059_v54  ;;  %v5027_v14 = vsub.f32 %v8445_v43, %v4985_v60  ;;  %v5026_v56 = vsub.f32 %v8439_v21, %v4982_v61 }
 0xcd2   :  { %v5045_v37 = vmul.f32 1.442695, %v5027_v14  ;;  %v5043_v40 = vmul.f32 1.442695, %v5026_v56 }
 0xcd3   :  { %v5009_v10 = vpop.xlane.xlu0 %5008 }
 0xcd4   :  { %7232 = vpow2.f32 %v5045_v37  ;;  %v5035_v12 = vsub.f32 %v8453_v51, %v5009_v10 }
 0xcd5   :  { %7234 = vpow2.f32 %v5043_v40 }
 0xcd6   :  { %v5061_v62 = vmul.f32 1.442695, %v5035_v12 }
 0xcd8   :  { %7236 = vpow2.f32 %v5061_v62 }
 0xcda   :  { %v8509_v0 = vpop.eup %7230  ;;  %v5012_v46 = vpop.xlane.xlu0 %5011 }
 0xcdb   :  { %v5036_v15 = vsub.f32 %v8459_v44, %v5012_v46  ;;  %v5100_v16 = vsel %vm228_vm2, %v8509_v0, 0.0 }
 0xcdc   :  { %5101 = vadd.xlane.f32.xlu0 %v5100_v16 }
 0xcdd   :  { %v5063_v43 = vmul.f32 1.442695, %v5036_v15 }
 0xcde   :  { %v8514_v21 = vpop.eup %7232  ;;  %v4988_v18 = vpop.xlane.xlu0 %4987 }
 0xcdf   :  { %v8516_v13 = vpop.eup %7234  ;;  %7238 = vpow2.f32 %v5063_v43  ;;  %v5028_v51 = vsub.f32 %v8457_v41, %v4988_v18  ;;  %v5079_v48 = vsel %vm228_vm2, %v8514_v21, 0.0 }
 0xce0   :  { %5080 = vadd.xlane.f32.xlu0 %v5079_v48  ;;  %v5076_v44 = vsel %vm228_vm2, %v8516_v13, 0.0 }
 0xce1   :  { %v5047_v42 = vmul.f32 1.442695, %v5028_v51  ;;  %5077 = vadd.xlane.f32.xlu1 %v5076_v44 }
 0xce2   :  { %v8523_v63 = vpop.eup %7236  ;;  %v5015_v28 = vpop.xlane.xlu1 %5014 }
 0xce3   :  { %v4991_v26 = vpop.xlane.xlu0 %4990  ;;  %7240 = vpow2.f32 %v5047_v42  ;;  %v5037_v4 = vsub.f32 %v8469_v8, %v5015_v28  ;;  %v5103_v41 = vsel %vm228_vm2, %v8523_v63, 0.0 }
 0xce4   :  { %v5029_v33 = vsub.f32 %v8463_v6, %v4991_v26  ;;  %5104 = vadd.xlane.f32.xlu0 %v5103_v41 }
 0xce5   :  { %v5065_v34 = vmul.f32 1.442695, %v5037_v4 }
 0xce6   :  { %v5049_v24 = vmul.f32 1.442695, %v5029_v33  ;;  %v4994_v7 = vpop.xlane.xlu1 %4993 }
 0xce7   :  { %7242 = vpow2.f32 %v5065_v34  ;;  %v5030_v35 = vsub.f32 %v8475_v32, %v4994_v7 }
 0xce8   :  { %7244 = vpow2.f32 %v5049_v24 }
 0xce9   :  { %v8530_v50 = vpop.eup %7238  ;;  %v5051_v31 = vmul.f32 1.442695, %v5030_v35  ;;  %v5018_v45 = vpop.xlane.xlu0 %5017 }
 0xcea   :  { %v5038_v47 = vsub.f32 %v8479_v36, %v5018_v45  ;;  %v5106_v6 = vsel %vm228_vm2, %v8530_v50, 0.0 }
 0xceb   :  { %7246 = vpow2.f32 %v5051_v31  ;;  %5107 = vadd.xlane.f32.xlu0 %v5106_v6 }
 0xcec   :  { %v5067_v8 = vmul.f32 1.442695, %v5038_v47 }
 0xced   :  { %v8535_v52 = vpop.eup %7240  ;;  %v4997_v57 = vpop.xlane.xlu1 %4996 }
 0xcee   :  { %7248 = vpow2.f32 %v5067_v8  ;;  %v5031_v27 = vsub.f32 %v8483_v53, %v4997_v57  ;;  %v5082_v32 = vsel %vm228_vm2, %v8535_v52, 0.0 }
 0xcef   :  { %5083 = vadd.xlane.f32.xlu1 %v5082_v32 }
 0xcf0   :  { %v5053_v11 = vmul.f32 1.442695, %v5031_v27 }
 0xcf1   :  { %v8540_v19 = vpop.eup %7242 }
 0xcf2   :  { %v8542_v36 = vpop.eup %7244  ;;  %7250 = vpow2.f32 %v5053_v11  ;;  %v5109_v59 = vsel %vm228_vm2, %v8540_v19, 0.0 }
 0xcf3   :  { %5110 = vadd.xlane.f32.xlu1 %v5109_v59  ;;  %v5085_v2 = vsel %vm228_vm2, %v8542_v36, 0.0 }
 0xcf4   :  { %5086 = vadd.xlane.f32.xlu0 %v5085_v2 }
 0xcf5   :  { %v8548_v54 = vpop.eup %7246 }
 0xcf6   :  { %v5088_v53 = vsel %vm228_vm2, %v8548_v54, 0.0 }
 0xcf7   :  { %5089 = vadd.xlane.f32.xlu1 %v5088_v53  ;;  %v5000_v60 = vpop.xlane.xlu1 %4999 }
 0xcf8   :  { %v8552_v61 = vpop.eup %7248  ;;  %v5032_v14 = vsub.f32 %v8491_v17, %v5000_v60 }
 0xcf9   :  { %v5112_v56 = vsel %vm228_vm2, %v8552_v61, 0.0 }
 0xcfa   :  { %v5055_v37 = vmul.f32 1.442695, %v5032_v14  ;;  %5113 = vadd.xlane.f32.xlu0 %v5112_v56 }
 0xcfb   :  { %v5021_v40 = vpop.xlane.xlu1 %5020  ;;  %v5024_v10 = vpop.xlane.xlu0 %5023 }
 0xcfc   :  { %v8557_v12 = vpop.eup %7250  ;;  %7252 = vpow2.f32 %v5055_v37  ;;  %v5039_v62 = vsub.f32 %v8489_v29, %v5021_v40  ;;  %v5040_v46 = vsub.f32 %v8495_v23, %v5024_v10 }
 0xcfd   :  { %v5091_v15 = vsel %vm228_vm2, %v8557_v12, 0.0 }
 0xcfe   :  { %v5069_v16 = vmul.f32 1.442695, %v5039_v62  ;;  %v5071_v43 = vmul.f32 1.442695, %v5040_v46  ;;  %5092 = vadd.xlane.f32.xlu1 %v5091_v15 }
 0xcff   :  { %v4979_v17 = vpop.xlane.xlu1 %4978  ;;  %v5003_v18 = vpop.xlane.xlu0 %5002 }
 0xd00   :  { %7254 = vpow2.f32 %v5069_v16  ;;  %v5025_v51 = vsub.f32 %v8435_v3, %v4979_v17  ;;  %v5033_v48 = vsub.f32 %v8437_v20, %v5003_v18 }
 0xd01   :  { %7256 = vpow2.f32 %v5071_v43 }
 0xd02   :  { %v5041_v44 = vmul.f32 1.442695, %v5025_v51  ;;  %v5057_v42 = vmul.f32 1.442695, %v5033_v48 }
 0xd04   :  { %7258 = vpow2.f32 %v5041_v44 }
 0xd05   :  { %7260 = vpow2.f32 %v5057_v42 }
 0xd06   :  { %v8565_v29 = vpop.eup %7252 }
 0xd07   :  { %v5094_v23 = vsel %vm228_vm2, %v8565_v29, 0.0 }
 0xd08   :  { %5095 = vadd.xlane.f32.xlu1 %v5094_v23 }
 0xd0a   :  { %v8569_v28 = vpop.eup %7254 }
 0xd0b   :  { %v8571_v26 = vpop.eup %7256  ;;  %v5115_v3 = vsel %vm228_vm2, %v8569_v28, 0.0 }
 0xd0c   :  { %5116 = vadd.xlane.f32.xlu1 %v5115_v3  ;;  %v5118_v20 = vsel %vm228_vm2, %v8571_v26, 0.0 }
 0xd0d   :  { %5119 = vadd.xlane.f32.xlu0 %v5118_v20 }
 0xd0e   :  { %v8577_v4 = vpop.eup %7258 }
 0xd0f   :  { %v8579_v33 = vpop.eup %7260  ;;  %v5073_v41 = vsel %vm228_vm2, %v8577_v4, 0.0 }
 0xd10   :  { %5074 = vadd.xlane.f32.xlu1 %v5073_v41  ;;  %v5097_v34 = vsel %vm228_vm2, %v8579_v33, 0.0 }
 0xd11   :  { %5098 = vadd.xlane.f32.xlu0 %v5097_v34 }
 0xd69   :  { %v5102_v24 = vpop.xlane.xlu0 %5101 }
 0xd6a   :  { %7262 = vrcp.f32 %v5102_v24 }
 0xd6d   :  { %v5081_v7 = vpop.xlane.xlu0 %5080 }
 0xd6e   :  { %v5078_v35 = vpop.xlane.xlu1 %5077  ;;  %7264 = vrcp.f32 %v5081_v7 }
 0xd6f   :  { %7266 = vrcp.f32 %v5078_v35 }
 0xd71   :  { %v5105_v31 = vpop.xlane.xlu0 %5104 }
 0xd72   :  { %7268 = vrcp.f32 %v5105_v31 }
 0xd74   :  { %v7263_v45 = vpop.eup %7262 }
 0xd75   :  { %v5146_v47 = vmul.f32 %v7263_v45, %v8509_v0 }
 0xd77   :  { %5157 = vrot.lane.b32.xlu0 %v5146_v47, %s9032_s25 }
 0xd78   :  { %v7265_v6 = vpop.eup %7264  ;;  %v5108_v8 = vpop.xlane.xlu0 %5107 }
 0xd79   :  { %v7267_v57 = vpop.eup %7266  ;;  %7270 = vrcp.f32 %v5108_v8  ;;  %v5139_v27 = vmul.f32 %v7265_v6, %v8514_v21 }
 0xd7a   :  { %v5138_v32 = vmul.f32 %v7267_v57, %v8516_v13 }
 0xd7b   :  { %5163 = vrot.lane.b32.xlu0 %v5139_v27, %s9030_s1 }
 0xd7c   :  { %v7269_v11 = vpop.eup %7268  ;;  %5155 = vrot.lane.b32.xlu1 %v5138_v32, %s9032_s25  ;;  %v5084_v59 = vpop.xlane.xlu1 %5083 }
 0xd7d   :  { %7272 = vrcp.f32 %v5084_v59  ;;  %v5147_v2 = vmul.f32 %v7269_v11, %v8523_v63 }
 0xd7f   :  { %5165 = vrot.lane.b32.xlu0 %v5147_v2, %s9030_s1 }
 0xd80   :  { %v5111_v0 = vpop.xlane.xlu1 %5110 }
 0xd81   :  { %7274 = vrcp.f32 %v5111_v0  ;;  %v5087_v53 = vpop.xlane.xlu0 %5086 }
 0xd82   :  { %7276 = vrcp.f32 %v5087_v53 }
 0xd83   :  { %v7271_v60 = vpop.eup %7270 }
 0xd84   :  { %v5148_v21 = vmul.f32 %v7271_v60, %v8530_v50  ;;  %v5090_v14 = vpop.xlane.xlu1 %5089 }
 0xd86   :  { %5173 = vrot.lane.b32.xlu0 %v5148_v21, %s7410_s30 }
 0xd87   :  { %v7273_v13 = vpop.eup %7272  ;;  %v5114_v56 = vpop.xlane.xlu0 %5113 }
 0xd88   :  { %7278 = vrcp.f32 %v5114_v56  ;;  %v5140_v37 = vmul.f32 %v7273_v13, %v8535_v52 }
 0xd89   :  { %7280 = vrcp.f32 %v5090_v14 }
 0xd8a   :  { %5171 = vrot.lane.b32.xlu1 %v5140_v37, %s7410_s30 }
 0xd8b   :  { %v7275_v63 = vpop.eup %7274  ;;  %v5093_v40 = vpop.xlane.xlu1 %5092 }
 0xd8c   :  { %v7277_v10 = vpop.eup %7276  ;;  %v5149_v62 = vmul.f32 %v7275_v63, %v8540_v19  ;;  %7282 = vrcp.f32 %v5093_v40  ;;  %v8635_v40 = vld [vmem:[%s9009_s6 + $0x8] sm:$0x3f] }
 0xd8d   :  { %v5141_v46 = vmul.f32 %v7277_v10, %v8542_v36  ;;  %v5372_v10 = vrot.slane %v8635_v40, %v7603_v39 }
 0xd8e   :  { %5181 = vrot.lane.b32.xlu0 %v5149_v62, %s7407_s27 }
 0xd8f   :  { %5179 = vrot.lane.b32.xlu1 %v5141_v46, %s7407_s27 }
 0xd92   :  { %v7279_v50 = vpop.eup %7278 }
 0xd93   :  { %v5150_v15 = vmul.f32 %v7279_v50, %v8552_v61  ;;  %v7281_v16 = vpop.eup %7280 }
 0xd94   :  { %v5142_v43 = vmul.f32 %v7281_v16, %v8548_v54 }
 0xd95   :  { %5189 = vrot.lane.b32.xlu1 %v5150_v15, %s7406_s26  ;;  %v5096_v52 = vpop.xlane.xlu1 %5095 }
 0xd96   :  { %7284 = vrcp.f32 %v5096_v52  ;;  %v7283_v17 = vpop.eup %7282 }
 0xd97   :  { %v5143_v18 = vmul.f32 %v7283_v17, %v8557_v12 }
 0xd99   :  { %5187 = vrot.lane.b32.xlu1 %v5142_v43, %s7406_s26  ;;  %v5117_v19 = vpop.xlane.xlu1 %5116 }
 0xd9a   :  { %7286 = vrcp.f32 %v5117_v19  ;;  %v5120_v36 = vpop.xlane.xlu0 %5119 }
 0xd9b   :  { %7288 = vrcp.f32 %v5120_v36 }
 0xd9d   :  { %5195 = vrot.lane.b32.xlu1 %v5143_v18, %s7403_s24  ;;  %v5075_v23 = vpop.xlane.xlu1 %5074 }
 0xd9e   :  { %v5099_v12 = vpop.xlane.xlu0 %5098  ;;  %7290 = vrcp.f32 %v5075_v23 }
 0xd9f   :  { %7292 = vrcp.f32 %v5099_v12  ;;  %v6245_v12 = vld [vmem:[%s9010_s7 + $0x98] sm:$0xff] }
 0xda0   :  { %v7285_v51 = vpop.eup %7284 }
 0xda1   :  { %v5144_v61 = vmul.f32 %v7285_v51, %v8565_v29 }
 0xda3   :  { %5203 = vrot.lane.b32.xlu1 %v5144_v61, %s7401_s18 }
 0xda4   :  { %v7287_v48 = vpop.eup %7286 }
 0xda5   :  { %v7289_v44 = vpop.eup %7288  ;;  %v5151_v54 = vmul.f32 %v7287_v48, %v8569_v28 }
 0xda6   :  { %v5152_v42 = vmul.f32 %v7289_v44, %v8571_v26 }
 0xda7   :  { %5197 = vrot.lane.b32.xlu0 %v5151_v54, %s7403_s24 }
 0xda8   :  { %5205 = vrot.lane.b32.xlu1 %v5152_v42, %s7401_s18  ;;  %v7291_v7 = vpop.eup %7290  ;;  %s7417_s18 = smov [#allocation7]  }
 0xda9   :  { %v5137_v28 = vmul.f32 %v7291_v7, %v8577_v4  ;;  %v7293_v45 = vpop.eup %7292  ;;  %v6249_v7 = vld [vmem:[%s9010_s7 + $0xb8] sm:$0xff]  ;;  %s6107_s24 = sshll.u32 %s7417_s18, 4  ;;  %s6108_s24 = int_to_ptr.vmem [resolvable:$true] %s6107_s24 }
 0xdaa   :  { %v5145_v27 = vmul.f32 %v7293_v45, %v8579_v33  ;;  %v6251_v45 = vld [vmem:[%s9010_s7 + $0xc8] sm:$0xff]  ;;  %s7366_s6 = scalar_lea.vmem %s6108_s24, 32  ;;  %p7371_p3 = scmp.lt.s32.totalorder %s6108_s24, %s6108_s24 }
 0xdab   :  { %p7367_p2 = scmp.ne.s32.totalorder %s6108_s24, %s7366_s6  ;;  %p7372_p4 = scmp.lt.s32.totalorder %s7366_s6, %s7366_s6 }
 0xdad   :  { %p7373_p5 = por %p7372_p4, %p7371_p3 }
 0xdaf   :  { %p7374_p6 = pnand %p7373_p5, %p7367_p2 }
 0xde9   :  { %v5158_v41 = vpop.permute.xlu0 %5157 }
 0xdea   :  { %v5210_v59 = vsel %vm228_vm2, %v5145_v27, %v5158_v41  ;;  %v6242_v41 = vld [vmem:[%s9010_s7 + $0x80] sm:$0xff] }
 0xded   :  { %v5164_v29 = vpop.permute.xlu0 %5163 }
 0xdee   :  { %v5156_v3 = vpop.permute.xlu1 %5155 }
 0xdef   :  { %v5209_v26 = vsel %vm228_vm2, %v5137_v28, %v5156_v3  ;;  %v6246_v28 = vld [vmem:[%s9010_s7 + $0xa0] sm:$0xff]  ;;  %vm5856_vm2 = vcmask 1041409  }
 0xdf0   :  { %v5211_v47 = vsel %vm2368_vm3, %v5209_v26, %v5164_v29 }
 0xdf1   :  { %v5166_v31 = vpop.permute.xlu0 %5165 }
 0xdf2   :  { %v5212_v53 = vsel %vm2368_vm3, %v5210_v59, %v5166_v31  ;;  %v6248_v31 = vld [vmem:[%s9010_s7 + $0xb0] sm:$0xff]  ;;  %v6254_v59 = vld [vmem:[%s9010_s7 + $0xe0] sm:$0xff] }
 0xdf3   :  { %v7003_v26 = vpack.c.bf16 %v6248_v31, %v6246_v28  ;;  %v6286_v28 = vld [vmem:[%s9012_s9 + $0x1c8] sm:$0xff] }
 0xdf8   :  { %v5174_v6 = vpop.permute.xlu0 %5173 }
 0xdf9   :  { %v5214_v21 = vsel %vm2371_vm4, %v5212_v53, %v5174_v6 }
 0xdfc   :  { %v5172_v20 = vpop.permute.xlu1 %5171 }
 0xdfd   :  { %v5213_v57 = vsel %vm2371_vm4, %v5211_v47, %v5172_v20  ;;  %v6253_v47 = vld [vmem:[%s9010_s7 + $0xd8] sm:$0xff] }
 0xdfe   :  { %v7005_v6 = vpack.c.bf16 %v6253_v47, %v6251_v45  ;;  %v6270_v45 = vld [vmem:[%s9012_s9 + $0x148] sm:$0xff] }
 0xe00   :  { %v5182_v2 = vpop.permute.xlu0 %5181 }
 0xe01   :  { %v5180_v34 = vpop.permute.xlu1 %5179  ;;  %v5216_v33 = vsel %vm2374_vm5, %v5214_v21, %v5182_v2 }
 0xe02   :  { %v5215_v32 = vsel %vm2374_vm5, %v5213_v57, %v5180_v34  ;;  %v6244_v34 = vld [vmem:[%s9010_s7 + $0x90] sm:$0xff] }
 0xe03   :  { %v6999_v29 = vpack.c.bf16 %v6244_v34, %v6242_v41  ;;  %v6252_v57 = vld [vmem:[%s9010_s7 + $0xd0] sm:$0xff]  ;;  %v6284_v41 = vld [vmem:[%s9012_s9 + $0x1b8] sm:$0xff] }
 0xe07   :  { %v5190_v24 = vpop.permute.xlu1 %5189 }
 0xe08   :  { %v5218_v13 = vsel %vm2377_vm6, %v5216_v33, %v5190_v24  ;;  %v6247_v24 = vld [vmem:[%s9010_s7 + $0xa8] sm:$0xff] }
 0xe0b   :  { %v5188_v35 = vpop.permute.xlu1 %5187 }
 0xe0c   :  { %v5217_v11 = vsel %vm2377_vm6, %v5215_v32, %v5188_v35  ;;  %v7001_v35 = vpack.c.bf16 %v6249_v7, %v6247_v24  ;;  %v6255_v32 = vld [vmem:[%s9010_s7 + $0xe8] sm:$0xff]  ;;  %v6268_v24 = vld [vmem:[%s9012_s9 + $0x138] sm:$0xff] }
 0xe0f   :  { %v5196_v8 = vpop.permute.xlu1 %5195 }
 0xe10   :  { %v5219_v4 = vsel %vm2380_vm7, %v5217_v11, %v5196_v8  ;;  %v6250_v8 = vld [vmem:[%s9010_s7 + $0xc0] sm:$0xff]  ;;  %v6257_v11 = vld [vmem:[%s9010_s7 + $0xf8] sm:$0xff] }
 0xe11   :  { %v7007_v27 = vpack.c.bf16 %v6252_v57, %v6250_v8  ;;  %v7009_v2 = vpack.c.bf16 %v6257_v11, %v6255_v32  ;;  %v6288_v8 = vld [vmem:[%s9012_s9 + $0x1d8] sm:$0xff] }
 0xe12   :  { %v6272_v32 = vld [vmem:[%s9012_s9 + $0x158] sm:$0xff] }
 0xe15   :  { %v5204_v0 = vpop.permute.xlu1 %5203 }
 0xe16   :  { %v5221_v60 = vsel %vm2383_vm8, %v5219_v4, %v5204_v0  ;;  %v6256_v4 = vld [vmem:[%s9010_s7 + $0xf0] sm:$0xff] }
 0xe17   :  { %6848 = vmatmul.mubr.msk.f32.vlgmr.msra.gmra.mrb[64].mxu1 %vm141_vm0, %v5221_v60  ;;  %v7011_v0 = vpack.c.bf16 %v6256_v4, %v6254_v59  ;;  %v6289_v59 = vld [vmem:[%s9012_s9 + $0x1e0] sm:$0xff] }
 0xe18   :  { %5515 = vmatprep.mubr.f32.mxu1 %v7399_v22 }
 0xe19   :  { %v5198_v14 = vpop.permute.xlu0 %5197 }
 0xe1a   :  { %v5206_v56 = vpop.permute.xlu1 %5205  ;;  %v5220_v37 = vsel %vm2380_vm7, %v5218_v13, %v5198_v14 }
 0xe1b   :  { %v5222_v63 = vsel %vm2383_vm8, %v5220_v37, %v5206_v56  ;;  %v5406_v56 = vrot.slane %v8635_v40, %v7643_v49 }
 0xe1c   :  { %6867 = vmatmul.mubr.msk.f32.vlgmr.msra.gmra.mrb[52].mxu0 %vm141_vm0, %v5222_v63 }
 0xeea   :  { %v5292_v62 = vpop.f32.mrb[64].mxu1 }
 0xeeb   :  { %v5373_v46 = vadd.f32 %v5372_v10, %v5292_v62  ;;  %v6849_v50 = vpop.f32.mrb[65].mxu1 }
 0xeed   :  { %v5375_v15 = vadd.f32 %v5373_v46, %v8273_v9 }
 0xeef   :  { %v5365_v16 = vpop.f32.mrb[52].mxu0  ;;  %v5377_v52 = vsel %vm141_vm0, %v5375_v15, 0.0 }
 0xef0   :  { %v5374_v43 = vadd.f32 %v5372_v10, %v5365_v16  ;;  %5378 = vadd.xlane.f32.xlu0 %v5377_v52  ;;  %v6868_v17 = vpop.f32.mrb[53].mxu0  ;;  %v5412_v10 = vrot.slane %v8635_v40, %v2575_v58  ;;  %v6277_v58 = vld [vmem:[%s9012_s9 + $0x180] sm:$0xff] }
 0xef2   :  { %v5376_v19 = vadd.f32 %v5374_v43, %v8278_v5  ;;  %v6243_v5 = vld [vmem:[%s9010_s7 + $0x88] sm:$0xff] }
 0xef3   :  { %v6997_v20 = vpack.c.bf16 %v6245_v12, %v6243_v5  ;;  %v6278_v43 = vld [vmem:[%s9012_s9 + $0x188] sm:$0xff] }
 0xef4   :  { %v5380_v36 = vsel %vm141_vm0, %v5376_v19, 0.0  ;;  %v7013_v17 = vpack.c.bf16 %v6278_v43, %v6277_v58  ;;  %v6266_v5 = vld [vmem:[%s9012_s9 + $0x128] sm:$0xff] }
 0xef5   :  { %5381 = vadd.xlane.f32.xlu1 %v5380_v36  ;;  %6998 = vmatprep.subr.bf16.mxu1 %v6997_v20  ;;  %v6262_v36 = vld [vmem:[%s9012_s9 + $0x108] sm:$0xff]  ;;  %v6283_v20 = vld [vmem:[%s9012_s9 + $0x1b0] sm:$0xff] }
 0xef6   :  { %7000 = vmatpush1.bf16.msra.mxu1 %v6999_v29  ;;  %7014 = vmatprep.subr.bf16.mxu0 %v7013_v17  ;;  %v7025_v34 = vpack.c.bf16 %v6284_v41, %v6283_v20  ;;  %v6267_v29 = vld [vmem:[%s9012_s9 + $0x130] sm:$0xff] }
 0xef7   :  { %7002 = vmatprep.subr.bf16.mxu1 %v7001_v35  ;;  %v7027_v7 = vpack.c.bf16 %v6268_v24, %v6267_v29  ;;  %v6285_v35 = vld [vmem:[%s9012_s9 + $0x1c0] sm:$0xff] }
 0xef8   :  { %v7029_v31 = vpack.c.bf16 %v6286_v28, %v6285_v35 }
 0xefa   :  { %7004 = vmatpush1.bf16.msra.mxu1 %v7003_v26  ;;  %v6269_v26 = vld [vmem:[%s9012_s9 + $0x140] sm:$0xff] }
 0xefb   :  { %7006 = vmatprep.subr.bf16.mxu1 %v7005_v6  ;;  %v7031_v47 = vpack.c.bf16 %v6270_v45, %v6269_v26  ;;  %v6287_v6 = vld [vmem:[%s9012_s9 + $0x1d0] sm:$0xff] }
 0xefc   :  { %v7033_v57 = vpack.c.bf16 %v6288_v8, %v6287_v6 }
 0xefe   :  { %7008 = vmatpush1.bf16.msra.mxu1 %v7007_v27  ;;  %v6271_v27 = vld [vmem:[%s9012_s9 + $0x150] sm:$0xff] }
 0xeff   :  { %7010 = vmatprep.subr.bf16.mxu1 %v7009_v2  ;;  %v7035_v11 = vpack.c.bf16 %v6272_v32, %v6271_v27  ;;  %v6290_v2 = vld [vmem:[%s9012_s9 + $0x1e8] sm:$0xff] }
 0xf00   :  { %v7037_v4 = vpack.c.bf16 %v6290_v2, %v6289_v59 }
 0xf02   :  { %7012 = vmatpush1.bf16.msra.mxu1 %v7011_v0  ;;  %v6273_v0 = vld [vmem:[%s9012_s9 + $0x160] sm:$0xff] }
 0xf7d   :  { %v5379_v18 = vpop.xlane.xlu0 %5378 }
 0xf7e   :  { %v5383_v51 = vmul.f32 0.015625, %v5379_v18 }
 0xf80   :  { %v5385_v61 = vsub.f32 %v5375_v15, %v5383_v51  ;;  %v6280_v51 = vld [vmem:[%s9012_s9 + $0x198] sm:$0xff] }
 0xf82   :  { %v5382_v48 = vpop.xlane.xlu1 %5381  ;;  %v5387_v44 = vmul.f32 %v5385_v61, %v5385_v61 }
 0xf83   :  { %v5384_v54 = vmul.f32 0.015625, %v5382_v48  ;;  %v6263_v48 = vld [vmem:[%s9012_s9 + $0x110] sm:$0xff] }
 0xf84   :  { %v5389_v42 = vsel %vm141_vm0, %v5387_v44, 0.0  ;;  %v6264_v44 = vld [vmem:[%s9012_s9 + $0x118] sm:$0xff] }
 0xf85   :  { %v5386_v9 = vsub.f32 %v5376_v19, %v5384_v54  ;;  %5390 = vadd.xlane.f32.xlu0 %v5389_v42  ;;  %v6261_v19 = vld [vmem:[%s9012_s9 + $0x100] sm:$0xff]  ;;  %v7019_v54 = vpack.c.bf16 %v6264_v44, %v6263_v48 }
 0xf86   :  { %v7015_v18 = vpack.c.bf16 %v6262_v36, %v6261_v19  ;;  %v6281_v42 = vld [vmem:[%s9012_s9 + $0x1a0] sm:$0xff] }
 0xf87   :  { %v5388_v23 = vmul.f32 %v5386_v9, %v5386_v9 }
 0xf88   :  { %7016 = vmatpush3.bf16.msra.mxu0 %v7015_v18 }
 0xf89   :  { %v5392_v3 = vsel %vm141_vm0, %v5388_v23, 0.0 }
 0xf8a   :  { %5393 = vadd.xlane.f32.xlu0 %v5392_v3  ;;  %v6265_v3 = vld [vmem:[%s9012_s9 + $0x120] sm:$0xff] }
 0xf8b   :  { %v7023_v12 = vpack.c.bf16 %v6266_v5, %v6265_v3 }
0x1012   :  { %v5391_v53 = vpop.xlane.xlu0 %5390 }
0x1013   :  { %v5395_v60 = vmul.f32 0.015625, %v5391_v53  ;;  %v6274_v53 = vld [vmem:[%s9012_s9 + $0x168] sm:$0xff] }
0x1015   :  { %v5397_v21 = vadd.f32 1e-06, %v5395_v60  ;;  %v7039_v60 = vpack.c.bf16 %v6274_v53, %v6273_v0 }
0x1017   :  { %7294 = vrsqrt.f32 %v5397_v21  ;;  %v5394_v33 = vpop.xlane.xlu0 %5393  ;;  %v6291_v21 = vld [vmem:[%s9012_s9 + $0x1f0] sm:$0xff] }
0x1018   :  { %v5396_v13 = vmul.f32 0.015625, %v5394_v33  ;;  %v6292_v33 = vld [vmem:[%s9012_s9 + $0x1f8] sm:$0xff] }
0x101a   :  { %v5398_v14 = vadd.f32 1e-06, %v5396_v13  ;;  %v7041_v13 = vpack.c.bf16 %v6292_v33, %v6291_v21 }
0x101c   :  { %7296 = vrsqrt.f32 %v5398_v14  ;;  %v6275_v14 = vld [vmem:[%s9012_s9 + $0x170] sm:$0xff] }
0x1021   :  { %v7295_v37 = vpop.eup %7294 }
0x1022   :  { %v5401_v63 = vmul.f32 %v7295_v37, %v5385_v61 }
0x1024   :  { %v5407_v62 = vmul.f32 %v5406_v56, %v5401_v63  ;;  %v6258_v63 = vld [vmem:[%s9011_s8 + $0x2] sm:$0x3] }
0x1026   :  { %v7297_v46 = vpop.eup %7296  ;;  %v8698_v50 = vadd.f32 %v5412_v10, %v5407_v62  ;;  %v5442_v62 = vrot.slane %v6258_v63, %v7643_v49 }
0x1027   :  { %v5402_v15 = vmul.f32 %v7297_v46, %v5386_v9  ;;  %v6282_v9 = vld [vmem:[%s9012_s9 + $0x1a8] sm:$0xff] }
0x1028   :  { %6259 = vmatmul.mubr.msk.f32.vlgmr.msra.gmra.mrb[66].mxu1 %vm141_vm0, %v8698_v50  ;;  %v7021_v23 = vpack.c.bf16 %v6282_v9, %v6281_v42 }
0x1029   :  { %5521 = vmatprep.mubr.f32.mxu1 %v7399_v22  ;;  %v5408_v16 = vmul.f32 %v5406_v56, %v5402_v15  ;;  %v6276_v56 = vld [vmem:[%s9012_s9 + $0x178] sm:$0xff] }
0x102a   :  { %v7043_v37 = vpack.c.bf16 %v6276_v56, %v6275_v14 }
0x102b   :  { %v8703_v52 = vadd.f32 %v5412_v10, %v5408_v16  ;;  %v5438_v10 = vrot.slane %v6258_v63, %v7603_v39 }
0x102d   :  { %6260 = vmatmul.mubr.msk.f32.gmra.mrb[68].mxu1 %vm141_vm0, %v8703_v52 }
0x102e   :  { %5974 = vmatprep.mubr.f32.mxu1 %v7399_v22  ;;  %v6279_v22 = vld [vmem:[%s9012_s9 + $0x190] sm:$0xff] }
0x102f   :  { %v7017_v61 = vpack.c.bf16 %v6280_v51, %v6279_v22 }
0x1031   :  { %7018 = vmatprep.subr.bf16.mxu0 %v7017_v61 }
0x1032   :  { %7020 = vmatpush3.bf16.msra.mxu0 %v7019_v54 }
0x1033   :  { %7022 = vmatprep.subr.bf16.mxu0 %v7021_v23 }
0x1036   :  { %7024 = vmatpush3.bf16.msra.mxu0 %v7023_v12 }
0x1037   :  { %7026 = vmatprep.subr.bf16.mxu0 %v7025_v34 }
0x103a   :  { %7028 = vmatpush3.bf16.msra.mxu0 %v7027_v7 }
0x103b   :  { %7030 = vmatprep.subr.bf16.mxu0 %v7029_v31 }
0x103e   :  { %7032 = vmatpush3.bf16.msra.mxu0 %v7031_v47 }
0x103f   :  { %7034 = vmatprep.subr.bf16.mxu0 %v7033_v57 }
0x1042   :  { %7036 = vmatpush3.bf16.msra.mxu0 %v7035_v11 }
0x1043   :  { %7038 = vmatprep.subr.bf16.mxu0 %v7037_v4 }
0x1046   :  { %7040 = vmatpush3.bf16.msra.mxu0 %v7039_v60 }
0x1047   :  { %7042 = vmatprep.subr.bf16.mxu0 %v7041_v13 }
0x104a   :  { %7044 = vmatpush3.bf16.msra.mxu0 %v7043_v37 }
0x10fb   :  { %v5517_v46 = vpop.f32.mrb[66].mxu1 }
0x10fc   :  { %v8809_v15 = vadd.f32 %v5517_v46, %v5438_v10  ;;  %v5519_v16 = vpop.f32.mrb[67].mxu1 }
0x10fd   :  { %v8811_v58 = vadd.f32 %v5519_v16, %v5442_v62 }
0x10fe   :  { %v8814_v43 = vmul.f32 0.70710677, %v8809_v15 }
0x10ff   :  { %v8817_v17 = vmul.f32 0.70710677, %v8811_v58 }
0x1100   :  { %v5544_v19 = vand.u32 2147483647, %v8814_v43  ;;  %v5523_v36 = vpop.f32.mrb[68].mxu1  ;;  %vm5536_vm13 = vcmp.ge.f32.partialorder %v8814_v43, 0.0 }
0x1101   :  { %v5545_v18 = vand.u32 2147483647, %v8817_v17  ;;  %v8821_v22 = vadd.f32 %v5523_v36, %v5438_v10  ;;  %v5525_v51 = vpop.f32.mrb[69].mxu1  ;;  %vm5537_vm14 = vcmp.ge.f32.partialorder %v8817_v17, 0.0 }
0x1102   :  { %v5548_v61 = vmul.f32 0.3275911, %v5544_v19  ;;  %v8823_v48 = vadd.f32 %v5525_v51, %v5442_v62  ;;  %v5596_v34 = vsub.f32 0.0, %v5544_v19 }
0x1103   :  { %v5549_v44 = vmul.f32 0.3275911, %v5545_v18  ;;  %v8826_v54 = vmul.f32 0.70710677, %v8821_v22  ;;  %v5597_v24 = vsub.f32 0.0, %v5545_v18 }
0x1104   :  { %v5552_v42 = vadd.f32 1.0, %v5548_v61  ;;  %v8829_v9 = vmul.f32 0.70710677, %v8823_v48  ;;  %v5600_v35 = vmul.f32 %v5596_v34, %v5544_v19 }
0x1105   :  { %v5553_v23 = vadd.f32 1.0, %v5549_v44  ;;  %v5546_v3 = vand.u32 2147483647, %v8826_v54  ;;  %v5601_v26 = vmul.f32 %v5597_v24, %v5545_v18  ;;  %vm5538_vm15 = vcmp.ge.f32.partialorder %v8826_v54, 0.0 }
0x1106   :  { %7298 = vrcp.f32 %v5552_v42  ;;  %v5547_v12 = vand.u32 2147483647, %v8829_v9  ;;  %v5604_v8 = vmul.f32 1.442695, %v5600_v35  ;;  %vm5539_vm1 = vcmp.ge.f32.partialorder %v8829_v9, 0.0 }
0x1107   :  { %7300 = vrcp.f32 %v5553_v23  ;;  %v5550_v5 = vmul.f32 0.3275911, %v5546_v3  ;;  %v5598_v45 = vsub.f32 0.0, %v5546_v3  ;;  %v5606_v59 = vmul.f32 1.442695, %v5601_v26 }
0x1108   :  { %v5551_v41 = vmul.f32 0.3275911, %v5547_v12  ;;  %v5599_v57 = vsub.f32 0.0, %v5547_v12 }
0x1109   :  { %v5554_v20 = vadd.f32 1.0, %v5550_v5  ;;  %v5602_v2 = vmul.f32 %v5598_v45, %v5546_v3 }
0x110a   :  { %v5555_v29 = vadd.f32 1.0, %v5551_v41  ;;  %v5603_v21 = vmul.f32 %v5599_v57, %v5547_v12 }
0x110b   :  { %7302 = vrcp.f32 %v5554_v20  ;;  %v5608_v56 = vmul.f32 1.442695, %v5602_v2 }
0x110c   :  { %7304 = vrcp.f32 %v5555_v29  ;;  %v5610_v16 = vmul.f32 1.442695, %v5603_v21 }
0x110d   :  { %7306 = vpow2.f32 %v5604_v8  ;;  %v5540_v8 = vsel %vm5536_vm13, 1.0, %v7416_v55 }
0x110e   :  { %7308 = vpow2.f32 %v5606_v59 }
0x110f   :  { %7310 = vpow2.f32 %v5608_v56 }
0x1110   :  { %v7299_v7 = vpop.eup %7298  ;;  %7312 = vpow2.f32 %v5610_v16 }
0x1111   :  { %v7301_v28 = vpop.eup %7300  ;;  %v5560_v31 = vmul.f32 1.0614054, %v7299_v7 }
0x1112   :  { %v5561_v47 = vmul.f32 1.0614054, %v7301_v28 }
0x1113   :  { %v5564_v6 = vadd.f32 -1.4531521, %v5560_v31 }
0x1114   :  { %v5565_v27 = vadd.f32 -1.4531521, %v5561_v47 }
0x1115   :  { %v7303_v32 = vpop.eup %7302  ;;  %v5568_v11 = vmul.f32 %v7299_v7, %v5564_v6 }
0x1116   :  { %v5569_v4 = vmul.f32 %v7301_v28, %v5565_v27  ;;  %v5562_v0 = vmul.f32 1.0614054, %v7303_v32  ;;  %v7305_v60 = vpop.eup %7304 }
0x1117   :  { %v5572_v53 = vadd.f32 1.4214138, %v5568_v11  ;;  %v5563_v37 = vmul.f32 1.0614054, %v7305_v60  ;;  %v7307_v41 = vpop.eup %7306 }
0x1118   :  { %v5573_v33 = vadd.f32 1.4214138, %v5569_v4  ;;  %v5566_v13 = vadd.f32 -1.4531521, %v5562_v0  ;;  %v7309_v24 = vpop.eup %7308 }
0x1119   :  { %v5576_v14 = vmul.f32 %v7299_v7, %v5572_v53  ;;  %v5567_v46 = vadd.f32 -1.4531521, %v5563_v37  ;;  %v5529_v53 = vmul.f32 0.5, %v8811_v58  ;;  %v5531_v58 = vmul.f32 0.5, %v8823_v48 }
0x111a   :  { %v5577_v63 = vmul.f32 %v7301_v28, %v5573_v33  ;;  %v5570_v10 = vmul.f32 %v7303_v32, %v5566_v13  ;;  %v5528_v13 = vmul.f32 0.5, %v8809_v15  ;;  %v5530_v15 = vmul.f32 0.5, %v8821_v22 }
0x111b   :  { %v5580_v62 = vadd.f32 -0.28449672, %v5576_v14  ;;  %v5571_v51 = vmul.f32 %v7305_v60, %v5567_v46 }
0x111c   :  { %v5581_v19 = vadd.f32 -0.28449672, %v5577_v63  ;;  %v5574_v36 = vadd.f32 1.4214138, %v5570_v10  ;;  %v5543_v10 = vsel %vm5539_vm1, 1.0, %v7416_v55 }
0x111d   :  { %v5584_v18 = vmul.f32 %v7299_v7, %v5580_v62  ;;  %v5575_v23 = vadd.f32 1.4214138, %v5571_v51 }
0x111e   :  { %v5585_v61 = vmul.f32 %v7301_v28, %v5581_v19  ;;  %v5578_v44 = vmul.f32 %v7303_v32, %v5574_v36  ;;  %v5668_v36 = vrot.slane %v8635_v40, %v2828_v1 }
0x111f   :  { %v5588_v42 = vadd.f32 0.2548296, %v5584_v18  ;;  %v5579_v20 = vmul.f32 %v7305_v60, %v5575_v23 }
0x1120   :  { %v5589_v3 = vadd.f32 0.2548296, %v5585_v61  ;;  %v5582_v5 = vadd.f32 -0.28449672, %v5578_v44 }
0x1121   :  { %v5592_v12 = vmul.f32 %v7299_v7, %v5588_v42  ;;  %v5583_v31 = vadd.f32 -0.28449672, %v5579_v20  ;;  %v7311_v7 = vpop.eup %7310 }
0x1122   :  { %v5593_v34 = vmul.f32 %v7301_v28, %v5589_v3  ;;  %v5586_v29 = vmul.f32 %v7303_v32, %v5582_v5  ;;  %v5541_v28 = vsel %vm5537_vm14, 1.0, %v7416_v55  ;;  %v7313_v17 = vpop.eup %7312 }
0x1123   :  { %v5612_v35 = vmul.f32 %v7307_v41, %v5592_v12  ;;  %v5587_v6 = vmul.f32 %v7305_v60, %v5583_v31 }
0x1124   :  { %v5613_v26 = vmul.f32 %v7309_v24, %v5593_v34  ;;  %v5590_v45 = vadd.f32 0.2548296, %v5586_v29 }
0x1125   :  { %v5616_v47 = vsub.f32 1.0, %v5612_v35  ;;  %v5591_v59 = vadd.f32 0.2548296, %v5587_v6 }
0x1126   :  { %v5617_v57 = vsub.f32 1.0, %v5613_v26  ;;  %v5594_v27 = vmul.f32 %v7303_v32, %v5590_v45  ;;  %v5542_v32 = vsel %vm5538_vm15, 1.0, %v7416_v55 }
0x1127   :  { %v5620_v11 = vmul.f32 %v5616_v47, %v5540_v8  ;;  %v5595_v0 = vmul.f32 %v7305_v60, %v5591_v59 }
0x1128   :  { %v5621_v43 = vmul.f32 %v5617_v57, %v5541_v28  ;;  %v5614_v2 = vmul.f32 %v7311_v7, %v5594_v27  ;;  %v5775_v57 = vrot.slane %v8635_v40, %v2935_v30 }
0x1129   :  { %v5624_v4 = vadd.f32 1.0, %v5620_v11  ;;  %v5615_v14 = vmul.f32 %v7313_v17, %v5595_v0  ;;  %v5781_v11 = vrot.slane %v8635_v40, %v2941_v25 }
0x112a   :  { %v5625_v21 = vadd.f32 1.0, %v5621_v43  ;;  %v5618_v33 = vsub.f32 1.0, %v5614_v2 }
0x112b   :  { %v5628_v63 = vmul.f32 %v5624_v4, %v5528_v13  ;;  %v5619_v54 = vsub.f32 1.0, %v5615_v14 }
0x112c   :  { %v5629_v56 = vmul.f32 %v5625_v21, %v5529_v53  ;;  %v5622_v37 = vmul.f32 %v5618_v33, %v5542_v32 }
0x112d   :  { %v5623_v60 = vmul.f32 %v5619_v54, %v5543_v10  ;;  %v5866_v54 = vld [vmem:[%s9014_s11] sm:$0xff] }
0x112e   :  { %5733 = vmatprep.mubr.f32.mxu0 %v5629_v56  ;;  %v5626_v62 = vadd.f32 1.0, %v5622_v37  ;;  %v5867_v37 = vld [vmem:[%s9014_s11 + $0x8] sm:$0xff] }
0x112f   :  { %5734 = vmatmul.mubr.f32.vlgmr.msra.gmra.mrb[54].mxu0 %v5628_v63  ;;  %v5627_v46 = vadd.f32 1.0, %v5623_v60  ;;  %v5869_v63 = vld [vmem:[%s9014_s11 + $0x18] sm:$0xff]  ;;  %v5868_v60 = vld [vmem:[%s9014_s11 + $0x10] sm:$0xff] }
0x1130   :  { %v5630_v19 = vmul.f32 %v5626_v62, %v5530_v15  ;;  %v7045_v10 = vpack.c.bf16 %v5869_v63, %v5867_v37  ;;  %v5871_v62 = vld [vmem:[%s9014_s11 + $0x28] sm:$0xff] }
0x1131   :  { %v5631_v16 = vmul.f32 %v5627_v46, %v5531_v58  ;;  %v5873_v58 = vld [vmem:[%s9014_s11 + $0x38] sm:$0xff]  ;;  %v7047_v46 = vpack.c.bf16 %v5868_v60, %v5866_v54 }
0x1132   :  { %v7049_v15 = vpack.c.bf16 %v5873_v58, %v5871_v62  ;;  %7046 = vmatprep.subr.bf16.mxu1 %v7045_v10 }
0x1133   :  { %5738 = vmatprep.mubr.f32.mxu0 %v5631_v16  ;;  %v5870_v16 = vld [vmem:[%s9014_s11 + $0x20] sm:$0xff]  ;;  %7048 = vmatpush1.bf16.msra.mxu1 %v7047_v46 }
0x1134   :  { %5739 = vmatmul.mubr.f32.gmra.mrb[56].mxu0 %v5630_v19  ;;  %v5872_v19 = vld [vmem:[%s9014_s11 + $0x30] sm:$0xff]  ;;  %7050 = vmatprep.subr.bf16.mxu1 %v7049_v15 }
0x1202   :  { %v6512_v9 = vpop.f32.mrb[54].mxu0 }
0x1203   :  { %v6513_v18 = vpop.f32.mrb[55].mxu0 }
0x1204   :  { %v6514_v55 = vadd.f32 %v6513_v18, %v6512_v9  ;;  %v5875_v9 = vld [vmem:[%s9014_s11 + $0x48] sm:$0xff]  ;;  %v7051_v18 = vpack.c.bf16 %v5872_v19, %v5870_v16 }
0x1206   :  { %v5736_v51 = vadd.f32 %v6514_v55, %v5668_v36  ;;  %7052 = vmatpush1.bf16.msra.mxu1 %v7051_v18 }
0x1207   :  { %v6515_v44 = vpop.f32.mrb[56].mxu0 }
0x1208   :  { %v5744_v61 = vadd.f32 %v5736_v51, %v8698_v50  ;;  %v6516_v42 = vpop.f32.mrb[57].mxu0  ;;  %v5874_v51 = vld [vmem:[%s9014_s11 + $0x40] sm:$0xff] }
0x1209   :  { %v6517_v23 = vadd.f32 %v6516_v42, %v6515_v44  ;;  %v5879_v44 = vld [vmem:[%s9014_s11 + $0x68] sm:$0xff]  ;;  %v5881_v42 = vld [vmem:[%s9014_s11 + $0x78] sm:$0xff] }
0x120a   :  { %v5746_v48 = vsel %vm141_vm0, %v5744_v61, 0.0 }
0x120b   :  { %5747 = vadd.xlane.f32.xlu1 %v5746_v48  ;;  %v5741_v22 = vadd.f32 %v6517_v23, %v5668_v36  ;;  %v5877_v36 = vld [vmem:[%s9014_s11 + $0x58] sm:$0xff]  ;;  %v7057_v23 = vpack.c.bf16 %v5881_v42, %v5879_v44  ;;  %v6007_v44 = vld [vmem:[#allocation5 + $0x80] sm:$0xff]  ;;  %v6008_v42 = vld [vmem:[#allocation5 + $0x88] sm:$0xff] }
0x120c   :  { %v7053_v55 = vpack.c.bf16 %v5877_v36, %v5875_v9 }
0x120d   :  { %v5745_v3 = vadd.f32 %v5741_v22, %v8703_v52  ;;  %v5878_v22 = vld [vmem:[%s9014_s11 + $0x60] sm:$0xff] }
0x120e   :  { %7054 = vmatprep.subr.bf16.mxu1 %v7053_v55 }
0x120f   :  { %v5749_v5 = vsel %vm141_vm0, %v5745_v3, 0.0 }
0x1210   :  { %5750 = vadd.xlane.f32.xlu0 %v5749_v5  ;;  %v5883_v5 = vld [vmem:[%s9014_s11 + $0x88] sm:$0xff] }
0x1298   :  { %v5748_v12 = vpop.xlane.xlu1 %5747 }
0x1299   :  { %v5752_v20 = vmul.f32 0.015625, %v5748_v12  ;;  %v5885_v12 = vld [vmem:[%s9014_s11 + $0x98] sm:$0xff] }
0x129b   :  { %v5754_v1 = vsub.f32 %v5744_v61, %v5752_v20  ;;  %v5876_v61 = vld [vmem:[%s9014_s11 + $0x50] sm:$0xff] }
0x129c   :  { %v7055_v48 = vpack.c.bf16 %v5876_v61, %v5874_v51 }
0x129d   :  { %v5756_v41 = vmul.f32 %v5754_v1, %v5754_v1  ;;  %v5751_v34 = vpop.xlane.xlu0 %5750 }
0x129e   :  { %v5753_v50 = vmul.f32 0.015625, %v5751_v34  ;;  %7056 = vmatpush1.bf16.msra.mxu1 %v7055_v48  ;;  %v5884_v34 = vld [vmem:[%s9014_s11 + $0x90] sm:$0xff]  ;;  %v5991_v48 = vld [vmem:[#allocation5] sm:$0xff] }
0x129f   :  { %v5758_v29 = vsel %vm141_vm0, %v5756_v41, 0.0  ;;  %7058 = vmatprep.subr.bf16.mxu1 %v7057_v23  ;;  %v5882_v41 = vld [vmem:[%s9014_s11 + $0x80] sm:$0xff] }
0x12a0   :  { %5759 = vadd.xlane.f32.xlu1 %v5758_v29  ;;  %v5755_v24 = vsub.f32 %v5745_v3, %v5753_v50  ;;  %v5880_v3 = vld [vmem:[%s9014_s11 + $0x70] sm:$0xff]  ;;  %v5887_v29 = vld [vmem:[%s9014_s11 + $0xa8] sm:$0xff]  ;;  %v5889_v50 = vld [vmem:[%s9014_s11 + $0xb8] sm:$0xff] }
0x12a1   :  { %v7059_v20 = vpack.c.bf16 %v5880_v3, %v5878_v22  ;;  %v7077_v3 = vpack.c.bf16 %v6008_v42, %v6007_v44  ;;  %v6021_v42 = vld [vmem:[#allocation5 + $0xf0] sm:$0xff] }
0x12a2   :  { %v5757_v35 = vmul.f32 %v5755_v24, %v5755_v24 }
0x12a3   :  { %7060 = vmatpush1.bf16.msra.mxu1 %v7059_v20  ;;  %v6010_v20 = vld [vmem:[#allocation5 + $0x98] sm:$0xff]  ;;  %7078 = vmatprep.subr.bf16.mxu0 %v7077_v3 }
0x12a4   :  { %v5761_v31 = vsel %vm141_vm0, %v5757_v35, 0.0  ;;  %v7065_v35 = vpack.c.bf16 %v5889_v50, %v5887_v29  ;;  %v5994_v29 = vld [vmem:[#allocation5 + $0x18] sm:$0xff]  ;;  %v6011_v50 = vld [vmem:[#allocation5 + $0xa0] sm:$0xff] }
0x12a5   :  { %5762 = vadd.xlane.f32.xlu0 %v5761_v31  ;;  %v5886_v31 = vld [vmem:[%s9014_s11 + $0xa0] sm:$0xff] }
0x132d   :  { %v5760_v26 = vpop.xlane.xlu1 %5759 }
0x132e   :  { %v5764_v45 = vmul.f32 0.015625, %v5760_v26  ;;  %v5888_v26 = vld [vmem:[%s9014_s11 + $0xb0] sm:$0xff] }
0x1330   :  { %v5766_v52 = vadd.f32 1e-06, %v5764_v45  ;;  %v5891_v45 = vld [vmem:[%s9014_s11 + $0xc8] sm:$0xff] }
0x1332   :  { %7314 = vrsqrt.f32 %v5766_v52  ;;  %v5763_v47 = vpop.xlane.xlu0 %5762  ;;  %v5893_v52 = vld [vmem:[%s9014_s11 + $0xd8] sm:$0xff] }
0x1333   :  { %v5765_v6 = vmul.f32 0.015625, %v5763_v47  ;;  %v7067_v47 = vpack.c.bf16 %v5888_v26, %v5886_v31  ;;  %v6012_v26 = vld [vmem:[#allocation5 + $0xa8] sm:$0xff] }
0x1335   :  { %v5767_v8 = vadd.f32 1e-06, %v5765_v6  ;;  %v7069_v6 = vpack.c.bf16 %v5893_v52, %v5891_v45 }
0x1337   :  { %7316 = vrsqrt.f32 %v5767_v8  ;;  %v5890_v8 = vld [vmem:[%s9014_s11 + $0xc0] sm:$0xff] }
0x133c   :  { %v7315_v27 = vpop.eup %7314 }
0x133d   :  { %v5770_v7 = vmul.f32 %v7315_v27, %v5754_v1  ;;  %v7061_v1 = vpack.c.bf16 %v5885_v12, %v5883_v5  ;;  %v5895_v27 = vld [vmem:[%s9014_s11 + $0xe8] sm:$0xff]  ;;  %v6009_v12 = vld [vmem:[#allocation5 + $0x90] sm:$0xff] }
0x133e   :  { %v5992_v5 = vld [vmem:[#allocation5 + $0x8] sm:$0xff] }
0x133f   :  { %v5776_v28 = vmul.f32 %v5775_v57, %v5770_v7  ;;  %7062 = vmatprep.subr.bf16.mxu1 %v7061_v1  ;;  %v5897_v7 = vld [vmem:[%s9014_s11 + $0xf8] sm:$0xff]  ;;  %v7079_v1 = vpack.c.bf16 %v5992_v5, %v5991_v48  ;;  %v5898_v5 = vld [vmem:[%s9015_s12] sm:$0x3] }
0x1340   :  { %v6022_v48 = vld [vmem:[#allocation5 + $0xf8] sm:$0xff] }
0x1341   :  { %v5782_v59 = vadd.f32 %v5781_v11, %v5776_v28  ;;  %v7317_v43 = vpop.eup %7316  ;;  %v7073_v28 = vpack.c.bf16 %v5897_v7, %v5895_v27  ;;  %7080 = vmatpush3.bf16.msra.mxu0 %v7079_v1  ;;  %v5996_v27 = vld [vmem:[#allocation5 + $0x28] sm:$0xff]  ;;  %v6013_v7 = vld [vmem:[#allocation5 + $0xb0] sm:$0xff] }
0x1342   :  { %v5771_v4 = vmul.f32 %v7317_v43, %v5755_v24  ;;  %v7063_v24 = vpack.c.bf16 %v5884_v34, %v5882_v41  ;;  %v5896_v43 = vld [vmem:[%s9014_s11 + $0xf0] sm:$0xff]  ;;  %v7081_v41 = vpack.c.bf16 %v6010_v20, %v6009_v12  ;;  %v5903_v12 = vrot.slane %v5898_v5, %v7603_v39 }
0x1343   :  { %v5785_v2 = vsel %vm141_vm0, %v5782_v59, 0.0  ;;  %v5993_v34 = vld [vmem:[#allocation5 + $0x10] sm:$0xff]  ;;  %v5907_v20 = vrot.slane %v5898_v5, %v7643_v49 }
0x1344   :  { %5786 = vadd.xlane.f32.xlu1 %v5785_v2  ;;  %v5777_v0 = vmul.f32 %v5775_v57, %v5771_v4  ;;  %7064 = vmatpush1.bf16.msra.mxu1 %v7063_v24  ;;  %v5892_v57 = vld [vmem:[%s9014_s11 + $0xd0] sm:$0xff]  ;;  %v7083_v45 = vpack.c.bf16 %v5994_v29, %v5993_v34 }
0x1345   :  { %7066 = vmatprep.subr.bf16.mxu1 %v7065_v35  ;;  %7082 = vmatprep.subr.bf16.mxu0 %v7081_v41 }
0x1346   :  { %v5783_v17 = vadd.f32 %v5781_v11, %v5777_v0  ;;  %v7071_v11 = vpack.c.bf16 %v5892_v57, %v5890_v8  ;;  %v7085_v8 = vpack.c.bf16 %v6012_v26, %v6011_v50  ;;  %v5995_v57 = vld [vmem:[#allocation5 + $0x20] sm:$0xff]  ;;  %7084 = vmatpush3.bf16.msra.mxu0 %v7083_v45 }
0x1348   :  { %v5788_v53 = vsel %vm141_vm0, %v5783_v17, 0.0  ;;  %7068 = vmatpush1.bf16.msra.mxu1 %v7067_v47  ;;  %7086 = vmatprep.subr.bf16.mxu0 %v7085_v8 }
0x1349   :  { %5789 = vadd.xlane.f32.xlu0 %v5788_v53  ;;  %7070 = vmatprep.subr.bf16.mxu1 %v7069_v6 }
0x134c   :  { %7072 = vmatpush1.bf16.msra.mxu1 %v7071_v11  ;;  %v6014_v11 = vld [vmem:[#allocation5 + $0xb8] sm:$0xff] }
0x134d   :  { %7074 = vmatprep.subr.bf16.mxu1 %v7073_v28 }
0x13d1   :  { %v5787_v21 = vpop.xlane.xlu1 %5786 }
0x13d2   :  { %v5791_v30 = vmul.f32 0.015625, %v5787_v21 }
0x13d4   :  { %v8862_v33 = vsub.f32 %v5782_v59, %v5791_v30  ;;  %v5894_v59 = vld [vmem:[%s9014_s11 + $0xe0] sm:$0xff] }
0x13d5   :  { %v7075_v2 = vpack.c.bf16 %v5896_v43, %v5894_v59 }
0x13d6   :  { %v5795_v38 = vmul.f32 %v8862_v33, %v8862_v33  ;;  %v5790_v25 = vpop.xlane.xlu0 %5789 }
0x13d7   :  { %v5792_v13 = vmul.f32 0.015625, %v5790_v25  ;;  %7076 = vmatpush1.bf16.msra.mxu1 %v7075_v2  ;;  %v7087_v2 = vpack.c.bf16 %v5996_v27, %v5995_v57 }
0x13d8   :  { %v5797_v40 = vsel %vm141_vm0, %v5795_v38, 0.0  ;;  %v5784_v38 = vld [vmem:[%s9013_s10] sm:$0x3] }
0x13d9   :  { %5798 = vadd.xlane.f32.xlu1 %v5797_v40  ;;  %v8867_v32 = vsub.f32 %v5783_v17, %v5792_v13  ;;  %v5814_v25 = vrot.slane %v5784_v38, %v7603_v39  ;;  %7088 = vmatpush3.bf16.msra.mxu0 %v7087_v2  ;;  %v6293_v39 = vld [vmem:[%s9017_s14] ss:$0 sm:$0xff] }
0x13db   :  { %v5796_v14 = vmul.f32 %v8867_v32, %v8867_v32 }
0x13dd   :  { %v5800_v56 = vsel %vm141_vm0, %v5796_v14, 0.0  ;;  %v5820_v14 = vrot.slane %v5784_v38, %v7643_v49  ;;  %v6015_v38 = vld [vmem:[#allocation5 + $0xc0] sm:$0xff] }
0x13de   :  { %5801 = vadd.xlane.f32.xlu0 %v5800_v56 }
0x1466   :  { %v5799_v4 = vpop.xlane.xlu1 %5798 }
0x1467   :  { %v5803_v0 = vmul.f32 0.015625, %v5799_v4 }
0x1469   :  { %v5805_v17 = vadd.f32 1e-05, %v5803_v0 }
0x146b   :  { %7318 = vrsqrt.f32 %v5805_v17  ;;  %v5802_v53 = vpop.xlane.xlu0 %5801 }
0x146c   :  { %v5804_v21 = vmul.f32 0.015625, %v5802_v53  ;;  %v7089_v53 = vpack.c.bf16 %v6014_v11, %v6013_v7 }
0x146e   :  { %v5806_v30 = vadd.f32 1e-05, %v5804_v21  ;;  %v5997_v21 = vld [vmem:[#allocation5 + $0x30] sm:$0xff]  ;;  %7090 = vmatprep.subr.bf16.mxu0 %v7089_v53 }
0x1470   :  { %7320 = vrsqrt.f32 %v5806_v30  ;;  %v5998_v30 = vld [vmem:[#allocation5 + $0x38] sm:$0xff] }
0x1475   :  { %v7319_v40 = vpop.eup %7318 }
0x1476   :  { %v5809_v13 = vmul.f32 %v7319_v40, %v8862_v33 }
0x1478   :  { %v5815_v56 = vmul.f32 %v5814_v25, %v5809_v13 }
0x147a   :  { %v5821_v37 = vadd.f32 %v5820_v14, %v5815_v56  ;;  %v7321_v63 = vpop.eup %7320  ;;  %v7091_v56 = vpack.c.bf16 %v5998_v30, %v5997_v21 }
0x147b   :  { %v5810_v60 = vmul.f32 %v7321_v63, %v8867_v32 }
0x147c   :  { %v5840_v54 = vsel %vm141_vm0, %v5821_v37, -inf  ;;  %v5823_v10 = vsel %vm141_vm0, %v5821_v37, 0.0  ;;  %7092 = vmatpush3.bf16.msra.mxu0 %v7091_v56 }
0x147d   :  { %v5841_v62 = vrot.slane %v5840_v54, 4  ;;  %v5824_v58 = vrot.slane %v5823_v10, 4  ;;  %v5816_v46 = vmul.f32 %v5814_v25, %v5810_v60  ;;  %v6016_v25 = vld [vmem:[#allocation5 + $0xc8] sm:$0xff]  ;;  %v5999_v60 = vld [vmem:[#allocation5 + $0x40] sm:$0xff] }
0x147e   :  { %v7093_v63 = vpack.c.bf16 %v6016_v25, %v6015_v38 }
0x147f   :  { %v5842_v15 = vmax.f32 %v5840_v54, %v5841_v62  ;;  %v5825_v16 = vadd.f32 %v5824_v58, %v5823_v10  ;;  %v5822_v19 = vadd.f32 %v5820_v14, %v5816_v46  ;;  %v6000_v62 = vld [vmem:[#allocation5 + $0x48] sm:$0xff]  ;;  %v6017_v46 = vld [vmem:[#allocation5 + $0xd0] sm:$0xff] }
0x1480   :  { %7094 = vmatprep.subr.bf16.mxu0 %v7093_v63  ;;  %v7095_v58 = vpack.c.bf16 %v6000_v62, %v5999_v60 }
0x1481   :  { %v5826_v9 = vrot.slane %v5825_v16, 2  ;;  %v5843_v36 = vrot.slane %v5842_v15, 2  ;;  %v5847_v33 = vsel %vm141_vm0, %v5822_v19, -inf  ;;  %v5830_v18 = vsel %vm141_vm0, %v5822_v19, 0.0  ;;  %v6001_v19 = vld [vmem:[#allocation5 + $0x50] sm:$0xff] }
0x1482   :  { %v5848_v55 = vrot.slane %v5847_v33, 4  ;;  %v5831_v61 = vrot.slane %v5830_v18, 4  ;;  %7096 = vmatpush3.bf16.msra.mxu0 %v7095_v58 }
0x1483   :  { %v5827_v51 = vadd.f32 %v5826_v9, %v5825_v16  ;;  %v5844_v23 = vmax.f32 %v5842_v15, %v5843_v36  ;;  %v6018_v15 = vld [vmem:[#allocation5 + $0xd8] sm:$0xff] }
0x1484   :  { %v5849_v32 = vmax.f32 %v5847_v33, %v5848_v55  ;;  %v5832_v22 = vadd.f32 %v5831_v61, %v5830_v18  ;;  %v7097_v16 = vpack.c.bf16 %v6018_v15, %v6017_v46  ;;  %v6002_v9 = vld [vmem:[#allocation5 + $0x58] sm:$0xff]  ;;  %v6019_v33 = vld [vmem:[#allocation5 + $0xe0] sm:$0xff]  ;;  %v6020_v18 = vld [vmem:[#allocation5 + $0xe8] sm:$0xff] }
0x1485   :  { %v5828_v35 = vrot.slane %v5827_v51, 1  ;;  %v5845_v52 = vrot.slane %v5844_v23, 1  ;;  %v7099_v36 = vpack.c.bf16 %v6002_v9, %v6001_v19  ;;  %v7101_v55 = vpack.c.bf16 %v6020_v18, %v6019_v33  ;;  %v6004_v61 = vld [vmem:[#allocation5 + $0x68] sm:$0xff] }
0x1486   :  { %v5850_v24 = vrot.slane %v5849_v32, 2  ;;  %v5833_v31 = vrot.slane %v5832_v22, 2  ;;  %7098 = vmatprep.subr.bf16.mxu0 %v7097_v16 }
0x1487   :  { %v5829_v59 = vadd.f32 %v5828_v35, %v5827_v51  ;;  %v5846_v4 = vmax.f32 %v5844_v23, %v5845_v52  ;;  %7100 = vmatpush3.bf16.msra.mxu0 %v7099_v36  ;;  %v6003_v51 = vld [vmem:[#allocation5 + $0x60] sm:$0xff]  ;;  %v7105_v23 = vpack.c.bf16 %v6022_v48, %v6021_v42 }
0x1488   :  { %v5851_v47 = vmax.f32 %v5849_v32, %v5850_v24  ;;  %v5834_v6 = vadd.f32 %v5833_v31, %v5832_v22  ;;  %v7103_v44 = vpack.c.bf16 %v6004_v61, %v6003_v51  ;;  %7102 = vmatprep.subr.bf16.mxu0 %v7101_v55  ;;  %v6005_v32 = vld [vmem:[#allocation5 + $0x70] sm:$0xff]  ;;  %v6006_v22 = vld [vmem:[#allocation5 + $0x78] sm:$0xff] }
0x1489   :  { %v5838_v13 = vmul.f32 0.125, %v5829_v59  ;;  %v7107_v3 = vpack.c.bf16 %v6006_v22, %v6005_v32 }
0x148a   :  { %v5852_v28 = vrot.slane %v5851_v47, 1  ;;  %v5835_v43 = vrot.slane %v5834_v6, 1 }
0x148b   :  { %7104 = vmatpush3.bf16.msra.mxu0 %v7103_v44 }
0x148c   :  { %v5853_v0 = vmax.f32 %v5851_v47, %v5852_v28  ;;  %v5836_v17 = vadd.f32 %v5835_v43, %v5834_v6  ;;  %7106 = vmatprep.subr.bf16.mxu0 %v7105_v23 }
0x148e   :  { %v5861_v40 = vsel %vm5856_vm2, %v5853_v0, %v5846_v4  ;;  %v5839_v14 = vmul.f32 0.125, %v5836_v17 }
0x148f   :  { %5862 = vrot.lane.b32.xlu1 %v5861_v40, %s7402_s23  ;;  %7108 = vmatpush3.bf16.msra.mxu0 %v7107_v3 }
0x1490   :  { %v5857_v37 = vsel %vm5856_vm2, %v5839_v14, %v5838_v13 }
0x1501   :  { %v5863_v54 = vpop.permute.xlu1 %5862 }
0x1502   :  { %v5865_v10 = vsel %vm141_vm0, %v5857_v37, %v5863_v54 }
0x1503   :  { %5975 = vmatmul.mubr.f32.vlgmr.msra.gmra.mrb[70].mxu1 %v5865_v10 }
0x15d6   :  { %v5976_v1 = vpop.f32.mrb[70].mxu1 }
0x15d7   :  { %v5977_v41 = vadd.f32 %v5976_v1, %v5903_v12  ;;  %v5978_v34 = vpop.f32.mrb[71].mxu1 }
0x15d8   :  { %v5979_v29 = vadd.f32 %v5978_v34, %v5907_v20 }
0x15d9   :  { %v5981_v50 = vadd.f32 3.0, %v5977_v41 }
0x15da   :  { %v5982_v24 = vadd.f32 3.0, %v5979_v29 }
0x15db   :  { %v5983_v35 = vmax.f32 %v5981_v50, 0.0 }
0x15dc   :  { %v5984_v31 = vmax.f32 %v5982_v24, 0.0 }
0x15dd   :  { %v5985_v26 = vmin.f32 %v5983_v35, 6.0 }
0x15de   :  { %v5986_v45 = vmin.f32 %v5984_v31, 6.0 }
0x15df   :  { %v5987_v52 = vmul.f32 %v5985_v26, %v5977_v41 }
0x15e0   :  { %v5988_v47 = vmul.f32 %v5986_v45, %v5979_v29 }
0x15e1   :  { %v5989_v8 = vmul.f32 0.16666667, %v5987_v52 }
0x15e2   :  { %v5990_v6 = vmul.f32 0.16666667, %v5988_v47 }
0x15e4   :  { %6094 = vmatprep.mubr.f32.mxu0 %v5990_v6 }
0x15e5   :  { %6095 = vmatmul.mubr.f32.vlgmr.msra.gmra.mrb[58].mxu0 %v5989_v8 }
0x16b8   :  { %v6550_v57 = vpop.f32.mrb[58].mxu0 }
0x16b9   :  { %v6551_v49 = vpop.f32.mrb[59].mxu0 }
0x16ba   :  { %v6552_v27 = vadd.f32 %v6551_v49, %v6550_v57 }
0x16bc   :  { %v6097_v7 = vadd.f32 %v6552_v27, %v6293_v39 }
0x16be   :  { %6100 = vst [vmem:[#allocation7] sm:$0x3] %v6097_v7 }
0x16bf   :  { %7377 = shalt.err (!%p7374_p6)
}
0x16c0   :  { %s7378_s5 = scalar_lea.hbm %s9018_s15, 32 }
0x16c1   :  { %p7379_p7 = scmp.ne.s32.totalorder %s9018_s15, %s7378_s5  ;;  %p7382_p8 = scmp.lt.u32.totalorder %s7378_s5, %s9018_s15 }
0x16c3   :  { %p7384_p9 = pnand %p7382_p8, %p7379_p7 }
0x16c5   :  { %7387 = shalt.err (!%p7384_p9)
}
0x16c6   :  { %6110 = dma.vmem_to_hbm [thread:$0]  %s6108_s24, 32, %s9018_s15, [#allocation4]  }
0x16c7   :  { %7392 = dma.done.wait [#allocation4], 32  }
0x16c8   :  { %7393 = vsyncadd [#allocation4], 4294967264 }
0x16c9   :  { %6114 = vsyncpa [#allocation3], 1 }
0x16ca   :  { %6115 = vsyncpa [#allocation6], 1 }
0x16cb   :  { %6116 = vsyncpa [#allocation4], 1 }

</bundles_post_ra>
